<compile_context>
chip_gen: v7x
topology: tpu7x:2x2x1
jax: 0.10.0
libtpu: 0.0.40
codegen_flags: <defaults>
</compile_context>

<pallas_src>
import jax
import jax.numpy as jnp
from jax.experimental import pallas as pl
from jax.experimental.pallas import tpu as pltpu


# ----------------------------------------------------------------------------
# Pallas kernels: tiled matmul + shift + ReLU  (BN scale pre-folded into W)
# ----------------------------------------------------------------------------
def matmul_shift_relu_kernel(x_ref, w_ref, shift_ref, o_ref):
    """Single-K-step variant (no scratch): o = relu(x @ w + shift)."""
    y = jnp.dot(x_ref[...], w_ref[...], preferred_element_type=jnp.float32)
    y = y + shift_ref[...]
    o_ref[...] = jnp.maximum(y, 0.0).astype(o_ref.dtype)


def matmul_shift_relu_acc_kernel(x_ref, w_ref, shift_ref, o_ref, acc_ref):
    """Multi-K-step variant: acc initialized with shift, ReLU at the last step."""
    @pl.when(pl.program_id(2) == 0)
    def _():
        acc_ref[...] = jnp.broadcast_to(shift_ref[...], acc_ref.shape)

    acc_ref[...] += jnp.dot(
        x_ref[...], w_ref[...], preferred_element_type=jnp.float32
    )

    @pl.when(pl.program_id(2) == pl.num_programs(2) - 1)
    def _():
        o_ref[...] = jnp.maximum(acc_ref[...], 0.0).astype(o_ref.dtype)


# ----------------------------------------------------------------------------
# Tiling helpers
# ----------------------------------------------------------------------------
def _round_up(v, m):
    return (v + m - 1) // m * m


def _pick_tile(padded_dim, cap):
    """Largest multiple-of-128 divisor of padded_dim that is <= cap."""
    best = 128
    t = 128
    while t <= min(padded_dim, cap):
        if padded_dim % t == 0:
            best = t
        t += 128
    return best


def _pick_k_tile(kp, cap=2048):
    """Full K when it fits (single K step); else largest mult-of-128 divisor."""
    if kp <= cap:
        return kp
    return _pick_tile(kp, cap)


def _pad2d(a, rows, cols):
    r, c = a.shape
    if r == rows and c == cols:
        return a
    return jnp.pad(a, ((0, rows - r), (0, cols - c)))


def _matmul_shift_relu(x, w, shift, out_dtype=jnp.float32):
    """out = relu(x @ w + shift), tiled on the MXU; x/w bf16, accum f32."""
    m, k = x.shape
    k2, n = w.shape
    assert k == k2

    mp = _round_up(m, 128)
    kp = _round_up(k, 128)
    np_ = _round_up(n, 128)

    tm = _pick_tile(mp, 512)
    tk = _pick_k_tile(kp, 2048)
    tn = _pick_tile(np_, 512)
    # Ensure >=2 parallel (M,N) grid steps when possible so both v7x cores work.
    if (mp // tm) * (np_ // tn) < 2 and np_ >= 256:
        tn = _pick_tile(np_, np_ // 2)

    xp = _pad2d(x.astype(jnp.bfloat16), mp, kp)
    wp = _pad2d(w.astype(jnp.bfloat16), kp, np_)
    sp = _pad2d(shift.reshape(1, n).astype(jnp.float32), 1, np_)

    if tk == kp:
        # Single K step: no f32 scratch, dot + shift + ReLU straight to output.
        out = pl.pallas_call(
            matmul_shift_relu_kernel,
            out_shape=jax.ShapeDtypeStruct((mp, np_), out_dtype),
            grid=(mp // tm, np_ // tn),
            in_specs=[
                pl.BlockSpec((tm, tk), lambda i, j: (i, 0)),
                pl.BlockSpec((tk, tn), lambda i, j: (0, j)),
                pl.BlockSpec((1, tn), lambda i, j: (0, j)),
            ],
            out_specs=pl.BlockSpec((tm, tn), lambda i, j: (i, j)),
            compiler_params=pltpu.CompilerParams(
                dimension_semantics=("parallel", "parallel")
            ),
        )(xp, wp, sp)
    else:
        out = pl.pallas_call(
            matmul_shift_relu_acc_kernel,
            out_shape=jax.ShapeDtypeStruct((mp, np_), out_dtype),
            grid=(mp // tm, np_ // tn, kp // tk),  # K last (reduction)
            in_specs=[
                pl.BlockSpec((tm, tk), lambda i, j, kk: (i, kk)),
                pl.BlockSpec((tk, tn), lambda i, j, kk: (kk, j)),
                pl.BlockSpec((1, tn), lambda i, j, kk: (0, j)),
            ],
            out_specs=pl.BlockSpec((tm, tn), lambda i, j, kk: (i, j)),
            scratch_shapes=[pltpu.VMEM((tm, tn), jnp.float32)],
            compiler_params=pltpu.CompilerParams(
                dimension_semantics=("parallel", "parallel", "arbitrary")
            ),
        )(xp, wp, sp)
    return out[:m, :n]


# ----------------------------------------------------------------------------
# JAX glue: im2col (layout plumbing only) + BasicConv2d wrapper
# ----------------------------------------------------------------------------
def _im2col(x_nhwc, kh, kw, stride, pad_h, pad_w):
    n, _, _, c = x_nhwc.shape
    if pad_h or pad_w:
        x_nhwc = jnp.pad(
            x_nhwc, ((0, 0), (pad_h, pad_h), (pad_w, pad_w), (0, 0))
        )
    hp, wp = x_nhwc.shape[1], x_nhwc.shape[2]
    ho = (hp - kh) // stride + 1
    wo = (wp - kw) // stride + 1
    cols = []
    for ih in range(kh):
        for iw in range(kw):
            cols.append(
                x_nhwc[
                    :,
                    ih : ih + (ho - 1) * stride + 1 : stride,
                    iw : iw + (wo - 1) * stride + 1 : stride,
                    :,
                ]
            )
    patches = jnp.stack(cols, axis=3)  # (N, Ho, Wo, kh*kw, C)
    return patches.reshape(n * ho * wo, kh * kw * c), ho, wo


def conv_bn_relu(x_nhwc, wmat, shift, kh, kw, *, padding=(0, 0),
                 out_dtype=jnp.float32):
    """BasicConv2d forward with a prepared (scale-folded, bf16) weight matrix."""
    n, h, w_sp, c = x_nhwc.shape
    xb = x_nhwc.astype(jnp.bfloat16)
    if kh == 1 and kw == 1:
        patches, ho, wo = xb.reshape(n * h * w_sp, c), h, w_sp
    else:
        patches, ho, wo = _im2col(xb, kh, kw, 1, padding[0], padding[1])
    out = _matmul_shift_relu(patches, wmat, shift, out_dtype)
    return out.reshape(n, ho, wo, wmat.shape[1])


# ----------------------------------------------------------------------------
# Parameter init (deterministic, synthetic; BN running stats folded) + prep
# ----------------------------------------------------------------------------
def make_basic_conv_params(key, in_ch, out_ch, ksize, eps=0.001):
    if isinstance(ksize, int):
        ksize = (ksize, ksize)
    kw_w, kw_g, kw_b, kw_m, kw_v = jax.random.split(key, 5)
    w = jax.random.normal(kw_w, (out_ch, in_ch, ksize[0], ksize[1]), jnp.float32) * 0.05
    gamma = jax.random.uniform(kw_g, (out_ch,), jnp.float32, 0.5, 1.5)
    beta = jax.random.normal(kw_b, (out_ch,), jnp.float32) * 0.1
    mean = jax.random.normal(kw_m, (out_ch,), jnp.float32) * 0.1
    var = jax.random.uniform(kw_v, (out_ch,), jnp.float32, 0.5, 1.5)
    scale = gamma / jnp.sqrt(var + eps)
    shift = beta - mean * scale
    return {"w": w, "scale": scale, "shift": shift}


def init_inception_e_params(key, in_channels):
    k = jax.random.split(key, 9)
    return {
        "branch1x1": make_basic_conv_params(k[0], in_channels, 320, 1),
        "branch3x3_1": make_basic_conv_params(k[1], in_channels, 384, 1),
        "branch3x3_2a": make_basic_conv_params(k[2], 384, 384, (1, 3)),
        "branch3x3_2b": make_basic_conv_params(k[3], 384, 384, (3, 1)),
        "branch3x3dbl_1": make_basic_conv_params(k[4], in_channels, 448, 1),
        "branch3x3dbl_2": make_basic_conv_params(k[5], 448, 384, 3),
        "branch3x3dbl_3a": make_basic_conv_params(k[6], 384, 384, (1, 3)),
        "branch3x3dbl_3b": make_basic_conv_params(k[7], 384, 384, (3, 1)),
        "branch_pool": make_basic_conv_params(k[8], in_channels, 192, 1),
    }


def _prep_conv(p):
    """(Cout,Cin,kh,kw) -> (kh*kw*Cin, Cout) matmul weight with BN scale folded."""
    cout, cin, kh, kw = p["w"].shape
    wmat = jnp.transpose(p["w"], (2, 3, 1, 0)).reshape(kh * kw * cin, cout)
    wmat = (wmat * p["scale"][None, :]).astype(jnp.bfloat16)
    return {"wmat": wmat, "shift": p["shift"].astype(jnp.float32)}


def prepare_inception_e_params(raw):
    """One-time prep: transpose/fold/cast weights, fuse the same-input 1x1s."""
    prep = {k: _prep_conv(v) for k, v in raw.items()}
    # branch1x1 (320) + branch3x3_1 (384) + branch3x3dbl_1 (448) = 1152 cols.
    prep["fused1x1"] = {
        "wmat": jnp.concatenate(
            [prep["branch1x1"]["wmat"], prep["branch3x3_1"]["wmat"],
             prep["branch3x3dbl_1"]["wmat"]], axis=1),
        "shift": jnp.concatenate(
            [prep["branch1x1"]["shift"], prep["branch3x3_1"]["shift"],
             prep["branch3x3dbl_1"]["shift"]]),
    }
    return prep


# ----------------------------------------------------------------------------
# InceptionE forward (Pallas)
# ----------------------------------------------------------------------------
def inception_e_forward(prepared, x_nchw):
    x = jnp.transpose(x_nchw, (0, 2, 3, 1))  # NCHW -> NHWC
    h, w_sp = x.shape[1], x.shape[2]

    # One fused 1152-wide 1x1 matmul for the three branches that read x.
    # Output in bf16: the 384/448-channel slices immediately feed further convs.
    f = prepared["fused1x1"]
    fused = conv_bn_relu(x, f["wmat"], f["shift"], 1, 1, out_dtype=jnp.bfloat16)
    b1 = fused[..., 0:320].astype(jnp.float32)      # branch1x1 (module output)
    b3 = fused[..., 320:704]                        # branch3x3_1 (bf16, interm.)
    d = fused[..., 704:1152]                        # branch3x3dbl_1 (bf16, interm.)

    p = prepared["branch3x3_2a"]
    b3a = conv_bn_relu(b3, p["wmat"], p["shift"], 1, 3, padding=(0, 1))
    p = prepared["branch3x3_2b"]
    b3b = conv_bn_relu(b3, p["wmat"], p["shift"], 3, 1, padding=(1, 0))

    p = prepared["branch3x3dbl_2"]
    d = conv_bn_relu(d, p["wmat"], p["shift"], 3, 3, padding=(1, 1),
                     out_dtype=jnp.bfloat16)        # feeds 3a/3b -> bf16
    p = prepared["branch3x3dbl_3a"]
    da = conv_bn_relu(d, p["wmat"], p["shift"], 1, 3, padding=(0, 1))
    p = prepared["branch3x3dbl_3b"]
    db = conv_bn_relu(d, p["wmat"], p["shift"], 3, 1, padding=(1, 0))

    # branch_pool: avg_pool2d(3, stride=1, pad=1, count_include_pad=True) as a
    # cheap VPU pass (9 shifted adds), then a plain 1x1 conv on the MXU.
    xp = jnp.pad(x, ((0, 0), (1, 1), (1, 1), (0, 0)))
    pooled = jnp.zeros_like(x)
    for ih in range(3):
        for iw in range(3):
            pooled = pooled + xp[:, ih:ih + h, iw:iw + w_sp, :]
    pooled = pooled * (1.0 / 9.0)
    p = prepared["branch_pool"]
    bp = conv_bn_relu(pooled, p["wmat"], p["shift"], 1, 1)

    # Single channel concat (PyTorch order: 1x1, 3x3(a,b), 3x3dbl(a,b), pool).
    out = jnp.concatenate([b1, b3a, b3b, da, db, bp], axis=-1)
    return jnp.transpose(out, (0, 3, 1, 2))  # NHWC -> NCHW


# ----------------------------------------------------------------------------
# Pure-JAX reference (f32) for validation (uses raw, un-prepared params)
# ----------------------------------------------------------------------------
def _conv_ref(x_nhwc, w_oihw, scale, shift, padding=(0, 0)):
    w_hwio = jnp.transpose(w_oihw, (2, 3, 1, 0))
    y = jax.lax.conv_general_dilated(
        x_nhwc, w_hwio, window_strides=(1, 1),
        padding=((padding[0], padding[0]), (padding[1], padding[1])),
        dimension_numbers=("NHWC", "HWIO", "NHWC"))
    return jnp.maximum(y * scale + shift, 0.0)


def inception_e_ref(params, x_nchw):
    x = jnp.transpose(x_nchw, (0, 2, 3, 1))
    p = params["branch1x1"]
    b1 = _conv_ref(x, p["w"], p["scale"], p["shift"])
    p = params["branch3x3_1"]
    b3 = _conv_ref(x, p["w"], p["scale"], p["shift"])
    pa, pb = params["branch3x3_2a"], params["branch3x3_2b"]
    b3 = jnp.concatenate(
        [_conv_ref(b3, pa["w"], pa["scale"], pa["shift"], (0, 1)),
         _conv_ref(b3, pb["w"], pb["scale"], pb["shift"], (1, 0))], axis=-1)
    p = params["branch3x3dbl_1"]
    d = _conv_ref(x, p["w"], p["scale"], p["shift"])
    p = params["branch3x3dbl_2"]
    d = _conv_ref(d, p["w"], p["scale"], p["shift"], (1, 1))
    pa, pb = params["branch3x3dbl_3a"], params["branch3x3dbl_3b"]
    d = jnp.concatenate(
        [_conv_ref(d, pa["w"], pa["scale"], pa["shift"], (0, 1)),
         _conv_ref(d, pb["w"], pb["scale"], pb["shift"], (1, 0))], axis=-1)
    pool = jax.lax.reduce_window(
        x, 0.0, jax.lax.add, (1, 3, 3, 1), (1, 1, 1, 1),
        padding=((0, 0), (1, 1), (1, 1), (0, 0))) / 9.0
    p = params["branch_pool"]
    bp = _conv_ref(pool, p["w"], p["scale"], p["shift"])
    out = jnp.concatenate([b1, b3, d, bp], axis=-1)
    return jnp.transpose(out, (0, 3, 1, 2))


# ----------------------------------------------------------------------------
if __name__ == "__main__":
    key = jax.random.PRNGKey(0)
    k_param, k_x = jax.random.split(key)

    batch, in_channels, spatial = 2, 8, 8
    x = jax.random.normal(k_x, (batch, in_channels, spatial, spatial), jnp.float32)
    raw_params = init_inception_e_params(k_param, in_channels)
    prepared = prepare_inception_e_params(raw_params)   # one-time weight prep

    fwd = jax.jit(inception_e_forward)
    out = jax.block_until_ready(fwd(prepared, x))

    # Expected: (2, 320 + 768 + 768 + 192, 8, 8) = (2, 2048, 8, 8)
    expected_shape = (batch, 320 + 768 + 768 + 192, spatial, spatial)
    assert out.shape == expected_shape, (out.shape, expected_shape)
    assert bool(jnp.all(jnp.isfinite(out)))
    assert bool(jnp.all(out >= 0.0))  # every branch ends in ReLU

    ref = jax.block_until_ready(jax.jit(inception_e_ref)(raw_params, x))
    max_err = float(jnp.max(jnp.abs(out - ref)))
    assert max_err < 0.1, f"max abs err vs f32 reference: {max_err}"

    print("KERNEL_OK")
</pallas_src>

<mosaic_0001>
module attributes {stable_mosaic.version = 11 : i64} {
  func.func @matmul_shift_relu_kernel(%arg0: i32, %arg1: i32, %arg2: memref<128x128xbf16, #tpu.memory_space<vmem>>, %arg3: memref<128x384xbf16, #tpu.memory_space<vmem>>, %arg4: memref<1x384xf32, #tpu.memory_space<vmem>>, %arg5: memref<128x384xbf16, #tpu.memory_space<vmem>>) attributes {dimension_semantics = [#tpu.dimension_semantics<parallel>, #tpu.dimension_semantics<parallel>], iteration_bounds = array<i64: 1, 3>, scalar_prefetch = 0 : i64, scratch_operands = 0 : i64, tpu.core_type = #tpu.core_type<tc>, window_params = [{transform_indices = @transform_0, window_bounds = array<i64: 128, 128>}, {transform_indices = @transform_1, window_bounds = array<i64: 128, 384>}, {transform_indices = @transform_2, window_bounds = array<i64: 1, 384>}, {transform_indices = @transform_3, window_bounds = array<i64: 128, 384>}]} {
    %c0 = arith.constant 0 : index
    %c0_0 = arith.constant 0 : index
    %0 = vector.load %arg2[%c0, %c0_0] : memref<128x128xbf16, #tpu.memory_space<vmem>>, vector<128x128xbf16>
    %c0_1 = arith.constant 0 : index
    %c0_2 = arith.constant 0 : index
    %1 = vector.load %arg3[%c0_1, %c0_2] : memref<128x384xbf16, #tpu.memory_space<vmem>>, vector<128x384xbf16>
    %cst = arith.constant dense<0.000000e+00> : vector<128x384xf32>
    %2 = tpu.matmul %0, %1, %cst {dimension_numbers = #tpu.dot_dimension_numbers<[1], [0], [0], [1], [0, 0, 1, 1], [], []>} : vector<128x128xbf16>, vector<128x384xbf16>, vector<128x384xf32> -> vector<128x384xf32>
    %c0_3 = arith.constant 0 : index
    %c0_4 = arith.constant 0 : index
    %3 = vector.load %arg4[%c0_3, %c0_4] : memref<1x384xf32, #tpu.memory_space<vmem>>, vector<1x384xf32>
    %4 = vector.broadcast %3 : vector<1x384xf32> to vector<128x384xf32>
    %5 = arith.addf %2, %4 : vector<128x384xf32>
    %cst_5 = arith.constant 0.000000e+00 : f32
    %6 = vector.broadcast %cst_5 : f32 to vector<128x384xf32>
    %7 = arith.maximumf %5, %6 : vector<128x384xf32>
    %8 = arith.truncf %7 : vector<128x384xf32> to vector<128x384xbf16>
    %c0_6 = arith.constant 0 : index
    %c0_7 = arith.constant 0 : index
    %9 = vector.load %arg5[%c0_6, %c0_7] : memref<128x384xbf16, #tpu.memory_space<vmem>>, vector<128x384xbf16>
    tpu.vector_store %arg5[%c0_6, %c0_7], %8 {strides = array<i32>} : memref<128x384xbf16, #tpu.memory_space<vmem>>, vector<128x384xbf16>,
    return
  }
  func.func @transform_0(%arg0: i32, %arg1: i32) -> (i32, i32) {
    %c0_i32 = arith.constant 0 : i32
    %c0_i32_0 = arith.constant 0 : i32
    return %arg0, %c0_i32 : i32, i32
  }
  func.func @transform_1(%arg0: i32, %arg1: i32) -> (i32, i32) {
    %c0_i32 = arith.constant 0 : i32
    %c0_i32_0 = arith.constant 0 : i32
    return %c0_i32, %arg1 : i32, i32
  }
  func.func @transform_2(%arg0: i32, %arg1: i32) -> (i32, i32) {
    %c0_i32 = arith.constant 0 : i32
    %c0_i32_0 = arith.constant 0 : i32
    return %c0_i32, %arg1 : i32, i32
  }
  func.func @transform_3(%arg0: i32, %arg1: i32) -> (i32, i32) {
    %c0_i32 = arith.constant 0 : i32
    return %arg0, %arg1 : i32, i32
  }
}

module attributes {stable_mosaic.version = 11 : i64} {
  func.func @matmul_shift_relu_acc_kernel(%arg0: i32, %arg1: i32, %arg2: i32, %arg3: memref<128x2048xbf16, #tpu.memory_space<vmem>>, %arg4: memref<2048x128xbf16, #tpu.memory_space<vmem>>, %arg5: memref<1x128xf32, #tpu.memory_space<vmem>>, %arg6: memref<128x128xbf16, #tpu.memory_space<vmem>>, %arg7: memref<128x128xf32, #tpu.memory_space<vmem>>) attributes {dimension_semantics = [#tpu.dimension_semantics<parallel>, #tpu.dimension_semantics<parallel>, #tpu.dimension_semantics<arbitrary>], iteration_bounds = array<i64: 1, 3, 2>, scalar_prefetch = 0 : i64, scratch_operands = 1 : i64, tpu.core_type = #tpu.core_type<tc>, window_params = [{transform_indices = @transform_0, window_bounds = array<i64: 128, 2048>}, {transform_indices = @transform_1, window_bounds = array<i64: 2048, 128>}, {transform_indices = @transform_2, window_bounds = array<i64: 1, 128>}, {transform_indices = @transform_3, window_bounds = array<i64: 128, 128>}]} {
    %c0_i32 = arith.constant 0 : i32
    %0 = arith.cmpi eq, %arg2, %c0_i32 : i32
    %1 = arith.extui %0 : i1 to i32
    %c0_i32_0 = arith.constant 0 : i32
    %2 = arith.cmpi ne, %1, %c0_i32_0 : i32
    scf.if %2 {
      %c0_9 = arith.constant 0 : index
      %c0_10 = arith.constant 0 : index
      %12 = vector.load %arg5[%c0_9, %c0_10] : memref<1x128xf32, #tpu.memory_space<vmem>>, vector<1x128xf32>
      %13 = vector.shape_cast %12 : vector<1x128xf32> to vector<1x128xf32>
      %14 = vector.broadcast %13 : vector<1x128xf32> to vector<128x128xf32>
      %c0_11 = arith.constant 0 : index
      %c0_12 = arith.constant 0 : index
      %15 = vector.load %arg7[%c0_11, %c0_12] : memref<128x128xf32, #tpu.memory_space<vmem>>, vector<128x128xf32>
      tpu.vector_store %arg7[%c0_11, %c0_12], %14 {strides = array<i32>} : memref<128x128xf32, #tpu.memory_space<vmem>>, vector<128x128xf32>,
    } else {
    }
    %c0 = arith.constant 0 : index
    %c0_1 = arith.constant 0 : index
    %3 = vector.load %arg7[%c0, %c0_1] : memref<128x128xf32, #tpu.memory_space<vmem>>, vector<128x128xf32>
    %c0_2 = arith.constant 0 : index
    %c0_3 = arith.constant 0 : index
    %4 = vector.load %arg3[%c0_2, %c0_3] : memref<128x2048xbf16, #tpu.memory_space<vmem>>, vector<128x2048xbf16>
    %c0_4 = arith.constant 0 : index
    %c0_5 = arith.constant 0 : index
    %5 = vector.load %arg4[%c0_4, %c0_5] : memref<2048x128xbf16, #tpu.memory_space<vmem>>, vector<2048x128xbf16>
    %cst = arith.constant dense<0.000000e+00> : vector<128x128xf32>
    %6 = tpu.matmul %4, %5, %cst {dimension_numbers = #tpu.dot_dimension_numbers<[1], [0], [0], [1], [0, 0, 1, 1], [], []>} : vector<128x2048xbf16>, vector<2048x128xbf16>, vector<128x128xf32> -> vector<128x128xf32>
    %7 = arith.addf %3, %6 : vector<128x128xf32>
    %c0_6 = arith.constant 0 : index
    %c0_7 = arith.constant 0 : index
    %8 = vector.load %arg7[%c0_6, %c0_7] : memref<128x128xf32, #tpu.memory_space<vmem>>, vector<128x128xf32>
    tpu.vector_store %arg7[%c0_6, %c0_7], %7 {strides = array<i32>} : memref<128x128xf32, #tpu.memory_space<vmem>>, vector<128x128xf32>,
    %c1_i32 = arith.constant 1 : i32
    %9 = arith.cmpi eq, %arg2, %c1_i32 : i32
    %10 = arith.extui %9 : i1 to i32
    %c0_i32_8 = arith.constant 0 : i32
    %11 = arith.cmpi ne, %10, %c0_i32_8 : i32
    scf.if %11 {
      %c0_9 = arith.constant 0 : index
      %c0_10 = arith.constant 0 : index
      %12 = vector.load %arg7[%c0_9, %c0_10] : memref<128x128xf32, #tpu.memory_space<vmem>>, vector<128x128xf32>
      %cst_11 = arith.constant 0.000000e+00 : f32
      %13 = vector.broadcast %cst_11 : f32 to vector<128x128xf32>
      %14 = arith.maximumf %12, %13 : vector<128x128xf32>
      %15 = arith.truncf %14 : vector<128x128xf32> to vector<128x128xbf16>
      %c0_12 = arith.constant 0 : index
      %c0_13 = arith.constant 0 : index
      %16 = vector.load %arg6[%c0_12, %c0_13] : memref<128x128xbf16, #tpu.memory_space<vmem>>, vector<128x128xbf16>
      tpu.vector_store %arg6[%c0_12, %c0_13], %15 {strides = array<i32>} : memref<128x128xbf16, #tpu.memory_space<vmem>>, vector<128x128xbf16>,
    } else {
    }
    return
  }
  func.func @transform_0(%arg0: i32, %arg1: i32, %arg2: i32) -> (i32, i32) {
    %c0_i32 = arith.constant 0 : i32
    return %arg0, %arg2 : i32, i32
  }
  func.func @transform_1(%arg0: i32, %arg1: i32, %arg2: i32) -> (i32, i32) {
    %c0_i32 = arith.constant 0 : i32
    return %arg2, %arg1 : i32, i32
  }
  func.func @transform_2(%arg0: i32, %arg1: i32, %arg2: i32) -> (i32, i32) {
    %c0_i32 = arith.constant 0 : i32
    %c0_i32_0 = arith.constant 0 : i32
    return %c0_i32, %arg1 : i32, i32
  }
  func.func @transform_3(%arg0: i32, %arg1: i32, %arg2: i32) -> (i32, i32) {
    %c0_i32 = arith.constant 0 : i32
    return %arg0, %arg1 : i32, i32
  }
}

module attributes {stable_mosaic.version = 11 : i64} {
  func.func @matmul_shift_relu_kernel(%arg0: i32, %arg1: i32, %arg2: memref<128x1152xbf16, #tpu.memory_space<vmem>>, %arg3: memref<1152x128xbf16, #tpu.memory_space<vmem>>, %arg4: memref<1x128xf32, #tpu.memory_space<vmem>>, %arg5: memref<128x128xf32, #tpu.memory_space<vmem>>) attributes {dimension_semantics = [#tpu.dimension_semantics<parallel>, #tpu.dimension_semantics<parallel>], iteration_bounds = array<i64: 1, 3>, scalar_prefetch = 0 : i64, scratch_operands = 0 : i64, tpu.core_type = #tpu.core_type<tc>, window_params = [{transform_indices = @transform_0, window_bounds = array<i64: 128, 1152>}, {transform_indices = @transform_1, window_bounds = array<i64: 1152, 128>}, {transform_indices = @transform_2, window_bounds = array<i64: 1, 128>}, {transform_indices = @transform_3, window_bounds = array<i64: 128, 128>}]} {
    %c0 = arith.constant 0 : index
    %c0_0 = arith.constant 0 : index
    %0 = vector.load %arg2[%c0, %c0_0] : memref<128x1152xbf16, #tpu.memory_space<vmem>>, vector<128x1152xbf16>
    %c0_1 = arith.constant 0 : index
    %c0_2 = arith.constant 0 : index
    %1 = vector.load %arg3[%c0_1, %c0_2] : memref<1152x128xbf16, #tpu.memory_space<vmem>>, vector<1152x128xbf16>
    %cst = arith.constant dense<0.000000e+00> : vector<128x128xf32>
    %2 = tpu.matmul %0, %1, %cst {dimension_numbers = #tpu.dot_dimension_numbers<[1], [0], [0], [1], [0, 0, 1, 1], [], []>} : vector<128x1152xbf16>, vector<1152x128xbf16>, vector<128x128xf32> -> vector<128x128xf32>
    %c0_3 = arith.constant 0 : index
    %c0_4 = arith.constant 0 : index
    %3 = vector.load %arg4[%c0_3, %c0_4] : memref<1x128xf32, #tpu.memory_space<vmem>>, vector<1x128xf32>
    %4 = vector.broadcast %3 : vector<1x128xf32> to vector<128x128xf32>
    %5 = arith.addf %2, %4 : vector<128x128xf32>
    %cst_5 = arith.constant 0.000000e+00 : f32
    %6 = vector.broadcast %cst_5 : f32 to vector<128x128xf32>
    %7 = arith.maximumf %5, %6 : vector<128x128xf32>
    %c0_6 = arith.constant 0 : index
    %c0_7 = arith.constant 0 : index
    %8 = vector.load %arg5[%c0_6, %c0_7] : memref<128x128xf32, #tpu.memory_space<vmem>>, vector<128x128xf32>
    tpu.vector_store %arg5[%c0_6, %c0_7], %7 {strides = array<i32>} : memref<128x128xf32, #tpu.memory_space<vmem>>, vector<128x128xf32>,
    return
  }
  func.func @transform_0(%arg0: i32, %arg1: i32) -> (i32, i32) {
    %c0_i32 = arith.constant 0 : i32
    %c0_i32_0 = arith.constant 0 : i32
    return %arg0, %c0_i32 : i32, i32
  }
  func.func @transform_1(%arg0: i32, %arg1: i32) -> (i32, i32) {
    %c0_i32 = arith.constant 0 : i32
    %c0_i32_0 = arith.constant 0 : i32
    return %c0_i32, %arg1 : i32, i32
  }
  func.func @transform_2(%arg0: i32, %arg1: i32) -> (i32, i32) {
    %c0_i32 = arith.constant 0 : i32
    %c0_i32_0 = arith.constant 0 : i32
    return %c0_i32, %arg1 : i32, i32
  }
  func.func @transform_3(%arg0: i32, %arg1: i32) -> (i32, i32) {
    %c0_i32 = arith.constant 0 : i32
    return %arg0, %arg1 : i32, i32
  }
}

module attributes {stable_mosaic.version = 11 : i64} {
  func.func @matmul_shift_relu_kernel(%arg0: i32, %arg1: i32, %arg2: memref<128x128xbf16, #tpu.memory_space<vmem>>, %arg3: memref<128x128xbf16, #tpu.memory_space<vmem>>, %arg4: memref<1x128xf32, #tpu.memory_space<vmem>>, %arg5: memref<128x128xf32, #tpu.memory_space<vmem>>) attributes {dimension_semantics = [#tpu.dimension_semantics<parallel>, #tpu.dimension_semantics<parallel>], iteration_bounds = array<i64: 1, 2>, scalar_prefetch = 0 : i64, scratch_operands = 0 : i64, tpu.core_type = #tpu.core_type<tc>, window_params = [{transform_indices = @transform_0, window_bounds = array<i64: 128, 128>}, {transform_indices = @transform_1, window_bounds = array<i64: 128, 128>}, {transform_indices = @transform_2, window_bounds = array<i64: 1, 128>}, {transform_indices = @transform_3, window_bounds = array<i64: 128, 128>}]} {
    %c0 = arith.constant 0 : index
    %c0_0 = arith.constant 0 : index
    %0 = vector.load %arg2[%c0, %c0_0] : memref<128x128xbf16, #tpu.memory_space<vmem>>, vector<128x128xbf16>
    %c0_1 = arith.constant 0 : index
    %c0_2 = arith.constant 0 : index
    %1 = vector.load %arg3[%c0_1, %c0_2] : memref<128x128xbf16, #tpu.memory_space<vmem>>, vector<128x128xbf16>
    %cst = arith.constant dense<0.000000e+00> : vector<128x128xf32>
    %2 = tpu.matmul %0, %1, %cst {dimension_numbers = #tpu.dot_dimension_numbers<[1], [0], [0], [1], [0, 0, 1, 1], [], []>} : vector<128x128xbf16>, vector<128x128xbf16>, vector<128x128xf32> -> vector<128x128xf32>
    %c0_3 = arith.constant 0 : index
    %c0_4 = arith.constant 0 : index
    %3 = vector.load %arg4[%c0_3, %c0_4] : memref<1x128xf32, #tpu.memory_space<vmem>>, vector<1x128xf32>
    %4 = vector.broadcast %3 : vector<1x128xf32> to vector<128x128xf32>
    %5 = arith.addf %2, %4 : vector<128x128xf32>
    %cst_5 = arith.constant 0.000000e+00 : f32
    %6 = vector.broadcast %cst_5 : f32 to vector<128x128xf32>
    %7 = arith.maximumf %5, %6 : vector<128x128xf32>
    %c0_6 = arith.constant 0 : index
    %c0_7 = arith.constant 0 : index
    %8 = vector.load %arg5[%c0_6, %c0_7] : memref<128x128xf32, #tpu.memory_space<vmem>>, vector<128x128xf32>
    tpu.vector_store %arg5[%c0_6, %c0_7], %7 {strides = array<i32>} : memref<128x128xf32, #tpu.memory_space<vmem>>, vector<128x128xf32>,
    return
  }
  func.func @transform_0(%arg0: i32, %arg1: i32) -> (i32, i32) {
    %c0_i32 = arith.constant 0 : i32
    %c0_i32_0 = arith.constant 0 : i32
    return %arg0, %c0_i32 : i32, i32
  }
  func.func @transform_1(%arg0: i32, %arg1: i32) -> (i32, i32) {
    %c0_i32 = arith.constant 0 : i32
    %c0_i32_0 = arith.constant 0 : i32
    return %c0_i32, %arg1 : i32, i32
  }
  func.func @transform_2(%arg0: i32, %arg1: i32) -> (i32, i32) {
    %c0_i32 = arith.constant 0 : i32
    %c0_i32_0 = arith.constant 0 : i32
    return %c0_i32, %arg1 : i32, i32
  }
  func.func @transform_3(%arg0: i32, %arg1: i32) -> (i32, i32) {
    %c0_i32 = arith.constant 0 : i32
    return %arg0, %arg1 : i32, i32
  }
}

</mosaic_0001>

<bundles_post_ra>
// kernel: inception_e_forward.7
= control target key start
LH: loop header
LB: loop body
LE: loop exit
PB: predicated region body
PF: predicated region fallthrough
CT: control target
= control target key end

     0   :  { %s1571_s12 = smov 0   ;;  %s1573_s13 = smov 0   ;;  %s1931_s0 = inlined_call_operand.vmem [shape: bf16[128,128], index: 0, kind: input, shape index: {}]   ;;  %s1932_s1 = inlined_call_operand.vmem [shape: bf16[128,1152], index: 1, kind: input, shape index: {}]   ;;  %s1933_s2 = inlined_call_operand.vmem [shape: f32[1,1152], index: 2, kind: input, shape index: {}]   ;;  %s1934_s3 = inlined_call_operand.vmem [shape: bf16[128,1152], index: 3, kind: output, shape index: {}]  }
   0x1   :  { %s1575_s14 = smov 0   ;;  %s1577_s15 = smov 0  }
   0x2   :  { %s1579_s16 = smov 0  }
   0x3 LB: > { %s22_s17 = sadd.s32 1, %s1544_s15  ;;  %s1207_s18 = sadd.s32 4294967295, %s1548_s16   ;;  %s1548_s16 = sphi %s1579_s16, %s13_s16   ;;  %s1544_s15 = sphi %s1577_s15, %s1939_s15   ;;  %s1540_s14 = sphi %s1575_s14, %s1938_s14   ;;  %s1536_s13 = sphi %s1573_s13, %s1937_s13   ;;  %s1532_s12 = sphi %s1571_s12, %s1936_s12  }
   0x4   : > { %p23_p0 = scmp.ge.s32.totalorder %s22_s17, 3  ;;  %p65_p1 = scmp.ne.s32.totalorder %s1536_s13, %s1532_s12 }
   0x5   : > { %p66_p2 = scmp.eq.s32.totalorder %s1548_s16, 0  ;;  %p123_p4 = scmp.eq.s32.totalorder %s1207_s18, 2 }
   0x6   : > { %s1941_s17 = smov (%p23_p0, %s22_s17), 0  ;;  %s58_s20 = sadd.s32 1, %s1536_s13 }
   0x7   : > { %p67_p3 = por %p66_p2, %p65_p1  ;;  %s55_s19 = ssub.s32 %s1544_s15, %s1941_s17 }
   0x8   : > { %p56_p5 = scmp.eq.s32.totalorder %s55_s19, 0  ;;  %p1606_p6 = por %p123_p4, %p65_p1 }
   0x9   : > { %p1211_p7 = scmp.ge.s32.totalorder %s1548_s16, 3 }
   0xa   : > { %s1611_s22 = scalar_select %p56_p5, %s1536_s13, %s58_s20  }
   0xb   : > { %154 = sbr.rel (%p1211_p7) target bundleno = 41 (0x29), region = 20 }
  0x12   : > { %157 = sbr.rel (!%p67_p3) target bundleno = 41 (0x29), region = 24  ;;  %s159_s23 = sand.u32 (%p67_p3), 1, %s1536_s13  }
  0x13   : > { %s1345_s24 = smul.u32 (%p67_p3), 12, %s1544_s15 }
  0x14   : > { %s1427_s25 = smul.u32 (%p67_p3), 192, %s159_s23 }
  0x15   : > { %s1619_s28 = scalar_lea.vmem (%p67_p3), %s1932_s1, %s1345_s24 }
  0x16   : > { %v179_v0 = vld [vmem:[%s1619_s28] sm:$0xff] (%p67_p3)  ;;  %v183_v2 = vld [vmem:[%s1619_s28 + $0x48] sm:$0xff] (%p67_p3)  ;;  %s1624_s29 = scalar_lea.vmem (%p67_p3), [#allocation2], %s1427_s25  ;;  %v187_v4 = vld [vmem:[%s1619_s28 + $0x90] sm:$0xff] (%p67_p3) }
  0x17   : > { %v181_v1 = vld [vmem:[%s1619_s28 + $0x24] sm:$0xff] (%p67_p3)  ;;  %180 = vst [vmem:[%s1624_s29] sm:$0xff] (%p67_p3), %v179_v0  ;;  %184 = vst [vmem:[%s1624_s29 + $0x18] sm:$0xff] (%p67_p3), %v183_v2  ;;  %v185_v3 = vld [vmem:[%s1619_s28 + $0x6c] sm:$0xff] (%p67_p3) }
  0x18   : > { %182 = vst [vmem:[%s1624_s29 + $0xc] sm:$0xff] (%p67_p3), %v181_v1  ;;  %v189_v5 = vld [vmem:[%s1619_s28 + $0xb4] sm:$0xff] (%p67_p3)  ;;  %186 = vst [vmem:[%s1624_s29 + $0x24] sm:$0xff] (%p67_p3), %v185_v3  ;;  %v193_v7 = vld [vmem:[%s1619_s28 + $0xfc] sm:$0xff] (%p67_p3) }
  0x19   : > { %188 = vst [vmem:[%s1624_s29 + $0x30] sm:$0xff] %v187_v4  ;;  %190 = vst [vmem:[%s1624_s29 + $0x3c] sm:$0xff] %v189_v5  ;;  %v191_v6 = vld [vmem:[%s1619_s28 + $0xd8] sm:$0xff]  ;;  %v195_v8 = vld [vmem:[%s1619_s28 + $0x120] sm:$0xff] }
  0x1a   : > { %192 = vst [vmem:[%s1624_s29 + $0x48] sm:$0xff] %v191_v6  ;;  %194 = vst [vmem:[%s1624_s29 + $0x54] sm:$0xff] %v193_v7  ;;  %v197_v9 = vld [vmem:[%s1619_s28 + $0x144] sm:$0xff]  ;;  %v201_v11 = vld [vmem:[%s1619_s28 + $0x18c] sm:$0xff] }
  0x1b   : > { %196 = vst [vmem:[%s1624_s29 + $0x60] sm:$0xff] %v195_v8  ;;  %v199_v10 = vld [vmem:[%s1619_s28 + $0x168] sm:$0xff]  ;;  %198 = vst [vmem:[%s1624_s29 + $0x6c] sm:$0xff] %v197_v9  ;;  %v203_v12 = vld [vmem:[%s1619_s28 + $0x1b0] sm:$0xff] }
  0x1c   : > { %200 = vst [vmem:[%s1624_s29 + $0x78] sm:$0xff] %v199_v10  ;;  %202 = vst [vmem:[%s1624_s29 + $0x84] sm:$0xff] %v201_v11  ;;  %v205_v13 = vld [vmem:[%s1619_s28 + $0x1d4] sm:$0xff]  ;;  %v209_v15 = vld [vmem:[%s1619_s28 + $0x21c] sm:$0xff] }
  0x1d   : > { %v207_v14 = vld [vmem:[%s1619_s28 + $0x1f8] sm:$0xff]  ;;  %204 = vst [vmem:[%s1624_s29 + $0x90] sm:$0xff] %v203_v12  ;;  %206 = vst [vmem:[%s1624_s29 + $0x9c] sm:$0xff] %v205_v13  ;;  %v1213_v16 = vld [vmem:[%s1619_s28 + $0x8] sm:$0xf] }
  0x1e   : > { %208 = vst [vmem:[%s1624_s29 + $0xa8] sm:$0xff] %v207_v14  ;;  %v1215_v17 = vld [vmem:[%s1619_s28 + $0x2c] sm:$0xf]  ;;  %210 = vst [vmem:[%s1624_s29 + $0xb4] sm:$0xff] %v209_v15  ;;  %v1217_v18 = vld [vmem:[%s1619_s28 + $0x50] sm:$0xf] }
  0x1f   : > { %1214 = vst [vmem:[%s1624_s29 + $0x8] sm:$0xf] %v1213_v16  ;;  %1216 = vst [vmem:[%s1624_s29 + $0x14] sm:$0xf] %v1215_v17  ;;  %v1219_v19 = vld [vmem:[%s1619_s28 + $0x74] sm:$0xf] }
  0x20   : > { %v1221_v20 = vld [vmem:[%s1619_s28 + $0x98] sm:$0xf]  ;;  %1218 = vst [vmem:[%s1624_s29 + $0x20] sm:$0xf] %v1217_v18  ;;  %1220 = vst [vmem:[%s1624_s29 + $0x2c] sm:$0xf] %v1219_v19 }
  0x21   : > { %1222 = vst [vmem:[%s1624_s29 + $0x38] sm:$0xf] %v1221_v20  ;;  %v1223_v21 = vld [vmem:[%s1619_s28 + $0xbc] sm:$0xf]  ;;  %v1225_v22 = vld [vmem:[%s1619_s28 + $0xe0] sm:$0xf] }
  0x22   : > { %v1227_v23 = vld [vmem:[%s1619_s28 + $0x104] sm:$0xf]  ;;  %1224 = vst [vmem:[%s1624_s29 + $0x44] sm:$0xf] %v1223_v21  ;;  %1226 = vst [vmem:[%s1624_s29 + $0x50] sm:$0xf] %v1225_v22 }
  0x23   : > { %1228 = vst [vmem:[%s1624_s29 + $0x5c] sm:$0xf] %v1227_v23  ;;  %v1229_v24 = vld [vmem:[%s1619_s28 + $0x128] sm:$0xf]  ;;  %v1231_v25 = vld [vmem:[%s1619_s28 + $0x14c] sm:$0xf] }
  0x24   : > { %v1233_v26 = vld [vmem:[%s1619_s28 + $0x170] sm:$0xf]  ;;  %1230 = vst [vmem:[%s1624_s29 + $0x68] sm:$0xf] %v1229_v24  ;;  %1232 = vst [vmem:[%s1624_s29 + $0x74] sm:$0xf] %v1231_v25 }
  0x25   : > { %1234 = vst [vmem:[%s1624_s29 + $0x80] sm:$0xf] %v1233_v26  ;;  %v1235_v27 = vld [vmem:[%s1619_s28 + $0x194] sm:$0xf]  ;;  %v1237_v28 = vld [vmem:[%s1619_s28 + $0x1b8] sm:$0xf] }
  0x26   : > { %v1239_v29 = vld [vmem:[%s1619_s28 + $0x1dc] sm:$0xf]  ;;  %1236 = vst [vmem:[%s1624_s29 + $0x8c] sm:$0xf] %v1235_v27  ;;  %1238 = vst [vmem:[%s1624_s29 + $0x98] sm:$0xf] %v1237_v28 }
  0x27   : > { %1240 = vst [vmem:[%s1624_s29 + $0xa4] sm:$0xf] %v1239_v29  ;;  %v1241_v30 = vld [vmem:[%s1619_s28 + $0x200] sm:$0xf]  ;;  %v1243_v31 = vld [vmem:[%s1619_s28 + $0x224] sm:$0xf] }
  0x28   : > { %1242 = vst [vmem:[%s1624_s29 + $0xb0] sm:$0xf] %v1241_v30  ;;  %1244 = vst [vmem:[%s1624_s29 + $0xbc] sm:$0xf] %v1243_v31 }
  0x29 PF: > { %p1245_p8 = scmp.ge.s32.totalorder %s1548_s16, 1  ;;  %p262_p9 = scmp.lt.s32.totalorder %s1548_s16, 4 }
  0x2b   : > { %p263_p10 = pnand %p1245_p8, %p262_p9 }
  0x2c   : > { %s269_s30 = sand.u32 (!%p263_p10), 1, %s1532_s12   ;;  %v1550_v32 = vmov (!%p263_p10), 0   ;;  %v1495_v33 = vld [vmem:[%s1931_s0] sm:$0xff] (!%p263_p10)   ;;  %v1498_v58 = vld [vmem:[%s1931_s0 + $0x8] sm:$0xff] (!%p263_p10)   ;;  %v1501_v59 = vld [vmem:[%s1931_s0 + $0x10] sm:$0xff] (!%p263_p10)   ;;  %s307_s29 = smul.u32 (!%p263_p10), 3, %s1540_s14  ;;  %v365_v1 = vlaneseq (!%p263_p10) }
  0x2d   : > { %266 = sbr.rel (%p263_p10) target bundleno = 368 (0x170), region = 54  ;;  %588 = vmatprep.mubr.bf16.mxu0 (!%p263_p10), %v1550_v32  ;;  %1411 = vmatprep.mubr.bf16.mxu1 (!%p263_p10), %v1495_v33  ;;  %v1504_v60 = vld [vmem:[%s1931_s0 + $0x18] sm:$0xff] (!%p263_p10)   ;;  %v1506_v61 = vld [vmem:[%s1931_s0 + $0x20] sm:$0xff] (!%p263_p10)   ;;  %v1507_v62 = vld [vmem:[%s1931_s0 + $0x28] sm:$0xff] (!%p263_p10)  }
  0x2e   : > { %s1690_s4 = smul.u32 (!%p263_p10), 192, %s269_s30  ;;  %v1508_v63 = vld [vmem:[%s1931_s0 + $0x30] sm:$0xff] (!%p263_p10)   ;;  %v1509_v0 = vld [vmem:[%s1931_s0 + $0x38] sm:$0xff] (!%p263_p10)   ;;  %p308_p11 = scmp.lt.s32.totalorder (!%p263_p10), %s307_s29, 8  ;;  %v366_v2 = vshrl.u32 (!%p263_p10), %v365_v1, 7 }
  0x30   : > { %s1697_s7 = scalar_lea.vmem (!%p263_p10), [#allocation2], %s1690_s4  ;;  %v367_v3 = vsub.s32 (!%p263_p10), 0, %v366_v2  ;;  %v371_v5 = vsub.s32 (!%p263_p10), 1, %v366_v2  ;;  %v375_v18 = vsub.s32 (!%p263_p10), 2, %v366_v2 }
  0x31   : > { %v1470_v34 = vld [vmem:[%s1697_s7 + $0x4] ss:$12 sps:$4 sm:$0xff] (!%p263_p10)   ;;  %v1472_v35 = vld [vmem:[%s1697_s7] ss:$12 sps:$4 sm:$0xff] (!%p263_p10)   ;;  %v1473_v36 = vld [vmem:[%s1697_s7 + $0x1c] ss:$12 sps:$4 sm:$0xff] (!%p263_p10)  }
  0x32   : > { %556 = vmatprep.subr.bf16.mxu0 (!%p263_p10), %v1470_v34  ;;  %v1475_v37 = vld [vmem:[%s1697_s7 + $0x18] ss:$12 sps:$4 sm:$0xff] (!%p263_p10)   ;;  %v1476_v38 = vld [vmem:[%s1697_s7 + $0x34] ss:$12 sps:$4 sm:$0xff] (!%p263_p10)   ;;  %v1478_v39 = vld [vmem:[%s1697_s7 + $0x30] ss:$12 sps:$4 sm:$0xff] (!%p263_p10)  }
  0x33   : > { %557 = vmatpush1.bf16.msra.mxu0 (!%p263_p10), %v1472_v35  ;;  %v1479_v40 = vld [vmem:[%s1697_s7 + $0x4c] ss:$12 sps:$4 sm:$0xff] (!%p263_p10)   ;;  %v1481_v41 = vld [vmem:[%s1697_s7 + $0x48] ss:$12 sps:$4 sm:$0xff] (!%p263_p10)   ;;  %v1482_v42 = vld [vmem:[%s1697_s7 + $0x64] ss:$12 sps:$4 sm:$0xff] (!%p263_p10)  }
  0x34   : > { %558 = vmatprep.subr.bf16.mxu0 %v1473_v36  ;;  %v1494_v43 = vld [vmem:[%s1697_s7 + $0x8] ss:$12 sps:$4 sm:$0xff]   ;;  %v1496_v44 = vld [vmem:[%s1697_s7 + $0x20] ss:$12 sps:$4 sm:$0xff]   ;;  %v1497_v46 = vld [vmem:[%s1697_s7 + $0x38] ss:$12 sps:$4 sm:$0xff]  }
  0x35   : > { %1395 = vmatprep.subr.bf16.mxu1 %v1494_v43  ;;  %v1484_v45 = vld [vmem:[%s1697_s7 + $0x60] ss:$12 sps:$4 sm:$0xff]   ;;  %v1485_v47 = vld [vmem:[%s1697_s7 + $0x7c] ss:$12 sps:$4 sm:$0xff]   ;;  %v1487_v48 = vld [vmem:[%s1697_s7 + $0x78] ss:$12 sps:$4 sm:$0xff]  }
  0x36   : > { %1396 = vmatpush3.bf16.msra.mxu1 %v1494_v43  ;;  %v1499_v49 = vld [vmem:[%s1697_s7 + $0x50] ss:$12 sps:$4 sm:$0xff]   ;;  %v1488_v50 = vld [vmem:[%s1697_s7 + $0x94] ss:$12 sps:$4 sm:$0xff]   ;;  %v1491_v53 = vld [vmem:[%s1697_s7 + $0xac] ss:$12 sps:$4 sm:$0xff]  }
  0x37   : > { %559 = vmatpush1.bf16.msra.mxu0 %v1475_v37  ;;  %1397 = vmatprep.subr.bf16.mxu1 %v1496_v44  ;;  %v1490_v51 = vld [vmem:[%s1697_s7 + $0x90] ss:$12 sps:$4 sm:$0xff]   ;;  %v1500_v52 = vld [vmem:[%s1697_s7 + $0x68] ss:$12 sps:$4 sm:$0xff]   ;;  %v1502_v55 = vld [vmem:[%s1697_s7 + $0x80] ss:$12 sps:$4 sm:$0xff]  }
  0x38   : > { %560 = vmatprep.subr.bf16.mxu0 %v1476_v38  ;;  %v1493_v54 = vld [vmem:[%s1697_s7 + $0xa8] ss:$12 sps:$4 sm:$0xff]   ;;  %v1503_v56 = vld [vmem:[%s1697_s7 + $0x98] ss:$12 sps:$4 sm:$0xff]   ;;  %v1505_v57 = vld [vmem:[%s1697_s7 + $0xb0] ss:$12 sps:$4 sm:$0xff]  }
  0x39   : > { %s1943_s29 = smov (!%p308_p11, %s307_s29), 8  ;;  %s1764_s7 = scalar_lea.vmem [#allocation3], %s1690_s4 }
  0x3a   : > { %1398 = vmatpush3.bf16.msra.mxu1 %v1496_v44  ;;  %s310_s6 = scalar_lea.vmem %s1933_s2, %s1943_s29  ;;  %s1378_s4 = smul.u32 (%p1606_p6), 12, %s1540_s14 }
  0x3b   : > { %561 = vmatpush1.bf16.msra.mxu0 %v1478_v39  ;;  %1399 = vmatprep.subr.bf16.mxu1 %v1497_v46  ;;  %v363_v4 = vld [vmem:[%s310_s6] sm:$0x7] }
  0x3c   : > { %562 = vmatprep.subr.bf16.mxu0 %v1479_v40  ;;  %v1755_v6 = vrot.slane %v363_v4, %v367_v3  ;;  %v1757_v7 = vrot.slane %v363_v4, %v371_v5  ;;  %v1767_v24 = vrot.slane %v363_v4, %v375_v18  ;;  %s1856_s9 = scalar_lea.vmem (%p1606_p6), %s1934_s3, %s1378_s4 }
  0x3e   : > { %1400 = vmatpush3.bf16.msra.mxu1 %v1497_v46 }
  0x3f   : > { %563 = vmatpush1.bf16.msra.mxu0 %v1481_v41  ;;  %1401 = vmatprep.subr.bf16.mxu1 %v1499_v49 }
  0x40   : > { %564 = vmatprep.subr.bf16.mxu0 %v1482_v42 }
  0x42   : > { %1402 = vmatpush3.bf16.msra.mxu1 %v1499_v49 }
  0x43   : > { %565 = vmatpush1.bf16.msra.mxu0 %v1484_v45  ;;  %1403 = vmatprep.subr.bf16.mxu1 %v1500_v52 }
  0x44   : > { %566 = vmatprep.subr.bf16.mxu0 %v1485_v47 }
  0x46   : > { %1404 = vmatpush3.bf16.msra.mxu1 %v1500_v52 }
  0x47   : > { %567 = vmatpush1.bf16.msra.mxu0 %v1487_v48  ;;  %1405 = vmatprep.subr.bf16.mxu1 %v1502_v55 }
  0x48   : > { %568 = vmatprep.subr.bf16.mxu0 %v1488_v50 }
  0x4a   : > { %1406 = vmatpush3.bf16.msra.mxu1 %v1502_v55 }
  0x4b   : > { %569 = vmatpush1.bf16.msra.mxu0 %v1490_v51  ;;  %1407 = vmatprep.subr.bf16.mxu1 %v1503_v56 }
  0x4c   : > { %570 = vmatprep.subr.bf16.mxu0 %v1491_v53 }
  0x4e   : > { %1408 = vmatpush3.bf16.msra.mxu1 %v1503_v56 }
  0x4f   : > { %571 = vmatpush1.bf16.msra.mxu0 %v1493_v54  ;;  %1409 = vmatprep.subr.bf16.mxu1 %v1505_v57 }
  0x52   : > { %589 = vmatmul.mubr.bf16.vlgmr.msra.gmra.mrb[0].mxu0 %v1495_v33  ;;  %1410 = vmatpush3.bf16.msra.mxu1 %v1505_v57 }
  0x53   : > { %598 = vmatprep.mubr.bf16.mxu0 %v1550_v32 }
  0x55   : > { %1412 = vmatmul.mubr.bf16.vlgmr.msra.gmra.mrb[0].mxu1 %v1498_v58 }
  0x56   : > { %1415 = vmatprep.mubr.bf16.mxu1 %v1501_v59 }
  0x5a   : > { %599 = vmatmul.mubr.bf16.gmra.mrb[4].mxu0 %v1498_v58 }
  0x5b   : > { %608 = vmatprep.mubr.bf16.mxu0 %v1550_v32 }
  0x5d   : > { %1416 = vmatmul.mubr.bf16.gmra.mrb[4].mxu1 %v1504_v60 }
  0x5e   : > { %1419 = vmatprep.mubr.bf16.mxu1 %v1506_v61 }
  0x62   : > { %609 = vmatmul.mubr.bf16.gmra.mrb[8].mxu0 %v1501_v59 }
  0x63   : > { %618 = vmatprep.mubr.bf16.mxu0 %v1550_v32 }
  0x65   : > { %1420 = vmatmul.mubr.bf16.gmra.mrb[8].mxu1 %v1507_v62 }
  0x66   : > { %1423 = vmatprep.mubr.bf16.mxu1 %v1508_v63 }
  0x6a   : > { %619 = vmatmul.mubr.bf16.gmra.mrb[12].mxu0 %v1504_v60 }
  0x6b   : > { %628 = vmatprep.mubr.bf16.mxu0 %v1550_v32 }
  0x6d   : > { %1424 = vmatmul.mubr.bf16.gmra.mrb[12].mxu1 %v1509_v0 }
  0x72   : > { %629 = vmatmul.mubr.bf16.gmra.mrb[16].mxu0 %v1506_v61 }
  0x73   : > { %638 = vmatprep.mubr.bf16.mxu0 %v1550_v32 }
  0x7a   : > { %639 = vmatmul.mubr.bf16.gmra.mrb[20].mxu0 %v1507_v62 }
  0x7b   : > { %648 = vmatprep.mubr.bf16.mxu0 %v1550_v32 }
  0x82   : > { %649 = vmatmul.mubr.bf16.gmra.mrb[24].mxu0 %v1508_v63 }
  0x83   : > { %658 = vmatprep.mubr.bf16.mxu0 %v1550_v32 }
  0x8a   : > { %659 = vmatmul.mubr.bf16.gmra.mrb[28].mxu0 %v1509_v0 }
 0x125   : > { %v590_v8 = vpop.f32.mrb[0].mxu0 }
 0x126   : > { %v591_v9 = vadd.f32 %v590_v8, %v1755_v6  ;;  %v592_v10 = vpop.f32.mrb[1].mxu0 }
 0x127   : > { %v593_v11 = vadd.f32 %v592_v10, %v1757_v7  ;;  %v594_v12 = vpop.f32.mrb[2].mxu0 }
 0x128   : > { %v766_v13 = vmax.f32 %v591_v9, 0.0  ;;  %v595_v14 = vadd.f32 %v594_v12, %v1755_v6  ;;  %v596_v15 = vpop.f32.mrb[3].mxu0  ;;  %v1413_v32 = vpop.f32.mrb[0].mxu1 }
 0x129   : > { %v767_v16 = vmax.f32 %v593_v11, 0.0  ;;  %v597_v17 = vadd.f32 %v596_v15, %v1757_v7  ;;  %v712_v35 = vadd.f32 %v1413_v32, %v1767_v24  ;;  %v703_v36 = vpop.f32.mrb[1].mxu1 }
 0x12a   : > { %v769_v19 = vmax.f32 %v595_v14, 0.0  ;;  %v704_v38 = vadd.f32 %v703_v36, %v1767_v24  ;;  %v1414_v39 = vpop.f32.mrb[2].mxu1 }
 0x12b   : > { %v1346_v20 = vpack.c.bf16 %v767_v16, %v766_v13  ;;  %v770_v21 = vmax.f32 %v597_v17, 0.0  ;;  %v774_v42 = vmax.f32 %v712_v35, 0.0  ;;  %v715_v43 = vadd.f32 %v1414_v39, %v1767_v24  ;;  %v706_v44 = vpop.f32.mrb[3].mxu1 }
 0x12c   : > { %v768_v45 = vmax.f32 %v704_v38, 0.0  ;;  %v707_v46 = vadd.f32 %v706_v44, %v1767_v24 }
 0x12d   : > { %974 = vst [vmem:[%s1764_s7] sm:$0xff] %v1346_v20  ;;  %v1348_v22 = vpack.c.bf16 %v770_v21, %v769_v19  ;;  %v600_v23 = vpop.f32.mrb[4].mxu0  ;;  %v1351_v49 = vpack.c.bf16 %v774_v42, %v774_v42  ;;  %v777_v50 = vmax.f32 %v715_v43, 0.0 }
 0x12e   : > { %v601_v25 = vadd.f32 %v600_v23, %v1755_v6  ;;  %v602_v26 = vpop.f32.mrb[5].mxu0  ;;  %v1347_v53 = vpack.c.bf16 %v768_v45, %v768_v45  ;;  %v771_v54 = vmax.f32 %v707_v46, 0.0 }
 0x12f   : > { %976 = vst [vmem:[%s1764_s7 + $0xc] sm:$0xff] %v1348_v22  ;;  %v603_v27 = vadd.f32 %v602_v26, %v1757_v7  ;;  %v604_v28 = vpop.f32.mrb[6].mxu0  ;;  %979 = vst [vmem:[%s1764_s7 + $0x20] sm:$0xf] %v1351_v49  ;;  %v1353_v57 = vpack.c.bf16 %v777_v50, %v777_v50 }
 0x130   : > { %v772_v29 = vmax.f32 %v601_v25, 0.0  ;;  %v605_v30 = vadd.f32 %v604_v28, %v1755_v6  ;;  %v606_v31 = vpop.f32.mrb[7].mxu0  ;;  %975 = vst [vmem:[%s1764_s7 + $0x8] sm:$0xf] %v1347_v53  ;;  %v1349_v61 = vpack.c.bf16 %v771_v54, %v771_v54  ;;  %v1417_v62 = vpop.f32.mrb[4].mxu1 }
 0x131   : > { %v773_v33 = vmax.f32 %v603_v27, 0.0  ;;  %v607_v34 = vadd.f32 %v606_v31, %v1757_v7  ;;  %981 = vst [vmem:[%s1764_s7 + $0x2c] sm:$0xf] %v1353_v57  ;;  %v728_v1 = vadd.f32 %v1417_v62, %v1767_v24  ;;  %v719_v2 = vpop.f32.mrb[5].mxu1 }
 0x132   : > { %v775_v37 = vmax.f32 %v605_v30, 0.0  ;;  %977 = vst [vmem:[%s1764_s7 + $0x14] sm:$0xf] %v1349_v61  ;;  %v720_v4 = vadd.f32 %v719_v2, %v1767_v24  ;;  %v1418_v5 = vpop.f32.mrb[6].mxu1 }
 0x133   : > { %v1350_v40 = vpack.c.bf16 %v773_v33, %v772_v29  ;;  %v776_v41 = vmax.f32 %v607_v34, 0.0  ;;  %v786_v10 = vmax.f32 %v728_v1, 0.0  ;;  %v731_v11 = vadd.f32 %v1418_v5, %v1767_v24  ;;  %v722_v12 = vpop.f32.mrb[7].mxu1 }
 0x134   : > { %v780_v13 = vmax.f32 %v720_v4, 0.0  ;;  %v723_v14 = vadd.f32 %v722_v12, %v1767_v24 }
 0x135   : > { %978 = vst [vmem:[%s1764_s7 + $0x18] sm:$0xff] %v1350_v40  ;;  %v1352_v47 = vpack.c.bf16 %v776_v41, %v775_v37  ;;  %v610_v48 = vpop.f32.mrb[8].mxu0  ;;  %v1359_v17 = vpack.c.bf16 %v786_v10, %v786_v10  ;;  %v789_v18 = vmax.f32 %v731_v11, 0.0 }
 0x136   : > { %v611_v51 = vadd.f32 %v610_v48, %v1755_v6  ;;  %v612_v52 = vpop.f32.mrb[9].mxu0  ;;  %v1355_v21 = vpack.c.bf16 %v780_v13, %v780_v13  ;;  %v783_v22 = vmax.f32 %v723_v14, 0.0 }
 0x137   : > { %980 = vst [vmem:[%s1764_s7 + $0x24] sm:$0xff] %v1352_v47  ;;  %v613_v55 = vadd.f32 %v612_v52, %v1757_v7  ;;  %v614_v56 = vpop.f32.mrb[10].mxu0  ;;  %987 = vst [vmem:[%s1764_s7 + $0x50] sm:$0xf] %v1359_v17  ;;  %v1361_v26 = vpack.c.bf16 %v789_v18, %v789_v18 }
 0x138   : > { %v778_v58 = vmax.f32 %v611_v51, 0.0  ;;  %v615_v59 = vadd.f32 %v614_v56, %v1755_v6  ;;  %v616_v60 = vpop.f32.mrb[11].mxu0  ;;  %983 = vst [vmem:[%s1764_s7 + $0x38] sm:$0xf] %v1355_v21  ;;  %v1357_v30 = vpack.c.bf16 %v783_v22, %v783_v22  ;;  %v1421_v31 = vpop.f32.mrb[8].mxu1 }
 0x139   : > { %v779_v63 = vmax.f32 %v613_v55, 0.0  ;;  %v617_v0 = vadd.f32 %v616_v60, %v1757_v7  ;;  %989 = vst [vmem:[%s1764_s7 + $0x5c] sm:$0xf] %v1361_v26  ;;  %v744_v34 = vadd.f32 %v1421_v31, %v1767_v24  ;;  %v735_v35 = vpop.f32.mrb[9].mxu1 }
 0x13a   : > { %v781_v3 = vmax.f32 %v615_v59, 0.0  ;;  %985 = vst [vmem:[%s1764_s7 + $0x44] sm:$0xf] %v1357_v30  ;;  %v736_v37 = vadd.f32 %v735_v35, %v1767_v24  ;;  %v1422_v38 = vpop.f32.mrb[10].mxu1 }
 0x13b   : > { %v1354_v8 = vpack.c.bf16 %v779_v63, %v778_v58  ;;  %v782_v9 = vmax.f32 %v617_v0, 0.0  ;;  %v798_v41 = vmax.f32 %v744_v34, 0.0  ;;  %v747_v42 = vadd.f32 %v1422_v38, %v1767_v24  ;;  %v738_v43 = vpop.f32.mrb[11].mxu1 }
 0x13c   : > { %v792_v44 = vmax.f32 %v736_v37, 0.0  ;;  %v739_v45 = vadd.f32 %v738_v43, %v1767_v24 }
 0x13d   : > { %982 = vst [vmem:[%s1764_s7 + $0x30] sm:$0xff] %v1354_v8  ;;  %v1356_v15 = vpack.c.bf16 %v782_v9, %v781_v3  ;;  %v620_v16 = vpop.f32.mrb[12].mxu0  ;;  %v1367_v48 = vpack.c.bf16 %v798_v41, %v798_v41  ;;  %v801_v49 = vmax.f32 %v747_v42, 0.0 }
 0x13e   : > { %v621_v19 = vadd.f32 %v620_v16, %v1755_v6  ;;  %v622_v20 = vpop.f32.mrb[13].mxu0  ;;  %v1363_v52 = vpack.c.bf16 %v792_v44, %v792_v44  ;;  %v795_v53 = vmax.f32 %v739_v45, 0.0 }
 0x13f   : > { %984 = vst [vmem:[%s1764_s7 + $0x3c] sm:$0xff] %v1356_v15  ;;  %v623_v23 = vadd.f32 %v622_v20, %v1757_v7  ;;  %v624_v25 = vpop.f32.mrb[14].mxu0  ;;  %995 = vst [vmem:[%s1764_s7 + $0x80] sm:$0xf] %v1367_v48  ;;  %v1369_v56 = vpack.c.bf16 %v801_v49, %v801_v49 }
 0x140   : > { %v784_v27 = vmax.f32 %v621_v19, 0.0  ;;  %v625_v28 = vadd.f32 %v624_v25, %v1755_v6  ;;  %v626_v29 = vpop.f32.mrb[15].mxu0  ;;  %991 = vst [vmem:[%s1764_s7 + $0x68] sm:$0xf] %v1363_v52  ;;  %v1365_v60 = vpack.c.bf16 %v795_v53, %v795_v53  ;;  %v1425_v61 = vpop.f32.mrb[12].mxu1 }
 0x141   : > { %v785_v32 = vmax.f32 %v623_v23, 0.0  ;;  %v627_v33 = vadd.f32 %v626_v29, %v1757_v7  ;;  %997 = vst [vmem:[%s1764_s7 + $0x8c] sm:$0xf] %v1369_v56  ;;  %v760_v0 = vadd.f32 %v1425_v61, %v1767_v24  ;;  %v751_v1 = vpop.f32.mrb[13].mxu1 }
 0x142   : > { %v787_v36 = vmax.f32 %v625_v28, 0.0  ;;  %993 = vst [vmem:[%s1764_s7 + $0x74] sm:$0xf] %v1365_v60  ;;  %v752_v3 = vadd.f32 %v751_v1, %v1767_v24  ;;  %v1426_v4 = vpop.f32.mrb[14].mxu1 }
 0x143   : > { %v1358_v39 = vpack.c.bf16 %v785_v32, %v784_v27  ;;  %v788_v40 = vmax.f32 %v627_v33, 0.0  ;;  %v810_v9 = vmax.f32 %v760_v0, 0.0  ;;  %v763_v10 = vadd.f32 %v1426_v4, %v1767_v24  ;;  %v754_v11 = vpop.f32.mrb[15].mxu1  ;;  %v1039_v0 = vld [vmem:[%s1764_s7 + $0x24] sm:$0xff] (%p1606_p6) }
 0x144   : > { %v804_v12 = vmax.f32 %v752_v3, 0.0  ;;  %v755_v13 = vadd.f32 %v754_v11, %v1767_v24  ;;  %v1041_v1 = vld [vmem:[%s1764_s7 + $0x30] sm:$0xff] (%p1606_p6)  ;;  %1040 = vst [vmem:[%s1856_s9 + $0x6c] sm:$0xff] (%p1606_p6), %v1039_v0 }
 0x145   : > { %986 = vst [vmem:[%s1764_s7 + $0x48] sm:$0xff] %v1358_v39  ;;  %v1360_v46 = vpack.c.bf16 %v788_v40, %v787_v36  ;;  %v630_v47 = vpop.f32.mrb[16].mxu0  ;;  %v1375_v16 = vpack.c.bf16 %v810_v9, %v810_v9  ;;  %v813_v17 = vmax.f32 %v763_v10, 0.0  ;;  %1042 = vst [vmem:[%s1856_s9 + $0x90] sm:$0xff] (%p1606_p6), %v1041_v1 }
 0x146   : > { %v631_v50 = vadd.f32 %v630_v47, %v1755_v6  ;;  %v632_v51 = vpop.f32.mrb[17].mxu0  ;;  %v1371_v20 = vpack.c.bf16 %v804_v12, %v804_v12  ;;  %v807_v21 = vmax.f32 %v755_v13, 0.0 }
 0x147   : > { %988 = vst [vmem:[%s1764_s7 + $0x54] sm:$0xff] %v1360_v46  ;;  %v633_v54 = vadd.f32 %v632_v51, %v1757_v7  ;;  %v634_v55 = vpop.f32.mrb[18].mxu0  ;;  %1003 = vst [vmem:[%s1764_s7 + $0xb0] sm:$0xf] %v1375_v16  ;;  %v1377_v24 = vpack.c.bf16 %v813_v17, %v813_v17  ;;  %v1313_v16 = vld [vmem:[%s1764_s7 + $0x14] sm:$0xf] (%p1606_p6) }
 0x148   : > { %v790_v57 = vmax.f32 %v631_v50, 0.0  ;;  %v635_v58 = vadd.f32 %v634_v55, %v1755_v6  ;;  %v636_v59 = vpop.f32.mrb[19].mxu0  ;;  %999 = vst [vmem:[%s1764_s7 + $0x98] sm:$0xf] %v1371_v20  ;;  %v1373_v28 = vpack.c.bf16 %v807_v21, %v807_v21  ;;  %1314 = vst [vmem:[%s1856_s9 + $0x2c] sm:$0xf] (%p1606_p6), %v1313_v16 }
 0x149   : > { %v791_v62 = vmax.f32 %v633_v54, 0.0  ;;  %v637_v63 = vadd.f32 %v636_v59, %v1757_v7  ;;  %1005 = vst [vmem:[%s1764_s7 + $0xbc] sm:$0xf] %v1377_v24  ;;  %v1315_v17 = vld [vmem:[%s1764_s7 + $0x20] sm:$0xf] (%p1606_p6) }
 0x14a   : > { %v793_v2 = vmax.f32 %v635_v58, 0.0  ;;  %1001 = vst [vmem:[%s1764_s7 + $0xa4] sm:$0xf] %v1373_v28  ;;  %1316 = vst [vmem:[%s1856_s9 + $0x50] sm:$0xf] (%p1606_p6), %v1315_v17 }
 0x14b   : > { %v1362_v5 = vpack.c.bf16 %v791_v62, %v790_v57  ;;  %v794_v8 = vmax.f32 %v637_v63, 0.0  ;;  %v1037_v63 = vld [vmem:[%s1764_s7 + $0x18] sm:$0xff] (%p1606_p6)  ;;  %v1321_v20 = vld [vmem:[%s1764_s7 + $0x44] sm:$0xf] (%p1606_p6)  ;;  %v1323_v21 = vld [vmem:[%s1764_s7 + $0x50] sm:$0xf] (%p1606_p6) }
 0x14c   : > { %v1045_v3 = vld [vmem:[%s1764_s7 + $0x48] sm:$0xff] (%p1606_p6)  ;;  %1038 = vst [vmem:[%s1856_s9 + $0x48] sm:$0xff] (%p1606_p6), %v1037_v63  ;;  %1322 = vst [vmem:[%s1856_s9 + $0xbc] sm:$0xf] (%p1606_p6), %v1321_v20  ;;  %v1329_v24 = vld [vmem:[%s1764_s7 + $0x74] sm:$0xf] (%p1606_p6) }
 0x14d   : > { %990 = vst [vmem:[%s1764_s7 + $0x60] sm:$0xff] %v1362_v5  ;;  %v1364_v14 = vpack.c.bf16 %v794_v8, %v793_v2  ;;  %v640_v15 = vpop.f32.mrb[20].mxu0  ;;  %v1043_v2 = vld [vmem:[%s1764_s7 + $0x3c] sm:$0xff] (%p1606_p6)  ;;  %1046 = vst [vmem:[%s1856_s9 + $0xd8] sm:$0xff] (%p1606_p6), %v1045_v3 }
 0x14e   : > { %v641_v18 = vadd.f32 %v640_v15, %v1755_v6  ;;  %v642_v19 = vpop.f32.mrb[21].mxu0  ;;  %v1047_v4 = vld [vmem:[%s1764_s7 + $0x54] sm:$0xff] (%p1606_p6)  ;;  %1044 = vst [vmem:[%s1856_s9 + $0xb4] sm:$0xff] (%p1606_p6), %v1043_v2  ;;  %v1311_v15 = vld [vmem:[%s1764_s7 + $0x8] sm:$0xf] (%p1606_p6) }
 0x14f   : > { %992 = vst [vmem:[%s1764_s7 + $0x6c] sm:$0xff] %v1364_v14  ;;  %v643_v22 = vadd.f32 %v642_v19, %v1757_v7  ;;  %v644_v23 = vpop.f32.mrb[22].mxu0  ;;  %1048 = vst [vmem:[%s1856_s9 + $0xfc] sm:$0xff] (%p1606_p6), %v1047_v4  ;;  %v1319_v19 = vld [vmem:[%s1764_s7 + $0x38] sm:$0xf] (%p1606_p6) }
 0x150   : > { %v796_v25 = vmax.f32 %v641_v18, 0.0  ;;  %v645_v26 = vadd.f32 %v644_v23, %v1755_v6  ;;  %v646_v27 = vpop.f32.mrb[23].mxu0  ;;  %1312 = vst [vmem:[%s1856_s9 + $0x8] sm:$0xf] (%p1606_p6), %v1311_v15  ;;  %v1317_v18 = vld [vmem:[%s1764_s7 + $0x2c] sm:$0xf] (%p1606_p6) }
 0x151   : > { %v797_v29 = vmax.f32 %v643_v22, 0.0  ;;  %v647_v30 = vadd.f32 %v646_v27, %v1757_v7  ;;  %1318 = vst [vmem:[%s1856_s9 + $0x74] sm:$0xf] (%p1606_p6), %v1317_v18  ;;  %1320 = vst [vmem:[%s1856_s9 + $0x98] sm:$0xf] (%p1606_p6), %v1319_v19 }
 0x152   : > { %v799_v31 = vmax.f32 %v645_v26, 0.0  ;;  %v1325_v22 = vld [vmem:[%s1764_s7 + $0x5c] sm:$0xf] (%p1606_p6)  ;;  %1324 = vst [vmem:[%s1856_s9 + $0xe0] sm:$0xf] (%p1606_p6), %v1323_v21 }
 0x153   : > { %v1366_v32 = vpack.c.bf16 %v797_v29, %v796_v25  ;;  %v800_v33 = vmax.f32 %v647_v30, 0.0  ;;  %1326 = vst [vmem:[%s1856_s9 + $0x104] sm:$0xf] (%p1606_p6), %v1325_v22  ;;  %v1327_v23 = vld [vmem:[%s1764_s7 + $0x68] sm:$0xf] (%p1606_p6) }
 0x154   : > { %v1049_v5 = vld [vmem:[%s1764_s7 + $0x60] sm:$0xff] (%p1606_p6)  ;;  %1328 = vst [vmem:[%s1856_s9 + $0x128] sm:$0xf] (%p1606_p6), %v1327_v23  ;;  %1330 = vst [vmem:[%s1856_s9 + $0x14c] sm:$0xf] (%p1606_p6), %v1329_v24 }
 0x155   : > { %994 = vst [vmem:[%s1764_s7 + $0x78] sm:$0xff] %v1366_v32  ;;  %v1368_v34 = vpack.c.bf16 %v800_v33, %v799_v31  ;;  %v650_v35 = vpop.f32.mrb[24].mxu0  ;;  %1050 = vst [vmem:[%s1856_s9 + $0x120] sm:$0xff] (%p1606_p6), %v1049_v5  ;;  %v1331_v25 = vld [vmem:[%s1764_s7 + $0x80] sm:$0xf] (%p1606_p6) }
 0x156   : > { %v651_v36 = vadd.f32 %v650_v35, %v1755_v6  ;;  %v652_v37 = vpop.f32.mrb[25].mxu0  ;;  %v1051_v8 = vld [vmem:[%s1764_s7 + $0x6c] sm:$0xff] (%p1606_p6)  ;;  %1332 = vst [vmem:[%s1856_s9 + $0x170] sm:$0xf] (%p1606_p6), %v1331_v25  ;;  %v1335_v27 = vld [vmem:[%s1764_s7 + $0x98] sm:$0xf] (%p1606_p6) }
 0x157   : > { %996 = vst [vmem:[%s1764_s7 + $0x84] sm:$0xff] %v1368_v34  ;;  %v653_v38 = vadd.f32 %v652_v37, %v1757_v7  ;;  %v654_v39 = vpop.f32.mrb[26].mxu0  ;;  %1052 = vst [vmem:[%s1856_s9 + $0x144] sm:$0xff] (%p1606_p6), %v1051_v8  ;;  %v1333_v26 = vld [vmem:[%s1764_s7 + $0x8c] sm:$0xf] (%p1606_p6) }
 0x158   : > { %v802_v40 = vmax.f32 %v651_v36, 0.0  ;;  %v655_v41 = vadd.f32 %v654_v39, %v1755_v6  ;;  %v656_v42 = vpop.f32.mrb[27].mxu0  ;;  %v1337_v28 = vld [vmem:[%s1764_s7 + $0xa4] sm:$0xf] (%p1606_p6)  ;;  %1334 = vst [vmem:[%s1856_s9 + $0x194] sm:$0xf] (%p1606_p6), %v1333_v26 }
 0x159   : > { %v803_v43 = vmax.f32 %v653_v38, 0.0  ;;  %v657_v44 = vadd.f32 %v656_v42, %v1757_v7  ;;  %1336 = vst [vmem:[%s1856_s9 + $0x1b8] sm:$0xf] (%p1606_p6), %v1335_v27  ;;  %1338 = vst [vmem:[%s1856_s9 + $0x1dc] sm:$0xf] (%p1606_p6), %v1337_v28 }
 0x15a   : > { %v805_v45 = vmax.f32 %v655_v41, 0.0  ;;  %v1339_v29 = vld [vmem:[%s1764_s7 + $0xb0] sm:$0xf] (%p1606_p6)  ;;  %v1341_v30 = vld [vmem:[%s1764_s7 + $0xbc] sm:$0xf] (%p1606_p6) }
 0x15b   : > { %v1370_v46 = vpack.c.bf16 %v803_v43, %v802_v40  ;;  %v806_v47 = vmax.f32 %v657_v44, 0.0  ;;  %1340 = vst [vmem:[%s1856_s9 + $0x200] sm:$0xf] (%p1606_p6), %v1339_v29  ;;  %1342 = vst [vmem:[%s1856_s9 + $0x224] sm:$0xf] (%p1606_p6), %v1341_v30 }
 0x15c   : > { %v1053_v9 = vld [vmem:[%s1764_s7 + $0x78] sm:$0xff] (%p1606_p6) }
 0x15d   : > { %998 = vst [vmem:[%s1764_s7 + $0x90] sm:$0xff] %v1370_v46  ;;  %v1372_v48 = vpack.c.bf16 %v806_v47, %v805_v45  ;;  %v660_v49 = vpop.f32.mrb[28].mxu0  ;;  %1054 = vst [vmem:[%s1856_s9 + $0x168] sm:$0xff] (%p1606_p6), %v1053_v9 }
 0x15e   : > { %v661_v50 = vadd.f32 %v660_v49, %v1755_v6  ;;  %v662_v51 = vpop.f32.mrb[29].mxu0  ;;  %v1055_v10 = vld [vmem:[%s1764_s7 + $0x84] sm:$0xff] (%p1606_p6) }
 0x15f   : > { %1000 = vst [vmem:[%s1764_s7 + $0x9c] sm:$0xff] %v1372_v48  ;;  %v663_v52 = vadd.f32 %v662_v51, %v1757_v7  ;;  %v664_v53 = vpop.f32.mrb[30].mxu0  ;;  %1056 = vst [vmem:[%s1856_s9 + $0x18c] sm:$0xff] (%p1606_p6), %v1055_v10 }
 0x160   : > { %v808_v54 = vmax.f32 %v661_v50, 0.0  ;;  %v665_v55 = vadd.f32 %v664_v53, %v1755_v6  ;;  %v666_v56 = vpop.f32.mrb[31].mxu0  ;;  %v1033_v6 = vld [vmem:[%s1764_s7] sm:$0xff] (%p1606_p6) }
 0x161   : > { %v809_v57 = vmax.f32 %v663_v52, 0.0  ;;  %v667_v58 = vadd.f32 %v666_v56, %v1757_v7  ;;  %1012 = sbr.rel (!%p1606_p6) target bundleno = 368 (0x170), region = 62  ;;  %v1035_v7 = vld [vmem:[%s1764_s7 + $0xc] sm:$0xff] (%p1606_p6)  ;;  %1034 = vst [vmem:[%s1856_s9] sm:$0xff] (%p1606_p6), %v1033_v6 }
 0x162   : > { %v811_v59 = vmax.f32 %v665_v55, 0.0  ;;  %1036 = vst [vmem:[%s1856_s9 + $0x24] sm:$0xff] (%p1606_p6), %v1035_v7 }
 0x163   : > { %v1374_v60 = vpack.c.bf16 %v809_v57, %v808_v54  ;;  %v812_v61 = vmax.f32 %v667_v58, 0.0 }
 0x164   : > { %v1057_v11 = vld [vmem:[%s1764_s7 + $0x90] sm:$0xff] (%p1606_p6) }
 0x165   : > { %1002 = vst [vmem:[%s1764_s7 + $0xa8] sm:$0xff] %v1374_v60  ;;  %v1376_v62 = vpack.c.bf16 %v812_v61, %v811_v59  ;;  %1058 = vst [vmem:[%s1856_s9 + $0x1b0] sm:$0xff] (%p1606_p6), %v1057_v11 }
 0x166   : > { %v1059_v12 = vld [vmem:[%s1764_s7 + $0x9c] sm:$0xff] (%p1606_p6) }
 0x167   : > { %1004 = vst [vmem:[%s1764_s7 + $0xb4] sm:$0xff] %v1376_v62  ;;  %1060 = vst [vmem:[%s1856_s9 + $0x1d4] sm:$0xff] (%p1606_p6), %v1059_v12 }
 0x16c   : > { %v1061_v13 = vld [vmem:[%s1764_s7 + $0xa8] sm:$0xff] }
 0x16d   : > { %1062 = vst [vmem:[%s1856_s9 + $0x1f8] sm:$0xff] %v1061_v13 }
 0x16e   : > { %v1063_v14 = vld [vmem:[%s1764_s7 + $0xb4] sm:$0xff] }
 0x16f   : > { %1064 = vst [vmem:[%s1856_s9 + $0x21c] sm:$0xff] %v1063_v14 }
 0x170 PF: > { %s13_s16 = sadd.s32 1, %s1548_s16   ;;  %s1936_s12 = smov %s1536_s13 }
 0x171   : > { %p10_p12 = scmp.ge.s32.totalorder %s13_s16, 5   ;;  %s1937_s13 = smov %s1611_s22 }
 0x172   : > { %s1938_s14 = smov %s1544_s15  ;;  %s1939_s15 = smov %s1941_s17 }
 0x173   :  { %12 = sbr.rel (!%p10_p12) target bundleno = 3 (0x3), region = 137 }

// kernel: inception_e_forward.10
= control target key start
LH: loop header
LB: loop body
LE: loop exit
PB: predicated region body
PF: predicated region fallthrough
CT: control target
= control target key end

     0   :  { %s7111_s0 = inlined_call_operand.vmem [shape: bf16[128,4096], index: 0, kind: input, shape index: {}]   ;;  %s7112_s1 = inlined_call_operand.vmem [shape: bf16[4096,384], index: 1, kind: input, shape index: {}]   ;;  %s7113_s2 = inlined_call_operand.vmem [shape: f32[1,384], index: 2, kind: input, shape index: {}]   ;;  %s7114_s3 = inlined_call_operand.vmem [shape: bf16[128,384], index: 3, kind: output, shape index: {}]  }
   0x1   :  { %7116 = sst [smem:[#allocation7_spill]] %s7111_s0 }
   0x2   :  { %7117 = sst [smem:[#allocation8_spill]] %s7112_s1 }
   0x3   :  { %s5740_s12 = smov 0   ;;  %s5742_s13 = smov 0  }
   0x4   :  { %s5744_s14 = smov 0   ;;  %s5746_s15 = smov 0  }
   0x5   :  { %s5748_s16 = smov 0   ;;  %s5750_s17 = smov 0  }
   0x6   :  { %s5752_s18 = smov 0   ;;  %s5754_s19 = smov 0  }
   0x7   :  { %s5756_s20 = smov 0   ;;  %s5758_s21 = smov 0  }
   0x8   :  { %s5760_s22 = smov 0  }
   0x9 LB: > { %s4545_s23 = sadd.s32 4294967295, %s5718_s22   ;;  %s25_s24 = sadd.s32 1, %s5710_s20  ;;  %s5718_s22 = sphi %s5760_s22, %s13_s22   ;;  %s5714_s21 = sphi %s5758_s21, %s7134_s21   ;;  %s5710_s20 = sphi %s5756_s20, %s7133_s20   ;;  %s5706_s19 = sphi %s5754_s19, %s7132_s19   ;;  %s5702_s18 = sphi %s5752_s18, %s7131_s18   ;;  %s5698_s17 = sphi %s5750_s17, %s7130_s17   ;;  %s5694_s16 = sphi %s5748_s16, %s7129_s16   ;;  %s5690_s15 = sphi %s5746_s15, %s7128_s15   ;;  %s5686_s14 = sphi %s5744_s14, %s7127_s14   ;;  %s5682_s13 = sphi %s5742_s13, %s7126_s13   ;;  %s5678_s12 = sphi %s5740_s12, %s7125_s12  }
   0xa   : > { %p26_p0 = scmp.ge.s32.totalorder %s25_s24, 2  ;;  %s28_s25 = sadd.s32 1, %s5714_s21 }
   0xb   : > { %s41_s26 = sadd.s32 1, %s5698_s17  ;;  %p48_p1 = scmp.ne.s32.totalorder %s5698_s17, %s5694_s16 }
   0xc   : > { %s7136_s24 = smov (%p26_p0, %s25_s24), 0  ;;  %s7138_s25 = smov (!%p26_p0, %s28_s25), %s5714_s21 }
   0xd   : > { %s37_s27 = ssub.s32 %s5710_s20, %s7136_s24  ;;  %p49_p2 = scmp.eq.s32.totalorder %s5718_s22, 0 }
   0xe   : > { %p30_p3 = scmp.ge.s32.totalorder %s7138_s25, 3  ;;  %p39_p4 = scmp.eq.s32.totalorder %s37_s27, 0 }
   0xf   : > { %p5807_p5 = por %p49_p2, %p48_p1  ;;  %s69_s29 = sadd.s32 1, %s5690_s15 }
  0x10   : > { %s7140_s25 = smov (%p30_p3, %s7138_s25), 0  ;;  %p76_p6 = scmp.ne.s32.totalorder %s5690_s15, %s5686_s14 }
  0x11   : > { %7119 = sst [smem:[#allocation6_spill]] %s7140_s25  ;;  %s65_s4 = ssub.s32 %s5714_s21, %s7140_s25 }
  0x12   : > { %s5815_s30 = scalar_select %p39_p4, %s5698_s17, %s41_s26  }
  0x13   : > { %s66_s5 = sor.u32 %s65_s4, %s37_s27  ;;  %p121_p7 = scmp.eq.s32.totalorder %s65_s4, 0 }
  0x14   : > { %p67_p8 = scmp.eq.s32.totalorder %s66_s5, 0  ;;  %p5821_p9 = por %p76_p6, %p49_p2 }
  0x15   : > { %s123_s7 = sadd.s32 1, %s5682_s13  ;;  %p133_p10 = scmp.ne.s32.totalorder %s5682_s13, %s5678_s12 }
  0x16   : > { %s5829_s8 = scalar_select %p67_p8, %s5690_s15, %s69_s29  }
  0x17   : > { %s5832_s9 = scalar_select %p121_p7, %s5682_s13, %s123_s7  }
  0x18   : > { %p134_p11 = scmp.eq.s32.totalorder %s4545_s23, 5  ;;  %p4548_p13 = scmp.ge.s32.totalorder %s5718_s22, 6 }
  0x1a   : > { %p5834_p12 = por %p134_p11, %p133_p10  ;;  %156 = sbr.rel (%p4548_p13) target bundleno = 287 (0x11f), region = 16 }
  0x21   : > { %159 = sbr.rel (!%p5807_p5) target bundleno = 107 (0x6b), region = 20  ;;  %s161_s11 = sand.u32 (%p5807_p5), 1, %s5698_s17  }
  0x22   : > { %s4839_s26 = sshll.u32 (%p5807_p5), %s5710_s20, 6  ;;  %s4549_s27 = sshll.u32 (%p5807_p5), %s161_s11, 10 }
  0x23   : > { %s7122_s0 = sld [smem:[#allocation7_spill]] (%p5807_p5)  ;;  %s5851_s23 = scalar_lea.vmem (%p5807_p5), [#allocation3], %s4549_s27 }
  0x29   : > { %s5846_s5 = scalar_lea.vmem %s7122_s0, %s4839_s26 }
  0x2a   : > { %v182_v0 = vld [vmem:[%s5846_s5] sm:$0xff]  ;;  %v184_v1 = vld [vmem:[%s5846_s5 + $0x8] sm:$0xff]  ;;  %v186_v2 = vld [vmem:[%s5846_s5 + $0x10] sm:$0xff] }
  0x2b   : > { %183 = vst [vmem:[%s5851_s23] sm:$0xff] %v182_v0  ;;  %185 = vst [vmem:[%s5851_s23 + $0x8] sm:$0xff] %v184_v1  ;;  %v188_v3 = vld [vmem:[%s5846_s5 + $0x18] sm:$0xff]  ;;  %v190_v4 = vld [vmem:[%s5846_s5 + $0x20] sm:$0xff] }
  0x2c   : > { %187 = vst [vmem:[%s5851_s23 + $0x10] sm:$0xff] %v186_v2  ;;  %v192_v5 = vld [vmem:[%s5846_s5 + $0x28] sm:$0xff]  ;;  %189 = vst [vmem:[%s5851_s23 + $0x18] sm:$0xff] %v188_v3  ;;  %v194_v6 = vld [vmem:[%s5846_s5 + $0x30] sm:$0xff] }
  0x2d   : > { %191 = vst [vmem:[%s5851_s23 + $0x20] sm:$0xff] %v190_v4  ;;  %193 = vst [vmem:[%s5851_s23 + $0x28] sm:$0xff] %v192_v5  ;;  %v196_v7 = vld [vmem:[%s5846_s5 + $0x38] sm:$0xff]  ;;  %v198_v8 = vld [vmem:[%s5846_s5 + $0x80] sm:$0xff] }
  0x2e   : > { %195 = vst [vmem:[%s5851_s23 + $0x30] sm:$0xff] %v194_v6  ;;  %197 = vst [vmem:[%s5851_s23 + $0x38] sm:$0xff] %v196_v7  ;;  %v200_v9 = vld [vmem:[%s5846_s5 + $0x88] sm:$0xff]  ;;  %v202_v10 = vld [vmem:[%s5846_s5 + $0x90] sm:$0xff] }
  0x2f   : > { %199 = vst [vmem:[%s5851_s23 + $0x40] sm:$0xff] %v198_v8  ;;  %v204_v11 = vld [vmem:[%s5846_s5 + $0x98] sm:$0xff]  ;;  %201 = vst [vmem:[%s5851_s23 + $0x48] sm:$0xff] %v200_v9  ;;  %v206_v12 = vld [vmem:[%s5846_s5 + $0xa0] sm:$0xff] }
  0x30   : > { %203 = vst [vmem:[%s5851_s23 + $0x50] sm:$0xff] %v202_v10  ;;  %205 = vst [vmem:[%s5851_s23 + $0x58] sm:$0xff] %v204_v11  ;;  %v208_v13 = vld [vmem:[%s5846_s5 + $0xa8] sm:$0xff]  ;;  %v210_v14 = vld [vmem:[%s5846_s5 + $0xb0] sm:$0xff] }
  0x31   : > { %207 = vst [vmem:[%s5851_s23 + $0x60] sm:$0xff] %v206_v12  ;;  %209 = vst [vmem:[%s5851_s23 + $0x68] sm:$0xff] %v208_v13  ;;  %v212_v15 = vld [vmem:[%s5846_s5 + $0xb8] sm:$0xff]  ;;  %v214_v16 = vld [vmem:[%s5846_s5 + $0x100] sm:$0xff] }
  0x32   : > { %211 = vst [vmem:[%s5851_s23 + $0x70] sm:$0xff] %v210_v14  ;;  %v216_v17 = vld [vmem:[%s5846_s5 + $0x108] sm:$0xff]  ;;  %213 = vst [vmem:[%s5851_s23 + $0x78] sm:$0xff] %v212_v15  ;;  %v218_v18 = vld [vmem:[%s5846_s5 + $0x110] sm:$0xff] }
  0x33   : > { %215 = vst [vmem:[%s5851_s23 + $0x80] sm:$0xff] %v214_v16  ;;  %217 = vst [vmem:[%s5851_s23 + $0x88] sm:$0xff] %v216_v17  ;;  %v220_v19 = vld [vmem:[%s5846_s5 + $0x118] sm:$0xff]  ;;  %v222_v20 = vld [vmem:[%s5846_s5 + $0x120] sm:$0xff] }
  0x34   : > { %219 = vst [vmem:[%s5851_s23 + $0x90] sm:$0xff] %v218_v18  ;;  %221 = vst [vmem:[%s5851_s23 + $0x98] sm:$0xff] %v220_v19  ;;  %v224_v21 = vld [vmem:[%s5846_s5 + $0x128] sm:$0xff]  ;;  %v226_v22 = vld [vmem:[%s5846_s5 + $0x130] sm:$0xff] }
  0x35   : > { %223 = vst [vmem:[%s5851_s23 + $0xa0] sm:$0xff] %v222_v20  ;;  %v228_v23 = vld [vmem:[%s5846_s5 + $0x138] sm:$0xff]  ;;  %225 = vst [vmem:[%s5851_s23 + $0xa8] sm:$0xff] %v224_v21  ;;  %v230_v24 = vld [vmem:[%s5846_s5 + $0x180] sm:$0xff] }
  0x36   : > { %227 = vst [vmem:[%s5851_s23 + $0xb0] sm:$0xff] %v226_v22  ;;  %229 = vst [vmem:[%s5851_s23 + $0xb8] sm:$0xff] %v228_v23  ;;  %v232_v25 = vld [vmem:[%s5846_s5 + $0x188] sm:$0xff]  ;;  %v234_v26 = vld [vmem:[%s5846_s5 + $0x190] sm:$0xff] }
  0x37   : > { %231 = vst [vmem:[%s5851_s23 + $0xc0] sm:$0xff] %v230_v24  ;;  %233 = vst [vmem:[%s5851_s23 + $0xc8] sm:$0xff] %v232_v25  ;;  %v236_v27 = vld [vmem:[%s5846_s5 + $0x198] sm:$0xff]  ;;  %v238_v28 = vld [vmem:[%s5846_s5 + $0x1a0] sm:$0xff] }
  0x38   : > { %235 = vst [vmem:[%s5851_s23 + $0xd0] sm:$0xff] %v234_v26  ;;  %v240_v29 = vld [vmem:[%s5846_s5 + $0x1a8] sm:$0xff]  ;;  %237 = vst [vmem:[%s5851_s23 + $0xd8] sm:$0xff] %v236_v27  ;;  %v242_v30 = vld [vmem:[%s5846_s5 + $0x1b0] sm:$0xff] }
  0x39   : > { %239 = vst [vmem:[%s5851_s23 + $0xe0] sm:$0xff] %v238_v28  ;;  %241 = vst [vmem:[%s5851_s23 + $0xe8] sm:$0xff] %v240_v29  ;;  %v244_v31 = vld [vmem:[%s5846_s5 + $0x1b8] sm:$0xff]  ;;  %v246_v32 = vld [vmem:[%s5846_s5 + $0x200] sm:$0xff] }
  0x3a   : > { %243 = vst [vmem:[%s5851_s23 + $0xf0] sm:$0xff] %v242_v30  ;;  %245 = vst [vmem:[%s5851_s23 + $0xf8] sm:$0xff] %v244_v31  ;;  %v248_v33 = vld [vmem:[%s5846_s5 + $0x208] sm:$0xff]  ;;  %v250_v34 = vld [vmem:[%s5846_s5 + $0x210] sm:$0xff] }
  0x3b   : > { %247 = vst [vmem:[%s5851_s23 + $0x100] sm:$0xff] %v246_v32  ;;  %v252_v35 = vld [vmem:[%s5846_s5 + $0x218] sm:$0xff]  ;;  %249 = vst [vmem:[%s5851_s23 + $0x108] sm:$0xff] %v248_v33  ;;  %v254_v36 = vld [vmem:[%s5846_s5 + $0x220] sm:$0xff] }
  0x3c   : > { %251 = vst [vmem:[%s5851_s23 + $0x110] sm:$0xff] %v250_v34  ;;  %253 = vst [vmem:[%s5851_s23 + $0x118] sm:$0xff] %v252_v35  ;;  %v256_v37 = vld [vmem:[%s5846_s5 + $0x228] sm:$0xff]  ;;  %v258_v38 = vld [vmem:[%s5846_s5 + $0x230] sm:$0xff] }
  0x3d   : > { %255 = vst [vmem:[%s5851_s23 + $0x120] sm:$0xff] %v254_v36  ;;  %257 = vst [vmem:[%s5851_s23 + $0x128] sm:$0xff] %v256_v37  ;;  %v260_v39 = vld [vmem:[%s5846_s5 + $0x238] sm:$0xff]  ;;  %v262_v40 = vld [vmem:[%s5846_s5 + $0x280] sm:$0xff] }
  0x3e   : > { %259 = vst [vmem:[%s5851_s23 + $0x130] sm:$0xff] %v258_v38  ;;  %v264_v41 = vld [vmem:[%s5846_s5 + $0x288] sm:$0xff]  ;;  %261 = vst [vmem:[%s5851_s23 + $0x138] sm:$0xff] %v260_v39  ;;  %v266_v42 = vld [vmem:[%s5846_s5 + $0x290] sm:$0xff] }
  0x3f   : > { %263 = vst [vmem:[%s5851_s23 + $0x140] sm:$0xff] %v262_v40  ;;  %265 = vst [vmem:[%s5851_s23 + $0x148] sm:$0xff] %v264_v41  ;;  %v268_v43 = vld [vmem:[%s5846_s5 + $0x298] sm:$0xff]  ;;  %v270_v44 = vld [vmem:[%s5846_s5 + $0x2a0] sm:$0xff] }
  0x40   : > { %267 = vst [vmem:[%s5851_s23 + $0x150] sm:$0xff] %v266_v42  ;;  %269 = vst [vmem:[%s5851_s23 + $0x158] sm:$0xff] %v268_v43  ;;  %v272_v45 = vld [vmem:[%s5846_s5 + $0x2a8] sm:$0xff]  ;;  %v274_v46 = vld [vmem:[%s5846_s5 + $0x2b0] sm:$0xff] }
  0x41   : > { %271 = vst [vmem:[%s5851_s23 + $0x160] sm:$0xff] %v270_v44  ;;  %v276_v47 = vld [vmem:[%s5846_s5 + $0x2b8] sm:$0xff]  ;;  %273 = vst [vmem:[%s5851_s23 + $0x168] sm:$0xff] %v272_v45  ;;  %v278_v48 = vld [vmem:[%s5846_s5 + $0x300] sm:$0xff] }
  0x42   : > { %275 = vst [vmem:[%s5851_s23 + $0x170] sm:$0xff] %v274_v46  ;;  %277 = vst [vmem:[%s5851_s23 + $0x178] sm:$0xff] %v276_v47  ;;  %v280_v49 = vld [vmem:[%s5846_s5 + $0x308] sm:$0xff]  ;;  %v282_v50 = vld [vmem:[%s5846_s5 + $0x310] sm:$0xff] }
  0x43   : > { %279 = vst [vmem:[%s5851_s23 + $0x180] sm:$0xff] %v278_v48  ;;  %281 = vst [vmem:[%s5851_s23 + $0x188] sm:$0xff] %v280_v49  ;;  %v284_v51 = vld [vmem:[%s5846_s5 + $0x318] sm:$0xff]  ;;  %v286_v52 = vld [vmem:[%s5846_s5 + $0x320] sm:$0xff] }
  0x44   : > { %283 = vst [vmem:[%s5851_s23 + $0x190] sm:$0xff] %v282_v50  ;;  %v288_v53 = vld [vmem:[%s5846_s5 + $0x328] sm:$0xff]  ;;  %285 = vst [vmem:[%s5851_s23 + $0x198] sm:$0xff] %v284_v51  ;;  %v290_v54 = vld [vmem:[%s5846_s5 + $0x330] sm:$0xff] }
  0x45   : > { %287 = vst [vmem:[%s5851_s23 + $0x1a0] sm:$0xff] %v286_v52  ;;  %289 = vst [vmem:[%s5851_s23 + $0x1a8] sm:$0xff] %v288_v53  ;;  %v292_v55 = vld [vmem:[%s5846_s5 + $0x338] sm:$0xff]  ;;  %v294_v56 = vld [vmem:[%s5846_s5 + $0x380] sm:$0xff] }
  0x46   : > { %291 = vst [vmem:[%s5851_s23 + $0x1b0] sm:$0xff] %v290_v54  ;;  %293 = vst [vmem:[%s5851_s23 + $0x1b8] sm:$0xff] %v292_v55  ;;  %v296_v57 = vld [vmem:[%s5846_s5 + $0x388] sm:$0xff]  ;;  %v298_v58 = vld [vmem:[%s5846_s5 + $0x390] sm:$0xff] }
  0x47   : > { %295 = vst [vmem:[%s5851_s23 + $0x1c0] sm:$0xff] %v294_v56  ;;  %v300_v59 = vld [vmem:[%s5846_s5 + $0x398] sm:$0xff]  ;;  %297 = vst [vmem:[%s5851_s23 + $0x1c8] sm:$0xff] %v296_v57  ;;  %v302_v60 = vld [vmem:[%s5846_s5 + $0x3a0] sm:$0xff] }
  0x48   : > { %299 = vst [vmem:[%s5851_s23 + $0x1d0] sm:$0xff] %v298_v58  ;;  %301 = vst [vmem:[%s5851_s23 + $0x1d8] sm:$0xff] %v300_v59  ;;  %v304_v61 = vld [vmem:[%s5846_s5 + $0x3a8] sm:$0xff]  ;;  %v306_v62 = vld [vmem:[%s5846_s5 + $0x3b0] sm:$0xff] }
  0x49   : > { %303 = vst [vmem:[%s5851_s23 + $0x1e0] sm:$0xff] %v302_v60  ;;  %305 = vst [vmem:[%s5851_s23 + $0x1e8] sm:$0xff] %v304_v61  ;;  %v308_v63 = vld [vmem:[%s5846_s5 + $0x3b8] sm:$0xff]  ;;  %v310_v0 = vld [vmem:[%s5846_s5 + $0x400] sm:$0xff] }
  0x4a   : > { %307 = vst [vmem:[%s5851_s23 + $0x1f0] sm:$0xff] %v306_v62  ;;  %v312_v1 = vld [vmem:[%s5846_s5 + $0x408] sm:$0xff]  ;;  %309 = vst [vmem:[%s5851_s23 + $0x1f8] sm:$0xff] %v308_v63  ;;  %v314_v2 = vld [vmem:[%s5846_s5 + $0x410] sm:$0xff] }
  0x4b   : > { %311 = vst [vmem:[%s5851_s23 + $0x200] sm:$0xff] %v310_v0  ;;  %313 = vst [vmem:[%s5851_s23 + $0x208] sm:$0xff] %v312_v1  ;;  %v316_v3 = vld [vmem:[%s5846_s5 + $0x418] sm:$0xff]  ;;  %v318_v4 = vld [vmem:[%s5846_s5 + $0x420] sm:$0xff] }
  0x4c   : > { %315 = vst [vmem:[%s5851_s23 + $0x210] sm:$0xff] %v314_v2  ;;  %317 = vst [vmem:[%s5851_s23 + $0x218] sm:$0xff] %v316_v3  ;;  %v320_v5 = vld [vmem:[%s5846_s5 + $0x428] sm:$0xff]  ;;  %v322_v6 = vld [vmem:[%s5846_s5 + $0x430] sm:$0xff] }
  0x4d   : > { %319 = vst [vmem:[%s5851_s23 + $0x220] sm:$0xff] %v318_v4  ;;  %v324_v7 = vld [vmem:[%s5846_s5 + $0x438] sm:$0xff]  ;;  %321 = vst [vmem:[%s5851_s23 + $0x228] sm:$0xff] %v320_v5  ;;  %v326_v8 = vld [vmem:[%s5846_s5 + $0x480] sm:$0xff] }
  0x4e   : > { %323 = vst [vmem:[%s5851_s23 + $0x230] sm:$0xff] %v322_v6  ;;  %325 = vst [vmem:[%s5851_s23 + $0x238] sm:$0xff] %v324_v7  ;;  %v328_v9 = vld [vmem:[%s5846_s5 + $0x488] sm:$0xff]  ;;  %v330_v10 = vld [vmem:[%s5846_s5 + $0x490] sm:$0xff] }
  0x4f   : > { %327 = vst [vmem:[%s5851_s23 + $0x240] sm:$0xff] %v326_v8  ;;  %329 = vst [vmem:[%s5851_s23 + $0x248] sm:$0xff] %v328_v9  ;;  %v332_v11 = vld [vmem:[%s5846_s5 + $0x498] sm:$0xff]  ;;  %v334_v12 = vld [vmem:[%s5846_s5 + $0x4a0] sm:$0xff] }
  0x50   : > { %331 = vst [vmem:[%s5851_s23 + $0x250] sm:$0xff] %v330_v10  ;;  %v336_v13 = vld [vmem:[%s5846_s5 + $0x4a8] sm:$0xff]  ;;  %333 = vst [vmem:[%s5851_s23 + $0x258] sm:$0xff] %v332_v11  ;;  %v338_v14 = vld [vmem:[%s5846_s5 + $0x4b0] sm:$0xff] }
  0x51   : > { %335 = vst [vmem:[%s5851_s23 + $0x260] sm:$0xff] %v334_v12  ;;  %337 = vst [vmem:[%s5851_s23 + $0x268] sm:$0xff] %v336_v13  ;;  %v340_v15 = vld [vmem:[%s5846_s5 + $0x4b8] sm:$0xff]  ;;  %v342_v16 = vld [vmem:[%s5846_s5 + $0x500] sm:$0xff] }
  0x52   : > { %339 = vst [vmem:[%s5851_s23 + $0x270] sm:$0xff] %v338_v14  ;;  %341 = vst [vmem:[%s5851_s23 + $0x278] sm:$0xff] %v340_v15  ;;  %v344_v17 = vld [vmem:[%s5846_s5 + $0x508] sm:$0xff]  ;;  %v346_v18 = vld [vmem:[%s5846_s5 + $0x510] sm:$0xff] }
  0x53   : > { %343 = vst [vmem:[%s5851_s23 + $0x280] sm:$0xff] %v342_v16  ;;  %v348_v19 = vld [vmem:[%s5846_s5 + $0x518] sm:$0xff]  ;;  %345 = vst [vmem:[%s5851_s23 + $0x288] sm:$0xff] %v344_v17  ;;  %v350_v20 = vld [vmem:[%s5846_s5 + $0x520] sm:$0xff] }
  0x54   : > { %347 = vst [vmem:[%s5851_s23 + $0x290] sm:$0xff] %v346_v18  ;;  %349 = vst [vmem:[%s5851_s23 + $0x298] sm:$0xff] %v348_v19  ;;  %v352_v21 = vld [vmem:[%s5846_s5 + $0x528] sm:$0xff]  ;;  %v354_v22 = vld [vmem:[%s5846_s5 + $0x530] sm:$0xff] }
  0x55   : > { %351 = vst [vmem:[%s5851_s23 + $0x2a0] sm:$0xff] %v350_v20  ;;  %353 = vst [vmem:[%s5851_s23 + $0x2a8] sm:$0xff] %v352_v21  ;;  %v356_v23 = vld [vmem:[%s5846_s5 + $0x538] sm:$0xff]  ;;  %v358_v24 = vld [vmem:[%s5846_s5 + $0x580] sm:$0xff] }
  0x56   : > { %355 = vst [vmem:[%s5851_s23 + $0x2b0] sm:$0xff] %v354_v22  ;;  %v360_v25 = vld [vmem:[%s5846_s5 + $0x588] sm:$0xff]  ;;  %357 = vst [vmem:[%s5851_s23 + $0x2b8] sm:$0xff] %v356_v23  ;;  %v362_v26 = vld [vmem:[%s5846_s5 + $0x590] sm:$0xff] }
  0x57   : > { %359 = vst [vmem:[%s5851_s23 + $0x2c0] sm:$0xff] %v358_v24  ;;  %361 = vst [vmem:[%s5851_s23 + $0x2c8] sm:$0xff] %v360_v25  ;;  %v364_v27 = vld [vmem:[%s5846_s5 + $0x598] sm:$0xff]  ;;  %v366_v28 = vld [vmem:[%s5846_s5 + $0x5a0] sm:$0xff] }
  0x58   : > { %363 = vst [vmem:[%s5851_s23 + $0x2d0] sm:$0xff] %v362_v26  ;;  %365 = vst [vmem:[%s5851_s23 + $0x2d8] sm:$0xff] %v364_v27  ;;  %v368_v29 = vld [vmem:[%s5846_s5 + $0x5a8] sm:$0xff]  ;;  %v370_v30 = vld [vmem:[%s5846_s5 + $0x5b0] sm:$0xff] }
  0x59   : > { %367 = vst [vmem:[%s5851_s23 + $0x2e0] sm:$0xff] %v366_v28  ;;  %v372_v31 = vld [vmem:[%s5846_s5 + $0x5b8] sm:$0xff]  ;;  %369 = vst [vmem:[%s5851_s23 + $0x2e8] sm:$0xff] %v368_v29  ;;  %v374_v32 = vld [vmem:[%s5846_s5 + $0x600] sm:$0xff] }
  0x5a   : > { %371 = vst [vmem:[%s5851_s23 + $0x2f0] sm:$0xff] %v370_v30  ;;  %373 = vst [vmem:[%s5851_s23 + $0x2f8] sm:$0xff] %v372_v31  ;;  %v376_v33 = vld [vmem:[%s5846_s5 + $0x608] sm:$0xff]  ;;  %v378_v34 = vld [vmem:[%s5846_s5 + $0x610] sm:$0xff] }
  0x5b   : > { %375 = vst [vmem:[%s5851_s23 + $0x300] sm:$0xff] %v374_v32  ;;  %377 = vst [vmem:[%s5851_s23 + $0x308] sm:$0xff] %v376_v33  ;;  %v380_v35 = vld [vmem:[%s5846_s5 + $0x618] sm:$0xff]  ;;  %v382_v36 = vld [vmem:[%s5846_s5 + $0x620] sm:$0xff] }
  0x5c   : > { %379 = vst [vmem:[%s5851_s23 + $0x310] sm:$0xff] %v378_v34  ;;  %v384_v37 = vld [vmem:[%s5846_s5 + $0x628] sm:$0xff]  ;;  %381 = vst [vmem:[%s5851_s23 + $0x318] sm:$0xff] %v380_v35  ;;  %v386_v38 = vld [vmem:[%s5846_s5 + $0x630] sm:$0xff] }
  0x5d   : > { %383 = vst [vmem:[%s5851_s23 + $0x320] sm:$0xff] %v382_v36  ;;  %385 = vst [vmem:[%s5851_s23 + $0x328] sm:$0xff] %v384_v37  ;;  %v388_v39 = vld [vmem:[%s5846_s5 + $0x638] sm:$0xff]  ;;  %v390_v40 = vld [vmem:[%s5846_s5 + $0x680] sm:$0xff] }
  0x5e   : > { %387 = vst [vmem:[%s5851_s23 + $0x330] sm:$0xff] %v386_v38  ;;  %389 = vst [vmem:[%s5851_s23 + $0x338] sm:$0xff] %v388_v39  ;;  %v392_v41 = vld [vmem:[%s5846_s5 + $0x688] sm:$0xff]  ;;  %v394_v42 = vld [vmem:[%s5846_s5 + $0x690] sm:$0xff] }
  0x5f   : > { %391 = vst [vmem:[%s5851_s23 + $0x340] sm:$0xff] %v390_v40  ;;  %v396_v43 = vld [vmem:[%s5846_s5 + $0x698] sm:$0xff]  ;;  %393 = vst [vmem:[%s5851_s23 + $0x348] sm:$0xff] %v392_v41  ;;  %v398_v44 = vld [vmem:[%s5846_s5 + $0x6a0] sm:$0xff] }
  0x60   : > { %395 = vst [vmem:[%s5851_s23 + $0x350] sm:$0xff] %v394_v42  ;;  %397 = vst [vmem:[%s5851_s23 + $0x358] sm:$0xff] %v396_v43  ;;  %v400_v45 = vld [vmem:[%s5846_s5 + $0x6a8] sm:$0xff]  ;;  %v402_v46 = vld [vmem:[%s5846_s5 + $0x6b0] sm:$0xff] }
  0x61   : > { %399 = vst [vmem:[%s5851_s23 + $0x360] sm:$0xff] %v398_v44  ;;  %401 = vst [vmem:[%s5851_s23 + $0x368] sm:$0xff] %v400_v45  ;;  %v404_v47 = vld [vmem:[%s5846_s5 + $0x6b8] sm:$0xff]  ;;  %v406_v48 = vld [vmem:[%s5846_s5 + $0x700] sm:$0xff] }
  0x62   : > { %403 = vst [vmem:[%s5851_s23 + $0x370] sm:$0xff] %v402_v46  ;;  %v408_v49 = vld [vmem:[%s5846_s5 + $0x708] sm:$0xff]  ;;  %405 = vst [vmem:[%s5851_s23 + $0x378] sm:$0xff] %v404_v47  ;;  %v410_v50 = vld [vmem:[%s5846_s5 + $0x710] sm:$0xff] }
  0x63   : > { %407 = vst [vmem:[%s5851_s23 + $0x380] sm:$0xff] %v406_v48  ;;  %409 = vst [vmem:[%s5851_s23 + $0x388] sm:$0xff] %v408_v49  ;;  %v412_v51 = vld [vmem:[%s5846_s5 + $0x718] sm:$0xff]  ;;  %v414_v52 = vld [vmem:[%s5846_s5 + $0x720] sm:$0xff] }
  0x64   : > { %411 = vst [vmem:[%s5851_s23 + $0x390] sm:$0xff] %v410_v50  ;;  %413 = vst [vmem:[%s5851_s23 + $0x398] sm:$0xff] %v412_v51  ;;  %v416_v53 = vld [vmem:[%s5846_s5 + $0x728] sm:$0xff]  ;;  %v418_v54 = vld [vmem:[%s5846_s5 + $0x730] sm:$0xff] }
  0x65   : > { %415 = vst [vmem:[%s5851_s23 + $0x3a0] sm:$0xff] %v414_v52  ;;  %v420_v55 = vld [vmem:[%s5846_s5 + $0x738] sm:$0xff]  ;;  %417 = vst [vmem:[%s5851_s23 + $0x3a8] sm:$0xff] %v416_v53  ;;  %v422_v56 = vld [vmem:[%s5846_s5 + $0x780] sm:$0xff] }
  0x66   : > { %419 = vst [vmem:[%s5851_s23 + $0x3b0] sm:$0xff] %v418_v54  ;;  %421 = vst [vmem:[%s5851_s23 + $0x3b8] sm:$0xff] %v420_v55  ;;  %v424_v57 = vld [vmem:[%s5846_s5 + $0x788] sm:$0xff]  ;;  %v426_v58 = vld [vmem:[%s5846_s5 + $0x790] sm:$0xff] }
  0x67   : > { %423 = vst [vmem:[%s5851_s23 + $0x3c0] sm:$0xff] %v422_v56  ;;  %425 = vst [vmem:[%s5851_s23 + $0x3c8] sm:$0xff] %v424_v57  ;;  %v428_v59 = vld [vmem:[%s5846_s5 + $0x798] sm:$0xff]  ;;  %v430_v60 = vld [vmem:[%s5846_s5 + $0x7a0] sm:$0xff] }
  0x68   : > { %427 = vst [vmem:[%s5851_s23 + $0x3d0] sm:$0xff] %v426_v58  ;;  %v432_v61 = vld [vmem:[%s5846_s5 + $0x7a8] sm:$0xff]  ;;  %429 = vst [vmem:[%s5851_s23 + $0x3d8] sm:$0xff] %v428_v59  ;;  %v434_v62 = vld [vmem:[%s5846_s5 + $0x7b0] sm:$0xff] }
  0x69   : > { %431 = vst [vmem:[%s5851_s23 + $0x3e0] sm:$0xff] %v430_v60  ;;  %433 = vst [vmem:[%s5851_s23 + $0x3e8] sm:$0xff] %v432_v61  ;;  %v436_v63 = vld [vmem:[%s5846_s5 + $0x7b8] sm:$0xff] }
  0x6a   : > { %435 = vst [vmem:[%s5851_s23 + $0x3f0] sm:$0xff] %v434_v62  ;;  %437 = vst [vmem:[%s5851_s23 + $0x3f8] sm:$0xff] %v436_v63 }
  0x6b PF: > { %443 = sbr.rel (!%p5821_p9) target bundleno = 287 (0x11f), region = 43  ;;  %s445_s28 = sand.u32 (%p5821_p9), 1, %s5690_s15  }
  0x6c   : > { %s5415_s7 = smul.u32 (%p5821_p9), 768, %s5710_s20  ;;  %s4552_s11 = sshll.u32 (%p5821_p9), %s445_s28, 10 }
  0x6d   : > { %s7123_s1 = sld [smem:[#allocation8_spill]] (%p5821_p9)  ;;  %s6119_s6 = scalar_lea.vmem (%p5821_p9), [#allocation4], %s4552_s11 }
  0x6e   : > { %s450_s26 = sadd.s32 (%p5821_p9), %s5714_s21, %s5415_s7 }
  0x6f   : > { %s4555_s27 = sshll.u32 (%p5821_p9), %s450_s26, 2 }
  0x73   : > { %s6114_s0 = scalar_lea.vmem %s7123_s1, %s4555_s27 }
  0x74   : > { %v468_v0 = vld [vmem:[%s6114_s0] sm:$0xf]  ;;  %v470_v1 = vld [vmem:[%s6114_s0 + $0xc] sm:$0xf]  ;;  %v472_v2 = vld [vmem:[%s6114_s0 + $0x18] sm:$0xf] }
  0x75   : > { %469 = vst [vmem:[%s6119_s6] sm:$0xf] %v468_v0  ;;  %471 = vst [vmem:[%s6119_s6 + $0x4] sm:$0xf] %v470_v1  ;;  %v474_v3 = vld [vmem:[%s6114_s0 + $0x24] sm:$0xf] }
  0x76   : > { %473 = vst [vmem:[%s6119_s6 + $0x8] sm:$0xf] %v472_v2  ;;  %v476_v4 = vld [vmem:[%s6114_s0 + $0x30] sm:$0xf]  ;;  %v478_v5 = vld [vmem:[%s6114_s0 + $0x3c] sm:$0xf] }
  0x77   : > { %475 = vst [vmem:[%s6119_s6 + $0xc] sm:$0xf] %v474_v3  ;;  %477 = vst [vmem:[%s6119_s6 + $0x10] sm:$0xf] %v476_v4  ;;  %v480_v6 = vld [vmem:[%s6114_s0 + $0x48] sm:$0xf] }
  0x78   : > { %479 = vst [vmem:[%s6119_s6 + $0x14] sm:$0xf] %v478_v5  ;;  %v482_v7 = vld [vmem:[%s6114_s0 + $0x54] sm:$0xf]  ;;  %v484_v8 = vld [vmem:[%s6114_s0 + $0x60] sm:$0xf] }
  0x79   : > { %481 = vst [vmem:[%s6119_s6 + $0x18] sm:$0xf] %v480_v6  ;;  %483 = vst [vmem:[%s6119_s6 + $0x1c] sm:$0xf] %v482_v7  ;;  %v486_v9 = vld [vmem:[%s6114_s0 + $0x6c] sm:$0xf] }
  0x7a   : > { %485 = vst [vmem:[%s6119_s6 + $0x20] sm:$0xf] %v484_v8  ;;  %v488_v10 = vld [vmem:[%s6114_s0 + $0x78] sm:$0xf]  ;;  %v490_v11 = vld [vmem:[%s6114_s0 + $0x84] sm:$0xf] }
  0x7b   : > { %487 = vst [vmem:[%s6119_s6 + $0x24] sm:$0xf] %v486_v9  ;;  %489 = vst [vmem:[%s6119_s6 + $0x28] sm:$0xf] %v488_v10  ;;  %v492_v12 = vld [vmem:[%s6114_s0 + $0x90] sm:$0xf] }
  0x7c   : > { %491 = vst [vmem:[%s6119_s6 + $0x2c] sm:$0xf] %v490_v11  ;;  %v494_v13 = vld [vmem:[%s6114_s0 + $0x9c] sm:$0xf]  ;;  %v496_v14 = vld [vmem:[%s6114_s0 + $0xa8] sm:$0xf] }
  0x7d   : > { %493 = vst [vmem:[%s6119_s6 + $0x30] sm:$0xf] %v492_v12  ;;  %495 = vst [vmem:[%s6119_s6 + $0x34] sm:$0xf] %v494_v13  ;;  %v498_v15 = vld [vmem:[%s6114_s0 + $0xb4] sm:$0xf] }
  0x7e   : > { %497 = vst [vmem:[%s6119_s6 + $0x38] sm:$0xf] %v496_v14  ;;  %v500_v16 = vld [vmem:[%s6114_s0 + $0xc0] sm:$0xf]  ;;  %v502_v17 = vld [vmem:[%s6114_s0 + $0xcc] sm:$0xf] }
  0x7f   : > { %499 = vst [vmem:[%s6119_s6 + $0x3c] sm:$0xf] %v498_v15  ;;  %501 = vst [vmem:[%s6119_s6 + $0x40] sm:$0xf] %v500_v16  ;;  %v504_v18 = vld [vmem:[%s6114_s0 + $0xd8] sm:$0xf] }
  0x80   : > { %503 = vst [vmem:[%s6119_s6 + $0x44] sm:$0xf] %v502_v17  ;;  %v506_v19 = vld [vmem:[%s6114_s0 + $0xe4] sm:$0xf]  ;;  %v508_v20 = vld [vmem:[%s6114_s0 + $0xf0] sm:$0xf] }
  0x81   : > { %505 = vst [vmem:[%s6119_s6 + $0x48] sm:$0xf] %v504_v18  ;;  %507 = vst [vmem:[%s6119_s6 + $0x4c] sm:$0xf] %v506_v19  ;;  %v510_v21 = vld [vmem:[%s6114_s0 + $0xfc] sm:$0xf] }
  0x82   : > { %509 = vst [vmem:[%s6119_s6 + $0x50] sm:$0xf] %v508_v20  ;;  %v512_v22 = vld [vmem:[%s6114_s0 + $0x108] sm:$0xf]  ;;  %v514_v23 = vld [vmem:[%s6114_s0 + $0x114] sm:$0xf] }
  0x83   : > { %511 = vst [vmem:[%s6119_s6 + $0x54] sm:$0xf] %v510_v21  ;;  %513 = vst [vmem:[%s6119_s6 + $0x58] sm:$0xf] %v512_v22  ;;  %v516_v24 = vld [vmem:[%s6114_s0 + $0x120] sm:$0xf] }
  0x84   : > { %515 = vst [vmem:[%s6119_s6 + $0x5c] sm:$0xf] %v514_v23  ;;  %v518_v25 = vld [vmem:[%s6114_s0 + $0x12c] sm:$0xf]  ;;  %v520_v26 = vld [vmem:[%s6114_s0 + $0x138] sm:$0xf] }
  0x85   : > { %517 = vst [vmem:[%s6119_s6 + $0x60] sm:$0xf] %v516_v24  ;;  %519 = vst [vmem:[%s6119_s6 + $0x64] sm:$0xf] %v518_v25  ;;  %v522_v27 = vld [vmem:[%s6114_s0 + $0x144] sm:$0xf] }
  0x86   : > { %521 = vst [vmem:[%s6119_s6 + $0x68] sm:$0xf] %v520_v26  ;;  %v524_v28 = vld [vmem:[%s6114_s0 + $0x150] sm:$0xf]  ;;  %v526_v29 = vld [vmem:[%s6114_s0 + $0x15c] sm:$0xf] }
  0x87   : > { %523 = vst [vmem:[%s6119_s6 + $0x6c] sm:$0xf] %v522_v27  ;;  %525 = vst [vmem:[%s6119_s6 + $0x70] sm:$0xf] %v524_v28  ;;  %v528_v30 = vld [vmem:[%s6114_s0 + $0x168] sm:$0xf] }
  0x88   : > { %527 = vst [vmem:[%s6119_s6 + $0x74] sm:$0xf] %v526_v29  ;;  %v530_v31 = vld [vmem:[%s6114_s0 + $0x174] sm:$0xf]  ;;  %v532_v32 = vld [vmem:[%s6114_s0 + $0x180] sm:$0xf] }
  0x89   : > { %529 = vst [vmem:[%s6119_s6 + $0x78] sm:$0xf] %v528_v30  ;;  %531 = vst [vmem:[%s6119_s6 + $0x7c] sm:$0xf] %v530_v31  ;;  %v534_v33 = vld [vmem:[%s6114_s0 + $0x18c] sm:$0xf] }
  0x8a   : > { %533 = vst [vmem:[%s6119_s6 + $0x80] sm:$0xf] %v532_v32  ;;  %v536_v34 = vld [vmem:[%s6114_s0 + $0x198] sm:$0xf]  ;;  %v538_v35 = vld [vmem:[%s6114_s0 + $0x1a4] sm:$0xf] }
  0x8b   : > { %535 = vst [vmem:[%s6119_s6 + $0x84] sm:$0xf] %v534_v33  ;;  %537 = vst [vmem:[%s6119_s6 + $0x88] sm:$0xf] %v536_v34  ;;  %v540_v36 = vld [vmem:[%s6114_s0 + $0x1b0] sm:$0xf] }
  0x8c   : > { %539 = vst [vmem:[%s6119_s6 + $0x8c] sm:$0xf] %v538_v35  ;;  %v542_v37 = vld [vmem:[%s6114_s0 + $0x1bc] sm:$0xf]  ;;  %v544_v38 = vld [vmem:[%s6114_s0 + $0x1c8] sm:$0xf] }
  0x8d   : > { %541 = vst [vmem:[%s6119_s6 + $0x90] sm:$0xf] %v540_v36  ;;  %543 = vst [vmem:[%s6119_s6 + $0x94] sm:$0xf] %v542_v37  ;;  %v546_v39 = vld [vmem:[%s6114_s0 + $0x1d4] sm:$0xf] }
  0x8e   : > { %545 = vst [vmem:[%s6119_s6 + $0x98] sm:$0xf] %v544_v38  ;;  %v548_v40 = vld [vmem:[%s6114_s0 + $0x1e0] sm:$0xf]  ;;  %v550_v41 = vld [vmem:[%s6114_s0 + $0x1ec] sm:$0xf] }
  0x8f   : > { %547 = vst [vmem:[%s6119_s6 + $0x9c] sm:$0xf] %v546_v39  ;;  %549 = vst [vmem:[%s6119_s6 + $0xa0] sm:$0xf] %v548_v40  ;;  %v552_v42 = vld [vmem:[%s6114_s0 + $0x1f8] sm:$0xf] }
  0x90   : > { %551 = vst [vmem:[%s6119_s6 + $0xa4] sm:$0xf] %v550_v41  ;;  %v554_v43 = vld [vmem:[%s6114_s0 + $0x204] sm:$0xf]  ;;  %v556_v44 = vld [vmem:[%s6114_s0 + $0x210] sm:$0xf] }
  0x91   : > { %553 = vst [vmem:[%s6119_s6 + $0xa8] sm:$0xf] %v552_v42  ;;  %555 = vst [vmem:[%s6119_s6 + $0xac] sm:$0xf] %v554_v43  ;;  %v558_v45 = vld [vmem:[%s6114_s0 + $0x21c] sm:$0xf] }
  0x92   : > { %557 = vst [vmem:[%s6119_s6 + $0xb0] sm:$0xf] %v556_v44  ;;  %v560_v46 = vld [vmem:[%s6114_s0 + $0x228] sm:$0xf]  ;;  %v562_v47 = vld [vmem:[%s6114_s0 + $0x234] sm:$0xf] }
  0x93   : > { %559 = vst [vmem:[%s6119_s6 + $0xb4] sm:$0xf] %v558_v45  ;;  %561 = vst [vmem:[%s6119_s6 + $0xb8] sm:$0xf] %v560_v46  ;;  %v564_v48 = vld [vmem:[%s6114_s0 + $0x240] sm:$0xf] }
  0x94   : > { %563 = vst [vmem:[%s6119_s6 + $0xbc] sm:$0xf] %v562_v47  ;;  %v566_v49 = vld [vmem:[%s6114_s0 + $0x24c] sm:$0xf]  ;;  %v568_v50 = vld [vmem:[%s6114_s0 + $0x258] sm:$0xf] }
  0x95   : > { %565 = vst [vmem:[%s6119_s6 + $0xc0] sm:$0xf] %v564_v48  ;;  %567 = vst [vmem:[%s6119_s6 + $0xc4] sm:$0xf] %v566_v49  ;;  %v570_v51 = vld [vmem:[%s6114_s0 + $0x264] sm:$0xf] }
  0x96   : > { %569 = vst [vmem:[%s6119_s6 + $0xc8] sm:$0xf] %v568_v50  ;;  %v572_v52 = vld [vmem:[%s6114_s0 + $0x270] sm:$0xf]  ;;  %v574_v53 = vld [vmem:[%s6114_s0 + $0x27c] sm:$0xf] }
  0x97   : > { %571 = vst [vmem:[%s6119_s6 + $0xcc] sm:$0xf] %v570_v51  ;;  %573 = vst [vmem:[%s6119_s6 + $0xd0] sm:$0xf] %v572_v52  ;;  %v576_v54 = vld [vmem:[%s6114_s0 + $0x288] sm:$0xf] }
  0x98   : > { %575 = vst [vmem:[%s6119_s6 + $0xd4] sm:$0xf] %v574_v53  ;;  %v578_v55 = vld [vmem:[%s6114_s0 + $0x294] sm:$0xf]  ;;  %v580_v56 = vld [vmem:[%s6114_s0 + $0x2a0] sm:$0xf] }
  0x99   : > { %577 = vst [vmem:[%s6119_s6 + $0xd8] sm:$0xf] %v576_v54  ;;  %579 = vst [vmem:[%s6119_s6 + $0xdc] sm:$0xf] %v578_v55  ;;  %v582_v57 = vld [vmem:[%s6114_s0 + $0x2ac] sm:$0xf] }
  0x9a   : > { %581 = vst [vmem:[%s6119_s6 + $0xe0] sm:$0xf] %v580_v56  ;;  %v584_v58 = vld [vmem:[%s6114_s0 + $0x2b8] sm:$0xf]  ;;  %v586_v59 = vld [vmem:[%s6114_s0 + $0x2c4] sm:$0xf] }
  0x9b   : > { %583 = vst [vmem:[%s6119_s6 + $0xe4] sm:$0xf] %v582_v57  ;;  %585 = vst [vmem:[%s6119_s6 + $0xe8] sm:$0xf] %v584_v58  ;;  %v588_v60 = vld [vmem:[%s6114_s0 + $0x2d0] sm:$0xf] }
  0x9c   : > { %587 = vst [vmem:[%s6119_s6 + $0xec] sm:$0xf] %v586_v59  ;;  %v590_v61 = vld [vmem:[%s6114_s0 + $0x2dc] sm:$0xf]  ;;  %v592_v62 = vld [vmem:[%s6114_s0 + $0x2e8] sm:$0xf] }
  0x9d   : > { %589 = vst [vmem:[%s6119_s6 + $0xf0] sm:$0xf] %v588_v60  ;;  %591 = vst [vmem:[%s6119_s6 + $0xf4] sm:$0xf] %v590_v61  ;;  %v594_v63 = vld [vmem:[%s6114_s0 + $0x2f4] sm:$0xf] }
  0x9e   : > { %593 = vst [vmem:[%s6119_s6 + $0xf8] sm:$0xf] %v592_v62  ;;  %v596_v0 = vld [vmem:[%s6114_s0 + $0x300] sm:$0xf]  ;;  %v598_v1 = vld [vmem:[%s6114_s0 + $0x30c] sm:$0xf] }
  0x9f   : > { %595 = vst [vmem:[%s6119_s6 + $0xfc] sm:$0xf] %v594_v63  ;;  %597 = vst [vmem:[%s6119_s6 + $0x100] sm:$0xf] %v596_v0  ;;  %v600_v2 = vld [vmem:[%s6114_s0 + $0x318] sm:$0xf] }
  0xa0   : > { %599 = vst [vmem:[%s6119_s6 + $0x104] sm:$0xf] %v598_v1  ;;  %v602_v3 = vld [vmem:[%s6114_s0 + $0x324] sm:$0xf]  ;;  %v604_v4 = vld [vmem:[%s6114_s0 + $0x330] sm:$0xf] }
  0xa1   : > { %601 = vst [vmem:[%s6119_s6 + $0x108] sm:$0xf] %v600_v2  ;;  %603 = vst [vmem:[%s6119_s6 + $0x10c] sm:$0xf] %v602_v3  ;;  %v606_v5 = vld [vmem:[%s6114_s0 + $0x33c] sm:$0xf] }
  0xa2   : > { %605 = vst [vmem:[%s6119_s6 + $0x110] sm:$0xf] %v604_v4  ;;  %v608_v6 = vld [vmem:[%s6114_s0 + $0x348] sm:$0xf]  ;;  %v610_v7 = vld [vmem:[%s6114_s0 + $0x354] sm:$0xf] }
  0xa3   : > { %607 = vst [vmem:[%s6119_s6 + $0x114] sm:$0xf] %v606_v5  ;;  %609 = vst [vmem:[%s6119_s6 + $0x118] sm:$0xf] %v608_v6  ;;  %v612_v8 = vld [vmem:[%s6114_s0 + $0x360] sm:$0xf] }
  0xa4   : > { %611 = vst [vmem:[%s6119_s6 + $0x11c] sm:$0xf] %v610_v7  ;;  %v614_v9 = vld [vmem:[%s6114_s0 + $0x36c] sm:$0xf]  ;;  %v616_v10 = vld [vmem:[%s6114_s0 + $0x378] sm:$0xf] }
  0xa5   : > { %613 = vst [vmem:[%s6119_s6 + $0x120] sm:$0xf] %v612_v8  ;;  %615 = vst [vmem:[%s6119_s6 + $0x124] sm:$0xf] %v614_v9  ;;  %v618_v11 = vld [vmem:[%s6114_s0 + $0x384] sm:$0xf] }
  0xa6   : > { %617 = vst [vmem:[%s6119_s6 + $0x128] sm:$0xf] %v616_v10  ;;  %v620_v12 = vld [vmem:[%s6114_s0 + $0x390] sm:$0xf]  ;;  %v622_v13 = vld [vmem:[%s6114_s0 + $0x39c] sm:$0xf] }
  0xa7   : > { %619 = vst [vmem:[%s6119_s6 + $0x12c] sm:$0xf] %v618_v11  ;;  %621 = vst [vmem:[%s6119_s6 + $0x130] sm:$0xf] %v620_v12  ;;  %v624_v14 = vld [vmem:[%s6114_s0 + $0x3a8] sm:$0xf] }
  0xa8   : > { %623 = vst [vmem:[%s6119_s6 + $0x134] sm:$0xf] %v622_v13  ;;  %v626_v15 = vld [vmem:[%s6114_s0 + $0x3b4] sm:$0xf]  ;;  %v628_v16 = vld [vmem:[%s6114_s0 + $0x3c0] sm:$0xf] }
  0xa9   : > { %625 = vst [vmem:[%s6119_s6 + $0x138] sm:$0xf] %v624_v14  ;;  %627 = vst [vmem:[%s6119_s6 + $0x13c] sm:$0xf] %v626_v15  ;;  %v630_v17 = vld [vmem:[%s6114_s0 + $0x3cc] sm:$0xf] }
  0xaa   : > { %629 = vst [vmem:[%s6119_s6 + $0x140] sm:$0xf] %v628_v16  ;;  %v632_v18 = vld [vmem:[%s6114_s0 + $0x3d8] sm:$0xf]  ;;  %v634_v19 = vld [vmem:[%s6114_s0 + $0x3e4] sm:$0xf] }
  0xab   : > { %631 = vst [vmem:[%s6119_s6 + $0x144] sm:$0xf] %v630_v17  ;;  %633 = vst [vmem:[%s6119_s6 + $0x148] sm:$0xf] %v632_v18  ;;  %v636_v20 = vld [vmem:[%s6114_s0 + $0x3f0] sm:$0xf] }
  0xac   : > { %635 = vst [vmem:[%s6119_s6 + $0x14c] sm:$0xf] %v634_v19  ;;  %v638_v21 = vld [vmem:[%s6114_s0 + $0x3fc] sm:$0xf]  ;;  %v640_v22 = vld [vmem:[%s6114_s0 + $0x408] sm:$0xf] }
  0xad   : > { %637 = vst [vmem:[%s6119_s6 + $0x150] sm:$0xf] %v636_v20  ;;  %639 = vst [vmem:[%s6119_s6 + $0x154] sm:$0xf] %v638_v21  ;;  %v642_v23 = vld [vmem:[%s6114_s0 + $0x414] sm:$0xf] }
  0xae   : > { %641 = vst [vmem:[%s6119_s6 + $0x158] sm:$0xf] %v640_v22  ;;  %v644_v24 = vld [vmem:[%s6114_s0 + $0x420] sm:$0xf]  ;;  %v646_v25 = vld [vmem:[%s6114_s0 + $0x42c] sm:$0xf] }
  0xaf   : > { %643 = vst [vmem:[%s6119_s6 + $0x15c] sm:$0xf] %v642_v23  ;;  %645 = vst [vmem:[%s6119_s6 + $0x160] sm:$0xf] %v644_v24  ;;  %v648_v26 = vld [vmem:[%s6114_s0 + $0x438] sm:$0xf] }
  0xb0   : > { %647 = vst [vmem:[%s6119_s6 + $0x164] sm:$0xf] %v646_v25  ;;  %v650_v27 = vld [vmem:[%s6114_s0 + $0x444] sm:$0xf]  ;;  %v652_v28 = vld [vmem:[%s6114_s0 + $0x450] sm:$0xf] }
  0xb1   : > { %649 = vst [vmem:[%s6119_s6 + $0x168] sm:$0xf] %v648_v26  ;;  %651 = vst [vmem:[%s6119_s6 + $0x16c] sm:$0xf] %v650_v27  ;;  %v654_v29 = vld [vmem:[%s6114_s0 + $0x45c] sm:$0xf] }
  0xb2   : > { %653 = vst [vmem:[%s6119_s6 + $0x170] sm:$0xf] %v652_v28  ;;  %v656_v30 = vld [vmem:[%s6114_s0 + $0x468] sm:$0xf]  ;;  %v658_v31 = vld [vmem:[%s6114_s0 + $0x474] sm:$0xf] }
  0xb3   : > { %655 = vst [vmem:[%s6119_s6 + $0x174] sm:$0xf] %v654_v29  ;;  %657 = vst [vmem:[%s6119_s6 + $0x178] sm:$0xf] %v656_v30  ;;  %v660_v32 = vld [vmem:[%s6114_s0 + $0x480] sm:$0xf] }
  0xb4   : > { %659 = vst [vmem:[%s6119_s6 + $0x17c] sm:$0xf] %v658_v31  ;;  %v662_v33 = vld [vmem:[%s6114_s0 + $0x48c] sm:$0xf]  ;;  %v664_v34 = vld [vmem:[%s6114_s0 + $0x498] sm:$0xf] }
  0xb5   : > { %661 = vst [vmem:[%s6119_s6 + $0x180] sm:$0xf] %v660_v32  ;;  %663 = vst [vmem:[%s6119_s6 + $0x184] sm:$0xf] %v662_v33  ;;  %v666_v35 = vld [vmem:[%s6114_s0 + $0x4a4] sm:$0xf] }
  0xb6   : > { %665 = vst [vmem:[%s6119_s6 + $0x188] sm:$0xf] %v664_v34  ;;  %v668_v36 = vld [vmem:[%s6114_s0 + $0x4b0] sm:$0xf]  ;;  %v670_v37 = vld [vmem:[%s6114_s0 + $0x4bc] sm:$0xf] }
  0xb7   : > { %667 = vst [vmem:[%s6119_s6 + $0x18c] sm:$0xf] %v666_v35  ;;  %669 = vst [vmem:[%s6119_s6 + $0x190] sm:$0xf] %v668_v36  ;;  %v672_v38 = vld [vmem:[%s6114_s0 + $0x4c8] sm:$0xf] }
  0xb8   : > { %671 = vst [vmem:[%s6119_s6 + $0x194] sm:$0xf] %v670_v37  ;;  %v674_v39 = vld [vmem:[%s6114_s0 + $0x4d4] sm:$0xf]  ;;  %v676_v40 = vld [vmem:[%s6114_s0 + $0x4e0] sm:$0xf] }
  0xb9   : > { %673 = vst [vmem:[%s6119_s6 + $0x198] sm:$0xf] %v672_v38  ;;  %675 = vst [vmem:[%s6119_s6 + $0x19c] sm:$0xf] %v674_v39  ;;  %v678_v41 = vld [vmem:[%s6114_s0 + $0x4ec] sm:$0xf] }
  0xba   : > { %677 = vst [vmem:[%s6119_s6 + $0x1a0] sm:$0xf] %v676_v40  ;;  %v680_v42 = vld [vmem:[%s6114_s0 + $0x4f8] sm:$0xf]  ;;  %v682_v43 = vld [vmem:[%s6114_s0 + $0x504] sm:$0xf] }
  0xbb   : > { %679 = vst [vmem:[%s6119_s6 + $0x1a4] sm:$0xf] %v678_v41  ;;  %681 = vst [vmem:[%s6119_s6 + $0x1a8] sm:$0xf] %v680_v42  ;;  %v684_v44 = vld [vmem:[%s6114_s0 + $0x510] sm:$0xf] }
  0xbc   : > { %683 = vst [vmem:[%s6119_s6 + $0x1ac] sm:$0xf] %v682_v43  ;;  %v686_v45 = vld [vmem:[%s6114_s0 + $0x51c] sm:$0xf]  ;;  %v688_v46 = vld [vmem:[%s6114_s0 + $0x528] sm:$0xf] }
  0xbd   : > { %685 = vst [vmem:[%s6119_s6 + $0x1b0] sm:$0xf] %v684_v44  ;;  %687 = vst [vmem:[%s6119_s6 + $0x1b4] sm:$0xf] %v686_v45  ;;  %v690_v47 = vld [vmem:[%s6114_s0 + $0x534] sm:$0xf] }
  0xbe   : > { %689 = vst [vmem:[%s6119_s6 + $0x1b8] sm:$0xf] %v688_v46  ;;  %v692_v48 = vld [vmem:[%s6114_s0 + $0x540] sm:$0xf]  ;;  %v694_v49 = vld [vmem:[%s6114_s0 + $0x54c] sm:$0xf] }
  0xbf   : > { %691 = vst [vmem:[%s6119_s6 + $0x1bc] sm:$0xf] %v690_v47  ;;  %693 = vst [vmem:[%s6119_s6 + $0x1c0] sm:$0xf] %v692_v48  ;;  %v696_v50 = vld [vmem:[%s6114_s0 + $0x558] sm:$0xf] }
  0xc0   : > { %695 = vst [vmem:[%s6119_s6 + $0x1c4] sm:$0xf] %v694_v49  ;;  %v698_v51 = vld [vmem:[%s6114_s0 + $0x564] sm:$0xf]  ;;  %v700_v52 = vld [vmem:[%s6114_s0 + $0x570] sm:$0xf] }
  0xc1   : > { %697 = vst [vmem:[%s6119_s6 + $0x1c8] sm:$0xf] %v696_v50  ;;  %699 = vst [vmem:[%s6119_s6 + $0x1cc] sm:$0xf] %v698_v51  ;;  %v702_v53 = vld [vmem:[%s6114_s0 + $0x57c] sm:$0xf] }
  0xc2   : > { %701 = vst [vmem:[%s6119_s6 + $0x1d0] sm:$0xf] %v700_v52  ;;  %v704_v54 = vld [vmem:[%s6114_s0 + $0x588] sm:$0xf]  ;;  %v706_v55 = vld [vmem:[%s6114_s0 + $0x594] sm:$0xf] }
  0xc3   : > { %703 = vst [vmem:[%s6119_s6 + $0x1d4] sm:$0xf] %v702_v53  ;;  %705 = vst [vmem:[%s6119_s6 + $0x1d8] sm:$0xf] %v704_v54  ;;  %v708_v56 = vld [vmem:[%s6114_s0 + $0x5a0] sm:$0xf] }
  0xc4   : > { %707 = vst [vmem:[%s6119_s6 + $0x1dc] sm:$0xf] %v706_v55  ;;  %v710_v57 = vld [vmem:[%s6114_s0 + $0x5ac] sm:$0xf]  ;;  %v712_v58 = vld [vmem:[%s6114_s0 + $0x5b8] sm:$0xf] }
  0xc5   : > { %709 = vst [vmem:[%s6119_s6 + $0x1e0] sm:$0xf] %v708_v56  ;;  %711 = vst [vmem:[%s6119_s6 + $0x1e4] sm:$0xf] %v710_v57  ;;  %v714_v59 = vld [vmem:[%s6114_s0 + $0x5c4] sm:$0xf] }
  0xc6   : > { %713 = vst [vmem:[%s6119_s6 + $0x1e8] sm:$0xf] %v712_v58  ;;  %v716_v60 = vld [vmem:[%s6114_s0 + $0x5d0] sm:$0xf]  ;;  %v718_v61 = vld [vmem:[%s6114_s0 + $0x5dc] sm:$0xf] }
  0xc7   : > { %715 = vst [vmem:[%s6119_s6 + $0x1ec] sm:$0xf] %v714_v59  ;;  %717 = vst [vmem:[%s6119_s6 + $0x1f0] sm:$0xf] %v716_v60  ;;  %v720_v62 = vld [vmem:[%s6114_s0 + $0x5e8] sm:$0xf] }
  0xc8   : > { %719 = vst [vmem:[%s6119_s6 + $0x1f4] sm:$0xf] %v718_v61  ;;  %v722_v63 = vld [vmem:[%s6114_s0 + $0x5f4] sm:$0xf]  ;;  %v724_v0 = vld [vmem:[%s6114_s0 + $0x600] sm:$0xf] }
  0xc9   : > { %721 = vst [vmem:[%s6119_s6 + $0x1f8] sm:$0xf] %v720_v62  ;;  %723 = vst [vmem:[%s6119_s6 + $0x1fc] sm:$0xf] %v722_v63  ;;  %v726_v1 = vld [vmem:[%s6114_s0 + $0x60c] sm:$0xf] }
  0xca   : > { %725 = vst [vmem:[%s6119_s6 + $0x200] sm:$0xf] %v724_v0  ;;  %v728_v2 = vld [vmem:[%s6114_s0 + $0x618] sm:$0xf]  ;;  %v730_v3 = vld [vmem:[%s6114_s0 + $0x624] sm:$0xf] }
  0xcb   : > { %727 = vst [vmem:[%s6119_s6 + $0x204] sm:$0xf] %v726_v1  ;;  %729 = vst [vmem:[%s6119_s6 + $0x208] sm:$0xf] %v728_v2  ;;  %v732_v4 = vld [vmem:[%s6114_s0 + $0x630] sm:$0xf] }
  0xcc   : > { %731 = vst [vmem:[%s6119_s6 + $0x20c] sm:$0xf] %v730_v3  ;;  %v734_v5 = vld [vmem:[%s6114_s0 + $0x63c] sm:$0xf]  ;;  %v736_v6 = vld [vmem:[%s6114_s0 + $0x648] sm:$0xf] }
  0xcd   : > { %733 = vst [vmem:[%s6119_s6 + $0x210] sm:$0xf] %v732_v4  ;;  %735 = vst [vmem:[%s6119_s6 + $0x214] sm:$0xf] %v734_v5  ;;  %v738_v7 = vld [vmem:[%s6114_s0 + $0x654] sm:$0xf] }
  0xce   : > { %737 = vst [vmem:[%s6119_s6 + $0x218] sm:$0xf] %v736_v6  ;;  %v740_v8 = vld [vmem:[%s6114_s0 + $0x660] sm:$0xf]  ;;  %v742_v9 = vld [vmem:[%s6114_s0 + $0x66c] sm:$0xf] }
  0xcf   : > { %739 = vst [vmem:[%s6119_s6 + $0x21c] sm:$0xf] %v738_v7  ;;  %741 = vst [vmem:[%s6119_s6 + $0x220] sm:$0xf] %v740_v8  ;;  %v744_v10 = vld [vmem:[%s6114_s0 + $0x678] sm:$0xf] }
  0xd0   : > { %743 = vst [vmem:[%s6119_s6 + $0x224] sm:$0xf] %v742_v9  ;;  %v746_v11 = vld [vmem:[%s6114_s0 + $0x684] sm:$0xf]  ;;  %v748_v12 = vld [vmem:[%s6114_s0 + $0x690] sm:$0xf] }
  0xd1   : > { %745 = vst [vmem:[%s6119_s6 + $0x228] sm:$0xf] %v744_v10  ;;  %747 = vst [vmem:[%s6119_s6 + $0x22c] sm:$0xf] %v746_v11  ;;  %v750_v13 = vld [vmem:[%s6114_s0 + $0x69c] sm:$0xf] }
  0xd2   : > { %749 = vst [vmem:[%s6119_s6 + $0x230] sm:$0xf] %v748_v12  ;;  %v752_v14 = vld [vmem:[%s6114_s0 + $0x6a8] sm:$0xf]  ;;  %v754_v15 = vld [vmem:[%s6114_s0 + $0x6b4] sm:$0xf] }
  0xd3   : > { %751 = vst [vmem:[%s6119_s6 + $0x234] sm:$0xf] %v750_v13  ;;  %753 = vst [vmem:[%s6119_s6 + $0x238] sm:$0xf] %v752_v14  ;;  %v756_v16 = vld [vmem:[%s6114_s0 + $0x6c0] sm:$0xf] }
  0xd4   : > { %755 = vst [vmem:[%s6119_s6 + $0x23c] sm:$0xf] %v754_v15  ;;  %v758_v17 = vld [vmem:[%s6114_s0 + $0x6cc] sm:$0xf]  ;;  %v760_v18 = vld [vmem:[%s6114_s0 + $0x6d8] sm:$0xf] }
  0xd5   : > { %757 = vst [vmem:[%s6119_s6 + $0x240] sm:$0xf] %v756_v16  ;;  %759 = vst [vmem:[%s6119_s6 + $0x244] sm:$0xf] %v758_v17  ;;  %v762_v19 = vld [vmem:[%s6114_s0 + $0x6e4] sm:$0xf] }
  0xd6   : > { %761 = vst [vmem:[%s6119_s6 + $0x248] sm:$0xf] %v760_v18  ;;  %v764_v20 = vld [vmem:[%s6114_s0 + $0x6f0] sm:$0xf]  ;;  %v766_v21 = vld [vmem:[%s6114_s0 + $0x6fc] sm:$0xf] }
  0xd7   : > { %763 = vst [vmem:[%s6119_s6 + $0x24c] sm:$0xf] %v762_v19  ;;  %765 = vst [vmem:[%s6119_s6 + $0x250] sm:$0xf] %v764_v20  ;;  %v768_v22 = vld [vmem:[%s6114_s0 + $0x708] sm:$0xf] }
  0xd8   : > { %767 = vst [vmem:[%s6119_s6 + $0x254] sm:$0xf] %v766_v21  ;;  %v770_v23 = vld [vmem:[%s6114_s0 + $0x714] sm:$0xf]  ;;  %v772_v24 = vld [vmem:[%s6114_s0 + $0x720] sm:$0xf] }
  0xd9   : > { %769 = vst [vmem:[%s6119_s6 + $0x258] sm:$0xf] %v768_v22  ;;  %771 = vst [vmem:[%s6119_s6 + $0x25c] sm:$0xf] %v770_v23  ;;  %v774_v25 = vld [vmem:[%s6114_s0 + $0x72c] sm:$0xf] }
  0xda   : > { %773 = vst [vmem:[%s6119_s6 + $0x260] sm:$0xf] %v772_v24  ;;  %v776_v26 = vld [vmem:[%s6114_s0 + $0x738] sm:$0xf]  ;;  %v778_v27 = vld [vmem:[%s6114_s0 + $0x744] sm:$0xf] }
  0xdb   : > { %775 = vst [vmem:[%s6119_s6 + $0x264] sm:$0xf] %v774_v25  ;;  %777 = vst [vmem:[%s6119_s6 + $0x268] sm:$0xf] %v776_v26  ;;  %v780_v28 = vld [vmem:[%s6114_s0 + $0x750] sm:$0xf] }
  0xdc   : > { %779 = vst [vmem:[%s6119_s6 + $0x26c] sm:$0xf] %v778_v27  ;;  %v782_v29 = vld [vmem:[%s6114_s0 + $0x75c] sm:$0xf]  ;;  %v784_v30 = vld [vmem:[%s6114_s0 + $0x768] sm:$0xf] }
  0xdd   : > { %781 = vst [vmem:[%s6119_s6 + $0x270] sm:$0xf] %v780_v28  ;;  %783 = vst [vmem:[%s6119_s6 + $0x274] sm:$0xf] %v782_v29  ;;  %v786_v31 = vld [vmem:[%s6114_s0 + $0x774] sm:$0xf] }
  0xde   : > { %785 = vst [vmem:[%s6119_s6 + $0x278] sm:$0xf] %v784_v30  ;;  %v788_v32 = vld [vmem:[%s6114_s0 + $0x780] sm:$0xf]  ;;  %v790_v33 = vld [vmem:[%s6114_s0 + $0x78c] sm:$0xf] }
  0xdf   : > { %787 = vst [vmem:[%s6119_s6 + $0x27c] sm:$0xf] %v786_v31  ;;  %789 = vst [vmem:[%s6119_s6 + $0x280] sm:$0xf] %v788_v32  ;;  %v792_v34 = vld [vmem:[%s6114_s0 + $0x798] sm:$0xf] }
  0xe0   : > { %791 = vst [vmem:[%s6119_s6 + $0x284] sm:$0xf] %v790_v33  ;;  %v794_v35 = vld [vmem:[%s6114_s0 + $0x7a4] sm:$0xf]  ;;  %v796_v36 = vld [vmem:[%s6114_s0 + $0x7b0] sm:$0xf] }
  0xe1   : > { %793 = vst [vmem:[%s6119_s6 + $0x288] sm:$0xf] %v792_v34  ;;  %795 = vst [vmem:[%s6119_s6 + $0x28c] sm:$0xf] %v794_v35  ;;  %v798_v37 = vld [vmem:[%s6114_s0 + $0x7bc] sm:$0xf] }
  0xe2   : > { %797 = vst [vmem:[%s6119_s6 + $0x290] sm:$0xf] %v796_v36  ;;  %v800_v38 = vld [vmem:[%s6114_s0 + $0x7c8] sm:$0xf]  ;;  %v802_v39 = vld [vmem:[%s6114_s0 + $0x7d4] sm:$0xf] }
  0xe3   : > { %799 = vst [vmem:[%s6119_s6 + $0x294] sm:$0xf] %v798_v37  ;;  %801 = vst [vmem:[%s6119_s6 + $0x298] sm:$0xf] %v800_v38  ;;  %v804_v40 = vld [vmem:[%s6114_s0 + $0x7e0] sm:$0xf] }
  0xe4   : > { %803 = vst [vmem:[%s6119_s6 + $0x29c] sm:$0xf] %v802_v39  ;;  %v806_v41 = vld [vmem:[%s6114_s0 + $0x7ec] sm:$0xf]  ;;  %v808_v42 = vld [vmem:[%s6114_s0 + $0x7f8] sm:$0xf] }
  0xe5   : > { %805 = vst [vmem:[%s6119_s6 + $0x2a0] sm:$0xf] %v804_v40  ;;  %807 = vst [vmem:[%s6119_s6 + $0x2a4] sm:$0xf] %v806_v41  ;;  %v810_v43 = vld [vmem:[%s6114_s0 + $0x804] sm:$0xf] }
  0xe6   : > { %809 = vst [vmem:[%s6119_s6 + $0x2a8] sm:$0xf] %v808_v42  ;;  %v812_v44 = vld [vmem:[%s6114_s0 + $0x810] sm:$0xf]  ;;  %v814_v45 = vld [vmem:[%s6114_s0 + $0x81c] sm:$0xf] }
  0xe7   : > { %811 = vst [vmem:[%s6119_s6 + $0x2ac] sm:$0xf] %v810_v43  ;;  %813 = vst [vmem:[%s6119_s6 + $0x2b0] sm:$0xf] %v812_v44  ;;  %v816_v46 = vld [vmem:[%s6114_s0 + $0x828] sm:$0xf] }
  0xe8   : > { %815 = vst [vmem:[%s6119_s6 + $0x2b4] sm:$0xf] %v814_v45  ;;  %v818_v47 = vld [vmem:[%s6114_s0 + $0x834] sm:$0xf]  ;;  %v820_v48 = vld [vmem:[%s6114_s0 + $0x840] sm:$0xf] }
  0xe9   : > { %817 = vst [vmem:[%s6119_s6 + $0x2b8] sm:$0xf] %v816_v46  ;;  %819 = vst [vmem:[%s6119_s6 + $0x2bc] sm:$0xf] %v818_v47  ;;  %v822_v49 = vld [vmem:[%s6114_s0 + $0x84c] sm:$0xf] }
  0xea   : > { %821 = vst [vmem:[%s6119_s6 + $0x2c0] sm:$0xf] %v820_v48  ;;  %v824_v50 = vld [vmem:[%s6114_s0 + $0x858] sm:$0xf]  ;;  %v826_v51 = vld [vmem:[%s6114_s0 + $0x864] sm:$0xf] }
  0xeb   : > { %823 = vst [vmem:[%s6119_s6 + $0x2c4] sm:$0xf] %v822_v49  ;;  %825 = vst [vmem:[%s6119_s6 + $0x2c8] sm:$0xf] %v824_v50  ;;  %v828_v52 = vld [vmem:[%s6114_s0 + $0x870] sm:$0xf] }
  0xec   : > { %827 = vst [vmem:[%s6119_s6 + $0x2cc] sm:$0xf] %v826_v51  ;;  %v830_v53 = vld [vmem:[%s6114_s0 + $0x87c] sm:$0xf]  ;;  %v832_v54 = vld [vmem:[%s6114_s0 + $0x888] sm:$0xf] }
  0xed   : > { %829 = vst [vmem:[%s6119_s6 + $0x2d0] sm:$0xf] %v828_v52  ;;  %831 = vst [vmem:[%s6119_s6 + $0x2d4] sm:$0xf] %v830_v53  ;;  %v834_v55 = vld [vmem:[%s6114_s0 + $0x894] sm:$0xf] }
  0xee   : > { %833 = vst [vmem:[%s6119_s6 + $0x2d8] sm:$0xf] %v832_v54  ;;  %v836_v56 = vld [vmem:[%s6114_s0 + $0x8a0] sm:$0xf]  ;;  %v838_v57 = vld [vmem:[%s6114_s0 + $0x8ac] sm:$0xf] }
  0xef   : > { %835 = vst [vmem:[%s6119_s6 + $0x2dc] sm:$0xf] %v834_v55  ;;  %837 = vst [vmem:[%s6119_s6 + $0x2e0] sm:$0xf] %v836_v56  ;;  %v840_v58 = vld [vmem:[%s6114_s0 + $0x8b8] sm:$0xf] }
  0xf0   : > { %839 = vst [vmem:[%s6119_s6 + $0x2e4] sm:$0xf] %v838_v57  ;;  %v842_v59 = vld [vmem:[%s6114_s0 + $0x8c4] sm:$0xf]  ;;  %v844_v60 = vld [vmem:[%s6114_s0 + $0x8d0] sm:$0xf] }
  0xf1   : > { %841 = vst [vmem:[%s6119_s6 + $0x2e8] sm:$0xf] %v840_v58  ;;  %843 = vst [vmem:[%s6119_s6 + $0x2ec] sm:$0xf] %v842_v59  ;;  %v846_v61 = vld [vmem:[%s6114_s0 + $0x8dc] sm:$0xf] }
  0xf2   : > { %845 = vst [vmem:[%s6119_s6 + $0x2f0] sm:$0xf] %v844_v60  ;;  %v848_v62 = vld [vmem:[%s6114_s0 + $0x8e8] sm:$0xf]  ;;  %v850_v63 = vld [vmem:[%s6114_s0 + $0x8f4] sm:$0xf] }
  0xf3   : > { %847 = vst [vmem:[%s6119_s6 + $0x2f4] sm:$0xf] %v846_v61  ;;  %849 = vst [vmem:[%s6119_s6 + $0x2f8] sm:$0xf] %v848_v62  ;;  %v852_v0 = vld [vmem:[%s6114_s0 + $0x900] sm:$0xf] }
  0xf4   : > { %851 = vst [vmem:[%s6119_s6 + $0x2fc] sm:$0xf] %v850_v63  ;;  %v854_v1 = vld [vmem:[%s6114_s0 + $0x90c] sm:$0xf]  ;;  %v856_v2 = vld [vmem:[%s6114_s0 + $0x918] sm:$0xf] }
  0xf5   : > { %853 = vst [vmem:[%s6119_s6 + $0x300] sm:$0xf] %v852_v0  ;;  %855 = vst [vmem:[%s6119_s6 + $0x304] sm:$0xf] %v854_v1  ;;  %v858_v3 = vld [vmem:[%s6114_s0 + $0x924] sm:$0xf] }
  0xf6   : > { %857 = vst [vmem:[%s6119_s6 + $0x308] sm:$0xf] %v856_v2  ;;  %v860_v4 = vld [vmem:[%s6114_s0 + $0x930] sm:$0xf]  ;;  %v862_v5 = vld [vmem:[%s6114_s0 + $0x93c] sm:$0xf] }
  0xf7   : > { %859 = vst [vmem:[%s6119_s6 + $0x30c] sm:$0xf] %v858_v3  ;;  %861 = vst [vmem:[%s6119_s6 + $0x310] sm:$0xf] %v860_v4  ;;  %v864_v6 = vld [vmem:[%s6114_s0 + $0x948] sm:$0xf] }
  0xf8   : > { %863 = vst [vmem:[%s6119_s6 + $0x314] sm:$0xf] %v862_v5  ;;  %v866_v7 = vld [vmem:[%s6114_s0 + $0x954] sm:$0xf]  ;;  %v868_v8 = vld [vmem:[%s6114_s0 + $0x960] sm:$0xf] }
  0xf9   : > { %865 = vst [vmem:[%s6119_s6 + $0x318] sm:$0xf] %v864_v6  ;;  %867 = vst [vmem:[%s6119_s6 + $0x31c] sm:$0xf] %v866_v7  ;;  %v870_v9 = vld [vmem:[%s6114_s0 + $0x96c] sm:$0xf] }
  0xfa   : > { %869 = vst [vmem:[%s6119_s6 + $0x320] sm:$0xf] %v868_v8  ;;  %v872_v10 = vld [vmem:[%s6114_s0 + $0x978] sm:$0xf]  ;;  %v874_v11 = vld [vmem:[%s6114_s0 + $0x984] sm:$0xf] }
  0xfb   : > { %871 = vst [vmem:[%s6119_s6 + $0x324] sm:$0xf] %v870_v9  ;;  %873 = vst [vmem:[%s6119_s6 + $0x328] sm:$0xf] %v872_v10  ;;  %v876_v12 = vld [vmem:[%s6114_s0 + $0x990] sm:$0xf] }
  0xfc   : > { %875 = vst [vmem:[%s6119_s6 + $0x32c] sm:$0xf] %v874_v11  ;;  %v878_v13 = vld [vmem:[%s6114_s0 + $0x99c] sm:$0xf]  ;;  %v880_v14 = vld [vmem:[%s6114_s0 + $0x9a8] sm:$0xf] }
  0xfd   : > { %877 = vst [vmem:[%s6119_s6 + $0x330] sm:$0xf] %v876_v12  ;;  %879 = vst [vmem:[%s6119_s6 + $0x334] sm:$0xf] %v878_v13  ;;  %v882_v15 = vld [vmem:[%s6114_s0 + $0x9b4] sm:$0xf] }
  0xfe   : > { %881 = vst [vmem:[%s6119_s6 + $0x338] sm:$0xf] %v880_v14  ;;  %v884_v16 = vld [vmem:[%s6114_s0 + $0x9c0] sm:$0xf]  ;;  %v886_v17 = vld [vmem:[%s6114_s0 + $0x9cc] sm:$0xf] }
  0xff   : > { %883 = vst [vmem:[%s6119_s6 + $0x33c] sm:$0xf] %v882_v15  ;;  %885 = vst [vmem:[%s6119_s6 + $0x340] sm:$0xf] %v884_v16  ;;  %v888_v18 = vld [vmem:[%s6114_s0 + $0x9d8] sm:$0xf] }
 0x100   : > { %887 = vst [vmem:[%s6119_s6 + $0x344] sm:$0xf] %v886_v17  ;;  %v890_v19 = vld [vmem:[%s6114_s0 + $0x9e4] sm:$0xf]  ;;  %v892_v20 = vld [vmem:[%s6114_s0 + $0x9f0] sm:$0xf] }
 0x101   : > { %889 = vst [vmem:[%s6119_s6 + $0x348] sm:$0xf] %v888_v18  ;;  %891 = vst [vmem:[%s6119_s6 + $0x34c] sm:$0xf] %v890_v19  ;;  %v894_v21 = vld [vmem:[%s6114_s0 + $0x9fc] sm:$0xf] }
 0x102   : > { %893 = vst [vmem:[%s6119_s6 + $0x350] sm:$0xf] %v892_v20  ;;  %v896_v22 = vld [vmem:[%s6114_s0 + $0xa08] sm:$0xf]  ;;  %v898_v23 = vld [vmem:[%s6114_s0 + $0xa14] sm:$0xf] }
 0x103   : > { %895 = vst [vmem:[%s6119_s6 + $0x354] sm:$0xf] %v894_v21  ;;  %897 = vst [vmem:[%s6119_s6 + $0x358] sm:$0xf] %v896_v22  ;;  %v900_v24 = vld [vmem:[%s6114_s0 + $0xa20] sm:$0xf] }
 0x104   : > { %899 = vst [vmem:[%s6119_s6 + $0x35c] sm:$0xf] %v898_v23  ;;  %v902_v25 = vld [vmem:[%s6114_s0 + $0xa2c] sm:$0xf]  ;;  %v904_v26 = vld [vmem:[%s6114_s0 + $0xa38] sm:$0xf] }
 0x105   : > { %901 = vst [vmem:[%s6119_s6 + $0x360] sm:$0xf] %v900_v24  ;;  %903 = vst [vmem:[%s6119_s6 + $0x364] sm:$0xf] %v902_v25  ;;  %v906_v27 = vld [vmem:[%s6114_s0 + $0xa44] sm:$0xf] }
 0x106   : > { %905 = vst [vmem:[%s6119_s6 + $0x368] sm:$0xf] %v904_v26  ;;  %v908_v28 = vld [vmem:[%s6114_s0 + $0xa50] sm:$0xf]  ;;  %v910_v29 = vld [vmem:[%s6114_s0 + $0xa5c] sm:$0xf] }
 0x107   : > { %907 = vst [vmem:[%s6119_s6 + $0x36c] sm:$0xf] %v906_v27  ;;  %909 = vst [vmem:[%s6119_s6 + $0x370] sm:$0xf] %v908_v28  ;;  %v912_v30 = vld [vmem:[%s6114_s0 + $0xa68] sm:$0xf] }
 0x108   : > { %911 = vst [vmem:[%s6119_s6 + $0x374] sm:$0xf] %v910_v29  ;;  %v914_v31 = vld [vmem:[%s6114_s0 + $0xa74] sm:$0xf]  ;;  %v916_v32 = vld [vmem:[%s6114_s0 + $0xa80] sm:$0xf] }
 0x109   : > { %913 = vst [vmem:[%s6119_s6 + $0x378] sm:$0xf] %v912_v30  ;;  %915 = vst [vmem:[%s6119_s6 + $0x37c] sm:$0xf] %v914_v31  ;;  %v918_v33 = vld [vmem:[%s6114_s0 + $0xa8c] sm:$0xf] }
 0x10a   : > { %917 = vst [vmem:[%s6119_s6 + $0x380] sm:$0xf] %v916_v32  ;;  %v920_v34 = vld [vmem:[%s6114_s0 + $0xa98] sm:$0xf]  ;;  %v922_v35 = vld [vmem:[%s6114_s0 + $0xaa4] sm:$0xf] }
 0x10b   : > { %919 = vst [vmem:[%s6119_s6 + $0x384] sm:$0xf] %v918_v33  ;;  %921 = vst [vmem:[%s6119_s6 + $0x388] sm:$0xf] %v920_v34  ;;  %v924_v36 = vld [vmem:[%s6114_s0 + $0xab0] sm:$0xf] }
 0x10c   : > { %923 = vst [vmem:[%s6119_s6 + $0x38c] sm:$0xf] %v922_v35  ;;  %v926_v37 = vld [vmem:[%s6114_s0 + $0xabc] sm:$0xf]  ;;  %v928_v38 = vld [vmem:[%s6114_s0 + $0xac8] sm:$0xf] }
 0x10d   : > { %925 = vst [vmem:[%s6119_s6 + $0x390] sm:$0xf] %v924_v36  ;;  %927 = vst [vmem:[%s6119_s6 + $0x394] sm:$0xf] %v926_v37  ;;  %v930_v39 = vld [vmem:[%s6114_s0 + $0xad4] sm:$0xf] }
 0x10e   : > { %929 = vst [vmem:[%s6119_s6 + $0x398] sm:$0xf] %v928_v38  ;;  %v932_v40 = vld [vmem:[%s6114_s0 + $0xae0] sm:$0xf]  ;;  %v934_v41 = vld [vmem:[%s6114_s0 + $0xaec] sm:$0xf] }
 0x10f   : > { %931 = vst [vmem:[%s6119_s6 + $0x39c] sm:$0xf] %v930_v39  ;;  %933 = vst [vmem:[%s6119_s6 + $0x3a0] sm:$0xf] %v932_v40  ;;  %v936_v42 = vld [vmem:[%s6114_s0 + $0xaf8] sm:$0xf] }
 0x110   : > { %935 = vst [vmem:[%s6119_s6 + $0x3a4] sm:$0xf] %v934_v41  ;;  %v938_v43 = vld [vmem:[%s6114_s0 + $0xb04] sm:$0xf]  ;;  %v940_v44 = vld [vmem:[%s6114_s0 + $0xb10] sm:$0xf] }
 0x111   : > { %937 = vst [vmem:[%s6119_s6 + $0x3a8] sm:$0xf] %v936_v42  ;;  %939 = vst [vmem:[%s6119_s6 + $0x3ac] sm:$0xf] %v938_v43  ;;  %v942_v45 = vld [vmem:[%s6114_s0 + $0xb1c] sm:$0xf] }
 0x112   : > { %941 = vst [vmem:[%s6119_s6 + $0x3b0] sm:$0xf] %v940_v44  ;;  %v944_v46 = vld [vmem:[%s6114_s0 + $0xb28] sm:$0xf]  ;;  %v946_v47 = vld [vmem:[%s6114_s0 + $0xb34] sm:$0xf] }
 0x113   : > { %943 = vst [vmem:[%s6119_s6 + $0x3b4] sm:$0xf] %v942_v45  ;;  %945 = vst [vmem:[%s6119_s6 + $0x3b8] sm:$0xf] %v944_v46  ;;  %v948_v48 = vld [vmem:[%s6114_s0 + $0xb40] sm:$0xf] }
 0x114   : > { %947 = vst [vmem:[%s6119_s6 + $0x3bc] sm:$0xf] %v946_v47  ;;  %v950_v49 = vld [vmem:[%s6114_s0 + $0xb4c] sm:$0xf]  ;;  %v952_v50 = vld [vmem:[%s6114_s0 + $0xb58] sm:$0xf] }
 0x115   : > { %949 = vst [vmem:[%s6119_s6 + $0x3c0] sm:$0xf] %v948_v48  ;;  %951 = vst [vmem:[%s6119_s6 + $0x3c4] sm:$0xf] %v950_v49  ;;  %v954_v51 = vld [vmem:[%s6114_s0 + $0xb64] sm:$0xf] }
 0x116   : > { %953 = vst [vmem:[%s6119_s6 + $0x3c8] sm:$0xf] %v952_v50  ;;  %v956_v52 = vld [vmem:[%s6114_s0 + $0xb70] sm:$0xf]  ;;  %v958_v53 = vld [vmem:[%s6114_s0 + $0xb7c] sm:$0xf] }
 0x117   : > { %955 = vst [vmem:[%s6119_s6 + $0x3cc] sm:$0xf] %v954_v51  ;;  %957 = vst [vmem:[%s6119_s6 + $0x3d0] sm:$0xf] %v956_v52  ;;  %v960_v54 = vld [vmem:[%s6114_s0 + $0xb88] sm:$0xf] }
 0x118   : > { %959 = vst [vmem:[%s6119_s6 + $0x3d4] sm:$0xf] %v958_v53  ;;  %v962_v55 = vld [vmem:[%s6114_s0 + $0xb94] sm:$0xf]  ;;  %v964_v56 = vld [vmem:[%s6114_s0 + $0xba0] sm:$0xf] }
 0x119   : > { %961 = vst [vmem:[%s6119_s6 + $0x3d8] sm:$0xf] %v960_v54  ;;  %963 = vst [vmem:[%s6119_s6 + $0x3dc] sm:$0xf] %v962_v55  ;;  %v966_v57 = vld [vmem:[%s6114_s0 + $0xbac] sm:$0xf] }
 0x11a   : > { %965 = vst [vmem:[%s6119_s6 + $0x3e0] sm:$0xf] %v964_v56  ;;  %v968_v58 = vld [vmem:[%s6114_s0 + $0xbb8] sm:$0xf]  ;;  %v970_v59 = vld [vmem:[%s6114_s0 + $0xbc4] sm:$0xf] }
 0x11b   : > { %967 = vst [vmem:[%s6119_s6 + $0x3e4] sm:$0xf] %v966_v57  ;;  %969 = vst [vmem:[%s6119_s6 + $0x3e8] sm:$0xf] %v968_v58  ;;  %v972_v60 = vld [vmem:[%s6114_s0 + $0xbd0] sm:$0xf] }
 0x11c   : > { %971 = vst [vmem:[%s6119_s6 + $0x3ec] sm:$0xf] %v970_v59  ;;  %v974_v61 = vld [vmem:[%s6114_s0 + $0xbdc] sm:$0xf]  ;;  %v976_v62 = vld [vmem:[%s6114_s0 + $0xbe8] sm:$0xf] }
 0x11d   : > { %973 = vst [vmem:[%s6119_s6 + $0x3f0] sm:$0xf] %v972_v60  ;;  %975 = vst [vmem:[%s6119_s6 + $0x3f4] sm:$0xf] %v974_v61  ;;  %v978_v63 = vld [vmem:[%s6114_s0 + $0xbf4] sm:$0xf] }
 0x11e   : > { %977 = vst [vmem:[%s6119_s6 + $0x3f8] sm:$0xf] %v976_v62  ;;  %979 = vst [vmem:[%s6119_s6 + $0x3fc] sm:$0xf] %v978_v63 }
 0x11f PF: > { %p4556_p0 = scmp.ge.s32.totalorder %s5718_s22, 1  ;;  %p1519_p1 = scmp.lt.s32.totalorder %s5718_s22, 7 }
 0x121   : > { %p1520_p2 = pnand %p4556_p0, %p1519_p1 }
 0x122   : > { %s1526_s5 = sand.u32 (!%p1520_p2), 1, %s5694_s16   ;;  %s1533_s23 = sand.u32 (!%p1520_p2), 1, %s5686_s14  }
 0x123   : > { %1523 = sbr.rel (%p1520_p2) target bundleno = 840 (0x348), region = 88  ;;  %s4557_s28 = sshll.u32 (!%p1520_p2), %s1526_s5, 10 }
 0x124   : > { %s4558_s7 = sshll.u32 (!%p1520_p2), %s1533_s23, 10  ;;  %s1559_s11 = sand.u32 (!%p1520_p2), 1, %s5678_s12  }
 0x125   : > { %p1565_p3 = scmp.lt.s32.totalorder (!%p1520_p2), %s5706_s19, 2  ;;  %s4559_s0 = sshll.u32 (!%p1520_p2), %s1559_s11, 6 }
 0x126   : > { %s6640_s6 = scalar_lea.vmem (!%p1520_p2), [#allocation3], %s4557_s28  ;;  %s6642_s1 = scalar_lea.vmem (!%p1520_p2), [#allocation4], %s4558_s7 }
 0x127   : > { %s6644_s25 = scalar_lea.vmem (!%p1520_p2), [#allocation5], %s4559_s0  ;;  %p4560_p4 = scmp.ne.s32.totalorder (!%p1520_p2), %s5702_s18, 0 }
 0x12a   : > { %s1566_s26 = scalar_select %p1565_p3, %s5706_s19, 2 }
 0x12b   : > { %1573 = sbr.rel (%p4560_p4) target bundleno = 310 (0x136), region = 100 }
 0x12c   : > { %s1567_s4 = scalar_lea.vmem %s7113_s2, %s1566_s26 }
 0x12d   : > { %v4561_v0 = vld [vmem:[%s1567_s4] ss:$0 sm:$0xff] (!%p4560_p4) }
 0x12e   : > { %1581 = vst [vmem:[#allocation2] sm:$0xff] (!%p4560_p4), %v4561_v0  ;;  %1582 = vst [vmem:[#allocation2 + $0x8] sm:$0xff] (!%p4560_p4), %v4561_v0 }
 0x12f   : > { %1583 = vst [vmem:[#allocation2 + $0x10] sm:$0xff] (!%p4560_p4), %v4561_v0  ;;  %1584 = vst [vmem:[#allocation2 + $0x18] sm:$0xff] (!%p4560_p4), %v4561_v0 }
 0x130   : > { %1585 = vst [vmem:[#allocation2 + $0x20] sm:$0xff] (!%p4560_p4), %v4561_v0  ;;  %1586 = vst [vmem:[#allocation2 + $0x28] sm:$0xff] (!%p4560_p4), %v4561_v0 }
 0x131   : > { %1587 = vst [vmem:[#allocation2 + $0x30] sm:$0xff] (!%p4560_p4), %v4561_v0  ;;  %1588 = vst [vmem:[#allocation2 + $0x38] sm:$0xff] (!%p4560_p4), %v4561_v0 }
 0x132   : > { %1589 = vst [vmem:[#allocation2 + $0x40] sm:$0xff] %v4561_v0  ;;  %1590 = vst [vmem:[#allocation2 + $0x48] sm:$0xff] %v4561_v0 }
 0x133   : > { %1591 = vst [vmem:[#allocation2 + $0x50] sm:$0xff] %v4561_v0  ;;  %1592 = vst [vmem:[#allocation2 + $0x58] sm:$0xff] %v4561_v0 }
 0x134   : > { %1593 = vst [vmem:[#allocation2 + $0x60] sm:$0xff] %v4561_v0  ;;  %1594 = vst [vmem:[#allocation2 + $0x68] sm:$0xff] %v4561_v0 }
 0x135   : > { %1595 = vst [vmem:[#allocation2 + $0x70] sm:$0xff] %v4561_v0  ;;  %1596 = vst [vmem:[#allocation2 + $0x78] sm:$0xff] %v4561_v0 }
 0x136 PF: > { %v5504_v1 = vld [vmem:[%s6642_s1 + $0x40] sm:$0xff]   ;;  %v5508_v5 = vld [vmem:[%s6642_s1 + $0x48] sm:$0xff]   ;;  %v5512_v9 = vld [vmem:[%s6642_s1 + $0x50] sm:$0xff]   ;;  %p4818_p5 = scmp.ne.s32.totalorder %s5702_s18, 1 }
 0x137   : > { %v5505_v2 = vld [vmem:[%s6642_s1 + $0xc0] sm:$0xff]   ;;  %4903 = vmatprep.subr.bf16.mxu0 %v5504_v1  ;;  %v5509_v6 = vld [vmem:[%s6642_s1 + $0xc8] sm:$0xff]   ;;  %v5513_v10 = vld [vmem:[%s6642_s1 + $0xd0] sm:$0xff]  }
 0x138   : > { %v5506_v3 = vld [vmem:[%s6642_s1] sm:$0xff]   ;;  %4967 = vmatprep.subr.bf16.mxu1 %v5505_v2  ;;  %v5510_v7 = vld [vmem:[%s6642_s1 + $0x8] sm:$0xff]   ;;  %v5514_v11 = vld [vmem:[%s6642_s1 + $0x10] sm:$0xff]  }
 0x139   : > { %v5507_v4 = vld [vmem:[%s6642_s1 + $0x80] sm:$0xff]   ;;  %4904 = vmatpush3.bf16.msra.mxu0 %v5506_v3  ;;  %v5511_v8 = vld [vmem:[%s6642_s1 + $0x88] sm:$0xff]   ;;  %v5515_v12 = vld [vmem:[%s6642_s1 + $0x90] sm:$0xff]  }
 0x13a   : > { %4968 = vmatpush3.bf16.msra.mxu1 %v5507_v4  ;;  %4905 = vmatprep.subr.bf16.mxu0 %v5508_v5  ;;  %v5516_v13 = vld [vmem:[%s6642_s1 + $0x58] sm:$0xff]   ;;  %v5520_v17 = vld [vmem:[%s6642_s1 + $0x60] sm:$0xff]   ;;  %v5524_v21 = vld [vmem:[%s6642_s1 + $0x68] sm:$0xff]  }
 0x13b   : > { %4969 = vmatprep.subr.bf16.mxu1 %v5509_v6  ;;  %v5517_v14 = vld [vmem:[%s6642_s1 + $0xd8] sm:$0xff]   ;;  %v5521_v18 = vld [vmem:[%s6642_s1 + $0xe0] sm:$0xff]   ;;  %v5525_v22 = vld [vmem:[%s6642_s1 + $0xe8] sm:$0xff]  }
 0x13c   : > { %v5518_v15 = vld [vmem:[%s6642_s1 + $0x18] sm:$0xff]   ;;  %v5522_v19 = vld [vmem:[%s6642_s1 + $0x20] sm:$0xff]   ;;  %v5526_v23 = vld [vmem:[%s6642_s1 + $0x28] sm:$0xff]  }
 0x13d   : > { %4906 = vmatpush3.bf16.msra.mxu0 %v5510_v7  ;;  %v5519_v16 = vld [vmem:[%s6642_s1 + $0x98] sm:$0xff]   ;;  %v5523_v20 = vld [vmem:[%s6642_s1 + $0xa0] sm:$0xff]   ;;  %v5527_v24 = vld [vmem:[%s6642_s1 + $0xa8] sm:$0xff]  }
 0x13e   : > { %4970 = vmatpush3.bf16.msra.mxu1 %v5511_v8  ;;  %4907 = vmatprep.subr.bf16.mxu0 %v5512_v9  ;;  %v5528_v25 = vld [vmem:[%s6642_s1 + $0x70] sm:$0xff]   ;;  %v5532_v29 = vld [vmem:[%s6642_s1 + $0x78] sm:$0xff]   ;;  %v1613_v33 = vld [vmem:[%s6640_s6] sm:$0xff] }
 0x13f   : > { %4971 = vmatprep.subr.bf16.mxu1 %v5513_v10  ;;  %v5529_v26 = vld [vmem:[%s6642_s1 + $0xf0] sm:$0xff]   ;;  %v5533_v30 = vld [vmem:[%s6642_s1 + $0xf8] sm:$0xff]   ;;  %v1621_v34 = vld [vmem:[%s6640_s6 + $0x40] sm:$0xff] }
 0x140   : > { %v5530_v27 = vld [vmem:[%s6642_s1 + $0x30] sm:$0xff]   ;;  %v5534_v31 = vld [vmem:[%s6642_s1 + $0x38] sm:$0xff]   ;;  %v1614_v35 = vld [vmem:[%s6640_s6 + $0x8] sm:$0xff]  ;;  %v4562_v36 = vcombine.low %v1613_v33, %v1621_v34  ;;  %v4563_v37 = vcombine.high %v1613_v33, %v1621_v34 }
 0x141   : > { %4908 = vmatpush3.bf16.msra.mxu0 %v5514_v11  ;;  %v5531_v28 = vld [vmem:[%s6642_s1 + $0xb0] sm:$0xff]   ;;  %v5535_v32 = vld [vmem:[%s6642_s1 + $0xb8] sm:$0xff]   ;;  %v1622_v38 = vld [vmem:[%s6640_s6 + $0x48] sm:$0xff] }
 0x142   : > { %4972 = vmatpush3.bf16.msra.mxu1 %v5515_v12  ;;  %4909 = vmatprep.subr.bf16.mxu0 %v5516_v13  ;;  %v4564_v39 = vcombine.low %v1614_v35, %v1622_v38  ;;  %v4565_v40 = vcombine.high %v1614_v35, %v1622_v38  ;;  %v5536_v41 = vld [vmem:[%s6642_s1 + $0x140] sm:$0xff]   ;;  %v1630_v48 = vld [vmem:[%s6640_s6 + $0x88] sm:$0xff]  ;;  %v5544_v63 = vld [vmem:[%s6642_s1 + $0x150] sm:$0xff]  }
 0x143   : > { %4973 = vmatprep.subr.bf16.mxu1 %v5517_v14  ;;  %3437 = vmatprep.mubr.bf16.mxu0 %v4563_v37  ;;  %v5537_v42 = vld [vmem:[%s6642_s1 + $0x100] sm:$0xff]   ;;  %v1638_v49 = vld [vmem:[%s6640_s6 + $0xc8] sm:$0xff]  ;;  %v5545_v0 = vld [vmem:[%s6642_s1 + $0x110] sm:$0xff]  }
 0x144   : > { %3534 = vmatprep.mubr.bf16.mxu1 %v4565_v40  ;;  %v5538_v43 = vld [vmem:[%s6642_s1 + $0x1c0] sm:$0xff]   ;;  %v4581_v50 = vcombine.high %v1630_v48, %v1638_v49  ;;  %v5540_v51 = vld [vmem:[%s6642_s1 + $0x148] sm:$0xff]   ;;  %v4580_v54 = vcombine.low %v1630_v48, %v1638_v49  ;;  %v5546_v1 = vld [vmem:[%s6642_s1 + $0x1d0] sm:$0xff]  }
 0x145   : > { %4910 = vmatpush3.bf16.msra.mxu0 %v5518_v15  ;;  %v5539_v44 = vld [vmem:[%s6642_s1 + $0x180] sm:$0xff]   ;;  %v5541_v53 = vld [vmem:[%s6642_s1 + $0x108] sm:$0xff]   ;;  %v5547_v2 = vld [vmem:[%s6642_s1 + $0x190] sm:$0xff]  }
 0x146   : > { %4974 = vmatpush3.bf16.msra.mxu1 %v5519_v16  ;;  %4911 = vmatprep.subr.bf16.mxu0 %v5520_v17  ;;  %v1629_v45 = vld [vmem:[%s6640_s6 + $0x80] sm:$0xff]  ;;  %v5542_v55 = vld [vmem:[%s6642_s1 + $0x1c8] sm:$0xff]   ;;  %v5548_v11 = vld [vmem:[%s6642_s1 + $0x158] sm:$0xff]  }
 0x147   : > { %4975 = vmatprep.subr.bf16.mxu1 %v5521_v18  ;;  %v1637_v46 = vld [vmem:[%s6640_s6 + $0xc0] sm:$0xff]  ;;  %v5543_v56 = vld [vmem:[%s6642_s1 + $0x188] sm:$0xff]   ;;  %v5549_v12 = vld [vmem:[%s6642_s1 + $0x118] sm:$0xff]  }
 0x148   : > { %v4579_v47 = vcombine.high %v1629_v45, %v1637_v46  ;;  %v4578_v52 = vcombine.low %v1629_v45, %v1637_v46  ;;  %v1645_v57 = vld [vmem:[%s6640_s6 + $0x100] sm:$0xff]  ;;  %v1646_v59 = vld [vmem:[%s6640_s6 + $0x108] sm:$0xff]  ;;  %v5550_v13 = vld [vmem:[%s6642_s1 + $0x1d8] sm:$0xff]  }
 0x149   : > { %4912 = vmatpush3.bf16.msra.mxu0 %v5522_v19  ;;  %v1653_v58 = vld [vmem:[%s6640_s6 + $0x140] sm:$0xff]  ;;  %v1654_v60 = vld [vmem:[%s6640_s6 + $0x148] sm:$0xff]  ;;  %v5551_v14 = vld [vmem:[%s6642_s1 + $0x198] sm:$0xff]  }
 0x14a   : > { %4976 = vmatpush3.bf16.msra.mxu1 %v5523_v20  ;;  %4913 = vmatprep.subr.bf16.mxu0 %v5524_v21  ;;  %v4595_v61 = vcombine.high %v1645_v57, %v1653_v58  ;;  %v4597_v62 = vcombine.high %v1646_v59, %v1654_v60  ;;  %v4594_v3 = vcombine.low %v1645_v57, %v1653_v58  ;;  %v1661_v4 = vld [vmem:[%s6640_s6 + $0x180] sm:$0xff]  ;;  %v1662_v6 = vld [vmem:[%s6640_s6 + $0x188] sm:$0xff]  ;;  %v5561_v40 = vld [vmem:[%s6642_s1 + $0x130] sm:$0xff]  }
 0x14b   : > { %4977 = vmatprep.subr.bf16.mxu1 %v5525_v22  ;;  %v1669_v5 = vld [vmem:[%s6640_s6 + $0x1c0] sm:$0xff]  ;;  %v4596_v7 = vcombine.low %v1646_v59, %v1654_v60  ;;  %v1670_v9 = vld [vmem:[%s6640_s6 + $0x1c8] sm:$0xff]  ;;  %v5565_v49 = vld [vmem:[%s6642_s1 + $0x138] sm:$0xff]  }
 0x14c   : > { %v4611_v8 = vcombine.high %v1661_v4, %v1669_v5  ;;  %v4613_v10 = vcombine.high %v1662_v6, %v1670_v9  ;;  %v1677_v15 = vld [vmem:[%s6640_s6 + $0x200] sm:$0xff]  ;;  %v1678_v17 = vld [vmem:[%s6640_s6 + $0x208] sm:$0xff]  ;;  %v4610_v20 = vcombine.low %v1661_v4, %v1669_v5  ;;  %v4612_v22 = vcombine.low %v1662_v6, %v1670_v9  ;;  %v1624_v4 = vld [vmem:[%s6640_s6 + $0x58] sm:$0xff] }
 0x14d   : > { %4914 = vmatpush3.bf16.msra.mxu0 %v5526_v23  ;;  %v1685_v16 = vld [vmem:[%s6640_s6 + $0x240] sm:$0xff]  ;;  %v1686_v18 = vld [vmem:[%s6640_s6 + $0x248] sm:$0xff]  ;;  %v1631_v9 = vld [vmem:[%s6640_s6 + $0x90] sm:$0xff] }
 0x14e   : > { %4978 = vmatpush3.bf16.msra.mxu1 %v5527_v24  ;;  %4915 = vmatprep.subr.bf16.mxu0 %v5528_v25  ;;  %v5552_v19 = vld [vmem:[%s6642_s1 + $0x160] sm:$0xff]   ;;  %v4627_v23 = vcombine.high %v1677_v15, %v1685_v16  ;;  %v4629_v25 = vcombine.high %v1678_v17, %v1686_v18  ;;  %v5558_v33 = vld [vmem:[%s6642_s1 + $0x1e8] sm:$0xff]   ;;  %v4626_v35 = vcombine.low %v1677_v15, %v1685_v16 }
 0x14f   : > { %4979 = vmatprep.subr.bf16.mxu1 %v5529_v26  ;;  %v5553_v21 = vld [vmem:[%s6642_s1 + $0x120] sm:$0xff]   ;;  %v5559_v34 = vld [vmem:[%s6642_s1 + $0x1a8] sm:$0xff]  }
 0x150   : > { %v5554_v24 = vld [vmem:[%s6642_s1 + $0x1e0] sm:$0xff]   ;;  %v1710_v45 = vld [vmem:[%s6640_s6 + $0x308] sm:$0xff] }
 0x151   : > { %4916 = vmatpush3.bf16.msra.mxu0 %v5530_v27  ;;  %v5555_v26 = vld [vmem:[%s6642_s1 + $0x1a0] sm:$0xff]   ;;  %v1718_v46 = vld [vmem:[%s6640_s6 + $0x348] sm:$0xff] }
 0x152   : > { %4980 = vmatpush3.bf16.msra.mxu1 %v5531_v28  ;;  %4917 = vmatprep.subr.bf16.mxu0 %v5532_v29  ;;  %v1693_v27 = vld [vmem:[%s6640_s6 + $0x280] sm:$0xff]  ;;  %v5556_v29 = vld [vmem:[%s6642_s1 + $0x168] sm:$0xff]  }
 0x153   : > { %4981 = vmatprep.subr.bf16.mxu1 %v5533_v30  ;;  %v1701_v28 = vld [vmem:[%s6640_s6 + $0x2c0] sm:$0xff]  ;;  %v1694_v30 = vld [vmem:[%s6640_s6 + $0x288] sm:$0xff] }
 0x154   : > { %v4643_v37 = vcombine.high %v1693_v27, %v1701_v28  ;;  %v4642_v48 = vcombine.low %v1693_v27, %v1701_v28  ;;  %v5568_v57 = vld [vmem:[%s6642_s1 + $0x240] sm:$0xff]   ;;  %v1726_v58 = vld [vmem:[%s6640_s6 + $0x388] sm:$0xff]  ;;  %v5576_v27 = vld [vmem:[%s6642_s1 + $0x250] sm:$0xff]  }
 0x155   : > { %4918 = vmatpush3.bf16.msra.mxu0 %v5534_v31  ;;  %v1702_v31 = vld [vmem:[%s6640_s6 + $0x2c8] sm:$0xff]  ;;  %v5570_v59 = vld [vmem:[%s6642_s1 + $0x2c0] sm:$0xff]   ;;  %v5578_v28 = vld [vmem:[%s6642_s1 + $0x2d0] sm:$0xff]  }
 0x156   : > { %4982 = vmatpush3.bf16.msra.mxu1 %v5535_v32  ;;  %5031 = vmatprep.subr.bf16.mxu0 %v5536_v41  ;;  %v5557_v32 = vld [vmem:[%s6642_s1 + $0x128] sm:$0xff]   ;;  %v4645_v38 = vcombine.high %v1694_v30, %v1702_v31  ;;  %v5562_v41 = vld [vmem:[%s6642_s1 + $0x1f0] sm:$0xff]   ;;  %v5571_v16 = vld [vmem:[%s6642_s1 + $0x280] sm:$0xff]  }
 0x157   : > { %5095 = vmatprep.subr.bf16.mxu1 %v5538_v43  ;;  %v1717_v43 = vld [vmem:[%s6640_s6 + $0x340] sm:$0xff]  ;;  %v1734_v60 = vld [vmem:[%s6640_s6 + $0x3c8] sm:$0xff] }
 0x158   : > { %3438 = vmatmul.mubr.bf16.vlgmr.msra.gmra.mrb[0].mxu0 %v4562_v36  ;;  %v4628_v36 = vcombine.low %v1678_v17, %v1686_v18  ;;  %v4676_v6 = vcombine.low %v1726_v58, %v1734_v60  ;;  %v5572_v18 = vld [vmem:[%s6642_s1 + $0x248] sm:$0xff]  }
 0x159   : > { %3535 = vmatmul.mubr.bf16.vlgmr.msra.gmra.mrb[0].mxu1 %v4564_v39  ;;  %5032 = vmatpush3.bf16.msra.mxu0 %v5537_v42  ;;  %v5560_v39 = vld [vmem:[%s6642_s1 + $0x170] sm:$0xff]   ;;  %v1709_v42 = vld [vmem:[%s6640_s6 + $0x300] sm:$0xff] }
 0x15a   : > { %5096 = vmatpush3.bf16.msra.mxu1 %v5539_v44  ;;  %3445 = vmatprep.mubr.bf16.mxu0 %v4579_v47  ;;  %v5563_v44 = vld [vmem:[%s6642_s1 + $0x1b0] sm:$0xff]   ;;  %v5564_v47 = vld [vmem:[%s6642_s1 + $0x178] sm:$0xff]  }
 0x15b   : > { %3542 = vmatprep.mubr.bf16.mxu1 %v4581_v50  ;;  %5033 = vmatprep.subr.bf16.mxu0 %v5540_v51  ;;  %v4644_v50 = vcombine.low %v1694_v30, %v1702_v31  ;;  %v4659_v51 = vcombine.high %v1709_v42, %v1717_v43 }
 0x15c   : > { %5097 = vmatprep.subr.bf16.mxu1 %v5542_v55  ;;  %v1725_v55 = vld [vmem:[%s6640_s6 + $0x380] sm:$0xff] }
 0x15d   : > { %5034 = vmatpush3.bf16.msra.mxu0 %v5541_v53  ;;  %v4661_v53 = vcombine.high %v1710_v45, %v1718_v46 }
 0x15e   : > { %5098 = vmatpush3.bf16.msra.mxu1 %v5543_v56  ;;  %5035 = vmatprep.subr.bf16.mxu0 %v5544_v63  ;;  %v1733_v56 = vld [vmem:[%s6640_s6 + $0x3c0] sm:$0xff] }
 0x15f   : > { %5099 = vmatprep.subr.bf16.mxu1 %v5546_v1  ;;  %v4675_v63 = vcombine.high %v1725_v55, %v1733_v56  ;;  %v1615_v1 = vld [vmem:[%s6640_s6 + $0x10] sm:$0xff]  ;;  %v4674_v5 = vcombine.low %v1725_v55, %v1733_v56  ;;  %v1680_v55 = vld [vmem:[%s6640_s6 + $0x218] sm:$0xff] }
 0x160   : > { %3446 = vmatmul.mubr.bf16.gmra.mrb[4].mxu0 %v4578_v52  ;;  %v5566_v52 = vld [vmem:[%s6642_s1 + $0x1f8] sm:$0xff]  }
 0x161   : > { %3543 = vmatmul.mubr.bf16.gmra.mrb[4].mxu1 %v4580_v54  ;;  %3453 = vmatprep.mubr.bf16.mxu0 %v4595_v61  ;;  %v5567_v54 = vld [vmem:[%s6642_s1 + $0x1b8] sm:$0xff]   ;;  %v4658_v61 = vcombine.low %v1709_v42, %v1717_v43  ;;  %v5584_v43 = vld [vmem:[%s6642_s1 + $0x260] sm:$0xff]  }
 0x162   : > { %3550 = vmatprep.mubr.bf16.mxu1 %v4597_v62  ;;  %5036 = vmatpush3.bf16.msra.mxu0 %v5545_v0  ;;  %v4660_v62 = vcombine.low %v1710_v45, %v1718_v46  ;;  %v4677_v0 = vcombine.high %v1726_v58, %v1734_v60  ;;  %v5583_v42 = vld [vmem:[%s6642_s1 + $0x298] sm:$0xff]   ;;  %v5586_v45 = vld [vmem:[%s6642_s1 + $0x2e0] sm:$0xff]   ;;  %v5591_v58 = vld [vmem:[%s6642_s1 + $0x2a8] sm:$0xff]  }
 0x163   : > { %5100 = vmatpush3.bf16.msra.mxu1 %v5547_v2  ;;  %5037 = vmatprep.subr.bf16.mxu0 %v5548_v11  ;;  %v1623_v2 = vld [vmem:[%s6640_s6 + $0x50] sm:$0xff]  ;;  %v1688_v56 = vld [vmem:[%s6640_s6 + $0x258] sm:$0xff] }
 0x164   : > { %5101 = vmatprep.subr.bf16.mxu1 %v5550_v13  ;;  %v4566_v11 = vcombine.low %v1615_v1, %v1623_v2  ;;  %v1632_v13 = vld [vmem:[%s6640_s6 + $0x98] sm:$0xff] }
 0x166   : > { %5038 = vmatpush3.bf16.msra.mxu0 %v5549_v12  ;;  %v5569_v12 = vld [vmem:[%s6642_s1 + $0x200] sm:$0xff]  }
 0x167   : > { %5102 = vmatpush3.bf16.msra.mxu1 %v5551_v14  ;;  %5039 = vmatprep.subr.bf16.mxu0 %v5552_v19  ;;  %v1640_v14 = vld [vmem:[%s6640_s6 + $0xd8] sm:$0xff] }
 0x168   : > { %3454 = vmatmul.mubr.bf16.gmra.mrb[8].mxu0 %v4594_v3  ;;  %5103 = vmatprep.subr.bf16.mxu1 %v5554_v24  ;;  %v1616_v3 = vld [vmem:[%s6640_s6 + $0x18] sm:$0xff]  ;;  %v4585_v19 = vcombine.high %v1632_v13, %v1640_v14  ;;  %v1655_v24 = vld [vmem:[%s6640_s6 + $0x150] sm:$0xff]  ;;  %v4584_v30 = vcombine.low %v1632_v13, %v1640_v14  ;;  %v5602_v13 = vld [vmem:[%s6642_s1 + $0x3c0] sm:$0xff]   ;;  %v4632_v14 = vcombine.low %v1680_v55, %v1688_v56 }
 0x169   : > { %3551 = vmatmul.mubr.bf16.gmra.mrb[8].mxu1 %v4596_v7  ;;  %3461 = vmatprep.mubr.bf16.mxu0 %v4611_v8  ;;  %v4567_v7 = vcombine.high %v1615_v1, %v1623_v2  ;;  %v4569_v8 = vcombine.high %v1616_v3, %v1624_v4  ;;  %v4568_v15 = vcombine.low %v1616_v3, %v1624_v4  ;;  %v5593_v1 = vld [vmem:[%s6642_s1 + $0x230] sm:$0xff]   ;;  %v5596_v3 = vld [vmem:[%s6642_s1 + $0x278] sm:$0xff]  }
 0x16a   : > { %3558 = vmatprep.mubr.bf16.mxu1 %v4613_v10  ;;  %5040 = vmatpush3.bf16.msra.mxu0 %v5553_v21  ;;  %v1639_v10 = vld [vmem:[%s6640_s6 + $0xd0] sm:$0xff]  ;;  %v5574_v21 = vld [vmem:[%s6642_s1 + $0x2c8] sm:$0xff]  }
 0x16b   : > { %5104 = vmatpush3.bf16.msra.mxu1 %v5555_v26  ;;  %5041 = vmatprep.subr.bf16.mxu0 %v5556_v29  ;;  %v4583_v17 = vcombine.high %v1631_v9, %v1639_v10  ;;  %v1656_v26 = vld [vmem:[%s6640_s6 + $0x158] sm:$0xff]  ;;  %v4582_v29 = vcombine.low %v1631_v9, %v1639_v10  ;;  %v5595_v2 = vld [vmem:[%s6642_s1 + $0x2b0] sm:$0xff]  }
 0x16c   : > { %5105 = vmatprep.subr.bf16.mxu1 %v5558_v33  ;;  %v5577_v33 = vld [vmem:[%s6642_s1 + $0x210] sm:$0xff]   ;;  %v5597_v9 = vld [vmem:[%s6642_s1 + $0x238] sm:$0xff]  }
 0x16d   : > { %v1695_v4 = vld [vmem:[%s6640_s6 + $0x290] sm:$0xff]  ;;  %v5599_v10 = vld [vmem:[%s6642_s1 + $0x2b8] sm:$0xff]  }
 0x16e   : > { %5042 = vmatpush3.bf16.msra.mxu0 %v5557_v32 }
 0x16f   : > { %5106 = vmatpush3.bf16.msra.mxu1 %v5559_v34  ;;  %5043 = vmatprep.subr.bf16.mxu0 %v5560_v39  ;;  %v5579_v34 = vld [vmem:[%s6642_s1 + $0x290] sm:$0xff]   ;;  %v1664_v39 = vld [vmem:[%s6640_s6 + $0x198] sm:$0xff] }
 0x170   : > { %3462 = vmatmul.mubr.bf16.gmra.mrb[12].mxu0 %v4610_v20  ;;  %5107 = vmatprep.subr.bf16.mxu1 %v5562_v41  ;;  %v5573_v20 = vld [vmem:[%s6642_s1 + $0x208] sm:$0xff]   ;;  %v5581_v41 = vld [vmem:[%s6642_s1 + $0x218] sm:$0xff]  }
 0x171   : > { %3559 = vmatmul.mubr.bf16.gmra.mrb[12].mxu1 %v4612_v22  ;;  %3469 = vmatprep.mubr.bf16.mxu0 %v4627_v23  ;;  %v5575_v22 = vld [vmem:[%s6642_s1 + $0x288] sm:$0xff]   ;;  %v1647_v23 = vld [vmem:[%s6640_s6 + $0x110] sm:$0xff] }
 0x172   : > { %3566 = vmatprep.mubr.bf16.mxu1 %v4629_v25  ;;  %5044 = vmatpush3.bf16.msra.mxu0 %v5561_v40  ;;  %v1648_v25 = vld [vmem:[%s6640_s6 + $0x118] sm:$0xff]  ;;  %v4599_v31 = vcombine.high %v1647_v23, %v1655_v24 }
 0x173   : > { %5108 = vmatpush3.bf16.msra.mxu1 %v5563_v44  ;;  %5045 = vmatprep.subr.bf16.mxu0 %v5564_v47  ;;  %v4601_v32 = vcombine.high %v1648_v25, %v1656_v26  ;;  %v1672_v40 = vld [vmem:[%s6640_s6 + $0x1d8] sm:$0xff]  ;;  %v4598_v44 = vcombine.low %v1647_v23, %v1655_v24  ;;  %v4600_v46 = vcombine.low %v1648_v25, %v1656_v26  ;;  %v1727_v25 = vld [vmem:[%s6640_s6 + $0x390] sm:$0xff] }
 0x174   : > { %5109 = vmatprep.subr.bf16.mxu1 %v5566_v52  ;;  %v1679_v52 = vld [vmem:[%s6640_s6 + $0x210] sm:$0xff] }
 0x175   : > { %v1735_v26 = vld [vmem:[%s6640_s6 + $0x3d0] sm:$0xff] }
 0x176   : > { %5046 = vmatpush3.bf16.msra.mxu0 %v5565_v49  ;;  %v4617_v49 = vcombine.high %v1664_v39, %v1672_v40 }
 0x177   : > { %5110 = vmatpush3.bf16.msra.mxu1 %v5567_v54  ;;  %5159 = vmatprep.subr.bf16.mxu0 %v5568_v57  ;;  %v1687_v54 = vld [vmem:[%s6640_s6 + $0x250] sm:$0xff]  ;;  %v5589_v57 = vld [vmem:[%s6642_s1 + $0x228] sm:$0xff]  }
 0x178   : > { %3470 = vmatmul.mubr.bf16.gmra.mrb[16].mxu0 %v4626_v35  ;;  %5223 = vmatprep.subr.bf16.mxu1 %v5570_v59  ;;  %v5580_v35 = vld [vmem:[%s6642_s1 + $0x258] sm:$0xff]   ;;  %v5592_v59 = vld [vmem:[%s6642_s1 + $0x270] sm:$0xff]  }
 0x179   : > { %3567 = vmatmul.mubr.bf16.gmra.mrb[16].mxu1 %v4628_v36  ;;  %3477 = vmatprep.mubr.bf16.mxu0 %v4643_v37  ;;  %v1663_v36 = vld [vmem:[%s6640_s6 + $0x190] sm:$0xff] }
 0x17a   : > { %3574 = vmatprep.mubr.bf16.mxu1 %v4645_v38  ;;  %v1671_v37 = vld [vmem:[%s6640_s6 + $0x1d0] sm:$0xff]  ;;  %v5582_v38 = vld [vmem:[%s6642_s1 + $0x2d8] sm:$0xff]  }
 0x17b   : > { %v4615_v47 = vcombine.high %v1663_v36, %v1671_v37  ;;  %v4614_v60 = vcombine.low %v1663_v36, %v1671_v37  ;;  %v1626_v36 = vld [vmem:[%s6640_s6 + $0x68] sm:$0xff]  ;;  %v4678_v37 = vcombine.low %v1727_v25, %v1735_v26 }
 0x180   : > { %3478 = vmatmul.mubr.bf16.gmra.mrb[20].mxu0 %v4642_v48  ;;  %v5585_v48 = vld [vmem:[%s6642_s1 + $0x220] sm:$0xff]  }
 0x181   : > { %3575 = vmatmul.mubr.bf16.gmra.mrb[20].mxu1 %v4644_v50  ;;  %3485 = vmatprep.mubr.bf16.mxu0 %v4659_v51  ;;  %v5587_v50 = vld [vmem:[%s6642_s1 + $0x2a0] sm:$0xff]   ;;  %v5588_v51 = vld [vmem:[%s6642_s1 + $0x268] sm:$0xff]  }
 0x182   : > { %3582 = vmatprep.mubr.bf16.mxu1 %v4661_v53  ;;  %v5590_v53 = vld [vmem:[%s6642_s1 + $0x2e8] sm:$0xff]  }
 0x188   : > { %3486 = vmatmul.mubr.bf16.gmra.mrb[24].mxu0 %v4658_v61  ;;  %v5594_v61 = vld [vmem:[%s6642_s1 + $0x2f0] sm:$0xff]  }
 0x189   : > { %3583 = vmatmul.mubr.bf16.gmra.mrb[24].mxu1 %v4660_v62  ;;  %3493 = vmatprep.mubr.bf16.mxu0 %v4675_v63  ;;  %v4616_v62 = vcombine.low %v1664_v39, %v1672_v40  ;;  %v4631_v63 = vcombine.high %v1679_v52, %v1687_v54 }
 0x18a   : > { %3590 = vmatprep.mubr.bf16.mxu1 %v4677_v0  ;;  %v4633_v0 = vcombine.high %v1680_v55, %v1688_v56  ;;  %v1649_v55 = vld [vmem:[%s6640_s6 + $0x120] sm:$0xff] }
 0x18b   : > { %v1657_v56 = vld [vmem:[%s6640_s6 + $0x160] sm:$0xff] }
 0x190   : > { %3494 = vmatmul.mubr.bf16.gmra.mrb[28].mxu0 %v4674_v5  ;;  %v1703_v5 = vld [vmem:[%s6640_s6 + $0x2d0] sm:$0xff] }
 0x191   : > { %3591 = vmatmul.mubr.bf16.gmra.mrb[28].mxu1 %v4676_v6  ;;  %3631 = vmatprep.mubr.bf16.mxu0 %v4567_v7  ;;  %v5598_v6 = vld [vmem:[%s6642_s1 + $0x2f8] sm:$0xff]  }
 0x192   : > { %3728 = vmatprep.mubr.bf16.mxu1 %v4569_v8  ;;  %v1696_v7 = vld [vmem:[%s6640_s6 + $0x298] sm:$0xff] }
 0x193   : > { %v1704_v8 = vld [vmem:[%s6640_s6 + $0x2d8] sm:$0xff] }
 0x198   : > { %3632 = vmatmul.mubr.bf16.vlgmr.msra.gmra.mrb[32].mxu0 %v4566_v11  ;;  %v5600_v11 = vld [vmem:[%s6642_s1 + $0x340] sm:$0xff]  }
 0x199   : > { %3729 = vmatmul.mubr.bf16.vlgmr.msra.gmra.mrb[32].mxu1 %v4568_v15  ;;  %5160 = vmatpush3.bf16.msra.mxu0 %v5569_v12  ;;  %v4630_v12 = vcombine.low %v1679_v52, %v1687_v54  ;;  %v4647_v15 = vcombine.high %v1695_v4, %v1703_v5  ;;  %v5606_v52 = vld [vmem:[%s6642_s1 + $0x3c8] sm:$0xff]  }
 0x19a   : > { %5224 = vmatpush3.bf16.msra.mxu1 %v5571_v16  ;;  %3639 = vmatprep.mubr.bf16.mxu0 %v4583_v17  ;;  %v4649_v16 = vcombine.high %v1696_v7, %v1704_v8  ;;  %v1711_v17 = vld [vmem:[%s6640_s6 + $0x310] sm:$0xff]  ;;  %v5607_v54 = vld [vmem:[%s6642_s1 + $0x388] sm:$0xff]  }
 0x19b   : > { %3736 = vmatprep.mubr.bf16.mxu1 %v4585_v19  ;;  %5161 = vmatprep.subr.bf16.mxu0 %v5572_v18  ;;  %v1719_v18 = vld [vmem:[%s6640_s6 + $0x350] sm:$0xff]  ;;  %v1712_v19 = vld [vmem:[%s6640_s6 + $0x318] sm:$0xff] }
 0x19c   : > { %5225 = vmatprep.subr.bf16.mxu1 %v5574_v21  ;;  %v4646_v21 = vcombine.low %v1695_v4, %v1703_v5  ;;  %v4663_v23 = vcombine.high %v1711_v17, %v1719_v18  ;;  %v5614_v4 = vld [vmem:[%s6642_s1 + $0x3d8] sm:$0xff]   ;;  %v1665_v5 = vld [vmem:[%s6640_s6 + $0x1a0] sm:$0xff] }
 0x19d   : > { %5162 = vmatpush3.bf16.msra.mxu0 %v5573_v20  ;;  %v1720_v20 = vld [vmem:[%s6640_s6 + $0x358] sm:$0xff] }
 0x19e   : > { %5226 = vmatpush3.bf16.msra.mxu1 %v5575_v22  ;;  %5163 = vmatprep.subr.bf16.mxu0 %v5576_v27  ;;  %v4648_v22 = vcombine.low %v1696_v7, %v1704_v8  ;;  %v4665_v24 = vcombine.high %v1712_v19, %v1720_v20  ;;  %v1728_v27 = vld [vmem:[%s6640_s6 + $0x398] sm:$0xff]  ;;  %v1666_v7 = vld [vmem:[%s6640_s6 + $0x1a8] sm:$0xff] }
 0x19f   : > { %5227 = vmatprep.subr.bf16.mxu1 %v5578_v28  ;;  %v1736_v28 = vld [vmem:[%s6640_s6 + $0x3d8] sm:$0xff] }
 0x1a0   : > { %3640 = vmatmul.mubr.bf16.gmra.mrb[36].mxu0 %v4582_v29  ;;  %v4662_v29 = vcombine.low %v1711_v17, %v1719_v18  ;;  %v5613_v8 = vld [vmem:[%s6642_s1 + $0x318] sm:$0xff]   ;;  %v5617_v17 = vld [vmem:[%s6642_s1 + $0x320] sm:$0xff]  }
 0x1a1   : > { %3737 = vmatmul.mubr.bf16.gmra.mrb[36].mxu1 %v4584_v30  ;;  %3647 = vmatprep.mubr.bf16.mxu0 %v4599_v31  ;;  %v4664_v30 = vcombine.low %v1712_v19, %v1720_v20  ;;  %v4679_v31 = vcombine.high %v1727_v25, %v1735_v26  ;;  %v5619_v18 = vld [vmem:[%s6642_s1 + $0x3a0] sm:$0xff]   ;;  %v5620_v19 = vld [vmem:[%s6642_s1 + $0x368] sm:$0xff]  }
 0x1a2   : > { %3744 = vmatprep.mubr.bf16.mxu1 %v4601_v32  ;;  %5164 = vmatpush3.bf16.msra.mxu0 %v5577_v33  ;;  %v4681_v32 = vcombine.high %v1728_v27, %v1736_v28  ;;  %v1617_v33 = vld [vmem:[%s6640_s6 + $0x20] sm:$0xff]  ;;  %v5622_v20 = vld [vmem:[%s6642_s1 + $0x3e8] sm:$0xff]  }
 0x1a3   : > { %5228 = vmatpush3.bf16.msra.mxu1 %v5579_v34  ;;  %5165 = vmatprep.subr.bf16.mxu0 %v5580_v35  ;;  %v1625_v34 = vld [vmem:[%s6640_s6 + $0x60] sm:$0xff]  ;;  %v1618_v35 = vld [vmem:[%s6640_s6 + $0x28] sm:$0xff] }
 0x1a4   : > { %5229 = vmatprep.subr.bf16.mxu1 %v5582_v38  ;;  %v4680_v38 = vcombine.low %v1728_v27, %v1736_v28  ;;  %v4571_v39 = vcombine.high %v1617_v33, %v1625_v34  ;;  %v4573_v40 = vcombine.high %v1618_v35, %v1626_v36  ;;  %v1690_v25 = vld [vmem:[%s6640_s6 + $0x268] sm:$0xff]  ;;  %v5624_v27 = vld [vmem:[%s6642_s1 + $0x370] sm:$0xff]  }
 0x1a5   : > { %v5623_v26 = vld [vmem:[%s6642_s1 + $0x3a8] sm:$0xff]  }
 0x1a6   : > { %5166 = vmatpush3.bf16.msra.mxu0 %v5581_v41  ;;  %v1633_v41 = vld [vmem:[%s6640_s6 + $0xa0] sm:$0xff] }
 0x1a7   : > { %5230 = vmatpush3.bf16.msra.mxu1 %v5583_v42  ;;  %5167 = vmatprep.subr.bf16.mxu0 %v5584_v43  ;;  %v1641_v42 = vld [vmem:[%s6640_s6 + $0xe0] sm:$0xff]  ;;  %v4570_v43 = vcombine.low %v1617_v33, %v1625_v34  ;;  %v5625_v33 = vld [vmem:[%s6642_s1 + $0x330] sm:$0xff]  }
 0x1a8   : > { %3648 = vmatmul.mubr.bf16.gmra.mrb[40].mxu0 %v4598_v44  ;;  %5231 = vmatprep.subr.bf16.mxu1 %v5586_v45  ;;  %v1634_v44 = vld [vmem:[%s6640_s6 + $0xa8] sm:$0xff]  ;;  %v5627_v34 = vld [vmem:[%s6642_s1 + $0x3b0] sm:$0xff]  }
 0x1a9   : > { %3745 = vmatmul.mubr.bf16.gmra.mrb[40].mxu1 %v4600_v46  ;;  %3655 = vmatprep.mubr.bf16.mxu0 %v4615_v47  ;;  %v1642_v45 = vld [vmem:[%s6640_s6 + $0xe8] sm:$0xff]  ;;  %v4572_v46 = vcombine.low %v1618_v35, %v1626_v36  ;;  %v5601_v47 = vld [vmem:[%s6642_s1 + $0x300] sm:$0xff]   ;;  %v5628_v35 = vld [vmem:[%s6642_s1 + $0x378] sm:$0xff]  }
 0x1aa   : > { %3752 = vmatprep.mubr.bf16.mxu1 %v4617_v49  ;;  %5168 = vmatpush3.bf16.msra.mxu0 %v5585_v48  ;;  %v5603_v48 = vld [vmem:[%s6642_s1 + $0x380] sm:$0xff]   ;;  %v4587_v49 = vcombine.high %v1633_v41, %v1641_v42  ;;  %v5630_v36 = vld [vmem:[%s6642_s1 + $0x3f8] sm:$0xff]  }
 0x1ab   : > { %5232 = vmatpush3.bf16.msra.mxu1 %v5587_v50  ;;  %5169 = vmatprep.subr.bf16.mxu0 %v5588_v51  ;;  %v4589_v50 = vcombine.high %v1634_v44, %v1642_v45  ;;  %v5604_v51 = vld [vmem:[%s6642_s1 + $0x348] sm:$0xff]  }
 0x1ac   : > { %5233 = vmatprep.subr.bf16.mxu1 %v5590_v53  ;;  %v5605_v53 = vld [vmem:[%s6642_s1 + $0x308] sm:$0xff]  }
 0x1ae   : > { %5170 = vmatpush3.bf16.msra.mxu0 %v5589_v57  ;;  %v5608_v57 = vld [vmem:[%s6642_s1 + $0x350] sm:$0xff]  }
 0x1af   : > { %5234 = vmatpush3.bf16.msra.mxu1 %v5591_v58  ;;  %5171 = vmatprep.subr.bf16.mxu0 %v5592_v59  ;;  %v1650_v58 = vld [vmem:[%s6640_s6 + $0x128] sm:$0xff] }
 0x1b0   : > { %3656 = vmatmul.mubr.bf16.gmra.mrb[44].mxu0 %v4614_v60  ;;  %5235 = vmatprep.subr.bf16.mxu1 %v5594_v61  ;;  %v1658_v59 = vld [vmem:[%s6640_s6 + $0x168] sm:$0xff]  ;;  %v5610_v60 = vld [vmem:[%s6642_s1 + $0x3d0] sm:$0xff]   ;;  %v4586_v61 = vcombine.low %v1633_v41, %v1641_v42  ;;  %v5631_v42 = vld [vmem:[%s6642_s1 + $0x3b8] sm:$0xff]  }
 0x1b1   : > { %3753 = vmatmul.mubr.bf16.gmra.mrb[44].mxu1 %v4616_v62  ;;  %3663 = vmatprep.mubr.bf16.mxu0 %v4631_v63  ;;  %v4588_v62 = vcombine.low %v1634_v44, %v1642_v45  ;;  %v4603_v63 = vcombine.high %v1649_v55, %v1657_v56  ;;  %v1706_v41 = vld [vmem:[%s6640_s6 + $0x2e8] sm:$0xff] }
 0x1b2   : > { %3760 = vmatprep.mubr.bf16.mxu1 %v4633_v0  ;;  %5172 = vmatpush3.bf16.msra.mxu0 %v5593_v1  ;;  %v4605_v0 = vcombine.high %v1650_v58, %v1658_v59  ;;  %v5609_v1 = vld [vmem:[%s6642_s1 + $0x310] sm:$0xff]  }
 0x1b3   : > { %5236 = vmatpush3.bf16.msra.mxu1 %v5595_v2  ;;  %5173 = vmatprep.subr.bf16.mxu0 %v5596_v3  ;;  %v5611_v2 = vld [vmem:[%s6642_s1 + $0x390] sm:$0xff]   ;;  %v5612_v3 = vld [vmem:[%s6642_s1 + $0x358] sm:$0xff]  }
 0x1b4   : > { %5237 = vmatprep.subr.bf16.mxu1 %v5598_v6  ;;  %v1673_v6 = vld [vmem:[%s6640_s6 + $0x1e0] sm:$0xff] }
 0x1b5   : > { %v4618_v28 = vcombine.low %v1665_v5, %v1673_v6 }
 0x1b6   : > { %5174 = vmatpush3.bf16.msra.mxu0 %v5597_v9  ;;  %v1674_v9 = vld [vmem:[%s6640_s6 + $0x1e8] sm:$0xff] }
 0x1b7   : > { %5238 = vmatpush3.bf16.msra.mxu1 %v5599_v10  ;;  %5287 = vmatprep.subr.bf16.mxu0 %v5600_v11  ;;  %v5615_v10 = vld [vmem:[%s6642_s1 + $0x398] sm:$0xff]   ;;  %v5616_v11 = vld [vmem:[%s6642_s1 + $0x360] sm:$0xff]  }
 0x1b8   : > { %3664 = vmatmul.mubr.bf16.gmra.mrb[48].mxu0 %v4630_v12  ;;  %5351 = vmatprep.subr.bf16.mxu1 %v5602_v13  ;;  %v4602_v12 = vcombine.low %v1649_v55, %v1657_v56  ;;  %v5618_v13 = vld [vmem:[%s6642_s1 + $0x3e0] sm:$0xff]  }
 0x1b9   : > { %3761 = vmatmul.mubr.bf16.gmra.mrb[48].mxu1 %v4632_v14  ;;  %3671 = vmatprep.mubr.bf16.mxu0 %v4647_v15  ;;  %v4604_v14 = vcombine.low %v1650_v58, %v1658_v59  ;;  %v4619_v15 = vcombine.high %v1665_v5, %v1673_v6  ;;  %v1729_v55 = vld [vmem:[%s6640_s6 + $0x3a0] sm:$0xff]  ;;  %v1738_v58 = vld [vmem:[%s6640_s6 + $0x3e8] sm:$0xff] }
 0x1ba   : > { %3768 = vmatprep.mubr.bf16.mxu1 %v4649_v16  ;;  %v4621_v16 = vcombine.high %v1666_v7, %v1674_v9  ;;  %v1737_v56 = vld [vmem:[%s6640_s6 + $0x3e0] sm:$0xff] }
 0x1c0   : > { %3672 = vmatmul.mubr.bf16.gmra.mrb[52].mxu0 %v4646_v21  ;;  %v1681_v21 = vld [vmem:[%s6640_s6 + $0x220] sm:$0xff] }
 0x1c1   : > { %3769 = vmatmul.mubr.bf16.gmra.mrb[52].mxu1 %v4648_v22  ;;  %3679 = vmatprep.mubr.bf16.mxu0 %v4663_v23  ;;  %v1689_v22 = vld [vmem:[%s6640_s6 + $0x260] sm:$0xff]  ;;  %v1682_v23 = vld [vmem:[%s6640_s6 + $0x228] sm:$0xff] }
 0x1c2   : > { %3776 = vmatprep.mubr.bf16.mxu1 %v4665_v24  ;;  %v5621_v24 = vld [vmem:[%s6642_s1 + $0x328] sm:$0xff]   ;;  %v4636_v44 = vcombine.low %v1682_v23, %v1690_v25 }
 0x1c8   : > { %3680 = vmatmul.mubr.bf16.gmra.mrb[56].mxu0 %v4662_v29  ;;  %v5626_v29 = vld [vmem:[%s6642_s1 + $0x3f0] sm:$0xff]  }
 0x1c9   : > { %3777 = vmatmul.mubr.bf16.gmra.mrb[56].mxu1 %v4664_v30  ;;  %3687 = vmatprep.mubr.bf16.mxu0 %v4679_v31  ;;  %v4620_v30 = vcombine.low %v1666_v7, %v1674_v9  ;;  %v4635_v31 = vcombine.high %v1681_v21, %v1689_v22  ;;  %v1635_v7 = vld [vmem:[%s6640_s6 + $0xb0] sm:$0xff]  ;;  %v1636_v9 = vld [vmem:[%s6640_s6 + $0xb8] sm:$0xff] }
 0x1ca   : > { %3784 = vmatprep.mubr.bf16.mxu1 %v4681_v32  ;;  %v4637_v32 = vcombine.high %v1682_v23, %v1690_v25  ;;  %v1667_v23 = vld [vmem:[%s6640_s6 + $0x1b0] sm:$0xff]  ;;  %v1668_v25 = vld [vmem:[%s6640_s6 + $0x1b8] sm:$0xff] }
 0x1d0   : > { %3688 = vmatmul.mubr.bf16.gmra.mrb[60].mxu0 %v4678_v37  ;;  %v1697_v37 = vld [vmem:[%s6640_s6 + $0x2a0] sm:$0xff] }
 0x1d1   : > { %3785 = vmatmul.mubr.bf16.gmra.mrb[60].mxu1 %v4680_v38  ;;  %3825 = vmatprep.mubr.bf16.mxu0 %v4571_v39  ;;  %v1705_v38 = vld [vmem:[%s6640_s6 + $0x2e0] sm:$0xff]  ;;  %v5629_v39 = vld [vmem:[%s6642_s1 + $0x338] sm:$0xff]  }
 0x1d2   : > { %3922 = vmatprep.mubr.bf16.mxu1 %v4573_v40  ;;  %v1698_v40 = vld [vmem:[%s6640_s6 + $0x2a8] sm:$0xff]  ;;  %v4651_v45 = vcombine.high %v1697_v37, %v1705_v38 }
 0x1d8   : > { %3826 = vmatmul.mubr.bf16.vlgmr.msra.gmra.mrb[64].mxu0 %v4570_v43  ;;  %v4634_v43 = vcombine.low %v1681_v21, %v1689_v22 }
 0x1d9   : > { %3923 = vmatmul.mubr.bf16.vlgmr.msra.gmra.mrb[64].mxu1 %v4572_v46  ;;  %5288 = vmatpush3.bf16.msra.mxu0 %v5601_v47  ;;  %v4653_v46 = vcombine.high %v1698_v40, %v1706_v41  ;;  %v1713_v47 = vld [vmem:[%s6640_s6 + $0x320] sm:$0xff] }
 0x1da   : > { %5352 = vmatpush3.bf16.msra.mxu1 %v5603_v48  ;;  %3833 = vmatprep.mubr.bf16.mxu0 %v4587_v49  ;;  %v1721_v48 = vld [vmem:[%s6640_s6 + $0x360] sm:$0xff]  ;;  %v1714_v49 = vld [vmem:[%s6640_s6 + $0x328] sm:$0xff] }
 0x1db   : > { %3930 = vmatprep.mubr.bf16.mxu1 %v4589_v50  ;;  %5289 = vmatprep.subr.bf16.mxu0 %v5604_v51  ;;  %v1722_v50 = vld [vmem:[%s6640_s6 + $0x368] sm:$0xff]  ;;  %v4650_v51 = vcombine.low %v1697_v37, %v1705_v38  ;;  %v4666_v59 = vcombine.low %v1713_v47, %v1721_v48 }
 0x1dc   : > { %5353 = vmatprep.subr.bf16.mxu1 %v5606_v52  ;;  %v4652_v52 = vcombine.low %v1698_v40, %v1706_v41 }
 0x1dd   : > { %5290 = vmatpush3.bf16.msra.mxu0 %v5605_v53  ;;  %v4667_v53 = vcombine.high %v1713_v47, %v1721_v48 }
 0x1de   : > { %5354 = vmatpush3.bf16.msra.mxu1 %v5607_v54  ;;  %5291 = vmatprep.subr.bf16.mxu0 %v5608_v57  ;;  %v4669_v54 = vcombine.high %v1714_v49, %v1722_v50  ;;  %v1730_v57 = vld [vmem:[%s6640_s6 + $0x3a8] sm:$0xff] }
 0x1df   : > { %5355 = vmatprep.subr.bf16.mxu1 %v5610_v60  ;;  %v4668_v60 = vcombine.low %v1714_v49, %v1722_v50 }
 0x1e0   : > { %3834 = vmatmul.mubr.bf16.gmra.mrb[68].mxu0 %v4586_v61  ;;  %v4683_v61 = vcombine.high %v1729_v55, %v1737_v56 }
 0x1e1   : > { %3931 = vmatmul.mubr.bf16.gmra.mrb[68].mxu1 %v4588_v62  ;;  %3841 = vmatprep.mubr.bf16.mxu0 %v4603_v63  ;;  %v4685_v62 = vcombine.high %v1730_v57, %v1738_v58  ;;  %v1619_v63 = vld [vmem:[%s6640_s6 + $0x30] sm:$0xff] }
 0x1e2   : > { %3938 = vmatprep.mubr.bf16.mxu1 %v4605_v0  ;;  %5292 = vmatpush3.bf16.msra.mxu0 %v5609_v1  ;;  %v1627_v0 = vld [vmem:[%s6640_s6 + $0x70] sm:$0xff]  ;;  %v1620_v1 = vld [vmem:[%s6640_s6 + $0x38] sm:$0xff] }
 0x1e3   : > { %5356 = vmatpush3.bf16.msra.mxu1 %v5611_v2  ;;  %5293 = vmatprep.subr.bf16.mxu0 %v5612_v3  ;;  %v1628_v2 = vld [vmem:[%s6640_s6 + $0x78] sm:$0xff]  ;;  %v4682_v3 = vcombine.low %v1729_v55, %v1737_v56  ;;  %v4575_v5 = vcombine.high %v1619_v63, %v1627_v0 }
 0x1e4   : > { %5357 = vmatprep.subr.bf16.mxu1 %v5614_v4  ;;  %v4684_v4 = vcombine.low %v1730_v57, %v1738_v58  ;;  %v4577_v6 = vcombine.high %v1620_v1, %v1628_v2  ;;  %v1700_v56 = vld [vmem:[%s6640_s6 + $0x2b8] sm:$0xff] }
 0x1e5   : > { %v1708_v57 = vld [vmem:[%s6640_s6 + $0x2f8] sm:$0xff] }
 0x1e6   : > { %5294 = vmatpush3.bf16.msra.mxu0 %v5613_v8  ;;  %v1643_v8 = vld [vmem:[%s6640_s6 + $0xf0] sm:$0xff] }
 0x1e7   : > { %5358 = vmatpush3.bf16.msra.mxu1 %v5615_v10  ;;  %5295 = vmatprep.subr.bf16.mxu0 %v5616_v11  ;;  %v1644_v10 = vld [vmem:[%s6640_s6 + $0xf8] sm:$0xff]  ;;  %v4574_v11 = vcombine.low %v1619_v63, %v1627_v0 }
 0x1e8   : > { %3842 = vmatmul.mubr.bf16.gmra.mrb[72].mxu0 %v4602_v12  ;;  %5359 = vmatprep.subr.bf16.mxu1 %v5618_v13  ;;  %v4576_v12 = vcombine.low %v1620_v1, %v1628_v2  ;;  %v4591_v13 = vcombine.high %v1635_v7, %v1643_v8 }
 0x1e9   : > { %3939 = vmatmul.mubr.bf16.gmra.mrb[72].mxu1 %v4604_v14  ;;  %3849 = vmatprep.mubr.bf16.mxu0 %v4619_v15  ;;  %v4593_v14 = vcombine.high %v1636_v9, %v1644_v10  ;;  %v1651_v15 = vld [vmem:[%s6640_s6 + $0x130] sm:$0xff] }
 0x1ea   : > { %3946 = vmatprep.mubr.bf16.mxu1 %v4621_v16  ;;  %5296 = vmatpush3.bf16.msra.mxu0 %v5617_v17  ;;  %v1659_v16 = vld [vmem:[%s6640_s6 + $0x170] sm:$0xff]  ;;  %v1652_v17 = vld [vmem:[%s6640_s6 + $0x138] sm:$0xff] }
 0x1eb   : > { %5360 = vmatpush3.bf16.msra.mxu1 %v5619_v18  ;;  %5297 = vmatprep.subr.bf16.mxu0 %v5620_v19  ;;  %v1660_v18 = vld [vmem:[%s6640_s6 + $0x178] sm:$0xff]  ;;  %v4590_v19 = vcombine.low %v1635_v7, %v1643_v8  ;;  %v4607_v21 = vcombine.high %v1651_v15, %v1659_v16 }
 0x1ec   : > { %5361 = vmatprep.subr.bf16.mxu1 %v5622_v20  ;;  %v4592_v20 = vcombine.low %v1636_v9, %v1644_v10  ;;  %v4609_v22 = vcombine.high %v1652_v17, %v1660_v18 }
 0x1ee   : > { %5298 = vmatpush3.bf16.msra.mxu0 %v5621_v24  ;;  %v1675_v24 = vld [vmem:[%s6640_s6 + $0x1f0] sm:$0xff] }
 0x1ef   : > { %5362 = vmatpush3.bf16.msra.mxu1 %v5623_v26  ;;  %5299 = vmatprep.subr.bf16.mxu0 %v5624_v27  ;;  %v1676_v26 = vld [vmem:[%s6640_s6 + $0x1f8] sm:$0xff]  ;;  %v4606_v27 = vcombine.low %v1651_v15, %v1659_v16  ;;  %v4622_v38 = vcombine.low %v1667_v23, %v1675_v24 }
 0x1f0   : > { %3850 = vmatmul.mubr.bf16.gmra.mrb[76].mxu0 %v4618_v28  ;;  %5363 = vmatprep.subr.bf16.mxu1 %v5626_v29  ;;  %v4608_v28 = vcombine.low %v1652_v17, %v1660_v18  ;;  %v4623_v29 = vcombine.high %v1667_v23, %v1675_v24  ;;  %v1724_v15 = vld [vmem:[%s6640_s6 + $0x378] sm:$0xff] }
 0x1f1   : > { %3947 = vmatmul.mubr.bf16.gmra.mrb[76].mxu1 %v4620_v30  ;;  %3857 = vmatprep.mubr.bf16.mxu0 %v4635_v31  ;;  %v4625_v30 = vcombine.high %v1668_v25, %v1676_v26  ;;  %v1683_v31 = vld [vmem:[%s6640_s6 + $0x230] sm:$0xff] }
 0x1f2   : > { %3954 = vmatprep.mubr.bf16.mxu1 %v4637_v32  ;;  %5300 = vmatpush3.bf16.msra.mxu0 %v5625_v33  ;;  %v1691_v32 = vld [vmem:[%s6640_s6 + $0x270] sm:$0xff] }
 0x1f3   : > { %5364 = vmatpush3.bf16.msra.mxu1 %v5627_v34  ;;  %5301 = vmatprep.subr.bf16.mxu0 %v5628_v35  ;;  %v1684_v34 = vld [vmem:[%s6640_s6 + $0x238] sm:$0xff] }
 0x1f4   : > { %5365 = vmatprep.subr.bf16.mxu1 %v5630_v36  ;;  %v1692_v35 = vld [vmem:[%s6640_s6 + $0x278] sm:$0xff] }
 0x1f5   : > { %v4641_v47 = vcombine.high %v1684_v34, %v1692_v35  ;;  %v4640_v0 = vcombine.low %v1684_v34, %v1692_v35  ;;  %v1739_v34 = vld [vmem:[%s6640_s6 + $0x3f0] sm:$0xff] }
 0x1f6   : > { %5302 = vmatpush3.bf16.msra.mxu0 %v5629_v39 }
 0x1f7   : > { %5366 = vmatpush3.bf16.msra.mxu1 %v5631_v42  ;;  %v4624_v42 = vcombine.low %v1668_v25, %v1676_v26 }
 0x1f8   : > { %3858 = vmatmul.mubr.bf16.gmra.mrb[80].mxu0 %v4634_v43  ;;  %v4639_v43 = vcombine.high %v1683_v31, %v1691_v32 }
 0x1f9   : > { %3955 = vmatmul.mubr.bf16.gmra.mrb[80].mxu1 %v4636_v44  ;;  %3865 = vmatprep.mubr.bf16.mxu0 %v4651_v45 }
 0x1fa   : > { %3962 = vmatprep.mubr.bf16.mxu1 %v4653_v46 }
 0x200   : > { %3866 = vmatmul.mubr.bf16.gmra.mrb[84].mxu0 %v4650_v51 }
 0x201   : > { %3963 = vmatmul.mubr.bf16.gmra.mrb[84].mxu1 %v4652_v52  ;;  %3873 = vmatprep.mubr.bf16.mxu0 %v4667_v53  ;;  %v1699_v53 = vld [vmem:[%s6640_s6 + $0x2b0] sm:$0xff] }
 0x202   : > { %3970 = vmatprep.mubr.bf16.mxu1 %v4669_v54  ;;  %v1707_v54 = vld [vmem:[%s6640_s6 + $0x2f0] sm:$0xff] }
 0x203   : > { %v4655_v1 = vcombine.high %v1699_v53, %v1707_v54  ;;  %v4654_v18 = vcombine.low %v1699_v53, %v1707_v54 }
 0x208   : > { %3874 = vmatmul.mubr.bf16.gmra.mrb[88].mxu0 %v4666_v59 }
 0x209   : > { %3971 = vmatmul.mubr.bf16.gmra.mrb[88].mxu1 %v4668_v60  ;;  %3881 = vmatprep.mubr.bf16.mxu0 %v4683_v61  ;;  %v4638_v60 = vcombine.low %v1683_v31, %v1691_v32 }
 0x20a   : > { %3978 = vmatprep.mubr.bf16.mxu1 %v4685_v62 }
 0x210   : > { %3882 = vmatmul.mubr.bf16.gmra.mrb[92].mxu0 %v4682_v3 }
 0x211   : > { %3979 = vmatmul.mubr.bf16.gmra.mrb[92].mxu1 %v4684_v4  ;;  %4019 = vmatprep.mubr.bf16.mxu0 %v4575_v5  ;;  %v4657_v5 = vcombine.high %v1700_v56, %v1708_v57 }
 0x212   : > { %4116 = vmatprep.mubr.bf16.mxu1 %v4577_v6 }
 0x218   : > { %4020 = vmatmul.mubr.bf16.vlgmr.msra.gmra.mrb[96].mxu0 %v4574_v11  ;;  %v1715_v11 = vld [vmem:[%s6640_s6 + $0x330] sm:$0xff] }
 0x219   : > { %4117 = vmatmul.mubr.bf16.vlgmr.msra.gmra.mrb[96].mxu1 %v4576_v12  ;;  %4027 = vmatprep.mubr.bf16.mxu0 %v4591_v13  ;;  %v1723_v12 = vld [vmem:[%s6640_s6 + $0x370] sm:$0xff] }
 0x21a   : > { %4124 = vmatprep.mubr.bf16.mxu1 %v4593_v14  ;;  %v1716_v14 = vld [vmem:[%s6640_s6 + $0x338] sm:$0xff]  ;;  %v4671_v23 = vcombine.high %v1715_v11, %v1723_v12 }
 0x220   : > { %4028 = vmatmul.mubr.bf16.gmra.mrb[100].mxu0 %v4590_v19 }
 0x221   : > { %4125 = vmatmul.mubr.bf16.gmra.mrb[100].mxu1 %v4592_v20  ;;  %4035 = vmatprep.mubr.bf16.mxu0 %v4607_v21 }
 0x222   : > { %4132 = vmatprep.mubr.bf16.mxu1 %v4609_v22  ;;  %v4656_v22 = vcombine.low %v1700_v56, %v1708_v57 }
 0x228   : > { %4036 = vmatmul.mubr.bf16.gmra.mrb[104].mxu0 %v4606_v27  ;;  %v4673_v27 = vcombine.high %v1716_v14, %v1724_v15 }
 0x229   : > { %4133 = vmatmul.mubr.bf16.gmra.mrb[104].mxu1 %v4608_v28  ;;  %4043 = vmatprep.mubr.bf16.mxu0 %v4623_v29 }
 0x22a   : > { %4140 = vmatprep.mubr.bf16.mxu1 %v4625_v30 }
 0x22b   : > { %v4919_v33 = vpop.f32.mrb[0].mxu0 }
 0x22c   : > { %v4983_v36 = vpop.f32.mrb[0].mxu1  ;;  %v4920_v37 = vpop.f32.mrb[1].mxu0 }
 0x22d   : > { %v4921_v39 = vadd.f32 %v4920_v37, %v4919_v33  ;;  %v4984_v40 = vpop.f32.mrb[1].mxu1  ;;  %v4922_v41 = vpop.f32.mrb[2].mxu0  ;;  %v1731_v33 = vld [vmem:[%s6640_s6 + $0x3b0] sm:$0xff]  ;;  %v1740_v37 = vld [vmem:[%s6640_s6 + $0x3f8] sm:$0xff] }
 0x22e   : > { %v4985_v44 = vadd.f32 %v4984_v40, %v4983_v36  ;;  %v4986_v45 = vpop.f32.mrb[2].mxu1  ;;  %v4923_v46 = vpop.f32.mrb[3].mxu0  ;;  %v1732_v36 = vld [vmem:[%s6640_s6 + $0x3b8] sm:$0xff]  ;;  %v4670_v40 = vcombine.low %v1715_v11, %v1723_v12 }
 0x22f   : > { %v4924_v48 = vadd.f32 %v4923_v46, %v4922_v41  ;;  %v4987_v49 = vpop.f32.mrb[3].mxu1 }
 0x230   : > { %v6891_v50 = vadd.f32 %v4985_v44, %v4921_v39  ;;  %v4988_v51 = vadd.f32 %v4987_v49, %v4986_v45  ;;  %4044 = vmatmul.mubr.bf16.gmra.mrb[108].mxu0 %v4622_v38  ;;  %v4672_v44 = vcombine.low %v1716_v14, %v1724_v15  ;;  %v4687_v45 = vcombine.high %v1731_v33, %v1739_v34 }
 0x231   : > { %4141 = vmatmul.mubr.bf16.gmra.mrb[108].mxu1 %v4624_v42  ;;  %4051 = vmatprep.mubr.bf16.mxu0 %v4639_v43  ;;  %v4689_v49 = vcombine.high %v1732_v36, %v1740_v37 }
 0x232   : > { %v6893_v52 = vadd.f32 %v4988_v51, %v4924_v48  ;;  %4148 = vmatprep.mubr.bf16.mxu1 %v4641_v47 }
 0x233   : > { %v4925_v55 = vpop.f32.mrb[4].mxu0 }
 0x234   : > { %v4989_v58 = vpop.f32.mrb[4].mxu1  ;;  %v4926_v59 = vpop.f32.mrb[5].mxu0 }
 0x235   : > { %v4927_v61 = vadd.f32 %v4926_v59, %v4925_v55  ;;  %v4990_v62 = vpop.f32.mrb[5].mxu1  ;;  %v4928_v63 = vpop.f32.mrb[6].mxu0 }
 0x236   : > { %v4991_v2 = vadd.f32 %v4990_v62, %v4989_v58  ;;  %v4992_v3 = vpop.f32.mrb[6].mxu1  ;;  %v4929_v4 = vpop.f32.mrb[7].mxu0 }
 0x237   : > { %v4930_v6 = vadd.f32 %v4929_v4, %v4928_v63  ;;  %v4993_v7 = vpop.f32.mrb[7].mxu1 }
 0x238   : > { %v6899_v8 = vadd.f32 %v4991_v2, %v4927_v61  ;;  %v4994_v9 = vadd.f32 %v4993_v7, %v4992_v3  ;;  %4052 = vmatmul.mubr.bf16.gmra.mrb[112].mxu0 %v4638_v60  ;;  %v4686_v60 = vcombine.low %v1731_v33, %v1739_v34 }
 0x239   : > { %4149 = vmatmul.mubr.bf16.gmra.mrb[112].mxu1 %v4640_v0  ;;  %4059 = vmatprep.mubr.bf16.mxu0 %v4655_v1  ;;  %v4688_v0 = vcombine.low %v1732_v36, %v1740_v37 }
 0x23a   : > { %v6901_v10 = vadd.f32 %v4994_v9, %v4930_v6  ;;  %4156 = vmatprep.mubr.bf16.mxu1 %v4657_v5 }
 0x23b   : > { %v4931_v13 = vpop.f32.mrb[8].mxu0 }
 0x23c   : > { %v4995_v16 = vpop.f32.mrb[8].mxu1  ;;  %v4932_v17 = vpop.f32.mrb[9].mxu0 }
 0x23d   : > { %v4933_v19 = vadd.f32 %v4932_v17, %v4931_v13  ;;  %v4996_v20 = vpop.f32.mrb[9].mxu1  ;;  %v4934_v21 = vpop.f32.mrb[10].mxu0 }
 0x23e   : > { %v4997_v24 = vadd.f32 %v4996_v20, %v4995_v16  ;;  %v4998_v25 = vpop.f32.mrb[10].mxu1  ;;  %v4935_v26 = vpop.f32.mrb[11].mxu0 }
 0x23f   : > { %v4936_v28 = vadd.f32 %v4935_v26, %v4934_v21  ;;  %v4999_v29 = vpop.f32.mrb[11].mxu1 }
 0x240   : > { %v6907_v30 = vadd.f32 %v4997_v24, %v4933_v19  ;;  %v5000_v31 = vadd.f32 %v4999_v29, %v4998_v25  ;;  %4060 = vmatmul.mubr.bf16.gmra.mrb[116].mxu0 %v4654_v18 }
 0x241   : > { %4157 = vmatmul.mubr.bf16.gmra.mrb[116].mxu1 %v4656_v22  ;;  %4067 = vmatprep.mubr.bf16.mxu0 %v4671_v23 }
 0x242   : > { %v6909_v32 = vadd.f32 %v5000_v31, %v4936_v28  ;;  %4164 = vmatprep.mubr.bf16.mxu1 %v4673_v27 }
 0x243   : > { %v4937_v35 = vpop.f32.mrb[12].mxu0 }
 0x244   : > { %v5001_v38 = vpop.f32.mrb[12].mxu1  ;;  %v4938_v39 = vpop.f32.mrb[13].mxu0 }
 0x245   : > { %v4939_v41 = vadd.f32 %v4938_v39, %v4937_v35  ;;  %v5002_v42 = vpop.f32.mrb[13].mxu1  ;;  %v4940_v43 = vpop.f32.mrb[14].mxu0 }
 0x246   : > { %v5003_v46 = vadd.f32 %v5002_v42, %v5001_v38  ;;  %v5004_v47 = vpop.f32.mrb[14].mxu1  ;;  %v4941_v48 = vpop.f32.mrb[15].mxu0 }
 0x247   : > { %v4942_v51 = vadd.f32 %v4941_v48, %v4940_v43  ;;  %v5005_v53 = vpop.f32.mrb[15].mxu1 }
 0x248   : > { %v6915_v54 = vadd.f32 %v5003_v46, %v4939_v41  ;;  %v5006_v55 = vadd.f32 %v5005_v53, %v5004_v47  ;;  %4068 = vmatmul.mubr.bf16.gmra.mrb[120].mxu0 %v4670_v40 }
 0x249   : > { %4165 = vmatmul.mubr.bf16.gmra.mrb[120].mxu1 %v4672_v44  ;;  %4075 = vmatprep.mubr.bf16.mxu0 %v4687_v45 }
 0x24a   : > { %v6917_v56 = vadd.f32 %v5006_v55, %v4942_v51  ;;  %4172 = vmatprep.mubr.bf16.mxu1 %v4689_v49 }
 0x24b   : > { %v4943_v57 = vpop.f32.mrb[16].mxu0 }
 0x24c   : > { %v5007_v58 = vpop.f32.mrb[16].mxu1  ;;  %v4944_v59 = vpop.f32.mrb[17].mxu0 }
 0x24d   : > { %v4945_v61 = vadd.f32 %v4944_v59, %v4943_v57  ;;  %v5008_v62 = vpop.f32.mrb[17].mxu1  ;;  %v4946_v63 = vpop.f32.mrb[18].mxu0 }
 0x24e   : > { %v5009_v1 = vadd.f32 %v5008_v62, %v5007_v58  ;;  %v5010_v2 = vpop.f32.mrb[18].mxu1  ;;  %v4947_v3 = vpop.f32.mrb[19].mxu0 }
 0x24f   : > { %v4948_v4 = vadd.f32 %v4947_v3, %v4946_v63  ;;  %v5011_v5 = vpop.f32.mrb[19].mxu1 }
 0x250   : > { %v6919_v6 = vadd.f32 %v5009_v1, %v4945_v61  ;;  %v5012_v7 = vadd.f32 %v5011_v5, %v5010_v2  ;;  %4076 = vmatmul.mubr.bf16.gmra.mrb[124].mxu0 %v4686_v60 }
 0x251   : > { %4173 = vmatmul.mubr.bf16.gmra.mrb[124].mxu1 %v4688_v0 }
 0x252   : > { %v6921_v9 = vadd.f32 %v5012_v7, %v4948_v4 }
 0x253   : > { %v4949_v11 = vpop.f32.mrb[20].mxu0 }
 0x254   : > { %v5013_v12 = vpop.f32.mrb[20].mxu1  ;;  %v4950_v13 = vpop.f32.mrb[21].mxu0 }
 0x255   : > { %v4951_v14 = vadd.f32 %v4950_v13, %v4949_v11  ;;  %v5014_v15 = vpop.f32.mrb[21].mxu1  ;;  %v4952_v16 = vpop.f32.mrb[22].mxu0 }
 0x256   : > { %v5015_v17 = vadd.f32 %v5014_v15, %v5013_v12  ;;  %v5016_v18 = vpop.f32.mrb[22].mxu1  ;;  %v4953_v19 = vpop.f32.mrb[23].mxu0 }
 0x257   : > { %v4954_v20 = vadd.f32 %v4953_v19, %v4952_v16  ;;  %v5017_v21 = vpop.f32.mrb[23].mxu1 }
 0x258   : > { %v6923_v22 = vadd.f32 %v5015_v17, %v4951_v14  ;;  %v5018_v23 = vadd.f32 %v5017_v21, %v5016_v18 }
 0x25a   : > { %v6925_v24 = vadd.f32 %v5018_v23, %v4954_v20 }
 0x25b   : > { %v4955_v25 = vpop.f32.mrb[24].mxu0 }
 0x25c   : > { %v5019_v26 = vpop.f32.mrb[24].mxu1  ;;  %v4956_v27 = vpop.f32.mrb[25].mxu0 }
 0x25d   : > { %v4957_v28 = vadd.f32 %v4956_v27, %v4955_v25  ;;  %v5020_v29 = vpop.f32.mrb[25].mxu1  ;;  %v4958_v31 = vpop.f32.mrb[26].mxu0 }
 0x25e   : > { %v5021_v33 = vadd.f32 %v5020_v29, %v5019_v26  ;;  %v5022_v34 = vpop.f32.mrb[26].mxu1  ;;  %v4959_v35 = vpop.f32.mrb[27].mxu0 }
 0x25f   : > { %v4960_v36 = vadd.f32 %v4959_v35, %v4958_v31  ;;  %v5023_v37 = vpop.f32.mrb[27].mxu1 }
 0x260   : > { %v6927_v38 = vadd.f32 %v5021_v33, %v4957_v28  ;;  %v5024_v39 = vadd.f32 %v5023_v37, %v5022_v34 }
 0x262   : > { %v6929_v40 = vadd.f32 %v5024_v39, %v4960_v36 }
 0x263   : > { %v4961_v41 = vpop.f32.mrb[28].mxu0 }
 0x264   : > { %v5025_v42 = vpop.f32.mrb[28].mxu1  ;;  %v4962_v43 = vpop.f32.mrb[29].mxu0 }
 0x265   : > { %v4963_v44 = vadd.f32 %v4962_v43, %v4961_v41  ;;  %v5026_v45 = vpop.f32.mrb[29].mxu1  ;;  %v4964_v46 = vpop.f32.mrb[30].mxu0 }
 0x266   : > { %v5027_v47 = vadd.f32 %v5026_v45, %v5025_v42  ;;  %v5028_v48 = vpop.f32.mrb[30].mxu1  ;;  %v4965_v49 = vpop.f32.mrb[31].mxu0 }
 0x267   : > { %v4966_v51 = vadd.f32 %v4965_v49, %v4964_v46  ;;  %v5029_v53 = vpop.f32.mrb[31].mxu1 }
 0x268   : > { %v6931_v55 = vadd.f32 %v5027_v47, %v4963_v44  ;;  %v5030_v57 = vadd.f32 %v5029_v53, %v5028_v48 }
 0x26a   : > { %v6933_v58 = vadd.f32 %v5030_v57, %v4966_v51 }
 0x26b   : > { %v5047_v59 = vpop.f32.mrb[32].mxu0 }
 0x26c   : > { %v5111_v60 = vpop.f32.mrb[32].mxu1  ;;  %v5048_v61 = vpop.f32.mrb[33].mxu0 }
 0x26d   : > { %v5049_v62 = vadd.f32 %v5048_v61, %v5047_v59  ;;  %v5112_v63 = vpop.f32.mrb[33].mxu1  ;;  %v5050_v0 = vpop.f32.mrb[34].mxu0 }
 0x26e   : > { %v5113_v1 = vadd.f32 %v5112_v63, %v5111_v60  ;;  %v5114_v2 = vpop.f32.mrb[34].mxu1  ;;  %v5051_v3 = vpop.f32.mrb[35].mxu0 }
 0x26f   : > { %v3634_v4 = vadd.f32 %v5049_v62, %v6891_v50  ;;  %v5052_v5 = vadd.f32 %v5051_v3, %v5050_v0  ;;  %v5115_v7 = vpop.f32.mrb[35].mxu1 }
 0x270   : > { %v5116_v11 = vadd.f32 %v5115_v7, %v5114_v2 }
 0x271   : > { %v6936_v12 = vadd.f32 %v5113_v1, %v3634_v4  ;;  %v3637_v13 = vadd.f32 %v5052_v5, %v6893_v52 }
 0x273   : > { %v6939_v14 = vadd.f32 %v5116_v11, %v3637_v13  ;;  %v5053_v15 = vpop.f32.mrb[36].mxu0 }
 0x274   : > { %v5117_v16 = vpop.f32.mrb[36].mxu1  ;;  %v5054_v17 = vpop.f32.mrb[37].mxu0 }
 0x275   : > { %v5055_v18 = vadd.f32 %v5054_v17, %v5053_v15  ;;  %v5118_v19 = vpop.f32.mrb[37].mxu1  ;;  %v5056_v20 = vpop.f32.mrb[38].mxu0 }
 0x276   : > { %v5119_v21 = vadd.f32 %v5118_v19, %v5117_v16  ;;  %v5120_v23 = vpop.f32.mrb[38].mxu1  ;;  %v5057_v25 = vpop.f32.mrb[39].mxu0 }
 0x277   : > { %v3642_v50 = vadd.f32 %v5055_v18, %v6899_v8  ;;  %v5058_v26 = vadd.f32 %v5057_v25, %v5056_v20  ;;  %v5121_v27 = vpop.f32.mrb[39].mxu1 }
 0x278   : > { %v5122_v28 = vadd.f32 %v5121_v27, %v5120_v23 }
 0x279   : > { %v6942_v29 = vadd.f32 %v5119_v21, %v3642_v50  ;;  %v3645_v52 = vadd.f32 %v5058_v26, %v6901_v10 }
 0x27b   : > { %v6945_v31 = vadd.f32 %v5122_v28, %v3645_v52  ;;  %v5059_v33 = vpop.f32.mrb[40].mxu0 }
 0x27c   : > { %v5123_v34 = vpop.f32.mrb[40].mxu1  ;;  %v5060_v35 = vpop.f32.mrb[41].mxu0 }
 0x27d   : > { %v5061_v36 = vadd.f32 %v5060_v35, %v5059_v33  ;;  %v5124_v37 = vpop.f32.mrb[41].mxu1  ;;  %v5062_v39 = vpop.f32.mrb[42].mxu0 }
 0x27e   : > { %v5125_v41 = vadd.f32 %v5124_v37, %v5123_v34  ;;  %v5126_v42 = vpop.f32.mrb[42].mxu1  ;;  %v5063_v43 = vpop.f32.mrb[43].mxu0 }
 0x27f   : > { %v3650_v8 = vadd.f32 %v5061_v36, %v6907_v30  ;;  %v5064_v44 = vadd.f32 %v5063_v43, %v5062_v39  ;;  %v5127_v45 = vpop.f32.mrb[43].mxu1 }
 0x280   : > { %v5128_v46 = vadd.f32 %v5127_v45, %v5126_v42 }
 0x281   : > { %v6948_v47 = vadd.f32 %v5125_v41, %v3650_v8  ;;  %v3653_v10 = vadd.f32 %v5064_v44, %v6909_v32 }
 0x283   : > { %v6951_v48 = vadd.f32 %v5128_v46, %v3653_v10  ;;  %v5065_v49 = vpop.f32.mrb[44].mxu0 }
 0x284   : > { %v5129_v51 = vpop.f32.mrb[44].mxu1  ;;  %v5066_v53 = vpop.f32.mrb[45].mxu0 }
 0x285   : > { %v5067_v57 = vadd.f32 %v5066_v53, %v5065_v49  ;;  %v5130_v59 = vpop.f32.mrb[45].mxu1  ;;  %v5068_v60 = vpop.f32.mrb[46].mxu0 }
 0x286   : > { %v5131_v61 = vadd.f32 %v5130_v59, %v5129_v51  ;;  %v5132_v62 = vpop.f32.mrb[46].mxu1  ;;  %v5069_v63 = vpop.f32.mrb[47].mxu0 }
 0x287   : > { %v3658_v30 = vadd.f32 %v5067_v57, %v6915_v54  ;;  %v5070_v0 = vadd.f32 %v5069_v63, %v5068_v60  ;;  %v5133_v1 = vpop.f32.mrb[47].mxu1 }
 0x288   : > { %v5134_v2 = vadd.f32 %v5133_v1, %v5132_v62 }
 0x289   : > { %v6954_v3 = vadd.f32 %v5131_v61, %v3658_v30  ;;  %v3661_v32 = vadd.f32 %v5070_v0, %v6917_v56 }
 0x28b   : > { %v6957_v4 = vadd.f32 %v5134_v2, %v3661_v32  ;;  %v5071_v5 = vpop.f32.mrb[48].mxu0 }
 0x28c   : > { %v5135_v7 = vpop.f32.mrb[48].mxu1  ;;  %v5072_v11 = vpop.f32.mrb[49].mxu0 }
 0x28d   : > { %v5073_v13 = vadd.f32 %v5072_v11, %v5071_v5  ;;  %v5136_v15 = vpop.f32.mrb[49].mxu1  ;;  %v5074_v16 = vpop.f32.mrb[50].mxu0 }
 0x28e   : > { %v5137_v17 = vadd.f32 %v5136_v15, %v5135_v7  ;;  %v5138_v18 = vpop.f32.mrb[50].mxu1  ;;  %v5075_v19 = vpop.f32.mrb[51].mxu0 }
 0x28f   : > { %v3666_v54 = vadd.f32 %v5073_v13, %v6919_v6  ;;  %v5076_v20 = vadd.f32 %v5075_v19, %v5074_v16  ;;  %v5139_v21 = vpop.f32.mrb[51].mxu1 }
 0x290   : > { %v5140_v23 = vadd.f32 %v5139_v21, %v5138_v18 }
 0x291   : > { %v6960_v25 = vadd.f32 %v5137_v17, %v3666_v54  ;;  %v3669_v56 = vadd.f32 %v5076_v20, %v6921_v9 }
 0x293   : > { %v6963_v50 = vadd.f32 %v5140_v23, %v3669_v56  ;;  %v5077_v26 = vpop.f32.mrb[52].mxu0 }
 0x294   : > { %v5141_v27 = vpop.f32.mrb[52].mxu1  ;;  %v5078_v28 = vpop.f32.mrb[53].mxu0 }
 0x295   : > { %v5079_v52 = vadd.f32 %v5078_v28, %v5077_v26  ;;  %v5142_v33 = vpop.f32.mrb[53].mxu1  ;;  %v5080_v34 = vpop.f32.mrb[54].mxu0 }
 0x296   : > { %v5143_v35 = vadd.f32 %v5142_v33, %v5141_v27  ;;  %v5144_v36 = vpop.f32.mrb[54].mxu1  ;;  %v5081_v37 = vpop.f32.mrb[55].mxu0 }
 0x297   : > { %v3674_v6 = vadd.f32 %v5079_v52, %v6923_v22  ;;  %v5082_v39 = vadd.f32 %v5081_v37, %v5080_v34  ;;  %v5145_v41 = vpop.f32.mrb[55].mxu1 }
 0x298   : > { %v5146_v42 = vadd.f32 %v5145_v41, %v5144_v36 }
 0x299   : > { %v6966_v43 = vadd.f32 %v5143_v35, %v3674_v6  ;;  %v3677_v9 = vadd.f32 %v5082_v39, %v6925_v24 }
 0x29b   : > { %v6969_v8 = vadd.f32 %v5146_v42, %v3677_v9  ;;  %v5083_v44 = vpop.f32.mrb[56].mxu0 }
 0x29c   : > { %v5147_v45 = vpop.f32.mrb[56].mxu1  ;;  %v5084_v46 = vpop.f32.mrb[57].mxu0 }
 0x29d   : > { %v5085_v10 = vadd.f32 %v5084_v46, %v5083_v44  ;;  %v5148_v49 = vpop.f32.mrb[57].mxu1  ;;  %v5086_v51 = vpop.f32.mrb[58].mxu0 }
 0x29e   : > { %v5149_v53 = vadd.f32 %v5148_v49, %v5147_v45  ;;  %v5150_v57 = vpop.f32.mrb[58].mxu1  ;;  %v5087_v59 = vpop.f32.mrb[59].mxu0 }
 0x29f   : > { %v3682_v22 = vadd.f32 %v5085_v10, %v6927_v38  ;;  %v5088_v60 = vadd.f32 %v5087_v59, %v5086_v51  ;;  %v5151_v61 = vpop.f32.mrb[59].mxu1 }
 0x2a0   : > { %v5152_v62 = vadd.f32 %v5151_v61, %v5150_v57 }
 0x2a1   : > { %v6972_v63 = vadd.f32 %v5149_v53, %v3682_v22  ;;  %v3685_v24 = vadd.f32 %v5088_v60, %v6929_v40 }
 0x2a3   : > { %v6975_v30 = vadd.f32 %v5152_v62, %v3685_v24  ;;  %v5089_v0 = vpop.f32.mrb[60].mxu0 }
 0x2a4   : > { %v5153_v1 = vpop.f32.mrb[60].mxu1  ;;  %v5090_v2 = vpop.f32.mrb[61].mxu0 }
 0x2a5   : > { %v5091_v32 = vadd.f32 %v5090_v2, %v5089_v0  ;;  %v5154_v5 = vpop.f32.mrb[61].mxu1  ;;  %v5092_v7 = vpop.f32.mrb[62].mxu0 }
 0x2a6   : > { %v5155_v11 = vadd.f32 %v5154_v5, %v5153_v1  ;;  %v5156_v13 = vpop.f32.mrb[62].mxu1  ;;  %v5093_v15 = vpop.f32.mrb[63].mxu0 }
 0x2a7   : > { %v3690_v38 = vadd.f32 %v5091_v32, %v6931_v55  ;;  %v5094_v16 = vadd.f32 %v5093_v15, %v5092_v7  ;;  %v5157_v17 = vpop.f32.mrb[63].mxu1 }
 0x2a8   : > { %v5158_v18 = vadd.f32 %v5157_v17, %v5156_v13 }
 0x2a9   : > { %v6978_v19 = vadd.f32 %v5155_v11, %v3690_v38  ;;  %v3693_v40 = vadd.f32 %v5094_v16, %v6933_v58 }
 0x2ab   : > { %v6981_v54 = vadd.f32 %v5158_v18, %v3693_v40  ;;  %v5175_v20 = vpop.f32.mrb[64].mxu0 }
 0x2ac   : > { %v5239_v21 = vpop.f32.mrb[64].mxu1  ;;  %v5176_v23 = vpop.f32.mrb[65].mxu0 }
 0x2ad   : > { %v5177_v56 = vadd.f32 %v5176_v23, %v5175_v20  ;;  %v5240_v26 = vpop.f32.mrb[65].mxu1  ;;  %v5178_v27 = vpop.f32.mrb[66].mxu0 }
 0x2ae   : > { %v5241_v28 = vadd.f32 %v5240_v26, %v5239_v21  ;;  %v5242_v52 = vpop.f32.mrb[66].mxu1  ;;  %v5179_v33 = vpop.f32.mrb[67].mxu0 }
 0x2af   : > { %v3828_v55 = vadd.f32 %v5177_v56, %v6936_v12  ;;  %v5180_v34 = vadd.f32 %v5179_v33, %v5178_v27  ;;  %v5243_v35 = vpop.f32.mrb[67].mxu1 }
 0x2b0   : > { %v5244_v36 = vadd.f32 %v5243_v35, %v5242_v52 }
 0x2b1   : > { %v6984_v37 = vadd.f32 %v5241_v28, %v3828_v55  ;;  %v3831_v58 = vadd.f32 %v5180_v34, %v6939_v14 }
 0x2b3   : > { %v6987_v6 = vadd.f32 %v5244_v36, %v3831_v58  ;;  %v5181_v39 = vpop.f32.mrb[68].mxu0 }
 0x2b4   : > { %v5245_v41 = vpop.f32.mrb[68].mxu1  ;;  %v5182_v42 = vpop.f32.mrb[69].mxu0 }
 0x2b5   : > { %v5183_v9 = vadd.f32 %v5182_v42, %v5181_v39  ;;  %v5246_v44 = vpop.f32.mrb[69].mxu1  ;;  %v5184_v45 = vpop.f32.mrb[70].mxu0 }
 0x2b6   : > { %v5247_v46 = vadd.f32 %v5246_v44, %v5245_v41  ;;  %v5248_v10 = vpop.f32.mrb[70].mxu1  ;;  %v5185_v49 = vpop.f32.mrb[71].mxu0 }
 0x2b7   : > { %v3836_v12 = vadd.f32 %v5183_v9, %v6942_v29  ;;  %v5186_v51 = vadd.f32 %v5185_v49, %v5184_v45  ;;  %v5249_v53 = vpop.f32.mrb[71].mxu1 }
 0x2b8   : > { %v5250_v57 = vadd.f32 %v5249_v53, %v5248_v10 }
 0x2b9   : > { %v6990_v59 = vadd.f32 %v5247_v46, %v3836_v12  ;;  %v3839_v14 = vadd.f32 %v5186_v51, %v6945_v31 }
 0x2bb   : > { %v6993_v22 = vadd.f32 %v5250_v57, %v3839_v14  ;;  %v5187_v60 = vpop.f32.mrb[72].mxu0 }
 0x2bc   : > { %v5251_v61 = vpop.f32.mrb[72].mxu1  ;;  %v5188_v62 = vpop.f32.mrb[73].mxu0 }
 0x2bd   : > { %v5189_v24 = vadd.f32 %v5188_v62, %v5187_v60  ;;  %v5252_v0 = vpop.f32.mrb[73].mxu1  ;;  %v5190_v1 = vpop.f32.mrb[74].mxu0 }
 0x2be   : > { %v5253_v2 = vadd.f32 %v5252_v0, %v5251_v61  ;;  %v5254_v32 = vpop.f32.mrb[74].mxu1  ;;  %v5191_v5 = vpop.f32.mrb[75].mxu0 }
 0x2bf   : > { %v3844_v29 = vadd.f32 %v5189_v24, %v6948_v47  ;;  %v5192_v7 = vadd.f32 %v5191_v5, %v5190_v1  ;;  %v5255_v11 = vpop.f32.mrb[75].mxu1 }
 0x2c0   : > { %v5256_v13 = vadd.f32 %v5255_v11, %v5254_v32 }
 0x2c1   : > { %v6996_v15 = vadd.f32 %v5253_v2, %v3844_v29  ;;  %v3847_v31 = vadd.f32 %v5192_v7, %v6951_v48 }
 0x2c3   : > { %v6999_v38 = vadd.f32 %v5256_v13, %v3847_v31  ;;  %v5193_v16 = vpop.f32.mrb[76].mxu0 }
 0x2c4   : > { %v5257_v17 = vpop.f32.mrb[76].mxu1  ;;  %v5194_v18 = vpop.f32.mrb[77].mxu0 }
 0x2c5   : > { %v5195_v40 = vadd.f32 %v5194_v18, %v5193_v16  ;;  %v5258_v20 = vpop.f32.mrb[77].mxu1  ;;  %v5196_v21 = vpop.f32.mrb[78].mxu0 }
 0x2c6   : > { %v5259_v23 = vadd.f32 %v5258_v20, %v5257_v17  ;;  %v5260_v56 = vpop.f32.mrb[78].mxu1  ;;  %v5197_v26 = vpop.f32.mrb[79].mxu0 }
 0x2c7   : > { %v3852_v47 = vadd.f32 %v5195_v40, %v6954_v3  ;;  %v5198_v27 = vadd.f32 %v5197_v26, %v5196_v21  ;;  %v5261_v28 = vpop.f32.mrb[79].mxu1 }
 0x2c8   : > { %v5262_v52 = vadd.f32 %v5261_v28, %v5260_v56 }
 0x2c9   : > { %v7002_v33 = vadd.f32 %v5259_v23, %v3852_v47  ;;  %v3855_v48 = vadd.f32 %v5198_v27, %v6957_v4 }
 0x2cb   : > { %v7005_v55 = vadd.f32 %v5262_v52, %v3855_v48  ;;  %v5199_v34 = vpop.f32.mrb[80].mxu0 }
 0x2cc   : > { %v5263_v35 = vpop.f32.mrb[80].mxu1  ;;  %v5200_v36 = vpop.f32.mrb[81].mxu0 }
 0x2cd   : > { %v5201_v58 = vadd.f32 %v5200_v36, %v5199_v34  ;;  %v5264_v39 = vpop.f32.mrb[81].mxu1  ;;  %v5202_v41 = vpop.f32.mrb[82].mxu0 }
 0x2ce   : > { %v5265_v42 = vadd.f32 %v5264_v39, %v5263_v35  ;;  %v5266_v9 = vpop.f32.mrb[82].mxu1  ;;  %v5203_v44 = vpop.f32.mrb[83].mxu0 }
 0x2cf   : > { %v3860_v3 = vadd.f32 %v5201_v58, %v6960_v25  ;;  %v5204_v45 = vadd.f32 %v5203_v44, %v5202_v41  ;;  %v5267_v46 = vpop.f32.mrb[83].mxu1 }
 0x2d0   : > { %v5268_v10 = vadd.f32 %v5267_v46, %v5266_v9 }
 0x2d1   : > { %v7008_v49 = vadd.f32 %v5265_v42, %v3860_v3  ;;  %v3863_v4 = vadd.f32 %v5204_v45, %v6963_v50 }
 0x2d3   : > { %v7011_v12 = vadd.f32 %v5268_v10, %v3863_v4  ;;  %v5205_v51 = vpop.f32.mrb[84].mxu0 }
 0x2d4   : > { %v5269_v53 = vpop.f32.mrb[84].mxu1  ;;  %v5206_v57 = vpop.f32.mrb[85].mxu0 }
 0x2d5   : > { %v5207_v14 = vadd.f32 %v5206_v57, %v5205_v51  ;;  %v5270_v60 = vpop.f32.mrb[85].mxu1  ;;  %v5208_v61 = vpop.f32.mrb[86].mxu0 }
 0x2d6   : > { %v5271_v62 = vadd.f32 %v5270_v60, %v5269_v53  ;;  %v5272_v24 = vpop.f32.mrb[86].mxu1  ;;  %v5209_v0 = vpop.f32.mrb[87].mxu0 }
 0x2d7   : > { %v3868_v25 = vadd.f32 %v5207_v14, %v6966_v43  ;;  %v5210_v1 = vadd.f32 %v5209_v0, %v5208_v61  ;;  %v5273_v2 = vpop.f32.mrb[87].mxu1 }
 0x2d8   : > { %v5274_v32 = vadd.f32 %v5273_v2, %v5272_v24  ;;  %v1597_v24 = vld [vmem:[#allocation2] sm:$0xff] }
 0x2d9   : > { %v7014_v5 = vadd.f32 %v5271_v62, %v3868_v25  ;;  %v3871_v50 = vadd.f32 %v5210_v1, %v6969_v8  ;;  %v1598_v1 = vld [vmem:[#allocation2 + $0x8] sm:$0xff] }
 0x2db   : > { %v7017_v29 = vadd.f32 %v5274_v32, %v3871_v50  ;;  %v5211_v7 = vpop.f32.mrb[88].mxu0 }
 0x2dc   : > { %v5275_v11 = vpop.f32.mrb[88].mxu1  ;;  %v5212_v13 = vpop.f32.mrb[89].mxu0 }
 0x2dd   : > { %v5213_v31 = vadd.f32 %v5212_v13, %v5211_v7  ;;  %v5276_v16 = vpop.f32.mrb[89].mxu1  ;;  %v5214_v17 = vpop.f32.mrb[90].mxu0 }
 0x2de   : > { %v5277_v18 = vadd.f32 %v5276_v16, %v5275_v11  ;;  %v5278_v40 = vpop.f32.mrb[90].mxu1  ;;  %v5215_v20 = vpop.f32.mrb[91].mxu0 }
 0x2df   : > { %v3876_v43 = vadd.f32 %v5213_v31, %v6972_v63  ;;  %v5216_v21 = vadd.f32 %v5215_v20, %v5214_v17  ;;  %v5279_v23 = vpop.f32.mrb[91].mxu1 }
 0x2e0   : > { %v5280_v56 = vadd.f32 %v5279_v23, %v5278_v40 }
 0x2e1   : > { %v7020_v26 = vadd.f32 %v5277_v18, %v3876_v43  ;;  %v3879_v8 = vadd.f32 %v5216_v21, %v6975_v30 }
 0x2e3   : > { %v7023_v47 = vadd.f32 %v5280_v56, %v3879_v8  ;;  %v5217_v27 = vpop.f32.mrb[92].mxu0 }
 0x2e4   : > { %v5281_v28 = vpop.f32.mrb[92].mxu1  ;;  %v5218_v52 = vpop.f32.mrb[93].mxu0 }
 0x2e5   : > { %v5219_v48 = vadd.f32 %v5218_v52, %v5217_v27  ;;  %v5282_v34 = vpop.f32.mrb[93].mxu1  ;;  %v5220_v35 = vpop.f32.mrb[94].mxu0  ;;  %v1600_v27 = vld [vmem:[#allocation2 + $0x18] sm:$0xff] }
 0x2e6   : > { %v5283_v36 = vadd.f32 %v5282_v34, %v5281_v28  ;;  %v5284_v58 = vpop.f32.mrb[94].mxu1  ;;  %v5221_v39 = vpop.f32.mrb[95].mxu0 }
 0x2e7   : > { %v3884_v63 = vadd.f32 %v5219_v48, %v6978_v19  ;;  %v5222_v41 = vadd.f32 %v5221_v39, %v5220_v35  ;;  %v5285_v42 = vpop.f32.mrb[95].mxu1 }
 0x2e8   : > { %v5286_v9 = vadd.f32 %v5285_v42, %v5284_v58 }
 0x2e9   : > { %v7026_v44 = vadd.f32 %v5283_v36, %v3884_v63  ;;  %v3887_v30 = vadd.f32 %v5222_v41, %v6981_v54 }
 0x2eb   : > { %v7029_v3 = vadd.f32 %v5286_v9, %v3887_v30  ;;  %v5303_v45 = vpop.f32.mrb[96].mxu0 }
 0x2ec   : > { %v5367_v46 = vpop.f32.mrb[96].mxu1  ;;  %v5304_v10 = vpop.f32.mrb[97].mxu0 }
 0x2ed   : > { %v5305_v4 = vadd.f32 %v5304_v10, %v5303_v45  ;;  %v5368_v51 = vpop.f32.mrb[97].mxu1  ;;  %v5306_v53 = vpop.f32.mrb[98].mxu0 }
 0x2ee   : > { %v5369_v57 = vadd.f32 %v5368_v51, %v5367_v46  ;;  %v5370_v14 = vpop.f32.mrb[98].mxu1  ;;  %v5307_v60 = vpop.f32.mrb[99].mxu0  ;;  %v1602_v51 = vld [vmem:[#allocation2 + $0x28] sm:$0xff] }
 0x2ef   : > { %v4022_v19 = vadd.f32 %v5305_v4, %v6984_v37  ;;  %v5308_v61 = vadd.f32 %v5307_v60, %v5306_v53  ;;  %v5371_v62 = vpop.f32.mrb[99].mxu1 }
 0x2f0   : > { %v5372_v0 = vadd.f32 %v5371_v62, %v5370_v14 }
 0x2f1   : > { %v4119_v25 = vadd.f32 %v5369_v57, %v4022_v19  ;;  %v4025_v54 = vadd.f32 %v5308_v61, %v6987_v6  ;;  %v1599_v6 = vld [vmem:[#allocation2 + $0x10] sm:$0xff] }
 0x2f3   : > { %v4181_v2 = vadd.f32 %v4119_v25, %v1597_v24  ;;  %v4122_v32 = vadd.f32 %v5372_v0, %v4025_v54  ;;  %v5309_v50 = vpop.f32.mrb[100].mxu0 }
 0x2f4   : > { %v5373_v7 = vpop.f32.mrb[100].mxu1  ;;  %v5310_v11 = vpop.f32.mrb[101].mxu0 }
 0x2f5   : > { %4197 = vst [vmem:[#allocation2] sm:$0xff] %v4181_v2  ;;  %v4182_v13 = vadd.f32 %v4122_v32, %v1598_v1  ;;  %v5311_v31 = vadd.f32 %v5310_v11, %v5309_v50  ;;  %v5374_v16 = vpop.f32.mrb[101].mxu1  ;;  %v5312_v17 = vpop.f32.mrb[102].mxu0 }
 0x2f6   : > { %v5375_v18 = vadd.f32 %v5374_v16, %v5373_v7  ;;  %v5376_v37 = vpop.f32.mrb[102].mxu1  ;;  %v5313_v40 = vpop.f32.mrb[103].mxu0 }
 0x2f7   : > { %4198 = vst [vmem:[#allocation2 + $0x8] sm:$0xff] %v4182_v13  ;;  %v4030_v20 = vadd.f32 %v5311_v31, %v6990_v59  ;;  %v5314_v43 = vadd.f32 %v5313_v40, %v5312_v17  ;;  %v5377_v21 = vpop.f32.mrb[103].mxu1  ;;  %v1604_v13 = vld [vmem:[#allocation2 + $0x38] sm:$0xff] }
 0x2f8   : > { %v5378_v23 = vadd.f32 %v5377_v21, %v5376_v37 }
 0x2f9   : > { %v4127_v56 = vadd.f32 %v5375_v18, %v4030_v20  ;;  %v4033_v8 = vadd.f32 %v5314_v43, %v6993_v22  ;;  %v1601_v22 = vld [vmem:[#allocation2 + $0x20] sm:$0xff] }
 0x2fb   : > { %v4183_v28 = vadd.f32 %v4127_v56, %v1599_v6  ;;  %v4130_v52 = vadd.f32 %v5378_v23, %v4033_v8  ;;  %v5315_v48 = vpop.f32.mrb[104].mxu0 }
 0x2fc   : > { %v5379_v34 = vpop.f32.mrb[104].mxu1  ;;  %v5316_v35 = vpop.f32.mrb[105].mxu0 }
 0x2fd   : > { %4199 = vst [vmem:[#allocation2 + $0x10] sm:$0xff] %v4183_v28  ;;  %v4184_v36 = vadd.f32 %v4130_v52, %v1600_v27  ;;  %v5317_v58 = vadd.f32 %v5316_v35, %v5315_v48  ;;  %v5380_v39 = vpop.f32.mrb[105].mxu1  ;;  %v5318_v63 = vpop.f32.mrb[106].mxu0 }
 0x2fe   : > { %v5381_v41 = vadd.f32 %v5380_v39, %v5379_v34  ;;  %v5382_v59 = vpop.f32.mrb[106].mxu1  ;;  %v5319_v42 = vpop.f32.mrb[107].mxu0  ;;  %v1606_v34 = vld [vmem:[#allocation2 + $0x48] sm:$0xff] }
 0x2ff   : > { %4200 = vst [vmem:[#allocation2 + $0x18] sm:$0xff] %v4184_v36  ;;  %v4038_v9 = vadd.f32 %v5317_v58, %v6996_v15  ;;  %v5320_v30 = vadd.f32 %v5319_v42, %v5318_v63  ;;  %v5383_v45 = vpop.f32.mrb[107].mxu1 }
 0x300   : > { %v5384_v46 = vadd.f32 %v5383_v45, %v5382_v59 }
 0x301   : > { %v4135_v10 = vadd.f32 %v5381_v41, %v4038_v9  ;;  %v4041_v4 = vadd.f32 %v5320_v30, %v6999_v38  ;;  %v1603_v38 = vld [vmem:[#allocation2 + $0x30] sm:$0xff] }
 0x303   : > { %v4185_v53 = vadd.f32 %v4135_v10, %v1601_v22  ;;  %v4138_v57 = vadd.f32 %v5384_v46, %v4041_v4  ;;  %v5321_v14 = vpop.f32.mrb[108].mxu0 }
 0x304   : > { %v5385_v60 = vpop.f32.mrb[108].mxu1  ;;  %v5322_v19 = vpop.f32.mrb[109].mxu0 }
 0x305   : > { %4201 = vst [vmem:[#allocation2 + $0x20] sm:$0xff] %v4185_v53  ;;  %v4186_v61 = vadd.f32 %v4138_v57, %v1602_v51  ;;  %v5323_v62 = vadd.f32 %v5322_v19, %v5321_v14  ;;  %v5386_v24 = vpop.f32.mrb[109].mxu1  ;;  %v5324_v0 = vpop.f32.mrb[110].mxu0  ;;  %v1608_v57 = vld [vmem:[#allocation2 + $0x58] sm:$0xff] }
 0x306   : > { %v5387_v25 = vadd.f32 %v5386_v24, %v5385_v60  ;;  %v5388_v15 = vpop.f32.mrb[110].mxu1  ;;  %v5325_v54 = vpop.f32.mrb[111].mxu0 }
 0x307   : > { %4202 = vst [vmem:[#allocation2 + $0x28] sm:$0xff] %v4186_v61  ;;  %v4046_v1 = vadd.f32 %v5323_v62, %v7002_v33  ;;  %v5326_v2 = vadd.f32 %v5325_v54, %v5324_v0  ;;  %v5389_v32 = vpop.f32.mrb[111].mxu1 }
 0x308   : > { %v5390_v50 = vadd.f32 %v5389_v32, %v5388_v15 }
 0x309   : > { %v4143_v7 = vadd.f32 %v5387_v25, %v4046_v1  ;;  %v4049_v11 = vadd.f32 %v5326_v2, %v7005_v55  ;;  %v1605_v55 = vld [vmem:[#allocation2 + $0x40] sm:$0xff] }
 0x30b   : > { %v4187_v31 = vadd.f32 %v4143_v7, %v1603_v38  ;;  %v4146_v16 = vadd.f32 %v5390_v50, %v4049_v11  ;;  %v5327_v17 = vpop.f32.mrb[112].mxu0 }
 0x30c   : > { %v5391_v18 = vpop.f32.mrb[112].mxu1  ;;  %v5328_v37 = vpop.f32.mrb[113].mxu0 }
 0x30d   : > { %4203 = vst [vmem:[#allocation2 + $0x30] sm:$0xff] %v4187_v31  ;;  %v4188_v40 = vadd.f32 %v4146_v16, %v1604_v13  ;;  %v5329_v20 = vadd.f32 %v5328_v37, %v5327_v17  ;;  %v5392_v43 = vpop.f32.mrb[113].mxu1  ;;  %v5330_v21 = vpop.f32.mrb[114].mxu0  ;;  %v1610_v13 = vld [vmem:[#allocation2 + $0x68] sm:$0xff] }
 0x30e   : > { %v5393_v6 = vadd.f32 %v5392_v43, %v5391_v18  ;;  %v5394_v33 = vpop.f32.mrb[114].mxu1  ;;  %v5331_v23 = vpop.f32.mrb[115].mxu0 }
 0x30f   : > { %4204 = vst [vmem:[#allocation2 + $0x38] sm:$0xff] %v4188_v40  ;;  %v4054_v56 = vadd.f32 %v5329_v20, %v7008_v49  ;;  %v5332_v8 = vadd.f32 %v5331_v23, %v5330_v21  ;;  %v5395_v27 = vpop.f32.mrb[115].mxu1 }
 0x310   : > { %v5396_v28 = vadd.f32 %v5395_v27, %v5394_v33 }
 0x311   : > { %v4151_v52 = vadd.f32 %v5393_v6, %v4054_v56  ;;  %v4057_v48 = vadd.f32 %v5332_v8, %v7011_v12  ;;  %v1607_v12 = vld [vmem:[#allocation2 + $0x50] sm:$0xff] }
 0x313   : > { %v4189_v35 = vadd.f32 %v4151_v52, %v1605_v55  ;;  %v4154_v36 = vadd.f32 %v5396_v28, %v4057_v48  ;;  %v5333_v58 = vpop.f32.mrb[116].mxu0  ;;  %v1612_v52 = vld [vmem:[#allocation2 + $0x78] sm:$0xff] }
 0x314   : > { %v5397_v39 = vpop.f32.mrb[116].mxu1  ;;  %v5334_v63 = vpop.f32.mrb[117].mxu0 }
 0x315   : > { %4205 = vst [vmem:[#allocation2 + $0x40] sm:$0xff] %v4189_v35  ;;  %v4190_v41 = vadd.f32 %v4154_v36, %v1606_v34  ;;  %v5335_v59 = vadd.f32 %v5334_v63, %v5333_v58  ;;  %v5398_v42 = vpop.f32.mrb[117].mxu1  ;;  %v5336_v9 = vpop.f32.mrb[118].mxu0  ;;  %v4217_v36 = vld [vmem:[#allocation2] sm:$0xff] (!%p4818_p5)  ;;  %v4218_v58 = vld [vmem:[#allocation2 + $0x8] sm:$0xff] (!%p4818_p5) }
 0x316   : > { %v5399_v30 = vadd.f32 %v5398_v42, %v5397_v39  ;;  %v5400_v49 = vpop.f32.mrb[118].mxu1  ;;  %v5337_v45 = vpop.f32.mrb[119].mxu0  ;;  %v4219_v39 = vld [vmem:[#allocation2 + $0x10] sm:$0xff] (!%p4818_p5)  ;;  %v4234_v63 = vmax.f32 (!%p4818_p5), %v4218_v58, 0.0  ;;  %v4221_v42 = vld [vmem:[#allocation2 + $0x20] sm:$0xff] (!%p4818_p5) }
 0x317   : > { %4206 = vst [vmem:[#allocation2 + $0x48] sm:$0xff] %v4190_v41  ;;  %v4062_v22 = vadd.f32 %v5335_v59, %v7014_v5  ;;  %v5338_v46 = vadd.f32 %v5337_v45, %v5336_v9  ;;  %v5401_v10 = vpop.f32.mrb[119].mxu1  ;;  %v4220_v41 = vld [vmem:[#allocation2 + $0x18] sm:$0xff] (!%p4818_p5)  ;;  %v4235_v59 = vmax.f32 (!%p4818_p5), %v4219_v39, 0.0  ;;  %v4222_v9 = vld [vmem:[#allocation2 + $0x28] sm:$0xff] (!%p4818_p5)  ;;  %v4223_v45 = vld [vmem:[#allocation2 + $0x30] sm:$0xff] (!%p4818_p5) }
 0x318   : > { %v5402_v4 = vadd.f32 %v5401_v10, %v5400_v49  ;;  %v4238_v49 = vmax.f32 (!%p4818_p5), %v4222_v9, 0.0 }
 0x319   : > { %v4159_v51 = vadd.f32 %v5399_v30, %v4062_v22  ;;  %v4065_v53 = vadd.f32 %v5338_v46, %v7017_v29  ;;  %v1609_v29 = vld [vmem:[#allocation2 + $0x60] sm:$0xff]  ;;  %v4236_v30 = vmax.f32 (!%p4818_p5), %v4220_v41, 0.0  ;;  %v4224_v22 = vld [vmem:[#allocation2 + $0x38] sm:$0xff] (!%p4818_p5) }
 0x31b   : > { %v4191_v14 = vadd.f32 %v4159_v51, %v1607_v12  ;;  %v4162_v60 = vadd.f32 %v5402_v4, %v4065_v53  ;;  %v5339_v19 = vpop.f32.mrb[120].mxu0  ;;  %v4239_v12 = vmax.f32 (!%p4818_p5), %v4223_v45, 0.0  ;;  %v4240_v4 = vmax.f32 (!%p4818_p5), %v4224_v22, 0.0 }
 0x31c   : > { %v5403_v61 = vpop.f32.mrb[120].mxu1  ;;  %v5340_v62 = vpop.f32.mrb[121].mxu0  ;;  %v4225_v46 = vld [vmem:[#allocation2 + $0x40] sm:$0xff] (!%p4818_p5) }
 0x31d   : > { %4207 = vst [vmem:[#allocation2 + $0x50] sm:$0xff] %v4191_v14  ;;  %v4192_v24 = vadd.f32 %v4162_v60, %v1608_v57  ;;  %v5341_v0 = vadd.f32 %v5340_v62, %v5339_v19  ;;  %v5404_v25 = vpop.f32.mrb[121].mxu1  ;;  %v5342_v15 = vpop.f32.mrb[122].mxu0  ;;  %v4241_v53 = vmax.f32 (!%p4818_p5), %v4225_v46, 0.0  ;;  %v4864_v60 = vpack.c.bf16 (!%p4818_p5), %v4236_v30, %v4235_v59 }
 0x31e   : > { %v5405_v54 = vadd.f32 %v5404_v25, %v5403_v61  ;;  %v5406_v5 = vpop.f32.mrb[122].mxu1  ;;  %v5343_v1 = vpop.f32.mrb[123].mxu0  ;;  %v4226_v51 = vld [vmem:[#allocation2 + $0x48] sm:$0xff] (!%p4818_p5) }
 0x31f   : > { %4208 = vst [vmem:[#allocation2 + $0x58] sm:$0xff] %v4192_v24  ;;  %v4070_v2 = vadd.f32 %v5341_v0, %v7020_v26  ;;  %v5344_v32 = vadd.f32 %v5343_v1, %v5342_v15  ;;  %v5407_v38 = vpop.f32.mrb[123].mxu1  ;;  %v4242_v61 = vmax.f32 (!%p4818_p5), %v4226_v51, 0.0  ;;  %v4874_v15 = vpack.c.bf16 (!%p4818_p5), %v4240_v4, %v4239_v12  ;;  %4896 = vst [vmem:[%s6644_s25 + $0x8] sm:$0xff] (!%p4818_p5), %v4864_v60  }
 0x320   : > { %v5408_v50 = vadd.f32 %v5407_v38, %v5406_v5 }
 0x321   : > { %v4167_v7 = vadd.f32 %v5405_v54, %v4070_v2  ;;  %v4073_v11 = vadd.f32 %v5344_v32, %v7023_v47  ;;  %v1611_v47 = vld [vmem:[#allocation2 + $0x70] sm:$0xff]  ;;  %v4879_v32 = vpack.c.bf16 (!%p4818_p5), %v4242_v61, %v4241_v53  ;;  %4898 = vst [vmem:[%s6644_s25 + $0x18] sm:$0xff] (!%p4818_p5), %v4874_v15  }
 0x323   : > { %v4193_v31 = vadd.f32 %v4167_v7, %v1609_v29  ;;  %v4170_v16 = vadd.f32 %v5408_v50, %v4073_v11  ;;  %v5345_v17 = vpop.f32.mrb[124].mxu0  ;;  %4899 = vst [vmem:[%s6644_s25 + $0x20] sm:$0xff] (!%p4818_p5), %v4879_v32  }
 0x324   : > { %v5409_v18 = vpop.f32.mrb[124].mxu1  ;;  %v5346_v37 = vpop.f32.mrb[125].mxu0  ;;  %v4227_v57 = vld [vmem:[#allocation2 + $0x50] sm:$0xff] (!%p4818_p5) }
 0x325   : > { %4209 = vst [vmem:[#allocation2 + $0x60] sm:$0xff] %v4193_v31  ;;  %v4194_v40 = vadd.f32 %v4170_v16, %v1610_v13  ;;  %v5347_v20 = vadd.f32 %v5346_v37, %v5345_v17  ;;  %v5410_v43 = vpop.f32.mrb[125].mxu1  ;;  %v5348_v21 = vpop.f32.mrb[126].mxu0  ;;  %v4243_v62 = vmax.f32 (!%p4818_p5), %v4227_v57, 0.0 }
 0x326   : > { %v5411_v6 = vadd.f32 %v5410_v43, %v5409_v18  ;;  %v5412_v26 = vpop.f32.mrb[126].mxu1  ;;  %v5349_v33 = vpop.f32.mrb[127].mxu0  ;;  %v4228_v14 = vld [vmem:[#allocation2 + $0x58] sm:$0xff] (!%p4818_p5) }
 0x327   : > { %4210 = vst [vmem:[#allocation2 + $0x68] sm:$0xff] %v4194_v40  ;;  %v4078_v23 = vadd.f32 %v5347_v20, %v7026_v44  ;;  %v5350_v56 = vadd.f32 %v5349_v33, %v5348_v21  ;;  %v5413_v8 = vpop.f32.mrb[127].mxu1  ;;  %v4233_v44 = vmax.f32 (!%p4818_p5), %v4217_v36, 0.0  ;;  %v4244_v54 = vmax.f32 (!%p4818_p5), %v4228_v14, 0.0 }
 0x328   : > { %v5414_v27 = vadd.f32 %v5413_v8, %v5412_v26 }
 0x329   : > { %v4175_v55 = vadd.f32 %v5411_v6, %v4078_v23  ;;  %v4081_v28 = vadd.f32 %v5350_v56, %v7029_v3  ;;  %4216 = sbr.rel (%p4818_p5) target bundleno = 828 (0x33c), region = 104  ;;  %v4237_v3 = vmax.f32 (!%p4818_p5), %v4221_v42, 0.0  ;;  %v4859_v10 = vpack.c.bf16 (!%p4818_p5), %v4234_v63, %v4233_v44 }
 0x32a   : > { %v4884_v50 = vpack.c.bf16 (!%p4818_p5), %v4244_v54, %v4243_v62 }
 0x32b   : > { %v4195_v48 = vadd.f32 %v4175_v55, %v1611_v47  ;;  %v4178_v34 = vadd.f32 %v5414_v27, %v4081_v28  ;;  %v4869_v19 = vpack.c.bf16 (!%p4818_p5), %v4238_v49, %v4237_v3  ;;  %4860 = vst [vmem:[%s6644_s25] sm:$0xff] (!%p4818_p5), %v4859_v10  }
 0x32c   : > { %v4229_v24 = vld [vmem:[#allocation2 + $0x60] sm:$0xff] (!%p4818_p5)  ;;  %4900 = vst [vmem:[%s6644_s25 + $0x28] sm:$0xff] (!%p4818_p5), %v4884_v50  }
 0x32d   : > { %4211 = vst [vmem:[#allocation2 + $0x70] sm:$0xff] %v4195_v48  ;;  %v4196_v35 = vadd.f32 %v4178_v34, %v1612_v52  ;;  %v4245_v5 = vmax.f32 (!%p4818_p5), %v4229_v24, 0.0  ;;  %4897 = vst [vmem:[%s6644_s25 + $0x10] sm:$0xff] (!%p4818_p5), %v4869_v19  }
 0x32e   : > { %v4230_v0 = vld [vmem:[#allocation2 + $0x68] sm:$0xff] (!%p4818_p5) }
 0x32f   : > { %4212 = vst [vmem:[#allocation2 + $0x78] sm:$0xff] %v4196_v35  ;;  %v4246_v1 = vmax.f32 (!%p4818_p5), %v4230_v0, 0.0 }
 0x331   : > { %v4889_v7 = vpack.c.bf16 %v4246_v1, %v4245_v5 }
 0x333   : > { %4901 = vst [vmem:[%s6644_s25 + $0x30] sm:$0xff] %v4889_v7  }
 0x334   : > { %v4231_v25 = vld [vmem:[#allocation2 + $0x70] sm:$0xff] }
 0x335   : > { %v4247_v38 = vmax.f32 %v4231_v25, 0.0 }
 0x336   : > { %v4232_v2 = vld [vmem:[#allocation2 + $0x78] sm:$0xff] }
 0x337   : > { %v4248_v29 = vmax.f32 %v4232_v2, 0.0 }
 0x339   : > { %v4894_v11 = vpack.c.bf16 %v4248_v29, %v4247_v38 }
 0x33b   : > { %4902 = vst [vmem:[%s6644_s25 + $0x38] sm:$0xff] %v4894_v11  }
 0x33c PF: > { %4335 = sbr.rel (!%p5834_p12) target bundleno = 840 (0x348), region = 108  ;;  %s4836_s1 = sshll.u32 (%p5834_p12), %s5706_s19, 2  ;;  %v4360_v16 = vld [vmem:[%s6644_s25 + $0x8] sm:$0xf] (%p5834_p12)  ;;  %v4362_v17 = vld [vmem:[%s6644_s25 + $0xc] sm:$0xf] (%p5834_p12) }
 0x33d   : > { %s4340_s16 = scalar_lea.vmem (%p5834_p12), %s7114_s3, %s4836_s1  ;;  %v4368_v40 = vld [vmem:[%s6644_s25 + $0x18] sm:$0xf] (%p5834_p12)  ;;  %v4370_v20 = vld [vmem:[%s6644_s25 + $0x1c] sm:$0xf] (%p5834_p12)  ;;  %v4372_v43 = vld [vmem:[%s6644_s25 + $0x20] sm:$0xf] (%p5834_p12) }
 0x33e   : > { %v4356_v13 = vld [vmem:[%s6644_s25] sm:$0xf] (%p5834_p12)  ;;  %v4358_v31 = vld [vmem:[%s6644_s25 + $0x4] sm:$0xf] (%p5834_p12)  ;;  %4361 = vst [vmem:[%s4340_s16 + $0x18] sm:$0xf] (%p5834_p12), %v4360_v16 }
 0x33f   : > { %4357 = vst [vmem:[%s4340_s16] sm:$0xf] (%p5834_p12), %v4356_v13  ;;  %4359 = vst [vmem:[%s4340_s16 + $0xc] sm:$0xf] (%p5834_p12), %v4358_v31  ;;  %v4374_v21 = vld [vmem:[%s6644_s25 + $0x24] sm:$0xf] (%p5834_p12) }
 0x340   : > { %v4364_v18 = vld [vmem:[%s6644_s25 + $0x10] sm:$0xf] (%p5834_p12)  ;;  %4363 = vst [vmem:[%s4340_s16 + $0x24] sm:$0xf] (%p5834_p12), %v4362_v17  ;;  %v4366_v37 = vld [vmem:[%s6644_s25 + $0x14] sm:$0xf] (%p5834_p12) }
 0x341   : > { %4365 = vst [vmem:[%s4340_s16 + $0x30] sm:$0xf] (%p5834_p12), %v4364_v18  ;;  %4367 = vst [vmem:[%s4340_s16 + $0x3c] sm:$0xf] (%p5834_p12), %v4366_v37  ;;  %v4376_v6 = vld [vmem:[%s6644_s25 + $0x28] sm:$0xf] (%p5834_p12) }
 0x342   : > { %4369 = vst [vmem:[%s4340_s16 + $0x48] sm:$0xf] (%p5834_p12), %v4368_v40  ;;  %4371 = vst [vmem:[%s4340_s16 + $0x54] sm:$0xf] (%p5834_p12), %v4370_v20  ;;  %v4378_v26 = vld [vmem:[%s6644_s25 + $0x2c] sm:$0xf] (%p5834_p12) }
 0x343   : > { %4373 = vst [vmem:[%s4340_s16 + $0x60] sm:$0xf] %v4372_v43  ;;  %4375 = vst [vmem:[%s4340_s16 + $0x6c] sm:$0xf] %v4374_v21  ;;  %v4380_v33 = vld [vmem:[%s6644_s25 + $0x30] sm:$0xf] }
 0x344   : > { %4377 = vst [vmem:[%s4340_s16 + $0x78] sm:$0xf] %v4376_v6  ;;  %v4382_v23 = vld [vmem:[%s6644_s25 + $0x34] sm:$0xf]  ;;  %4379 = vst [vmem:[%s4340_s16 + $0x84] sm:$0xf] %v4378_v26 }
 0x345   : > { %4381 = vst [vmem:[%s4340_s16 + $0x90] sm:$0xf] %v4380_v33  ;;  %4383 = vst [vmem:[%s4340_s16 + $0x9c] sm:$0xf] %v4382_v23  ;;  %v4384_v56 = vld [vmem:[%s6644_s25 + $0x38] sm:$0xf] }
 0x346   : > { %v4386_v8 = vld [vmem:[%s6644_s25 + $0x3c] sm:$0xf]  ;;  %4385 = vst [vmem:[%s4340_s16 + $0xa8] sm:$0xf] %v4384_v56 }
 0x347   : > { %4387 = vst [vmem:[%s4340_s16 + $0xb4] sm:$0xf] %v4386_v8 }
 0x348 PF: > { %s13_s22 = sadd.s32 1, %s5718_s22   ;;  %s7124_s10 = sld [smem:[#allocation6_spill]] }
 0x349   : > { %p10_p6 = scmp.ge.s32.totalorder %s13_s22, 8   ;;  %s7125_s12 = smov %s5682_s13 }
 0x34a   : > { %s7126_s13 = smov %s5832_s9  ;;  %s7127_s14 = smov %s5690_s15 }
 0x34b   : > { %s7128_s15 = smov %s5829_s8  ;;  %s7129_s16 = smov %s5698_s17 }
 0x34c   : > { %s7130_s17 = smov %s5815_s30  ;;  %s7131_s18 = smov %s5710_s20 }
 0x34d   : > { %s7132_s19 = smov %s5714_s21  ;;  %s7133_s20 = smov %s7136_s24 }
 0x34e   : > { %s7134_s21 = smov %s7124_s10  ;;  %12 = sbr.rel (!%p10_p6) target bundleno = 9 (0x9), region = 191 }

// kernel: inception_e_forward.12
= control target key start
LH: loop header
LB: loop body
LE: loop exit
PB: predicated region body
PF: predicated region fallthrough
CT: control target
= control target key end

     0   :  { %s3331_s12 = smov 0   ;;  %s3333_s13 = smov 0   ;;  %s4124_s0 = inlined_call_operand.vmem [shape: bf16[128,1152], index: 0, kind: input, shape index: {}]   ;;  %s4125_s1 = inlined_call_operand.vmem [shape: bf16[1152,384], index: 1, kind: input, shape index: {}]   ;;  %s4126_s2 = inlined_call_operand.vmem [shape: f32[1,384], index: 2, kind: input, shape index: {}]   ;;  %s4127_s3 = inlined_call_operand.vmem [shape: f32[128,384], index: 3, kind: output, shape index: {}]  }
   0x1   :  { %s3335_s14 = smov 0   ;;  %s3337_s15 = smov 0  }
   0x2   :  { %s3339_s16 = smov 0  }
   0x3 LB: > { %s22_s17 = sadd.s32 1, %s3305_s15  ;;  %s2576_s18 = sadd.s32 4294967295, %s3309_s16   ;;  %s3309_s16 = sphi %s3339_s16, %s13_s16   ;;  %s3305_s15 = sphi %s3337_s15, %s4132_s15   ;;  %s3301_s14 = sphi %s3335_s14, %s4131_s14   ;;  %s3297_s13 = sphi %s3333_s13, %s4130_s13   ;;  %s3293_s12 = sphi %s3331_s12, %s4129_s12  }
   0x4   : > { %p23_p0 = scmp.ge.s32.totalorder %s22_s17, 3  ;;  %p65_p1 = scmp.ne.s32.totalorder %s3297_s13, %s3293_s12 }
   0x5   : > { %p66_p2 = scmp.eq.s32.totalorder %s3309_s16, 0  ;;  %p123_p4 = scmp.eq.s32.totalorder %s2576_s18, 2 }
   0x6   : > { %s4134_s17 = smov (%p23_p0, %s22_s17), 0  ;;  %s58_s20 = sadd.s32 1, %s3297_s13 }
   0x7   : > { %p67_p3 = por %p66_p2, %p65_p1  ;;  %s55_s19 = ssub.s32 %s3305_s15, %s4134_s17 }
   0x8   : > { %p56_p5 = scmp.eq.s32.totalorder %s55_s19, 0  ;;  %p3366_p6 = por %p123_p4, %p65_p1 }
   0x9   : > { %p2580_p7 = scmp.ge.s32.totalorder %s3309_s16, 3 }
   0xa   : > { %s3371_s22 = scalar_select %p56_p5, %s3297_s13, %s58_s20  }
   0xb   : > { %155 = sbr.rel (%p2580_p7) target bundleno = 118 (0x76), region = 20 }
  0x12   : > { %158 = sbr.rel (!%p67_p3) target bundleno = 118 (0x76), region = 24  ;;  %s160_s23 = sand.u32 (%p67_p3), 1, %s3297_s13  }
  0x13   : > { %s2581_s24 = sshll.u32 (%p67_p3), %s3305_s15, 2  ;;  %s3053_s25 = smul.u32 (%p67_p3), 576, %s160_s23 }
  0x14   : > { %s3379_s28 = scalar_lea.vmem (%p67_p3), %s4125_s1, %s2581_s24 }
  0x15   : > { %v180_v0 = vld [vmem:[%s3379_s28] sm:$0xf] (%p67_p3)  ;;  %v182_v1 = vld [vmem:[%s3379_s28 + $0xc] sm:$0xf] (%p67_p3)  ;;  %v184_v2 = vld [vmem:[%s3379_s28 + $0x18] sm:$0xf] (%p67_p3) }
  0x16   : > { %v186_v3 = vld [vmem:[%s3379_s28 + $0x24] sm:$0xf] (%p67_p3)  ;;  %v188_v4 = vld [vmem:[%s3379_s28 + $0x30] sm:$0xf] (%p67_p3)  ;;  %s3386_s29 = scalar_lea.vmem (%p67_p3), [#allocation2], %s3053_s25 }
  0x17   : > { %181 = vst [vmem:[%s3386_s29] sm:$0xf] (%p67_p3), %v180_v0  ;;  %183 = vst [vmem:[%s3386_s29 + $0x4] sm:$0xf] (%p67_p3), %v182_v1  ;;  %v190_v5 = vld [vmem:[%s3379_s28 + $0x3c] sm:$0xf] (%p67_p3) }
  0x18   : > { %185 = vst [vmem:[%s3386_s29 + $0x8] sm:$0xf] (%p67_p3), %v184_v2  ;;  %187 = vst [vmem:[%s3386_s29 + $0xc] sm:$0xf] (%p67_p3), %v186_v3  ;;  %v192_v6 = vld [vmem:[%s3379_s28 + $0x48] sm:$0xf] (%p67_p3) }
  0x19   : > { %189 = vst [vmem:[%s3386_s29 + $0x10] sm:$0xf] %v188_v4  ;;  %v194_v7 = vld [vmem:[%s3379_s28 + $0x54] sm:$0xf]  ;;  %191 = vst [vmem:[%s3386_s29 + $0x14] sm:$0xf] %v190_v5 }
  0x1a   : > { %193 = vst [vmem:[%s3386_s29 + $0x18] sm:$0xf] %v192_v6  ;;  %195 = vst [vmem:[%s3386_s29 + $0x1c] sm:$0xf] %v194_v7  ;;  %v196_v8 = vld [vmem:[%s3379_s28 + $0x60] sm:$0xf] }
  0x1b   : > { %v198_v9 = vld [vmem:[%s3379_s28 + $0x6c] sm:$0xf]  ;;  %v200_v10 = vld [vmem:[%s3379_s28 + $0x78] sm:$0xf]  ;;  %197 = vst [vmem:[%s3386_s29 + $0x20] sm:$0xf] %v196_v8 }
  0x1c   : > { %199 = vst [vmem:[%s3386_s29 + $0x24] sm:$0xf] %v198_v9  ;;  %201 = vst [vmem:[%s3386_s29 + $0x28] sm:$0xf] %v200_v10  ;;  %v202_v11 = vld [vmem:[%s3379_s28 + $0x84] sm:$0xf] }
  0x1d   : > { %v204_v12 = vld [vmem:[%s3379_s28 + $0x90] sm:$0xf]  ;;  %v206_v13 = vld [vmem:[%s3379_s28 + $0x9c] sm:$0xf]  ;;  %203 = vst [vmem:[%s3386_s29 + $0x2c] sm:$0xf] %v202_v11 }
  0x1e   : > { %205 = vst [vmem:[%s3386_s29 + $0x30] sm:$0xf] %v204_v12  ;;  %207 = vst [vmem:[%s3386_s29 + $0x34] sm:$0xf] %v206_v13  ;;  %v208_v14 = vld [vmem:[%s3379_s28 + $0xa8] sm:$0xf] }
  0x1f   : > { %v210_v15 = vld [vmem:[%s3379_s28 + $0xb4] sm:$0xf]  ;;  %v212_v16 = vld [vmem:[%s3379_s28 + $0xc0] sm:$0xf]  ;;  %209 = vst [vmem:[%s3386_s29 + $0x38] sm:$0xf] %v208_v14 }
  0x20   : > { %211 = vst [vmem:[%s3386_s29 + $0x3c] sm:$0xf] %v210_v15  ;;  %213 = vst [vmem:[%s3386_s29 + $0x40] sm:$0xf] %v212_v16  ;;  %v214_v17 = vld [vmem:[%s3379_s28 + $0xcc] sm:$0xf] }
  0x21   : > { %v216_v18 = vld [vmem:[%s3379_s28 + $0xd8] sm:$0xf]  ;;  %v218_v19 = vld [vmem:[%s3379_s28 + $0xe4] sm:$0xf]  ;;  %215 = vst [vmem:[%s3386_s29 + $0x44] sm:$0xf] %v214_v17 }
  0x22   : > { %217 = vst [vmem:[%s3386_s29 + $0x48] sm:$0xf] %v216_v18  ;;  %219 = vst [vmem:[%s3386_s29 + $0x4c] sm:$0xf] %v218_v19  ;;  %v220_v20 = vld [vmem:[%s3379_s28 + $0xf0] sm:$0xf] }
  0x23   : > { %v222_v21 = vld [vmem:[%s3379_s28 + $0xfc] sm:$0xf]  ;;  %v224_v22 = vld [vmem:[%s3379_s28 + $0x108] sm:$0xf]  ;;  %221 = vst [vmem:[%s3386_s29 + $0x50] sm:$0xf] %v220_v20 }
  0x24   : > { %223 = vst [vmem:[%s3386_s29 + $0x54] sm:$0xf] %v222_v21  ;;  %225 = vst [vmem:[%s3386_s29 + $0x58] sm:$0xf] %v224_v22  ;;  %v226_v23 = vld [vmem:[%s3379_s28 + $0x114] sm:$0xf] }
  0x25   : > { %v228_v24 = vld [vmem:[%s3379_s28 + $0x120] sm:$0xf]  ;;  %v230_v25 = vld [vmem:[%s3379_s28 + $0x12c] sm:$0xf]  ;;  %227 = vst [vmem:[%s3386_s29 + $0x5c] sm:$0xf] %v226_v23 }
  0x26   : > { %229 = vst [vmem:[%s3386_s29 + $0x60] sm:$0xf] %v228_v24  ;;  %231 = vst [vmem:[%s3386_s29 + $0x64] sm:$0xf] %v230_v25  ;;  %v232_v26 = vld [vmem:[%s3379_s28 + $0x138] sm:$0xf] }
  0x27   : > { %v234_v27 = vld [vmem:[%s3379_s28 + $0x144] sm:$0xf]  ;;  %v236_v28 = vld [vmem:[%s3379_s28 + $0x150] sm:$0xf]  ;;  %233 = vst [vmem:[%s3386_s29 + $0x68] sm:$0xf] %v232_v26 }
  0x28   : > { %235 = vst [vmem:[%s3386_s29 + $0x6c] sm:$0xf] %v234_v27  ;;  %237 = vst [vmem:[%s3386_s29 + $0x70] sm:$0xf] %v236_v28  ;;  %v238_v29 = vld [vmem:[%s3379_s28 + $0x15c] sm:$0xf] }
  0x29   : > { %v240_v30 = vld [vmem:[%s3379_s28 + $0x168] sm:$0xf]  ;;  %v242_v31 = vld [vmem:[%s3379_s28 + $0x174] sm:$0xf]  ;;  %239 = vst [vmem:[%s3386_s29 + $0x74] sm:$0xf] %v238_v29 }
  0x2a   : > { %241 = vst [vmem:[%s3386_s29 + $0x78] sm:$0xf] %v240_v30  ;;  %243 = vst [vmem:[%s3386_s29 + $0x7c] sm:$0xf] %v242_v31  ;;  %v244_v32 = vld [vmem:[%s3379_s28 + $0x180] sm:$0xf] }
  0x2b   : > { %v246_v33 = vld [vmem:[%s3379_s28 + $0x18c] sm:$0xf]  ;;  %v248_v34 = vld [vmem:[%s3379_s28 + $0x198] sm:$0xf]  ;;  %245 = vst [vmem:[%s3386_s29 + $0x80] sm:$0xf] %v244_v32 }
  0x2c   : > { %247 = vst [vmem:[%s3386_s29 + $0x84] sm:$0xf] %v246_v33  ;;  %249 = vst [vmem:[%s3386_s29 + $0x88] sm:$0xf] %v248_v34  ;;  %v250_v35 = vld [vmem:[%s3379_s28 + $0x1a4] sm:$0xf] }
  0x2d   : > { %v252_v36 = vld [vmem:[%s3379_s28 + $0x1b0] sm:$0xf]  ;;  %v254_v37 = vld [vmem:[%s3379_s28 + $0x1bc] sm:$0xf]  ;;  %251 = vst [vmem:[%s3386_s29 + $0x8c] sm:$0xf] %v250_v35 }
  0x2e   : > { %253 = vst [vmem:[%s3386_s29 + $0x90] sm:$0xf] %v252_v36  ;;  %255 = vst [vmem:[%s3386_s29 + $0x94] sm:$0xf] %v254_v37  ;;  %v256_v38 = vld [vmem:[%s3379_s28 + $0x1c8] sm:$0xf] }
  0x2f   : > { %v258_v39 = vld [vmem:[%s3379_s28 + $0x1d4] sm:$0xf]  ;;  %v260_v40 = vld [vmem:[%s3379_s28 + $0x1e0] sm:$0xf]  ;;  %257 = vst [vmem:[%s3386_s29 + $0x98] sm:$0xf] %v256_v38 }
  0x30   : > { %259 = vst [vmem:[%s3386_s29 + $0x9c] sm:$0xf] %v258_v39  ;;  %261 = vst [vmem:[%s3386_s29 + $0xa0] sm:$0xf] %v260_v40  ;;  %v262_v41 = vld [vmem:[%s3379_s28 + $0x1ec] sm:$0xf] }
  0x31   : > { %v264_v42 = vld [vmem:[%s3379_s28 + $0x1f8] sm:$0xf]  ;;  %v266_v43 = vld [vmem:[%s3379_s28 + $0x204] sm:$0xf]  ;;  %263 = vst [vmem:[%s3386_s29 + $0xa4] sm:$0xf] %v262_v41 }
  0x32   : > { %265 = vst [vmem:[%s3386_s29 + $0xa8] sm:$0xf] %v264_v42  ;;  %267 = vst [vmem:[%s3386_s29 + $0xac] sm:$0xf] %v266_v43  ;;  %v268_v44 = vld [vmem:[%s3379_s28 + $0x210] sm:$0xf] }
  0x33   : > { %v270_v45 = vld [vmem:[%s3379_s28 + $0x21c] sm:$0xf]  ;;  %v272_v46 = vld [vmem:[%s3379_s28 + $0x228] sm:$0xf]  ;;  %269 = vst [vmem:[%s3386_s29 + $0xb0] sm:$0xf] %v268_v44 }
  0x34   : > { %271 = vst [vmem:[%s3386_s29 + $0xb4] sm:$0xf] %v270_v45  ;;  %273 = vst [vmem:[%s3386_s29 + $0xb8] sm:$0xf] %v272_v46  ;;  %v274_v47 = vld [vmem:[%s3379_s28 + $0x234] sm:$0xf] }
  0x35   : > { %v276_v48 = vld [vmem:[%s3379_s28 + $0x240] sm:$0xf]  ;;  %v278_v49 = vld [vmem:[%s3379_s28 + $0x24c] sm:$0xf]  ;;  %275 = vst [vmem:[%s3386_s29 + $0xbc] sm:$0xf] %v274_v47 }
  0x36   : > { %277 = vst [vmem:[%s3386_s29 + $0xc0] sm:$0xf] %v276_v48  ;;  %279 = vst [vmem:[%s3386_s29 + $0xc4] sm:$0xf] %v278_v49  ;;  %v280_v50 = vld [vmem:[%s3379_s28 + $0x258] sm:$0xf] }
  0x37   : > { %v282_v51 = vld [vmem:[%s3379_s28 + $0x264] sm:$0xf]  ;;  %v284_v52 = vld [vmem:[%s3379_s28 + $0x270] sm:$0xf]  ;;  %281 = vst [vmem:[%s3386_s29 + $0xc8] sm:$0xf] %v280_v50 }
  0x38   : > { %283 = vst [vmem:[%s3386_s29 + $0xcc] sm:$0xf] %v282_v51  ;;  %285 = vst [vmem:[%s3386_s29 + $0xd0] sm:$0xf] %v284_v52  ;;  %v286_v53 = vld [vmem:[%s3379_s28 + $0x27c] sm:$0xf] }
  0x39   : > { %v288_v54 = vld [vmem:[%s3379_s28 + $0x288] sm:$0xf]  ;;  %v290_v55 = vld [vmem:[%s3379_s28 + $0x294] sm:$0xf]  ;;  %287 = vst [vmem:[%s3386_s29 + $0xd4] sm:$0xf] %v286_v53 }
  0x3a   : > { %289 = vst [vmem:[%s3386_s29 + $0xd8] sm:$0xf] %v288_v54  ;;  %291 = vst [vmem:[%s3386_s29 + $0xdc] sm:$0xf] %v290_v55  ;;  %v292_v56 = vld [vmem:[%s3379_s28 + $0x2a0] sm:$0xf] }
  0x3b   : > { %v294_v57 = vld [vmem:[%s3379_s28 + $0x2ac] sm:$0xf]  ;;  %v296_v58 = vld [vmem:[%s3379_s28 + $0x2b8] sm:$0xf]  ;;  %293 = vst [vmem:[%s3386_s29 + $0xe0] sm:$0xf] %v292_v56 }
  0x3c   : > { %295 = vst [vmem:[%s3386_s29 + $0xe4] sm:$0xf] %v294_v57  ;;  %297 = vst [vmem:[%s3386_s29 + $0xe8] sm:$0xf] %v296_v58  ;;  %v298_v59 = vld [vmem:[%s3379_s28 + $0x2c4] sm:$0xf] }
  0x3d   : > { %v300_v60 = vld [vmem:[%s3379_s28 + $0x2d0] sm:$0xf]  ;;  %v302_v61 = vld [vmem:[%s3379_s28 + $0x2dc] sm:$0xf]  ;;  %299 = vst [vmem:[%s3386_s29 + $0xec] sm:$0xf] %v298_v59 }
  0x3e   : > { %301 = vst [vmem:[%s3386_s29 + $0xf0] sm:$0xf] %v300_v60  ;;  %303 = vst [vmem:[%s3386_s29 + $0xf4] sm:$0xf] %v302_v61  ;;  %v304_v62 = vld [vmem:[%s3379_s28 + $0x2e8] sm:$0xf] }
  0x3f   : > { %v306_v63 = vld [vmem:[%s3379_s28 + $0x2f4] sm:$0xf]  ;;  %v308_v0 = vld [vmem:[%s3379_s28 + $0x300] sm:$0xf]  ;;  %305 = vst [vmem:[%s3386_s29 + $0xf8] sm:$0xf] %v304_v62 }
  0x40   : > { %307 = vst [vmem:[%s3386_s29 + $0xfc] sm:$0xf] %v306_v63  ;;  %309 = vst [vmem:[%s3386_s29 + $0x100] sm:$0xf] %v308_v0  ;;  %v310_v1 = vld [vmem:[%s3379_s28 + $0x30c] sm:$0xf] }
  0x41   : > { %v312_v2 = vld [vmem:[%s3379_s28 + $0x318] sm:$0xf]  ;;  %v314_v3 = vld [vmem:[%s3379_s28 + $0x324] sm:$0xf]  ;;  %311 = vst [vmem:[%s3386_s29 + $0x104] sm:$0xf] %v310_v1 }
  0x42   : > { %313 = vst [vmem:[%s3386_s29 + $0x108] sm:$0xf] %v312_v2  ;;  %315 = vst [vmem:[%s3386_s29 + $0x10c] sm:$0xf] %v314_v3  ;;  %v316_v4 = vld [vmem:[%s3379_s28 + $0x330] sm:$0xf] }
  0x43   : > { %v318_v5 = vld [vmem:[%s3379_s28 + $0x33c] sm:$0xf]  ;;  %v320_v6 = vld [vmem:[%s3379_s28 + $0x348] sm:$0xf]  ;;  %317 = vst [vmem:[%s3386_s29 + $0x110] sm:$0xf] %v316_v4 }
  0x44   : > { %319 = vst [vmem:[%s3386_s29 + $0x114] sm:$0xf] %v318_v5  ;;  %321 = vst [vmem:[%s3386_s29 + $0x118] sm:$0xf] %v320_v6  ;;  %v322_v7 = vld [vmem:[%s3379_s28 + $0x354] sm:$0xf] }
  0x45   : > { %v324_v8 = vld [vmem:[%s3379_s28 + $0x360] sm:$0xf]  ;;  %v326_v9 = vld [vmem:[%s3379_s28 + $0x36c] sm:$0xf]  ;;  %323 = vst [vmem:[%s3386_s29 + $0x11c] sm:$0xf] %v322_v7 }
  0x46   : > { %325 = vst [vmem:[%s3386_s29 + $0x120] sm:$0xf] %v324_v8  ;;  %327 = vst [vmem:[%s3386_s29 + $0x124] sm:$0xf] %v326_v9  ;;  %v328_v10 = vld [vmem:[%s3379_s28 + $0x378] sm:$0xf] }
  0x47   : > { %v330_v11 = vld [vmem:[%s3379_s28 + $0x384] sm:$0xf]  ;;  %v332_v12 = vld [vmem:[%s3379_s28 + $0x390] sm:$0xf]  ;;  %329 = vst [vmem:[%s3386_s29 + $0x128] sm:$0xf] %v328_v10 }
  0x48   : > { %331 = vst [vmem:[%s3386_s29 + $0x12c] sm:$0xf] %v330_v11  ;;  %333 = vst [vmem:[%s3386_s29 + $0x130] sm:$0xf] %v332_v12  ;;  %v334_v13 = vld [vmem:[%s3379_s28 + $0x39c] sm:$0xf] }
  0x49   : > { %v336_v14 = vld [vmem:[%s3379_s28 + $0x3a8] sm:$0xf]  ;;  %v338_v15 = vld [vmem:[%s3379_s28 + $0x3b4] sm:$0xf]  ;;  %335 = vst [vmem:[%s3386_s29 + $0x134] sm:$0xf] %v334_v13 }
  0x4a   : > { %337 = vst [vmem:[%s3386_s29 + $0x138] sm:$0xf] %v336_v14  ;;  %339 = vst [vmem:[%s3386_s29 + $0x13c] sm:$0xf] %v338_v15  ;;  %v340_v16 = vld [vmem:[%s3379_s28 + $0x3c0] sm:$0xf] }
  0x4b   : > { %v342_v17 = vld [vmem:[%s3379_s28 + $0x3cc] sm:$0xf]  ;;  %v344_v18 = vld [vmem:[%s3379_s28 + $0x3d8] sm:$0xf]  ;;  %341 = vst [vmem:[%s3386_s29 + $0x140] sm:$0xf] %v340_v16 }
  0x4c   : > { %343 = vst [vmem:[%s3386_s29 + $0x144] sm:$0xf] %v342_v17  ;;  %345 = vst [vmem:[%s3386_s29 + $0x148] sm:$0xf] %v344_v18  ;;  %v346_v19 = vld [vmem:[%s3379_s28 + $0x3e4] sm:$0xf] }
  0x4d   : > { %v348_v20 = vld [vmem:[%s3379_s28 + $0x3f0] sm:$0xf]  ;;  %v350_v21 = vld [vmem:[%s3379_s28 + $0x3fc] sm:$0xf]  ;;  %347 = vst [vmem:[%s3386_s29 + $0x14c] sm:$0xf] %v346_v19 }
  0x4e   : > { %349 = vst [vmem:[%s3386_s29 + $0x150] sm:$0xf] %v348_v20  ;;  %351 = vst [vmem:[%s3386_s29 + $0x154] sm:$0xf] %v350_v21  ;;  %v352_v22 = vld [vmem:[%s3379_s28 + $0x408] sm:$0xf] }
  0x4f   : > { %v354_v23 = vld [vmem:[%s3379_s28 + $0x414] sm:$0xf]  ;;  %v356_v24 = vld [vmem:[%s3379_s28 + $0x420] sm:$0xf]  ;;  %353 = vst [vmem:[%s3386_s29 + $0x158] sm:$0xf] %v352_v22 }
  0x50   : > { %355 = vst [vmem:[%s3386_s29 + $0x15c] sm:$0xf] %v354_v23  ;;  %357 = vst [vmem:[%s3386_s29 + $0x160] sm:$0xf] %v356_v24  ;;  %v358_v25 = vld [vmem:[%s3379_s28 + $0x42c] sm:$0xf] }
  0x51   : > { %v360_v26 = vld [vmem:[%s3379_s28 + $0x438] sm:$0xf]  ;;  %v362_v27 = vld [vmem:[%s3379_s28 + $0x444] sm:$0xf]  ;;  %359 = vst [vmem:[%s3386_s29 + $0x164] sm:$0xf] %v358_v25 }
  0x52   : > { %361 = vst [vmem:[%s3386_s29 + $0x168] sm:$0xf] %v360_v26  ;;  %363 = vst [vmem:[%s3386_s29 + $0x16c] sm:$0xf] %v362_v27  ;;  %v364_v28 = vld [vmem:[%s3379_s28 + $0x450] sm:$0xf] }
  0x53   : > { %v366_v29 = vld [vmem:[%s3379_s28 + $0x45c] sm:$0xf]  ;;  %v368_v30 = vld [vmem:[%s3379_s28 + $0x468] sm:$0xf]  ;;  %365 = vst [vmem:[%s3386_s29 + $0x170] sm:$0xf] %v364_v28 }
  0x54   : > { %367 = vst [vmem:[%s3386_s29 + $0x174] sm:$0xf] %v366_v29  ;;  %369 = vst [vmem:[%s3386_s29 + $0x178] sm:$0xf] %v368_v30  ;;  %v370_v31 = vld [vmem:[%s3379_s28 + $0x474] sm:$0xf] }
  0x55   : > { %v372_v32 = vld [vmem:[%s3379_s28 + $0x480] sm:$0xf]  ;;  %v374_v33 = vld [vmem:[%s3379_s28 + $0x48c] sm:$0xf]  ;;  %371 = vst [vmem:[%s3386_s29 + $0x17c] sm:$0xf] %v370_v31 }
  0x56   : > { %373 = vst [vmem:[%s3386_s29 + $0x180] sm:$0xf] %v372_v32  ;;  %375 = vst [vmem:[%s3386_s29 + $0x184] sm:$0xf] %v374_v33  ;;  %v376_v34 = vld [vmem:[%s3379_s28 + $0x498] sm:$0xf] }
  0x57   : > { %v378_v35 = vld [vmem:[%s3379_s28 + $0x4a4] sm:$0xf]  ;;  %v380_v36 = vld [vmem:[%s3379_s28 + $0x4b0] sm:$0xf]  ;;  %377 = vst [vmem:[%s3386_s29 + $0x188] sm:$0xf] %v376_v34 }
  0x58   : > { %379 = vst [vmem:[%s3386_s29 + $0x18c] sm:$0xf] %v378_v35  ;;  %381 = vst [vmem:[%s3386_s29 + $0x190] sm:$0xf] %v380_v36  ;;  %v382_v37 = vld [vmem:[%s3379_s28 + $0x4bc] sm:$0xf] }
  0x59   : > { %v384_v38 = vld [vmem:[%s3379_s28 + $0x4c8] sm:$0xf]  ;;  %v386_v39 = vld [vmem:[%s3379_s28 + $0x4d4] sm:$0xf]  ;;  %383 = vst [vmem:[%s3386_s29 + $0x194] sm:$0xf] %v382_v37 }
  0x5a   : > { %385 = vst [vmem:[%s3386_s29 + $0x198] sm:$0xf] %v384_v38  ;;  %387 = vst [vmem:[%s3386_s29 + $0x19c] sm:$0xf] %v386_v39  ;;  %v388_v40 = vld [vmem:[%s3379_s28 + $0x4e0] sm:$0xf] }
  0x5b   : > { %v390_v41 = vld [vmem:[%s3379_s28 + $0x4ec] sm:$0xf]  ;;  %v392_v42 = vld [vmem:[%s3379_s28 + $0x4f8] sm:$0xf]  ;;  %389 = vst [vmem:[%s3386_s29 + $0x1a0] sm:$0xf] %v388_v40 }
  0x5c   : > { %391 = vst [vmem:[%s3386_s29 + $0x1a4] sm:$0xf] %v390_v41  ;;  %393 = vst [vmem:[%s3386_s29 + $0x1a8] sm:$0xf] %v392_v42  ;;  %v394_v43 = vld [vmem:[%s3379_s28 + $0x504] sm:$0xf] }
  0x5d   : > { %v396_v44 = vld [vmem:[%s3379_s28 + $0x510] sm:$0xf]  ;;  %v398_v45 = vld [vmem:[%s3379_s28 + $0x51c] sm:$0xf]  ;;  %395 = vst [vmem:[%s3386_s29 + $0x1ac] sm:$0xf] %v394_v43 }
  0x5e   : > { %397 = vst [vmem:[%s3386_s29 + $0x1b0] sm:$0xf] %v396_v44  ;;  %399 = vst [vmem:[%s3386_s29 + $0x1b4] sm:$0xf] %v398_v45  ;;  %v400_v46 = vld [vmem:[%s3379_s28 + $0x528] sm:$0xf] }
  0x5f   : > { %v402_v47 = vld [vmem:[%s3379_s28 + $0x534] sm:$0xf]  ;;  %v404_v48 = vld [vmem:[%s3379_s28 + $0x540] sm:$0xf]  ;;  %401 = vst [vmem:[%s3386_s29 + $0x1b8] sm:$0xf] %v400_v46 }
  0x60   : > { %403 = vst [vmem:[%s3386_s29 + $0x1bc] sm:$0xf] %v402_v47  ;;  %405 = vst [vmem:[%s3386_s29 + $0x1c0] sm:$0xf] %v404_v48  ;;  %v406_v49 = vld [vmem:[%s3379_s28 + $0x54c] sm:$0xf] }
  0x61   : > { %v408_v50 = vld [vmem:[%s3379_s28 + $0x558] sm:$0xf]  ;;  %v410_v51 = vld [vmem:[%s3379_s28 + $0x564] sm:$0xf]  ;;  %407 = vst [vmem:[%s3386_s29 + $0x1c4] sm:$0xf] %v406_v49 }
  0x62   : > { %409 = vst [vmem:[%s3386_s29 + $0x1c8] sm:$0xf] %v408_v50  ;;  %411 = vst [vmem:[%s3386_s29 + $0x1cc] sm:$0xf] %v410_v51  ;;  %v412_v52 = vld [vmem:[%s3379_s28 + $0x570] sm:$0xf] }
  0x63   : > { %v414_v53 = vld [vmem:[%s3379_s28 + $0x57c] sm:$0xf]  ;;  %v416_v54 = vld [vmem:[%s3379_s28 + $0x588] sm:$0xf]  ;;  %413 = vst [vmem:[%s3386_s29 + $0x1d0] sm:$0xf] %v412_v52 }
  0x64   : > { %415 = vst [vmem:[%s3386_s29 + $0x1d4] sm:$0xf] %v414_v53  ;;  %417 = vst [vmem:[%s3386_s29 + $0x1d8] sm:$0xf] %v416_v54  ;;  %v418_v55 = vld [vmem:[%s3379_s28 + $0x594] sm:$0xf] }
  0x65   : > { %v420_v56 = vld [vmem:[%s3379_s28 + $0x5a0] sm:$0xf]  ;;  %v422_v57 = vld [vmem:[%s3379_s28 + $0x5ac] sm:$0xf]  ;;  %419 = vst [vmem:[%s3386_s29 + $0x1dc] sm:$0xf] %v418_v55 }
  0x66   : > { %421 = vst [vmem:[%s3386_s29 + $0x1e0] sm:$0xf] %v420_v56  ;;  %423 = vst [vmem:[%s3386_s29 + $0x1e4] sm:$0xf] %v422_v57  ;;  %v424_v58 = vld [vmem:[%s3379_s28 + $0x5b8] sm:$0xf] }
  0x67   : > { %v426_v59 = vld [vmem:[%s3379_s28 + $0x5c4] sm:$0xf]  ;;  %v428_v60 = vld [vmem:[%s3379_s28 + $0x5d0] sm:$0xf]  ;;  %425 = vst [vmem:[%s3386_s29 + $0x1e8] sm:$0xf] %v424_v58 }
  0x68   : > { %427 = vst [vmem:[%s3386_s29 + $0x1ec] sm:$0xf] %v426_v59  ;;  %429 = vst [vmem:[%s3386_s29 + $0x1f0] sm:$0xf] %v428_v60  ;;  %v430_v61 = vld [vmem:[%s3379_s28 + $0x5dc] sm:$0xf] }
  0x69   : > { %v432_v62 = vld [vmem:[%s3379_s28 + $0x5e8] sm:$0xf]  ;;  %v434_v63 = vld [vmem:[%s3379_s28 + $0x5f4] sm:$0xf]  ;;  %431 = vst [vmem:[%s3386_s29 + $0x1f4] sm:$0xf] %v430_v61 }
  0x6a   : > { %433 = vst [vmem:[%s3386_s29 + $0x1f8] sm:$0xf] %v432_v62  ;;  %435 = vst [vmem:[%s3386_s29 + $0x1fc] sm:$0xf] %v434_v63  ;;  %v436_v0 = vld [vmem:[%s3379_s28 + $0x600] sm:$0xf] }
  0x6b   : > { %v438_v1 = vld [vmem:[%s3379_s28 + $0x60c] sm:$0xf]  ;;  %v440_v2 = vld [vmem:[%s3379_s28 + $0x618] sm:$0xf]  ;;  %437 = vst [vmem:[%s3386_s29 + $0x200] sm:$0xf] %v436_v0 }
  0x6c   : > { %439 = vst [vmem:[%s3386_s29 + $0x204] sm:$0xf] %v438_v1  ;;  %441 = vst [vmem:[%s3386_s29 + $0x208] sm:$0xf] %v440_v2  ;;  %v442_v3 = vld [vmem:[%s3379_s28 + $0x624] sm:$0xf] }
  0x6d   : > { %v444_v4 = vld [vmem:[%s3379_s28 + $0x630] sm:$0xf]  ;;  %v446_v5 = vld [vmem:[%s3379_s28 + $0x63c] sm:$0xf]  ;;  %443 = vst [vmem:[%s3386_s29 + $0x20c] sm:$0xf] %v442_v3 }
  0x6e   : > { %445 = vst [vmem:[%s3386_s29 + $0x210] sm:$0xf] %v444_v4  ;;  %447 = vst [vmem:[%s3386_s29 + $0x214] sm:$0xf] %v446_v5  ;;  %v448_v6 = vld [vmem:[%s3379_s28 + $0x648] sm:$0xf] }
  0x6f   : > { %v450_v7 = vld [vmem:[%s3379_s28 + $0x654] sm:$0xf]  ;;  %v452_v8 = vld [vmem:[%s3379_s28 + $0x660] sm:$0xf]  ;;  %449 = vst [vmem:[%s3386_s29 + $0x218] sm:$0xf] %v448_v6 }
  0x70   : > { %451 = vst [vmem:[%s3386_s29 + $0x21c] sm:$0xf] %v450_v7  ;;  %453 = vst [vmem:[%s3386_s29 + $0x220] sm:$0xf] %v452_v8  ;;  %v454_v9 = vld [vmem:[%s3379_s28 + $0x66c] sm:$0xf] }
  0x71   : > { %v456_v10 = vld [vmem:[%s3379_s28 + $0x678] sm:$0xf]  ;;  %v458_v11 = vld [vmem:[%s3379_s28 + $0x684] sm:$0xf]  ;;  %455 = vst [vmem:[%s3386_s29 + $0x224] sm:$0xf] %v454_v9 }
  0x72   : > { %457 = vst [vmem:[%s3386_s29 + $0x228] sm:$0xf] %v456_v10  ;;  %459 = vst [vmem:[%s3386_s29 + $0x22c] sm:$0xf] %v458_v11  ;;  %v460_v12 = vld [vmem:[%s3379_s28 + $0x690] sm:$0xf] }
  0x73   : > { %v462_v13 = vld [vmem:[%s3379_s28 + $0x69c] sm:$0xf]  ;;  %v464_v14 = vld [vmem:[%s3379_s28 + $0x6a8] sm:$0xf]  ;;  %461 = vst [vmem:[%s3386_s29 + $0x230] sm:$0xf] %v460_v12 }
  0x74   : > { %463 = vst [vmem:[%s3386_s29 + $0x234] sm:$0xf] %v462_v13  ;;  %465 = vst [vmem:[%s3386_s29 + $0x238] sm:$0xf] %v464_v14  ;;  %v466_v15 = vld [vmem:[%s3379_s28 + $0x6b4] sm:$0xf] }
  0x75   : > { %467 = vst [vmem:[%s3386_s29 + $0x23c] sm:$0xf] %v466_v15 }
  0x76 PF: > { %p2582_p8 = scmp.ge.s32.totalorder %s3309_s16, 1  ;;  %p783_p9 = scmp.lt.s32.totalorder %s3309_s16, 4 }
  0x78   : > { %p784_p10 = pnand %p2582_p8, %p783_p9 }
  0x79   : > { %s790_s30 = sand.u32 (!%p784_p10), 1, %s3293_s12   ;;  %v3129_v16 = vld [vmem:[%s4124_s0 + $0x4] ss:$36 sps:$4 sm:$0xff] (!%p784_p10)   ;;  %v3132_v17 = vld [vmem:[%s4124_s0 + $0xc] ss:$36 sps:$4 sm:$0xff] (!%p784_p10)   ;;  %p828_p11 = scmp.lt.s32.totalorder (!%p784_p10), %s3301_s14, 2 }
  0x7a   : > { %787 = sbr.rel (%p784_p10) target bundleno = 525 (0x20d), region = 69  ;;  %1896 = vmatprep.mubr.bf16.mxu0 (!%p784_p10), %v3129_v16  ;;  %1993 = vmatprep.mubr.bf16.mxu1 (!%p784_p10), %v3132_v17  ;;  %v3127_v48 = vld [vmem:[%s4124_s0] ss:$36 sps:$4 sm:$0xff] (!%p784_p10)   ;;  %v3130_v50 = vld [vmem:[%s4124_s0 + $0x8] ss:$36 sps:$4 sm:$0xff] (!%p784_p10)   ;;  %s2583_s23 = sshll.u32 (!%p784_p10), %s790_s30, 7 }
  0x7b   : > { %s3054_s4 = smul.u32 (!%p784_p10), 576, %s790_s30  ;;  %v3137_v52 = vld [vmem:[%s4124_s0 + $0x4c] ss:$36 sps:$4 sm:$0xff] (!%p784_p10)   ;;  %v3139_v57 = vld [vmem:[%s4124_s0 + $0x54] ss:$36 sps:$4 sm:$0xff] (!%p784_p10)   ;;  %s4063_s12 = scalar_lea.vmem (!%p784_p10), [#allocation3], %s2583_s23 }
  0x7c   : > { %v3141_v58 = vld [vmem:[%s4124_s0 + $0x48] ss:$36 sps:$4 sm:$0xff] (!%p784_p10)   ;;  %v3142_v59 = vld [vmem:[%s4124_s0 + $0x50] ss:$36 sps:$4 sm:$0xff] (!%p784_p10)   ;;  %v3149_v1 = vld [vmem:[%s4124_s0 + $0x9c] ss:$36 sps:$4 sm:$0xff] (!%p784_p10)  }
  0x7d   : > { %s3682_s9 = scalar_lea.vmem (!%p784_p10), [#allocation2], %s3054_s4  ;;  %v3147_v0 = vld [vmem:[%s4124_s0 + $0x94] ss:$36 sps:$4 sm:$0xff] (!%p784_p10)   ;;  %v3157_v8 = vld [vmem:[%s4124_s0 + $0xdc] ss:$36 sps:$4 sm:$0xff] (!%p784_p10)  }
  0x7e   : > { %v3095_v18 = vld [vmem:[%s3682_s9 + $0x40] sm:$0xff] (!%p784_p10)   ;;  %v3099_v22 = vld [vmem:[%s3682_s9 + $0x48] sm:$0xff] (!%p784_p10)   ;;  %v3103_v26 = vld [vmem:[%s3682_s9 + $0x50] sm:$0xff] (!%p784_p10)  }
  0x7f   : > { %v3096_v19 = vld [vmem:[%s3682_s9 + $0xc0] sm:$0xff] (!%p784_p10)   ;;  %2733 = vmatprep.subr.bf16.mxu0 (!%p784_p10), %v3095_v18  ;;  %v3100_v23 = vld [vmem:[%s3682_s9 + $0xc8] sm:$0xff] (!%p784_p10)   ;;  %v3104_v27 = vld [vmem:[%s3682_s9 + $0xd0] sm:$0xff] (!%p784_p10)  }
  0x80   : > { %v3097_v20 = vld [vmem:[%s3682_s9] sm:$0xff] (!%p784_p10)   ;;  %2797 = vmatprep.subr.bf16.mxu1 (!%p784_p10), %v3096_v19  ;;  %v3101_v24 = vld [vmem:[%s3682_s9 + $0x8] sm:$0xff] (!%p784_p10)   ;;  %v3105_v28 = vld [vmem:[%s3682_s9 + $0x10] sm:$0xff] (!%p784_p10)  }
  0x81   : > { %v3098_v21 = vld [vmem:[%s3682_s9 + $0x80] sm:$0xff]   ;;  %2734 = vmatpush3.bf16.msra.mxu0 %v3097_v20  ;;  %v3102_v25 = vld [vmem:[%s3682_s9 + $0x88] sm:$0xff]   ;;  %v3106_v29 = vld [vmem:[%s3682_s9 + $0x90] sm:$0xff]   ;;  %s829_s11 = scalar_select %p828_p11, %s3301_s14, 2 }
  0x82   : > { %2798 = vmatpush3.bf16.msra.mxu1 %v3098_v21  ;;  %2735 = vmatprep.subr.bf16.mxu0 %v3099_v22  ;;  %v3107_v30 = vld [vmem:[%s3682_s9 + $0x58] sm:$0xff]   ;;  %v3111_v34 = vld [vmem:[%s3682_s9 + $0x60] sm:$0xff]   ;;  %v3115_v38 = vld [vmem:[%s3682_s9 + $0x68] sm:$0xff]   ;;  %s2730_s30 = sshll.u32 (%p3366_p6), %s3301_s14, 3 }
  0x83   : > { %2799 = vmatprep.subr.bf16.mxu1 %v3100_v23  ;;  %v3108_v31 = vld [vmem:[%s3682_s9 + $0xd8] sm:$0xff]   ;;  %v3112_v35 = vld [vmem:[%s3682_s9 + $0xe0] sm:$0xff]   ;;  %v3116_v39 = vld [vmem:[%s3682_s9 + $0xe8] sm:$0xff]   ;;  %s830_s20 = scalar_lea.vmem %s4126_s2, %s829_s11  ;;  %s2392_s26 = scalar_lea.vmem (%p3366_p6), %s4127_s3, %s2730_s30 }
  0x84   : > { %v3109_v32 = vld [vmem:[%s3682_s9 + $0x18] sm:$0xff]   ;;  %v3113_v36 = vld [vmem:[%s3682_s9 + $0x20] sm:$0xff]   ;;  %v3117_v40 = vld [vmem:[%s3682_s9 + $0x28] sm:$0xff]  }
  0x85   : > { %2736 = vmatpush3.bf16.msra.mxu0 %v3101_v24  ;;  %v3110_v33 = vld [vmem:[%s3682_s9 + $0x98] sm:$0xff]   ;;  %v3114_v37 = vld [vmem:[%s3682_s9 + $0xa0] sm:$0xff]   ;;  %v3118_v41 = vld [vmem:[%s3682_s9 + $0xa8] sm:$0xff]  }
  0x86   : > { %2800 = vmatpush3.bf16.msra.mxu1 %v3102_v25  ;;  %2737 = vmatprep.subr.bf16.mxu0 %v3103_v26  ;;  %v3119_v42 = vld [vmem:[%s3682_s9 + $0x70] sm:$0xff]   ;;  %v3123_v46 = vld [vmem:[%s3682_s9 + $0x78] sm:$0xff]   ;;  %v3133_v53 = vld [vmem:[%s3682_s9 + $0x140] sm:$0xff]  }
  0x87   : > { %2801 = vmatprep.subr.bf16.mxu1 %v3104_v27  ;;  %v3120_v43 = vld [vmem:[%s3682_s9 + $0xf0] sm:$0xff]   ;;  %v3124_v47 = vld [vmem:[%s3682_s9 + $0xf8] sm:$0xff]   ;;  %v3134_v54 = vld [vmem:[%s3682_s9 + $0x1c0] sm:$0xff]  }
  0x88   : > { %v3121_v44 = vld [vmem:[%s3682_s9 + $0x30] sm:$0xff]   ;;  %v3125_v49 = vld [vmem:[%s3682_s9 + $0x38] sm:$0xff]   ;;  %v3135_v55 = vld [vmem:[%s3682_s9 + $0x100] sm:$0xff]  }
  0x89   : > { %2738 = vmatpush3.bf16.msra.mxu0 %v3105_v28  ;;  %v3122_v45 = vld [vmem:[%s3682_s9 + $0xb0] sm:$0xff]   ;;  %v3126_v51 = vld [vmem:[%s3682_s9 + $0xb8] sm:$0xff]   ;;  %v3136_v56 = vld [vmem:[%s3682_s9 + $0x180] sm:$0xff]  }
  0x8a   : > { %2802 = vmatpush3.bf16.msra.mxu1 %v3106_v29  ;;  %2739 = vmatprep.subr.bf16.mxu0 %v3107_v30  ;;  %v3143_v60 = vld [vmem:[%s3682_s9 + $0x148] sm:$0xff]   ;;  %v3153_v2 = vld [vmem:[%s3682_s9 + $0x150] sm:$0xff]   ;;  %v3152_v5 = vld [vmem:[%s4124_s0 + $0x98] ss:$36 sps:$4 sm:$0xff]  }
  0x8b   : > { %2803 = vmatprep.subr.bf16.mxu1 %v3108_v31  ;;  %v3144_v61 = vld [vmem:[%s3682_s9 + $0x1c8] sm:$0xff]   ;;  %v3151_v3 = vld [vmem:[%s4124_s0 + $0x90] ss:$36 sps:$4 sm:$0xff]   ;;  %v3163_v10 = vld [vmem:[%s3682_s9 + $0x158] sm:$0xff]  }
  0x8c   : > { %v3145_v62 = vld [vmem:[%s3682_s9 + $0x108] sm:$0xff]   ;;  %v3154_v4 = vld [vmem:[%s3682_s9 + $0x1d0] sm:$0xff]   ;;  %v3164_v11 = vld [vmem:[%s3682_s9 + $0x1d8] sm:$0xff]  }
  0x8d   : > { %2740 = vmatpush3.bf16.msra.mxu0 %v3109_v32  ;;  %v3146_v63 = vld [vmem:[%s3682_s9 + $0x188] sm:$0xff]   ;;  %v3155_v6 = vld [vmem:[%s3682_s9 + $0x110] sm:$0xff]   ;;  %v3165_v12 = vld [vmem:[%s3682_s9 + $0x118] sm:$0xff]  }
  0x8e   : > { %2804 = vmatpush3.bf16.msra.mxu1 %v3110_v33  ;;  %2741 = vmatprep.subr.bf16.mxu0 %v3111_v34  ;;  %v3156_v7 = vld [vmem:[%s3682_s9 + $0x190] sm:$0xff]   ;;  %v3159_v9 = vld [vmem:[%s4124_s0 + $0xe4] ss:$36 sps:$4 sm:$0xff]   ;;  %v3166_v13 = vld [vmem:[%s3682_s9 + $0x198] sm:$0xff]  }
  0x8f   : > { %2805 = vmatprep.subr.bf16.mxu1 %v3112_v35  ;;  %v3161_v14 = vld [vmem:[%s4124_s0 + $0xd8] ss:$36 sps:$4 sm:$0xff]   ;;  %v3162_v15 = vld [vmem:[%s4124_s0 + $0xe0] ss:$36 sps:$4 sm:$0xff]   ;;  %v3169_v17 = vld [vmem:[%s4124_s0 + $0x12c] ss:$36 sps:$4 sm:$0xff]  }
  0x90   : > { %v3167_v16 = vld [vmem:[%s4124_s0 + $0x124] ss:$36 sps:$4 sm:$0xff]   ;;  %v3177_v24 = vld [vmem:[%s4124_s0 + $0x16c] ss:$36 sps:$4 sm:$0xff]   ;;  %v3179_v25 = vld [vmem:[%s4124_s0 + $0x174] ss:$36 sps:$4 sm:$0xff]  }
  0x91   : > { %2742 = vmatpush3.bf16.msra.mxu0 %v3113_v36  ;;  %v3173_v18 = vld [vmem:[%s3682_s9 + $0x160] sm:$0xff]   ;;  %v3172_v23 = vld [vmem:[%s4124_s0 + $0x128] ss:$36 sps:$4 sm:$0xff]   ;;  %v3182_v31 = vld [vmem:[%s4124_s0 + $0x170] ss:$36 sps:$4 sm:$0xff]  }
  0x92   : > { %2806 = vmatpush3.bf16.msra.mxu1 %v3114_v37  ;;  %2743 = vmatprep.subr.bf16.mxu0 %v3115_v38  ;;  %v3174_v19 = vld [vmem:[%s3682_s9 + $0x1e0] sm:$0xff]   ;;  %v3183_v26 = vld [vmem:[%s3682_s9 + $0x168] sm:$0xff]   ;;  %v3187_v32 = vld [vmem:[%s4124_s0 + $0x1b4] ss:$36 sps:$4 sm:$0xff]  }
  0x93   : > { %2807 = vmatprep.subr.bf16.mxu1 %v3116_v39  ;;  %v3175_v20 = vld [vmem:[%s3682_s9 + $0x120] sm:$0xff]   ;;  %v3184_v27 = vld [vmem:[%s3682_s9 + $0x1e8] sm:$0xff]   ;;  %v3193_v34 = vld [vmem:[%s3682_s9 + $0x170] sm:$0xff]  }
  0x94   : > { %v3176_v21 = vld [vmem:[%s3682_s9 + $0x1a0] sm:$0xff]   ;;  %v3185_v28 = vld [vmem:[%s3682_s9 + $0x128] sm:$0xff]   ;;  %v3194_v35 = vld [vmem:[%s3682_s9 + $0x1f0] sm:$0xff]  }
  0x95   : > { %2744 = vmatpush3.bf16.msra.mxu0 %v3117_v40  ;;  %v3171_v22 = vld [vmem:[%s4124_s0 + $0x120] ss:$36 sps:$4 sm:$0xff]   ;;  %v3186_v29 = vld [vmem:[%s3682_s9 + $0x1a8] sm:$0xff]   ;;  %v3195_v36 = vld [vmem:[%s3682_s9 + $0x130] sm:$0xff]  }
  0x96   : > { %2808 = vmatpush3.bf16.msra.mxu1 %v3118_v41  ;;  %2745 = vmatprep.subr.bf16.mxu0 %v3119_v42  ;;  %v3181_v30 = vld [vmem:[%s4124_s0 + $0x168] ss:$36 sps:$4 sm:$0xff]   ;;  %v3189_v33 = vld [vmem:[%s4124_s0 + $0x1bc] ss:$36 sps:$4 sm:$0xff]   ;;  %v3196_v37 = vld [vmem:[%s3682_s9 + $0x1b0] sm:$0xff]  }
  0x97   : > { %2809 = vmatprep.subr.bf16.mxu1 %v3120_v43  ;;  %v3191_v38 = vld [vmem:[%s4124_s0 + $0x1b0] ss:$36 sps:$4 sm:$0xff]   ;;  %v3192_v39 = vld [vmem:[%s4124_s0 + $0x1b8] ss:$36 sps:$4 sm:$0xff]   ;;  %v3199_v42 = vld [vmem:[%s4124_s0 + $0x204] ss:$36 sps:$4 sm:$0xff]  }
  0x98   : > { %v3197_v40 = vld [vmem:[%s4124_s0 + $0x1fc] ss:$36 sps:$4 sm:$0xff]  }
  0x99   : > { %2746 = vmatpush3.bf16.msra.mxu0 %v3121_v44  ;;  %v3203_v41 = vld [vmem:[%s3682_s9 + $0x178] sm:$0xff]  }
  0x9a   : > { %2810 = vmatpush3.bf16.msra.mxu1 %v3122_v45  ;;  %2747 = vmatprep.subr.bf16.mxu0 %v3123_v46  ;;  %v3204_v43 = vld [vmem:[%s3682_s9 + $0x1f8] sm:$0xff]   ;;  %v3213_v46 = vld [vmem:[%s3682_s9 + $0x200] sm:$0xff]  }
  0x9b   : > { %2811 = vmatprep.subr.bf16.mxu1 %v3124_v47  ;;  %v3205_v44 = vld [vmem:[%s3682_s9 + $0x138] sm:$0xff]  }
  0x9c   : > { %v3206_v45 = vld [vmem:[%s3682_s9 + $0x1b8] sm:$0xff]  }
  0x9d   : > { %2748 = vmatpush3.bf16.msra.mxu0 %v3125_v49  ;;  %v3201_v47 = vld [vmem:[%s4124_s0 + $0x1f8] ss:$36 sps:$4 sm:$0xff]  }
  0x9e   : > { %2812 = vmatpush3.bf16.msra.mxu1 %v3126_v51  ;;  %2861 = vmatprep.subr.bf16.mxu0 %v3133_v53  ;;  %v3209_v49 = vld [vmem:[%s4124_s0 + $0x14] ss:$36 sps:$4 sm:$0xff]   ;;  %v3214_v53 = vld [vmem:[%s4124_s0 + $0x5c] ss:$36 sps:$4 sm:$0xff]  }
  0x9f   : > { %2925 = vmatprep.subr.bf16.mxu1 %v3134_v54  ;;  %v3207_v51 = vld [vmem:[%s4124_s0 + $0x10] ss:$36 sps:$4 sm:$0xff]   ;;  %v3216_v54 = vld [vmem:[%s4124_s0 + $0x64] ss:$36 sps:$4 sm:$0xff]  }
  0xa0   : > { %1897 = vmatmul.mubr.bf16.vlgmr.msra.gmra.mrb[0].mxu0 %v3127_v48  ;;  %v3202_v48 = vld [vmem:[%s4124_s0 + $0x200] ss:$36 sps:$4 sm:$0xff]  }
  0xa1   : > { %1994 = vmatmul.mubr.bf16.vlgmr.msra.gmra.mrb[0].mxu1 %v3130_v50  ;;  %2862 = vmatpush3.bf16.msra.mxu0 %v3135_v55  ;;  %v3212_v50 = vld [vmem:[%s4124_s0 + $0x1c] ss:$36 sps:$4 sm:$0xff]   ;;  %v3220_v55 = vld [vmem:[%s3682_s9 + $0x208] sm:$0xff]  }
  0xa2   : > { %2926 = vmatpush3.bf16.msra.mxu1 %v3136_v56  ;;  %1904 = vmatprep.mubr.bf16.mxu0 %v3137_v52  ;;  %v3210_v52 = vld [vmem:[%s4124_s0 + $0x18] ss:$36 sps:$4 sm:$0xff]   ;;  %v3227_v56 = vld [vmem:[%s3682_s9 + $0x210] sm:$0xff]  }
  0xa3   : > { %2001 = vmatprep.mubr.bf16.mxu1 %v3139_v57  ;;  %2863 = vmatprep.subr.bf16.mxu0 %v3143_v60  ;;  %v3218_v57 = vld [vmem:[%s4124_s0 + $0x58] ss:$36 sps:$4 sm:$0xff]   ;;  %v3223_v60 = vld [vmem:[%s4124_s0 + $0xac] ss:$36 sps:$4 sm:$0xff]  }
  0xa4   : > { %2927 = vmatprep.subr.bf16.mxu1 %v3144_v61  ;;  %v3234_v61 = vld [vmem:[%s3682_s9 + $0x218] sm:$0xff]  }
  0xa5   : > { %2864 = vmatpush3.bf16.msra.mxu0 %v3145_v62  ;;  %v3225_v62 = vld [vmem:[%s4124_s0 + $0xa0] ss:$36 sps:$4 sm:$0xff]  }
  0xa6   : > { %2928 = vmatpush3.bf16.msra.mxu1 %v3146_v63  ;;  %2865 = vmatprep.subr.bf16.mxu0 %v3153_v2  ;;  %v3241_v63 = vld [vmem:[%s3682_s9 + $0x220] sm:$0xff]   ;;  %v3230_v2 = vld [vmem:[%s4124_s0 + $0xf4] ss:$36 sps:$4 sm:$0xff]  }
  0xa7   : > { %2929 = vmatprep.subr.bf16.mxu1 %v3154_v4  ;;  %v3255_v4 = vld [vmem:[%s3682_s9 + $0x230] sm:$0xff]  }
  0xa8   : > { %1905 = vmatmul.mubr.bf16.gmra.mrb[4].mxu0 %v3141_v58  ;;  %v3219_v58 = vld [vmem:[%s4124_s0 + $0x60] ss:$36 sps:$4 sm:$0xff]  }
  0xa9   : > { %2002 = vmatmul.mubr.bf16.gmra.mrb[4].mxu1 %v3142_v59  ;;  %1912 = vmatprep.mubr.bf16.mxu0 %v3147_v0  ;;  %v3221_v59 = vld [vmem:[%s4124_s0 + $0xa4] ss:$36 sps:$4 sm:$0xff]  }
  0xaa   : > { %2009 = vmatprep.mubr.bf16.mxu1 %v3149_v1  ;;  %2866 = vmatpush3.bf16.msra.mxu0 %v3155_v6  ;;  %v3226_v0 = vld [vmem:[%s4124_s0 + $0xa8] ss:$36 sps:$4 sm:$0xff]   ;;  %v3233_v6 = vld [vmem:[%s4124_s0 + $0xf0] ss:$36 sps:$4 sm:$0xff]  }
  0xab   : > { %2930 = vmatpush3.bf16.msra.mxu1 %v3156_v7  ;;  %2867 = vmatprep.subr.bf16.mxu0 %v3163_v10  ;;  %v3228_v1 = vld [vmem:[%s4124_s0 + $0xec] ss:$36 sps:$4 sm:$0xff]   ;;  %v3235_v7 = vld [vmem:[%s4124_s0 + $0x134] ss:$36 sps:$4 sm:$0xff]  }
  0xac   : > { %2931 = vmatprep.subr.bf16.mxu1 %v3164_v11  ;;  %v3239_v10 = vld [vmem:[%s4124_s0 + $0x130] ss:$36 sps:$4 sm:$0xff]   ;;  %v3240_v11 = vld [vmem:[%s4124_s0 + $0x138] ss:$36 sps:$4 sm:$0xff]  }
  0xae   : > { %2868 = vmatpush3.bf16.msra.mxu0 %v3165_v12  ;;  %v3242_v12 = vld [vmem:[%s4124_s0 + $0x17c] ss:$36 sps:$4 sm:$0xff]  }
  0xaf   : > { %2932 = vmatpush3.bf16.msra.mxu1 %v3166_v13  ;;  %2869 = vmatprep.subr.bf16.mxu0 %v3173_v18  ;;  %v3244_v13 = vld [vmem:[%s4124_s0 + $0x184] ss:$36 sps:$4 sm:$0xff]  }
  0xb0   : > { %1913 = vmatmul.mubr.bf16.gmra.mrb[8].mxu0 %v3151_v3  ;;  %2933 = vmatprep.subr.bf16.mxu1 %v3174_v19  ;;  %v3248_v3 = vld [vmem:[%s3682_s9 + $0x228] sm:$0xff]   ;;  %v3253_v18 = vld [vmem:[%s4124_s0 + $0x1c0] ss:$36 sps:$4 sm:$0xff]  }
  0xb1   : > { %2010 = vmatmul.mubr.bf16.gmra.mrb[8].mxu1 %v3152_v5  ;;  %1920 = vmatprep.mubr.bf16.mxu0 %v3157_v8  ;;  %v3232_v5 = vld [vmem:[%s4124_s0 + $0xe8] ss:$36 sps:$4 sm:$0xff]   ;;  %v3237_v8 = vld [vmem:[%s4124_s0 + $0x13c] ss:$36 sps:$4 sm:$0xff]  }
  0xb2   : > { %2017 = vmatprep.mubr.bf16.mxu1 %v3159_v9  ;;  %2870 = vmatpush3.bf16.msra.mxu0 %v3175_v20  ;;  %v3262_v9 = vld [vmem:[%s3682_s9 + $0x238] sm:$0xff]   ;;  %v3254_v19 = vld [vmem:[%s4124_s0 + $0x1c8] ss:$36 sps:$4 sm:$0xff]  }
  0xb3   : > { %2934 = vmatpush3.bf16.msra.mxu1 %v3176_v21  ;;  %2871 = vmatprep.subr.bf16.mxu0 %v3183_v26  ;;  %v3256_v20 = vld [vmem:[%s4124_s0 + $0x20c] ss:$36 sps:$4 sm:$0xff]   ;;  %v3258_v21 = vld [vmem:[%s4124_s0 + $0x214] ss:$36 sps:$4 sm:$0xff]  }
  0xb4   : > { %2935 = vmatprep.subr.bf16.mxu1 %v3184_v27  ;;  %v3265_v26 = vld [vmem:[%s4124_s0 + $0x68] ss:$36 sps:$4 sm:$0xff]  }
  0xb5   : > { %v3266_v27 = vld [vmem:[%s4124_s0 + $0x188] ss:$36 sps:$4 sm:$0xff]  }
  0xb6   : > { %2872 = vmatpush3.bf16.msra.mxu0 %v3185_v28  ;;  %v3267_v28 = vld [vmem:[%s4124_s0 + $0xb0] ss:$36 sps:$4 sm:$0xff]  }
  0xb7   : > { %2936 = vmatpush3.bf16.msra.mxu1 %v3186_v29  ;;  %2873 = vmatprep.subr.bf16.mxu0 %v3193_v34  ;;  %v3268_v29 = vld [vmem:[%s4124_s0 + $0x1d0] ss:$36 sps:$4 sm:$0xff]   ;;  %v3971_v34 = vld [vmem:[%s830_s20] ss:$0 sm:$0xff] }
  0xb8   : > { %1921 = vmatmul.mubr.bf16.gmra.mrb[12].mxu0 %v3161_v14  ;;  %2937 = vmatprep.subr.bf16.mxu1 %v3194_v35  ;;  %v3246_v14 = vld [vmem:[%s4124_s0 + $0x178] ss:$36 sps:$4 sm:$0xff]  }
  0xb9   : > { %2018 = vmatmul.mubr.bf16.gmra.mrb[12].mxu1 %v3162_v15  ;;  %1928 = vmatprep.mubr.bf16.mxu0 %v3167_v16  ;;  %v3247_v15 = vld [vmem:[%s4124_s0 + $0x180] ss:$36 sps:$4 sm:$0xff]  }
  0xba   : > { %2025 = vmatprep.mubr.bf16.mxu1 %v3169_v17  ;;  %2874 = vmatpush3.bf16.msra.mxu0 %v3195_v36  ;;  %v3249_v16 = vld [vmem:[%s4124_s0 + $0x1c4] ss:$36 sps:$4 sm:$0xff]   ;;  %v3251_v17 = vld [vmem:[%s4124_s0 + $0x1cc] ss:$36 sps:$4 sm:$0xff]  }
  0xbb   : > { %2938 = vmatpush3.bf16.msra.mxu1 %v3196_v37  ;;  %2875 = vmatprep.subr.bf16.mxu0 %v3203_v41 }
  0xbc   : > { %2939 = vmatprep.subr.bf16.mxu1 %v3204_v43 }
  0xbe   : > { %2876 = vmatpush3.bf16.msra.mxu0 %v3205_v44 }
  0xbf   : > { %2940 = vmatpush3.bf16.msra.mxu1 %v3206_v45  ;;  %3005 = vmatprep.subr.bf16.mxu0 %v3213_v46 }
  0xc0   : > { %1929 = vmatmul.mubr.bf16.gmra.mrb[16].mxu0 %v3171_v22  ;;  %3037 = vmatprep.subr.bf16.mxu1 %v3213_v46  ;;  %v3260_v22 = vld [vmem:[%s4124_s0 + $0x208] ss:$36 sps:$4 sm:$0xff]  }
  0xc1   : > { %2026 = vmatmul.mubr.bf16.gmra.mrb[16].mxu1 %v3172_v23  ;;  %1936 = vmatprep.mubr.bf16.mxu0 %v3177_v24  ;;  %v3261_v23 = vld [vmem:[%s4124_s0 + $0x210] ss:$36 sps:$4 sm:$0xff]   ;;  %v3263_v24 = vld [vmem:[%s4124_s0 + $0x20] ss:$36 sps:$4 sm:$0xff]  }
  0xc2   : > { %2033 = vmatprep.mubr.bf16.mxu1 %v3179_v25  ;;  %v3264_v25 = vld [vmem:[%s4124_s0 + $0x140] ss:$36 sps:$4 sm:$0xff]  }
  0xc8   : > { %1937 = vmatmul.mubr.bf16.gmra.mrb[20].mxu0 %v3181_v30  ;;  %v3269_v30 = vld [vmem:[%s4124_s0 + $0xf8] ss:$36 sps:$4 sm:$0xff]  }
  0xc9   : > { %2034 = vmatmul.mubr.bf16.gmra.mrb[20].mxu1 %v3182_v31  ;;  %1944 = vmatprep.mubr.bf16.mxu0 %v3187_v32  ;;  %v3270_v31 = vld [vmem:[%s4124_s0 + $0x218] ss:$36 sps:$4 sm:$0xff]  }
  0xca   : > { %2041 = vmatprep.mubr.bf16.mxu1 %v3189_v33 }
  0xd0   : > { %1945 = vmatmul.mubr.bf16.gmra.mrb[24].mxu0 %v3191_v38 }
  0xd1   : > { %2042 = vmatmul.mubr.bf16.gmra.mrb[24].mxu1 %v3192_v39  ;;  %1952 = vmatprep.mubr.bf16.mxu0 %v3197_v40 }
  0xd2   : > { %2049 = vmatprep.mubr.bf16.mxu1 %v3199_v42 }
  0xd8   : > { %1953 = vmatmul.mubr.bf16.gmra.mrb[28].mxu0 %v3201_v47 }
  0xd9   : > { %2050 = vmatmul.mubr.bf16.gmra.mrb[28].mxu1 %v3202_v48  ;;  %2090 = vmatprep.mubr.bf16.mxu0 %v3209_v49 }
  0xda   : > { %2187 = vmatprep.mubr.bf16.mxu1 %v3212_v50 }
  0xe0   : > { %2091 = vmatmul.mubr.bf16.vlgmr.msra.gmra.mrb[32].mxu0 %v3207_v51 }
  0xe1   : > { %2188 = vmatmul.mubr.bf16.vlgmr.msra.gmra.mrb[32].mxu1 %v3210_v52  ;;  %3006 = vmatpush3.bf16.msra.mxu0 %v3213_v46 }
  0xe2   : > { %3045 = vmatpush3.bf16.msra.mxu1 %v3213_v46  ;;  %2098 = vmatprep.mubr.bf16.mxu0 %v3214_v53 }
  0xe3   : > { %2195 = vmatprep.mubr.bf16.mxu1 %v3216_v54  ;;  %3007 = vmatprep.subr.bf16.mxu0 %v3220_v55 }
  0xe4   : > { %3038 = vmatprep.subr.bf16.mxu1 %v3220_v55 }
  0xe5   : > { %3008 = vmatpush3.bf16.msra.mxu0 %v3220_v55 }
  0xe6   : > { %3046 = vmatpush3.bf16.msra.mxu1 %v3220_v55  ;;  %3009 = vmatprep.subr.bf16.mxu0 %v3227_v56 }
  0xe7   : > { %3039 = vmatprep.subr.bf16.mxu1 %v3227_v56 }
  0xe8   : > { %2099 = vmatmul.mubr.bf16.gmra.mrb[36].mxu0 %v3218_v57 }
  0xe9   : > { %2196 = vmatmul.mubr.bf16.gmra.mrb[36].mxu1 %v3219_v58  ;;  %2106 = vmatprep.mubr.bf16.mxu0 %v3221_v59 }
  0xea   : > { %2203 = vmatprep.mubr.bf16.mxu1 %v3223_v60  ;;  %3010 = vmatpush3.bf16.msra.mxu0 %v3227_v56 }
  0xeb   : > { %3047 = vmatpush3.bf16.msra.mxu1 %v3227_v56  ;;  %3011 = vmatprep.subr.bf16.mxu0 %v3234_v61 }
  0xec   : > { %3040 = vmatprep.subr.bf16.mxu1 %v3234_v61 }
  0xee   : > { %3012 = vmatpush3.bf16.msra.mxu0 %v3234_v61 }
  0xef   : > { %3048 = vmatpush3.bf16.msra.mxu1 %v3234_v61  ;;  %3013 = vmatprep.subr.bf16.mxu0 %v3241_v63 }
  0xf0   : > { %2107 = vmatmul.mubr.bf16.gmra.mrb[40].mxu0 %v3225_v62  ;;  %3041 = vmatprep.subr.bf16.mxu1 %v3241_v63 }
  0xf1   : > { %2204 = vmatmul.mubr.bf16.gmra.mrb[40].mxu1 %v3226_v0  ;;  %2114 = vmatprep.mubr.bf16.mxu0 %v3228_v1 }
  0xf2   : > { %2211 = vmatprep.mubr.bf16.mxu1 %v3230_v2  ;;  %3014 = vmatpush3.bf16.msra.mxu0 %v3241_v63 }
  0xf3   : > { %3049 = vmatpush3.bf16.msra.mxu1 %v3241_v63  ;;  %3015 = vmatprep.subr.bf16.mxu0 %v3248_v3 }
  0xf4   : > { %3042 = vmatprep.subr.bf16.mxu1 %v3248_v3 }
  0xf6   : > { %3016 = vmatpush3.bf16.msra.mxu0 %v3248_v3 }
  0xf7   : > { %3050 = vmatpush3.bf16.msra.mxu1 %v3248_v3  ;;  %3017 = vmatprep.subr.bf16.mxu0 %v3255_v4 }
  0xf8   : > { %2115 = vmatmul.mubr.bf16.gmra.mrb[44].mxu0 %v3232_v5  ;;  %3043 = vmatprep.subr.bf16.mxu1 %v3255_v4 }
  0xf9   : > { %2212 = vmatmul.mubr.bf16.gmra.mrb[44].mxu1 %v3233_v6  ;;  %2122 = vmatprep.mubr.bf16.mxu0 %v3235_v7 }
  0xfa   : > { %2219 = vmatprep.mubr.bf16.mxu1 %v3237_v8  ;;  %3018 = vmatpush3.bf16.msra.mxu0 %v3255_v4 }
  0xfb   : > { %3051 = vmatpush3.bf16.msra.mxu1 %v3255_v4  ;;  %3019 = vmatprep.subr.bf16.mxu0 %v3262_v9 }
  0xfc   : > { %3044 = vmatprep.subr.bf16.mxu1 %v3262_v9 }
  0xfe   : > { %3020 = vmatpush3.bf16.msra.mxu0 %v3262_v9 }
  0xff   : > { %3052 = vmatpush3.bf16.msra.mxu1 %v3262_v9 }
 0x100   : > { %2123 = vmatmul.mubr.bf16.gmra.mrb[48].mxu0 %v3239_v10 }
 0x101   : > { %2220 = vmatmul.mubr.bf16.gmra.mrb[48].mxu1 %v3240_v11  ;;  %2130 = vmatprep.mubr.bf16.mxu0 %v3242_v12 }
 0x102   : > { %2227 = vmatprep.mubr.bf16.mxu1 %v3244_v13 }
 0x108   : > { %2131 = vmatmul.mubr.bf16.gmra.mrb[52].mxu0 %v3246_v14 }
 0x109   : > { %2228 = vmatmul.mubr.bf16.gmra.mrb[52].mxu1 %v3247_v15  ;;  %2138 = vmatprep.mubr.bf16.mxu0 %v3249_v16 }
 0x10a   : > { %2235 = vmatprep.mubr.bf16.mxu1 %v3251_v17 }
 0x110   : > { %2139 = vmatmul.mubr.bf16.gmra.mrb[56].mxu0 %v3253_v18 }
 0x111   : > { %2236 = vmatmul.mubr.bf16.gmra.mrb[56].mxu1 %v3254_v19  ;;  %2146 = vmatprep.mubr.bf16.mxu0 %v3256_v20 }
 0x112   : > { %2243 = vmatprep.mubr.bf16.mxu1 %v3258_v21 }
 0x118   : > { %2147 = vmatmul.mubr.bf16.gmra.mrb[60].mxu0 %v3260_v22 }
 0x119   : > { %2244 = vmatmul.mubr.bf16.gmra.mrb[60].mxu1 %v3261_v23  ;;  %3021 = vmatprep.mubr.bf16.mxu0 %v3263_v24 }
 0x11a   : > { %3029 = vmatprep.mubr.bf16.mxu1 %v3264_v25 }
 0x120   : > { %3022 = vmatmul.mubr.bf16.vlgmr.msra.gmra.mrb[64].mxu0 %v3265_v26 }
 0x121   : > { %3030 = vmatmul.mubr.bf16.vlgmr.msra.gmra.mrb[64].mxu1 %v3266_v27  ;;  %3025 = vmatprep.mubr.bf16.mxu0 %v3267_v28 }
 0x122   : > { %3033 = vmatprep.mubr.bf16.mxu1 %v3268_v29 }
 0x128   : > { %3026 = vmatmul.mubr.bf16.gmra.mrb[68].mxu0 %v3269_v30 }
 0x129   : > { %3034 = vmatmul.mubr.bf16.gmra.mrb[68].mxu1 %v3270_v31 }
 0x173   : > { %v2749_v32 = vpop.f32.mrb[0].mxu0 }
 0x174   : > { %v2813_v33 = vpop.f32.mrb[0].mxu1  ;;  %v2750_v35 = vpop.f32.mrb[1].mxu0 }
 0x175   : > { %v2751_v36 = vadd.f32 %v2750_v35, %v2749_v32  ;;  %v2814_v37 = vpop.f32.mrb[1].mxu1  ;;  %v2752_v38 = vpop.f32.mrb[2].mxu0 }
 0x176   : > { %v2815_v39 = vadd.f32 %v2814_v37, %v2813_v33  ;;  %v2816_v40 = vpop.f32.mrb[2].mxu1  ;;  %v2753_v41 = vpop.f32.mrb[3].mxu0 }
 0x177   : > { %v1899_v42 = vadd.f32 %v2751_v36, %v3971_v34  ;;  %v2754_v43 = vadd.f32 %v2753_v41, %v2752_v38  ;;  %v2817_v44 = vpop.f32.mrb[3].mxu1 }
 0x178   : > { %v2818_v45 = vadd.f32 %v2817_v44, %v2816_v40 }
 0x179   : > { %v3974_v46 = vadd.f32 %v2815_v39, %v1899_v42  ;;  %v1902_v47 = vadd.f32 %v2754_v43, %v3971_v34 }
 0x17b   : > { %v3977_v48 = vadd.f32 %v2818_v45, %v1902_v47  ;;  %v2755_v49 = vpop.f32.mrb[4].mxu0 }
 0x17c   : > { %v2819_v50 = vpop.f32.mrb[4].mxu1  ;;  %v2756_v51 = vpop.f32.mrb[5].mxu0 }
 0x17d   : > { %v2757_v52 = vadd.f32 %v2756_v51, %v2755_v49  ;;  %v2820_v53 = vpop.f32.mrb[5].mxu1  ;;  %v2758_v54 = vpop.f32.mrb[6].mxu0 }
 0x17e   : > { %v2821_v55 = vadd.f32 %v2820_v53, %v2819_v50  ;;  %v2822_v56 = vpop.f32.mrb[6].mxu1  ;;  %v2759_v57 = vpop.f32.mrb[7].mxu0 }
 0x17f   : > { %v1907_v58 = vadd.f32 %v2757_v52, %v3971_v34  ;;  %v2760_v59 = vadd.f32 %v2759_v57, %v2758_v54  ;;  %v2823_v60 = vpop.f32.mrb[7].mxu1 }
 0x180   : > { %v2824_v61 = vadd.f32 %v2823_v60, %v2822_v56 }
 0x181   : > { %v3980_v62 = vadd.f32 %v2821_v55, %v1907_v58  ;;  %v1910_v63 = vadd.f32 %v2760_v59, %v3971_v34 }
 0x183   : > { %v3983_v0 = vadd.f32 %v2824_v61, %v1910_v63  ;;  %v2761_v1 = vpop.f32.mrb[8].mxu0 }
 0x184   : > { %v2825_v2 = vpop.f32.mrb[8].mxu1  ;;  %v2762_v3 = vpop.f32.mrb[9].mxu0 }
 0x185   : > { %v2763_v4 = vadd.f32 %v2762_v3, %v2761_v1  ;;  %v2826_v5 = vpop.f32.mrb[9].mxu1  ;;  %v2764_v6 = vpop.f32.mrb[10].mxu0 }
 0x186   : > { %v2827_v7 = vadd.f32 %v2826_v5, %v2825_v2  ;;  %v2828_v8 = vpop.f32.mrb[10].mxu1  ;;  %v2765_v9 = vpop.f32.mrb[11].mxu0 }
 0x187   : > { %v1915_v10 = vadd.f32 %v2763_v4, %v3971_v34  ;;  %v2766_v11 = vadd.f32 %v2765_v9, %v2764_v6  ;;  %v2829_v12 = vpop.f32.mrb[11].mxu1 }
 0x188   : > { %v2830_v13 = vadd.f32 %v2829_v12, %v2828_v8 }
 0x189   : > { %v3986_v14 = vadd.f32 %v2827_v7, %v1915_v10  ;;  %v1918_v15 = vadd.f32 %v2766_v11, %v3971_v34 }
 0x18b   : > { %v3989_v16 = vadd.f32 %v2830_v13, %v1918_v15  ;;  %v2767_v17 = vpop.f32.mrb[12].mxu0 }
 0x18c   : > { %v2831_v18 = vpop.f32.mrb[12].mxu1  ;;  %v2768_v19 = vpop.f32.mrb[13].mxu0 }
 0x18d   : > { %v2769_v20 = vadd.f32 %v2768_v19, %v2767_v17  ;;  %v2832_v21 = vpop.f32.mrb[13].mxu1  ;;  %v2770_v22 = vpop.f32.mrb[14].mxu0 }
 0x18e   : > { %v2833_v23 = vadd.f32 %v2832_v21, %v2831_v18  ;;  %v2834_v24 = vpop.f32.mrb[14].mxu1  ;;  %v2771_v25 = vpop.f32.mrb[15].mxu0 }
 0x18f   : > { %v1923_v26 = vadd.f32 %v2769_v20, %v3971_v34  ;;  %v2772_v27 = vadd.f32 %v2771_v25, %v2770_v22  ;;  %v2835_v28 = vpop.f32.mrb[15].mxu1 }
 0x190   : > { %v2836_v29 = vadd.f32 %v2835_v28, %v2834_v24 }
 0x191   : > { %v3992_v30 = vadd.f32 %v2833_v23, %v1923_v26  ;;  %v1926_v31 = vadd.f32 %v2772_v27, %v3971_v34 }
 0x193   : > { %v3995_v32 = vadd.f32 %v2836_v29, %v1926_v31  ;;  %v2773_v33 = vpop.f32.mrb[16].mxu0 }
 0x194   : > { %v2837_v35 = vpop.f32.mrb[16].mxu1  ;;  %v2774_v36 = vpop.f32.mrb[17].mxu0 }
 0x195   : > { %v2775_v37 = vadd.f32 %v2774_v36, %v2773_v33  ;;  %v2838_v38 = vpop.f32.mrb[17].mxu1  ;;  %v2776_v39 = vpop.f32.mrb[18].mxu0 }
 0x196   : > { %v2839_v40 = vadd.f32 %v2838_v38, %v2837_v35  ;;  %v2840_v41 = vpop.f32.mrb[18].mxu1  ;;  %v2777_v42 = vpop.f32.mrb[19].mxu0 }
 0x197   : > { %v1931_v43 = vadd.f32 %v2775_v37, %v3971_v34  ;;  %v2778_v44 = vadd.f32 %v2777_v42, %v2776_v39  ;;  %v2841_v45 = vpop.f32.mrb[19].mxu1 }
 0x198   : > { %v2842_v47 = vadd.f32 %v2841_v45, %v2840_v41 }
 0x199   : > { %v3998_v49 = vadd.f32 %v2839_v40, %v1931_v43  ;;  %v1934_v50 = vadd.f32 %v2778_v44, %v3971_v34 }
 0x19b   : > { %v4001_v51 = vadd.f32 %v2842_v47, %v1934_v50  ;;  %v2779_v52 = vpop.f32.mrb[20].mxu0 }
 0x19c   : > { %v2843_v53 = vpop.f32.mrb[20].mxu1  ;;  %v2780_v54 = vpop.f32.mrb[21].mxu0 }
 0x19d   : > { %v2781_v55 = vadd.f32 %v2780_v54, %v2779_v52  ;;  %v2844_v56 = vpop.f32.mrb[21].mxu1  ;;  %v2782_v57 = vpop.f32.mrb[22].mxu0 }
 0x19e   : > { %v2845_v58 = vadd.f32 %v2844_v56, %v2843_v53  ;;  %v2846_v59 = vpop.f32.mrb[22].mxu1  ;;  %v2783_v60 = vpop.f32.mrb[23].mxu0 }
 0x19f   : > { %v1939_v61 = vadd.f32 %v2781_v55, %v3971_v34  ;;  %v2784_v63 = vadd.f32 %v2783_v60, %v2782_v57  ;;  %v2847_v1 = vpop.f32.mrb[23].mxu1 }
 0x1a0   : > { %v2848_v2 = vadd.f32 %v2847_v1, %v2846_v59 }
 0x1a1   : > { %v4004_v3 = vadd.f32 %v2845_v58, %v1939_v61  ;;  %v1942_v4 = vadd.f32 %v2784_v63, %v3971_v34 }
 0x1a3   : > { %v4007_v5 = vadd.f32 %v2848_v2, %v1942_v4  ;;  %v2785_v6 = vpop.f32.mrb[24].mxu0 }
 0x1a4   : > { %v2849_v7 = vpop.f32.mrb[24].mxu1  ;;  %v2786_v8 = vpop.f32.mrb[25].mxu0 }
 0x1a5   : > { %v2787_v9 = vadd.f32 %v2786_v8, %v2785_v6  ;;  %v2850_v10 = vpop.f32.mrb[25].mxu1  ;;  %v2788_v11 = vpop.f32.mrb[26].mxu0 }
 0x1a6   : > { %v2851_v12 = vadd.f32 %v2850_v10, %v2849_v7  ;;  %v2852_v13 = vpop.f32.mrb[26].mxu1  ;;  %v2789_v15 = vpop.f32.mrb[27].mxu0 }
 0x1a7   : > { %v1947_v17 = vadd.f32 %v2787_v9, %v3971_v34  ;;  %v2790_v18 = vadd.f32 %v2789_v15, %v2788_v11  ;;  %v2853_v19 = vpop.f32.mrb[27].mxu1 }
 0x1a8   : > { %v2854_v20 = vadd.f32 %v2853_v19, %v2852_v13 }
 0x1a9   : > { %v4010_v21 = vadd.f32 %v2851_v12, %v1947_v17  ;;  %v1950_v22 = vadd.f32 %v2790_v18, %v3971_v34 }
 0x1ab   : > { %v4013_v23 = vadd.f32 %v2854_v20, %v1950_v22  ;;  %v2791_v24 = vpop.f32.mrb[28].mxu0 }
 0x1ac   : > { %v2855_v25 = vpop.f32.mrb[28].mxu1  ;;  %v2792_v26 = vpop.f32.mrb[29].mxu0 }
 0x1ad   : > { %v2793_v27 = vadd.f32 %v2792_v26, %v2791_v24  ;;  %v2856_v28 = vpop.f32.mrb[29].mxu1  ;;  %v2794_v29 = vpop.f32.mrb[30].mxu0 }
 0x1ae   : > { %v2857_v31 = vadd.f32 %v2856_v28, %v2855_v25  ;;  %v2858_v33 = vpop.f32.mrb[30].mxu1  ;;  %v2795_v35 = vpop.f32.mrb[31].mxu0 }
 0x1af   : > { %v1955_v36 = vadd.f32 %v2793_v27, %v3971_v34  ;;  %v2796_v37 = vadd.f32 %v2795_v35, %v2794_v29  ;;  %v2859_v38 = vpop.f32.mrb[31].mxu1 }
 0x1b0   : > { %v2860_v39 = vadd.f32 %v2859_v38, %v2858_v33 }
 0x1b1   : > { %v4016_v40 = vadd.f32 %v2857_v31, %v1955_v36  ;;  %v1958_v41 = vadd.f32 %v2796_v37, %v3971_v34 }
 0x1b3   : > { %v4019_v42 = vadd.f32 %v2860_v39, %v1958_v41  ;;  %v2877_v43 = vpop.f32.mrb[32].mxu0 }
 0x1b4   : > { %v2941_v44 = vpop.f32.mrb[32].mxu1  ;;  %v2878_v45 = vpop.f32.mrb[33].mxu0 }
 0x1b5   : > { %v2879_v47 = vadd.f32 %v2878_v45, %v2877_v43  ;;  %v2942_v50 = vpop.f32.mrb[33].mxu1  ;;  %v2880_v52 = vpop.f32.mrb[34].mxu0 }
 0x1b6   : > { %v2943_v53 = vadd.f32 %v2942_v50, %v2941_v44  ;;  %v2944_v54 = vpop.f32.mrb[34].mxu1  ;;  %v2881_v55 = vpop.f32.mrb[35].mxu0 }
 0x1b7   : > { %v2093_v56 = vadd.f32 %v2879_v47, %v3974_v46  ;;  %v2882_v57 = vadd.f32 %v2881_v55, %v2880_v52  ;;  %v2945_v58 = vpop.f32.mrb[35].mxu1 }
 0x1b8   : > { %v2946_v59 = vadd.f32 %v2945_v58, %v2944_v54 }
 0x1b9   : > { %v2096_v60 = vadd.f32 %v2882_v57, %v3977_v48  ;;  %v4023_v61 = vadd.f32 %v2943_v53, %v2093_v56 }
 0x1bb   : > { %v2883_v34 = vpop.f32.mrb[36].mxu0  ;;  %v4025_v63 = vadd.f32 %v2946_v59, %v2096_v60 }
 0x1bc   : > { %v2947_v1 = vpop.f32.mrb[36].mxu1  ;;  %v2884_v2 = vpop.f32.mrb[37].mxu0 }
 0x1bd   : > { %v2885_v4 = vadd.f32 %v2884_v2, %v2883_v34  ;;  %v2948_v6 = vpop.f32.mrb[37].mxu1  ;;  %v2886_v7 = vpop.f32.mrb[38].mxu0 }
 0x1be   : > { %v2949_v8 = vadd.f32 %v2948_v6, %v2947_v1  ;;  %v2950_v9 = vpop.f32.mrb[38].mxu1  ;;  %v2887_v10 = vpop.f32.mrb[39].mxu0 }
 0x1bf   : > { %v2101_v46 = vadd.f32 %v2885_v4, %v3980_v62  ;;  %v2888_v11 = vadd.f32 %v2887_v10, %v2886_v7  ;;  %v2951_v12 = vpop.f32.mrb[39].mxu1 }
 0x1c0   : > { %v2952_v13 = vadd.f32 %v2951_v12, %v2950_v9 }
 0x1c1   : > { %v2104_v48 = vadd.f32 %v2888_v11, %v3983_v0  ;;  %v4029_v15 = vadd.f32 %v2949_v8, %v2101_v46 }
 0x1c3   : > { %v2889_v17 = vpop.f32.mrb[40].mxu0  ;;  %v4031_v18 = vadd.f32 %v2952_v13, %v2104_v48 }
 0x1c4   : > { %v2953_v19 = vpop.f32.mrb[40].mxu1  ;;  %v2890_v20 = vpop.f32.mrb[41].mxu0 }
 0x1c5   : > { %v2891_v22 = vadd.f32 %v2890_v20, %v2889_v17  ;;  %v2954_v24 = vpop.f32.mrb[41].mxu1  ;;  %v2892_v25 = vpop.f32.mrb[42].mxu0 }
 0x1c6   : > { %v2955_v26 = vadd.f32 %v2954_v24, %v2953_v19  ;;  %v2956_v27 = vpop.f32.mrb[42].mxu1  ;;  %v2893_v28 = vpop.f32.mrb[43].mxu0 }
 0x1c7   : > { %v2109_v62 = vadd.f32 %v2891_v22, %v3986_v14  ;;  %v2894_v29 = vadd.f32 %v2893_v28, %v2892_v25  ;;  %v2957_v31 = vpop.f32.mrb[43].mxu1 }
 0x1c8   : > { %v2958_v33 = vadd.f32 %v2957_v31, %v2956_v27 }
 0x1c9   : > { %v2112_v0 = vadd.f32 %v2894_v29, %v3989_v16  ;;  %v4035_v35 = vadd.f32 %v2955_v26, %v2109_v62 }
 0x1cb   : > { %v2895_v36 = vpop.f32.mrb[44].mxu0  ;;  %v4037_v37 = vadd.f32 %v2958_v33, %v2112_v0 }
 0x1cc   : > { %v2959_v38 = vpop.f32.mrb[44].mxu1  ;;  %v2896_v39 = vpop.f32.mrb[45].mxu0 }
 0x1cd   : > { %v2897_v41 = vadd.f32 %v2896_v39, %v2895_v36  ;;  %v2960_v43 = vpop.f32.mrb[45].mxu1  ;;  %v2898_v44 = vpop.f32.mrb[46].mxu0 }
 0x1ce   : > { %v2961_v45 = vadd.f32 %v2960_v43, %v2959_v38  ;;  %v2962_v47 = vpop.f32.mrb[46].mxu1  ;;  %v2899_v50 = vpop.f32.mrb[47].mxu0 }
 0x1cf   : > { %v2117_v14 = vadd.f32 %v2897_v41, %v3992_v30  ;;  %v2900_v52 = vadd.f32 %v2899_v50, %v2898_v44  ;;  %v2963_v53 = vpop.f32.mrb[47].mxu1 }
 0x1d0   : > { %v2964_v54 = vadd.f32 %v2963_v53, %v2962_v47 }
 0x1d1   : > { %v2120_v16 = vadd.f32 %v2900_v52, %v3995_v32  ;;  %v4041_v55 = vadd.f32 %v2961_v45, %v2117_v14 }
 0x1d3   : > { %v2901_v56 = vpop.f32.mrb[48].mxu0  ;;  %v4043_v57 = vadd.f32 %v2964_v54, %v2120_v16 }
 0x1d4   : > { %v2965_v58 = vpop.f32.mrb[48].mxu1  ;;  %v2902_v59 = vpop.f32.mrb[49].mxu0 }
 0x1d5   : > { %v2903_v60 = vadd.f32 %v2902_v59, %v2901_v56  ;;  %v2966_v34 = vpop.f32.mrb[49].mxu1  ;;  %v2904_v1 = vpop.f32.mrb[50].mxu0 }
 0x1d6   : > { %v2967_v2 = vadd.f32 %v2966_v34, %v2965_v58  ;;  %v2968_v4 = vpop.f32.mrb[50].mxu1  ;;  %v2905_v6 = vpop.f32.mrb[51].mxu0 }
 0x1d7   : > { %v2125_v30 = vadd.f32 %v2903_v60, %v3998_v49  ;;  %v2906_v7 = vadd.f32 %v2905_v6, %v2904_v1  ;;  %v2969_v8 = vpop.f32.mrb[51].mxu1 }
 0x1d8   : > { %v2970_v9 = vadd.f32 %v2969_v8, %v2968_v4 }
 0x1d9   : > { %v2128_v32 = vadd.f32 %v2906_v7, %v4001_v51  ;;  %v2222_v10 = vadd.f32 %v2967_v2, %v2125_v30 }
 0x1db   : > { %v2907_v46 = vpop.f32.mrb[52].mxu0  ;;  %v4047_v11 = vadd.f32 %v2970_v9, %v2128_v32 }
 0x1dc   : > { %v2971_v12 = vpop.f32.mrb[52].mxu1  ;;  %v2908_v13 = vpop.f32.mrb[53].mxu0 }
 0x1dd   : > { %v2909_v48 = vadd.f32 %v2908_v13, %v2907_v46  ;;  %v2972_v17 = vpop.f32.mrb[53].mxu1  ;;  %v2910_v19 = vpop.f32.mrb[54].mxu0 }
 0x1de   : > { %v2973_v20 = vadd.f32 %v2972_v17, %v2971_v12  ;;  %v2974_v22 = vpop.f32.mrb[54].mxu1  ;;  %v2911_v24 = vpop.f32.mrb[55].mxu0 }
 0x1df   : > { %v2133_v25 = vadd.f32 %v2909_v48, %v4004_v3  ;;  %v2912_v49 = vadd.f32 %v2911_v24, %v2910_v19  ;;  %v2975_v26 = vpop.f32.mrb[55].mxu1 }
 0x1e0   : > { %v2976_v27 = vadd.f32 %v2975_v26, %v2974_v22 }
 0x1e1   : > { %v2136_v28 = vadd.f32 %v2912_v49, %v4007_v5  ;;  %v2230_v51 = vadd.f32 %v2973_v20, %v2133_v25 }
 0x1e3   : > { %v2913_v62 = vpop.f32.mrb[56].mxu0  ;;  %v2233_v29 = vadd.f32 %v2976_v27, %v2136_v28 }
 0x1e4   : > { %v2977_v31 = vpop.f32.mrb[56].mxu1  ;;  %v2914_v33 = vpop.f32.mrb[57].mxu0 }
 0x1e5   : > { %v2915_v0 = vadd.f32 %v2914_v33, %v2913_v62  ;;  %v2978_v36 = vpop.f32.mrb[57].mxu1  ;;  %v2916_v38 = vpop.f32.mrb[58].mxu0 }
 0x1e6   : > { %v2979_v39 = vadd.f32 %v2978_v36, %v2977_v31  ;;  %v2980_v41 = vpop.f32.mrb[58].mxu1  ;;  %v2917_v43 = vpop.f32.mrb[59].mxu0 }
 0x1e7   : > { %v2141_v44 = vadd.f32 %v2915_v0, %v4010_v21  ;;  %v2918_v45 = vadd.f32 %v2917_v43, %v2916_v38  ;;  %v2981_v3 = vpop.f32.mrb[59].mxu1 }
 0x1e8   : > { %v2982_v47 = vadd.f32 %v2981_v3, %v2980_v41 }
 0x1e9   : > { %v2144_v50 = vadd.f32 %v2918_v45, %v4013_v23  ;;  %v2238_v14 = vadd.f32 %v2979_v39, %v2141_v44 }
 0x1eb   : > { %v2919_v5 = vpop.f32.mrb[60].mxu0  ;;  %v4053_v52 = vadd.f32 %v2982_v47, %v2144_v50 }
 0x1ec   : > { %v2983_v53 = vpop.f32.mrb[60].mxu1  ;;  %v2920_v54 = vpop.f32.mrb[61].mxu0 }
 0x1ed   : > { %v2921_v16 = vadd.f32 %v2920_v54, %v2919_v5  ;;  %v2984_v56 = vpop.f32.mrb[61].mxu1  ;;  %v2922_v58 = vpop.f32.mrb[62].mxu0 }
 0x1ee   : > { %v2985_v59 = vadd.f32 %v2984_v56, %v2983_v53  ;;  %v2986_v60 = vpop.f32.mrb[62].mxu1  ;;  %v2923_v34 = vpop.f32.mrb[63].mxu0 }
 0x1ef   : > { %v2149_v21 = vadd.f32 %v2921_v16, %v4016_v40  ;;  %v2924_v1 = vadd.f32 %v2923_v34, %v2922_v58  ;;  %v2987_v2 = vpop.f32.mrb[63].mxu1 }
 0x1f0   : > { %v2988_v4 = vadd.f32 %v2987_v2, %v2986_v60 }
 0x1f1   : > { %v2152_v23 = vadd.f32 %v2924_v1, %v4019_v42  ;;  %v2246_v6 = vadd.f32 %v2985_v59, %v2149_v21 }
 0x1f3   : > { %v3023_v30 = vpop.f32.mrb[64].mxu0  ;;  %v2249_v7 = vadd.f32 %v2988_v4, %v2152_v23 }
 0x1f4   : > { %v2295_v8 = vadd.f32 %v3023_v30, %v4029_v15  ;;  %v3031_v9 = vpop.f32.mrb[64].mxu1  ;;  %v2286_v32 = vpop.f32.mrb[65].mxu0 }
 0x1f5   : > { %v2327_v46 = vadd.f32 %v3031_v9, %v2230_v51  ;;  %v2287_v12 = vadd.f32 %v2286_v32, %v4023_v61  ;;  %v2318_v13 = vpop.f32.mrb[65].mxu1  ;;  %v3024_v48 = vpop.f32.mrb[66].mxu0 }
 0x1f6   : > { %v2351_v40 = vmax.f32 %v2295_v8, 0.0  ;;  %v2319_v17 = vadd.f32 %v2318_v13, %v2222_v10  ;;  %v2298_v19 = vadd.f32 %v3024_v48, %v4031_v18  ;;  %v3032_v20 = vpop.f32.mrb[66].mxu1  ;;  %v2289_v42 = vpop.f32.mrb[67].mxu0 }
 0x1f7   : > { %v2359_v22 = vmax.f32 %v2327_v46, 0.0  ;;  %v2349_v24 = vmax.f32 %v2287_v12, 0.0  ;;  %v2330_v25 = vadd.f32 %v3032_v20, %v2233_v29  ;;  %v2290_v49 = vadd.f32 %v2289_v42, %v4025_v63  ;;  %v2321_v26 = vpop.f32.mrb[67].mxu1 }
 0x1f8   : > { %2367 = vst [vmem:[%s4063_s12 + $0x10] sm:$0xff] %v2351_v40  ;;  %v2357_v61 = vmax.f32 %v2319_v17, 0.0  ;;  %v2352_v15 = vmax.f32 %v2298_v19, 0.0  ;;  %v2322_v18 = vadd.f32 %v2321_v26, %v4047_v11 }
 0x1f9   : > { %2375 = vst [vmem:[%s4063_s12 + $0x50] sm:$0xff] %v2359_v22  ;;  %2365 = vst [vmem:[%s4063_s12] sm:$0xff] %v2349_v24  ;;  %v2360_v10 = vmax.f32 %v2330_v25, 0.0  ;;  %v2350_v63 = vmax.f32 %v2290_v49, 0.0 }
 0x1fa   : > { %2373 = vst [vmem:[%s4063_s12 + $0x40] sm:$0xff] %v2357_v61  ;;  %2368 = vst [vmem:[%s4063_s12 + $0x18] sm:$0xff] %v2352_v15  ;;  %v2358_v27 = vmax.f32 %v2322_v18, 0.0 }
 0x1fb   : > { %2376 = vst [vmem:[%s4063_s12 + $0x58] sm:$0xff] %v2360_v10  ;;  %2366 = vst [vmem:[%s4063_s12 + $0x8] sm:$0xff] %v2350_v63  ;;  %v3027_v28 = vpop.f32.mrb[68].mxu0 }
 0x1fc   : > { %2374 = vst [vmem:[%s4063_s12 + $0x48] sm:$0xff] %v2358_v27  ;;  %v2311_v51 = vadd.f32 %v3027_v28, %v4041_v55  ;;  %v3035_v62 = vpop.f32.mrb[68].mxu1  ;;  %v2302_v29 = vpop.f32.mrb[69].mxu0 }
 0x1fd   : > { %v2343_v31 = vadd.f32 %v3035_v62, %v2246_v6  ;;  %v2303_v33 = vadd.f32 %v2302_v29, %v4035_v35  ;;  %v2334_v11 = vpop.f32.mrb[69].mxu1  ;;  %v3028_v0 = vpop.f32.mrb[70].mxu0 }
 0x1fe   : > { %v2355_v36 = vmax.f32 %v2311_v51, 0.0  ;;  %v2335_v38 = vadd.f32 %v2334_v11, %v2238_v14  ;;  %v2314_v39 = vadd.f32 %v3028_v0, %v4043_v57  ;;  %v3036_v41 = vpop.f32.mrb[70].mxu1  ;;  %v2305_v43 = vpop.f32.mrb[71].mxu0  ;;  %2387 = sbr.rel (!%p3366_p6) target bundleno = 525 (0x20d), region = 77 }
 0x1ff   : > { %v2363_v44 = vmax.f32 %v2343_v31, 0.0  ;;  %v2353_v55 = vmax.f32 %v2303_v33, 0.0  ;;  %v2346_v45 = vadd.f32 %v3036_v41, %v2249_v7  ;;  %v2306_v35 = vadd.f32 %v2305_v43, %v4037_v37  ;;  %v2337_v3 = vpop.f32.mrb[71].mxu1  ;;  %v2454_v54 = vld [vmem:[%s4063_s12 + $0x10] sm:$0xff] (%p3366_p6) }
 0x200   : > { %2371 = vst [vmem:[%s4063_s12 + $0x30] sm:$0xff] %v2355_v36  ;;  %v2361_v47 = vmax.f32 %v2335_v38, 0.0  ;;  %v2356_v50 = vmax.f32 %v2314_v39, 0.0  ;;  %v2338_v14 = vadd.f32 %v2337_v3, %v4053_v52  ;;  %v2450_v37 = vld [vmem:[%s4063_s12] sm:$0xff] (%p3366_p6)  ;;  %2455 = vst [vmem:[%s2392_s26 + $0x30] sm:$0xff] (%p3366_p6), %v2454_v54  ;;  %v2470_v1 = vld [vmem:[%s4063_s12 + $0x50] sm:$0xff] (%p3366_p6) }
 0x201   : > { %2379 = vst [vmem:[%s4063_s12 + $0x70] sm:$0xff] %v2363_v44  ;;  %2369 = vst [vmem:[%s4063_s12 + $0x20] sm:$0xff] %v2353_v55  ;;  %v2364_v57 = vmax.f32 %v2346_v45, 0.0  ;;  %v2354_v5 = vmax.f32 %v2306_v35, 0.0  ;;  %v2456_v16 = vld [vmem:[%s4063_s12 + $0x18] sm:$0xff] (%p3366_p6)  ;;  %v2466_v34 = vld [vmem:[%s4063_s12 + $0x40] sm:$0xff] (%p3366_p6) }
 0x202   : > { %2377 = vst [vmem:[%s4063_s12 + $0x60] sm:$0xff] %v2361_v47  ;;  %2372 = vst [vmem:[%s4063_s12 + $0x38] sm:$0xff] %v2356_v50  ;;  %v2362_v53 = vmax.f32 %v2338_v14, 0.0  ;;  %v2452_v52 = vld [vmem:[%s4063_s12 + $0x8] sm:$0xff] (%p3366_p6)  ;;  %v2472_v2 = vld [vmem:[%s4063_s12 + $0x58] sm:$0xff] (%p3366_p6) }
 0x203   : > { %2380 = vst [vmem:[%s4063_s12 + $0x78] sm:$0xff] %v2364_v57  ;;  %2370 = vst [vmem:[%s4063_s12 + $0x28] sm:$0xff] %v2354_v5  ;;  %v2468_v21 = vld [vmem:[%s4063_s12 + $0x48] sm:$0xff] (%p3366_p6) }
 0x204   : > { %2378 = vst [vmem:[%s4063_s12 + $0x68] sm:$0xff] %v2362_v53  ;;  %2451 = vst [vmem:[%s2392_s26] sm:$0xff] (%p3366_p6), %v2450_v37 }
 0x205   : > { %2453 = vst [vmem:[%s2392_s26 + $0x18] sm:$0xff] %v2452_v52  ;;  %2457 = vst [vmem:[%s2392_s26 + $0x48] sm:$0xff] %v2456_v16 }
 0x206   : > { %2467 = vst [vmem:[%s2392_s26 + $0xc0] sm:$0xff] %v2466_v34  ;;  %2469 = vst [vmem:[%s2392_s26 + $0xd8] sm:$0xff] %v2468_v21 }
 0x207   : > { %v2462_v59 = vld [vmem:[%s4063_s12 + $0x30] sm:$0xff]  ;;  %2471 = vst [vmem:[%s2392_s26 + $0xf0] sm:$0xff] %v2470_v1  ;;  %2473 = vst [vmem:[%s2392_s26 + $0x108] sm:$0xff] %v2472_v2 }
 0x208   : > { %v2458_v56 = vld [vmem:[%s4063_s12 + $0x20] sm:$0xff]  ;;  %2463 = vst [vmem:[%s2392_s26 + $0x90] sm:$0xff] %v2462_v59  ;;  %v2478_v6 = vld [vmem:[%s4063_s12 + $0x70] sm:$0xff] }
 0x209   : > { %2459 = vst [vmem:[%s2392_s26 + $0x60] sm:$0xff] %v2458_v56  ;;  %v2464_v60 = vld [vmem:[%s4063_s12 + $0x38] sm:$0xff]  ;;  %v2474_v4 = vld [vmem:[%s4063_s12 + $0x60] sm:$0xff]  ;;  %2479 = vst [vmem:[%s2392_s26 + $0x150] sm:$0xff] %v2478_v6 }
 0x20a   : > { %v2460_v58 = vld [vmem:[%s4063_s12 + $0x28] sm:$0xff]  ;;  %2465 = vst [vmem:[%s2392_s26 + $0xa8] sm:$0xff] %v2464_v60  ;;  %2475 = vst [vmem:[%s2392_s26 + $0x120] sm:$0xff] %v2474_v4  ;;  %v2480_v30 = vld [vmem:[%s4063_s12 + $0x78] sm:$0xff] }
 0x20b   : > { %2461 = vst [vmem:[%s2392_s26 + $0x78] sm:$0xff] %v2460_v58  ;;  %v2476_v23 = vld [vmem:[%s4063_s12 + $0x68] sm:$0xff]  ;;  %2481 = vst [vmem:[%s2392_s26 + $0x168] sm:$0xff] %v2480_v30 }
 0x20c   : > { %2477 = vst [vmem:[%s2392_s26 + $0x138] sm:$0xff] %v2476_v23 }
 0x20d PF: > { %s13_s16 = sadd.s32 1, %s3309_s16   ;;  %s4129_s12 = smov %s3297_s13 }
 0x20e   : > { %p10_p12 = scmp.ge.s32.totalorder %s13_s16, 5   ;;  %s4130_s13 = smov %s3371_s22 }
 0x20f   : > { %s4131_s14 = smov %s3305_s15  ;;  %s4132_s15 = smov %s4134_s17 }
 0x210   :  { %12 = sbr.rel (!%p10_p12) target bundleno = 3 (0x3), region = 152 }

// kernel: inception_e_forward.13
= control target key start
LH: loop header
LB: loop body
LE: loop exit
PB: predicated region body
PF: predicated region fallthrough
CT: control target
= control target key end

     0   :  { %s988_s12 = smov 0   ;;  %s990_s13 = smov 0   ;;  %s1155_s0 = inlined_call_operand.vmem [shape: bf16[128,128], index: 0, kind: input, shape index: {}]   ;;  %s1156_s1 = inlined_call_operand.vmem [shape: bf16[128,256], index: 1, kind: input, shape index: {}]   ;;  %s1157_s2 = inlined_call_operand.vmem [shape: f32[1,256], index: 2, kind: input, shape index: {}]   ;;  %s1158_s3 = inlined_call_operand.vmem [shape: f32[128,256], index: 3, kind: output, shape index: {}]  }
   0x1   :  { %s992_s14 = smov 0   ;;  %s994_s15 = smov 0  }
   0x2   :  { %s996_s16 = smov 0  }
   0x3 LB: > { %s22_s17 = sadd.s32 1, %s962_s15  ;;  %s777_s18 = sadd.s32 4294967295, %s966_s16   ;;  %s966_s16 = sphi %s996_s16, %s13_s16   ;;  %s962_s15 = sphi %s994_s15, %s1163_s15   ;;  %s958_s14 = sphi %s992_s14, %s1162_s14   ;;  %s954_s13 = sphi %s990_s13, %s1161_s13   ;;  %s950_s12 = sphi %s988_s12, %s1160_s12  }
   0x4   : > { %p23_p0 = scmp.ge.s32.totalorder %s22_s17, 2  ;;  %p65_p1 = scmp.ne.s32.totalorder %s954_s13, %s950_s12 }
   0x5   : > { %p66_p2 = scmp.eq.s32.totalorder %s966_s16, 0  ;;  %p123_p4 = scmp.eq.s32.totalorder %s777_s18, 1 }
   0x6   : > { %s1165_s17 = smov (%p23_p0, %s22_s17), 0  ;;  %s58_s20 = sadd.s32 1, %s954_s13 }
   0x7   : > { %p67_p3 = por %p66_p2, %p65_p1  ;;  %s55_s19 = ssub.s32 %s962_s15, %s1165_s17 }
   0x8   : > { %p56_p5 = scmp.eq.s32.totalorder %s55_s19, 0  ;;  %p1023_p6 = por %p123_p4, %p65_p1 }
   0x9   : > { %p781_p7 = scmp.ge.s32.totalorder %s966_s16, 2 }
   0xa   : > { %s1028_s22 = scalar_select %p56_p5, %s954_s13, %s58_s20  }
   0xb   : > { %154 = sbr.rel (%p781_p7) target bundleno = 32 (0x20), region = 20 }
  0x12   : > { %157 = sbr.rel (!%p67_p3) target bundleno = 32 (0x20), region = 24  ;;  %s159_s23 = sand.u32 (%p67_p3), 1, %s954_s13  }
  0x13   : > { %s783_s24 = sshll.u32 (%p67_p3), %s962_s15, 2  ;;  %s782_s25 = sshll.u32 (%p67_p3), %s159_s23, 6 }
  0x14   : > { %s1036_s28 = scalar_lea.vmem (%p67_p3), %s1156_s1, %s783_s24  ;;  %s161_s29 = scalar_lea.vmem (%p67_p3), [#allocation2], %s782_s25 }
  0x15   : > { %v179_v0 = vld [vmem:[%s1036_s28] sm:$0xf] (%p67_p3)  ;;  %v181_v1 = vld [vmem:[%s1036_s28 + $0x8] sm:$0xf] (%p67_p3)  ;;  %v183_v2 = vld [vmem:[%s1036_s28 + $0x10] sm:$0xf] (%p67_p3) }
  0x16   : > { %180 = vst [vmem:[%s161_s29] sm:$0xf] (%p67_p3), %v179_v0  ;;  %182 = vst [vmem:[%s161_s29 + $0x4] sm:$0xf] (%p67_p3), %v181_v1  ;;  %v185_v3 = vld [vmem:[%s1036_s28 + $0x18] sm:$0xf] (%p67_p3) }
  0x17   : > { %v187_v4 = vld [vmem:[%s1036_s28 + $0x20] sm:$0xf] (%p67_p3)  ;;  %184 = vst [vmem:[%s161_s29 + $0x8] sm:$0xf] (%p67_p3), %v183_v2  ;;  %186 = vst [vmem:[%s161_s29 + $0xc] sm:$0xf] (%p67_p3), %v185_v3 }
  0x18   : > { %188 = vst [vmem:[%s161_s29 + $0x10] sm:$0xf] (%p67_p3), %v187_v4  ;;  %v189_v5 = vld [vmem:[%s1036_s28 + $0x28] sm:$0xf] (%p67_p3)  ;;  %v191_v6 = vld [vmem:[%s1036_s28 + $0x30] sm:$0xf] (%p67_p3) }
  0x19   : > { %v193_v7 = vld [vmem:[%s1036_s28 + $0x38] sm:$0xf]  ;;  %190 = vst [vmem:[%s161_s29 + $0x14] sm:$0xf] %v189_v5  ;;  %192 = vst [vmem:[%s161_s29 + $0x18] sm:$0xf] %v191_v6 }
  0x1a   : > { %194 = vst [vmem:[%s161_s29 + $0x1c] sm:$0xf] %v193_v7  ;;  %v195_v8 = vld [vmem:[%s1036_s28 + $0x40] sm:$0xf]  ;;  %v197_v9 = vld [vmem:[%s1036_s28 + $0x48] sm:$0xf] }
  0x1b   : > { %v199_v10 = vld [vmem:[%s1036_s28 + $0x50] sm:$0xf]  ;;  %196 = vst [vmem:[%s161_s29 + $0x20] sm:$0xf] %v195_v8  ;;  %198 = vst [vmem:[%s161_s29 + $0x24] sm:$0xf] %v197_v9 }
  0x1c   : > { %200 = vst [vmem:[%s161_s29 + $0x28] sm:$0xf] %v199_v10  ;;  %v201_v11 = vld [vmem:[%s1036_s28 + $0x58] sm:$0xf]  ;;  %v203_v12 = vld [vmem:[%s1036_s28 + $0x60] sm:$0xf] }
  0x1d   : > { %v205_v13 = vld [vmem:[%s1036_s28 + $0x68] sm:$0xf]  ;;  %202 = vst [vmem:[%s161_s29 + $0x2c] sm:$0xf] %v201_v11  ;;  %204 = vst [vmem:[%s161_s29 + $0x30] sm:$0xf] %v203_v12 }
  0x1e   : > { %206 = vst [vmem:[%s161_s29 + $0x34] sm:$0xf] %v205_v13  ;;  %v207_v14 = vld [vmem:[%s1036_s28 + $0x70] sm:$0xf]  ;;  %v209_v15 = vld [vmem:[%s1036_s28 + $0x78] sm:$0xf] }
  0x1f   : > { %208 = vst [vmem:[%s161_s29 + $0x38] sm:$0xf] %v207_v14  ;;  %210 = vst [vmem:[%s161_s29 + $0x3c] sm:$0xf] %v209_v15 }
  0x20 PF: > { %p784_p8 = scmp.ge.s32.totalorder %s966_s16, 1  ;;  %p270_p9 = scmp.lt.s32.totalorder %s966_s16, 3 }
  0x22   : > { %p271_p10 = pnand %p784_p8, %p270_p9 }
  0x23   : > { %s277_s30 = sand.u32 (!%p271_p10), 1, %s950_s12   ;;  %v920_v16 = vld [vmem:[%s1155_s0] sm:$0xff] (!%p271_p10)   ;;  %v922_v26 = vld [vmem:[%s1155_s0 + $0x8] sm:$0xff] (!%p271_p10)   ;;  %v924_v28 = vld [vmem:[%s1155_s0 + $0x10] sm:$0xff] (!%p271_p10)   ;;  %p313_p11 = scmp.lt.s32.totalorder (!%p271_p10), %s958_s14, 1 }
  0x24   : > { %274 = sbr.rel (%p271_p10) target bundleno = 308 (0x134), region = 69  ;;  %s785_s6 = sshll.u32 (!%p271_p10), %s277_s30, 6  ;;  %v921_v17 = vld [vmem:[%s1155_s0 + $0x20] sm:$0xff] (!%p271_p10)   ;;  %840 = vmatprep.mubr.bf16.mxu0 (!%p271_p10), %v920_v16  ;;  %v923_v27 = vld [vmem:[%s1155_s0 + $0x28] sm:$0xff] (!%p271_p10)   ;;  %v925_v29 = vld [vmem:[%s1155_s0 + $0x30] sm:$0xff] (!%p271_p10)  }
  0x25   : > { %s1065_s9 = scalar_lea.vmem (!%p271_p10), [#allocation2], %s785_s6  ;;  %848 = vmatprep.mubr.bf16.mxu1 (!%p271_p10), %v921_v17  ;;  %v926_v30 = vld [vmem:[%s1155_s0 + $0x18] sm:$0xff] (!%p271_p10)   ;;  %s786_s8 = sshll.u32 (!%p271_p10), %s277_s30, 7 }
  0x26   : > { %v912_v18 = vld [vmem:[%s1065_s9] sm:$0xff] (!%p271_p10)   ;;  %v913_v19 = vld [vmem:[%s1065_s9 + $0x8] sm:$0xff] (!%p271_p10)   ;;  %v914_v20 = vld [vmem:[%s1065_s9 + $0x10] sm:$0xff] (!%p271_p10)   ;;  %s1100_s12 = scalar_lea.vmem (!%p271_p10), [#allocation3], %s786_s8 }
  0x27   : > { %824 = vmatprep.subr.bf16.mxu0 (!%p271_p10), %v912_v18  ;;  %856 = vmatprep.subr.bf16.mxu1 (!%p271_p10), %v912_v18  ;;  %v915_v21 = vld [vmem:[%s1065_s9 + $0x18] sm:$0xff] (!%p271_p10)   ;;  %v916_v22 = vld [vmem:[%s1065_s9 + $0x20] sm:$0xff] (!%p271_p10)   ;;  %v917_v23 = vld [vmem:[%s1065_s9 + $0x28] sm:$0xff] (!%p271_p10)  }
  0x28   : > { %825 = vmatpush3.bf16.msra.mxu0 (!%p271_p10), %v912_v18  ;;  %864 = vmatpush3.bf16.msra.mxu1 (!%p271_p10), %v912_v18  ;;  %v918_v24 = vld [vmem:[%s1065_s9 + $0x30] sm:$0xff] (!%p271_p10)   ;;  %v919_v25 = vld [vmem:[%s1065_s9 + $0x38] sm:$0xff] (!%p271_p10)  }
  0x29   : > { %826 = vmatprep.subr.bf16.mxu0 (!%p271_p10), %v913_v19  ;;  %857 = vmatprep.subr.bf16.mxu1 (!%p271_p10), %v913_v19  ;;  %v927_v31 = vld [vmem:[%s1155_s0 + $0x38] sm:$0xff] (!%p271_p10)  }
  0x2b   : > { %s314_s4 = scalar_select %p313_p11, %s958_s14, 1 }
  0x2c   : > { %827 = vmatpush3.bf16.msra.mxu0 %v913_v19  ;;  %865 = vmatpush3.bf16.msra.mxu1 %v913_v19  ;;  %s805_s30 = sshll.u32 (%p1023_p6), %s958_s14, 3 }
  0x2d   : > { %828 = vmatprep.subr.bf16.mxu0 %v914_v20  ;;  %858 = vmatprep.subr.bf16.mxu1 %v914_v20  ;;  %s315_s7 = scalar_lea.vmem %s1157_s2, %s314_s4  ;;  %s593_s11 = scalar_lea.vmem (%p1023_p6), %s1158_s3, %s805_s30 }
  0x2e   : > { %v787_v32 = vld [vmem:[%s315_s7] ss:$0 sm:$0xff] }
  0x30   : > { %829 = vmatpush3.bf16.msra.mxu0 %v914_v20  ;;  %866 = vmatpush3.bf16.msra.mxu1 %v914_v20 }
  0x31   : > { %830 = vmatprep.subr.bf16.mxu0 %v915_v21  ;;  %859 = vmatprep.subr.bf16.mxu1 %v915_v21 }
  0x34   : > { %831 = vmatpush3.bf16.msra.mxu0 %v915_v21  ;;  %867 = vmatpush3.bf16.msra.mxu1 %v915_v21 }
  0x35   : > { %832 = vmatprep.subr.bf16.mxu0 %v916_v22  ;;  %860 = vmatprep.subr.bf16.mxu1 %v916_v22 }
  0x38   : > { %833 = vmatpush3.bf16.msra.mxu0 %v916_v22  ;;  %868 = vmatpush3.bf16.msra.mxu1 %v916_v22 }
  0x39   : > { %834 = vmatprep.subr.bf16.mxu0 %v917_v23  ;;  %861 = vmatprep.subr.bf16.mxu1 %v917_v23 }
  0x3c   : > { %835 = vmatpush3.bf16.msra.mxu0 %v917_v23  ;;  %869 = vmatpush3.bf16.msra.mxu1 %v917_v23 }
  0x3d   : > { %836 = vmatprep.subr.bf16.mxu0 %v918_v24  ;;  %862 = vmatprep.subr.bf16.mxu1 %v918_v24 }
  0x40   : > { %837 = vmatpush3.bf16.msra.mxu0 %v918_v24  ;;  %870 = vmatpush3.bf16.msra.mxu1 %v918_v24 }
  0x41   : > { %838 = vmatprep.subr.bf16.mxu0 %v919_v25  ;;  %863 = vmatprep.subr.bf16.mxu1 %v919_v25 }
  0x44   : > { %839 = vmatpush3.bf16.msra.mxu0 %v919_v25  ;;  %871 = vmatpush3.bf16.msra.mxu1 %v919_v25 }
  0x47   : > { %841 = vmatmul.mubr.bf16.vlgmr.msra.gmra.mrb[0].mxu0 %v922_v26  ;;  %849 = vmatmul.mubr.bf16.vlgmr.msra.gmra.mrb[0].mxu1 %v923_v27 }
  0x48   : > { %844 = vmatprep.mubr.bf16.mxu0 %v924_v28  ;;  %852 = vmatprep.mubr.bf16.mxu1 %v925_v29 }
  0x4f   : > { %845 = vmatmul.mubr.bf16.gmra.mrb[4].mxu0 %v926_v30  ;;  %853 = vmatmul.mubr.bf16.gmra.mrb[4].mxu1 %v927_v31 }
 0x11a   : > { %v842_v33 = vpop.f32.mrb[0].mxu0  ;;  %v850_v34 = vpop.f32.mrb[0].mxu1 }
 0x11b   : > { %v496_v35 = vadd.f32 %v842_v33, %v787_v32  ;;  %v528_v36 = vadd.f32 %v850_v34, %v787_v32  ;;  %v487_v37 = vpop.f32.mrb[1].mxu0  ;;  %v519_v38 = vpop.f32.mrb[1].mxu1 }
 0x11c   : > { %v488_v39 = vadd.f32 %v787_v32, %v487_v37  ;;  %v520_v40 = vadd.f32 %v787_v32, %v519_v38  ;;  %v843_v41 = vpop.f32.mrb[2].mxu0  ;;  %v851_v42 = vpop.f32.mrb[2].mxu1 }
 0x11d   : > { %v552_v43 = vmax.f32 %v496_v35, 0.0  ;;  %v560_v44 = vmax.f32 %v528_v36, 0.0  ;;  %v499_v45 = vadd.f32 %v843_v41, %v787_v32  ;;  %v531_v46 = vadd.f32 %v851_v42, %v787_v32  ;;  %v490_v47 = vpop.f32.mrb[3].mxu0  ;;  %v522_v48 = vpop.f32.mrb[3].mxu1 }
 0x11e   : > { %v550_v49 = vmax.f32 %v488_v39, 0.0  ;;  %v558_v50 = vmax.f32 %v520_v40, 0.0  ;;  %v491_v51 = vadd.f32 %v787_v32, %v490_v47  ;;  %v523_v52 = vadd.f32 %v787_v32, %v522_v48 }
 0x11f   : > { %568 = vst [vmem:[%s1100_s12 + $0x10] sm:$0xff] %v552_v43  ;;  %576 = vst [vmem:[%s1100_s12 + $0x50] sm:$0xff] %v560_v44  ;;  %v553_v53 = vmax.f32 %v499_v45, 0.0  ;;  %v561_v54 = vmax.f32 %v531_v46, 0.0 }
 0x120   : > { %566 = vst [vmem:[%s1100_s12] sm:$0xff] %v550_v49  ;;  %574 = vst [vmem:[%s1100_s12 + $0x40] sm:$0xff] %v558_v50  ;;  %v551_v55 = vmax.f32 %v491_v51, 0.0  ;;  %v559_v56 = vmax.f32 %v523_v52, 0.0 }
 0x121   : > { %569 = vst [vmem:[%s1100_s12 + $0x18] sm:$0xff] %v553_v53  ;;  %577 = vst [vmem:[%s1100_s12 + $0x58] sm:$0xff] %v561_v54 }
 0x122   : > { %567 = vst [vmem:[%s1100_s12 + $0x8] sm:$0xff] %v551_v55  ;;  %575 = vst [vmem:[%s1100_s12 + $0x48] sm:$0xff] %v559_v56  ;;  %v846_v57 = vpop.f32.mrb[4].mxu0  ;;  %v854_v58 = vpop.f32.mrb[4].mxu1 }
 0x123   : > { %v512_v59 = vadd.f32 %v846_v57, %v787_v32  ;;  %v544_v60 = vadd.f32 %v854_v58, %v787_v32  ;;  %v503_v61 = vpop.f32.mrb[5].mxu0  ;;  %v535_v62 = vpop.f32.mrb[5].mxu1 }
 0x124   : > { %v504_v63 = vadd.f32 %v787_v32, %v503_v61  ;;  %v536_v0 = vadd.f32 %v787_v32, %v535_v62  ;;  %v847_v1 = vpop.f32.mrb[6].mxu0  ;;  %v855_v2 = vpop.f32.mrb[6].mxu1  ;;  %588 = sbr.rel (!%p1023_p6) target bundleno = 308 (0x134), region = 77 }
 0x125   : > { %v556_v3 = vmax.f32 %v512_v59, 0.0  ;;  %v564_v4 = vmax.f32 %v544_v60, 0.0  ;;  %v515_v5 = vadd.f32 %v847_v1, %v787_v32  ;;  %v547_v6 = vadd.f32 %v855_v2, %v787_v32  ;;  %v506_v7 = vpop.f32.mrb[7].mxu0  ;;  %v538_v8 = vpop.f32.mrb[7].mxu1 }
 0x126   : > { %v554_v9 = vmax.f32 %v504_v63, 0.0  ;;  %v562_v10 = vmax.f32 %v536_v0, 0.0  ;;  %v507_v11 = vadd.f32 %v787_v32, %v506_v7  ;;  %v539_v12 = vadd.f32 %v787_v32, %v538_v8  ;;  %v655_v19 = vld [vmem:[%s1100_s12 + $0x10] sm:$0xff] (%p1023_p6) }
 0x127   : > { %572 = vst [vmem:[%s1100_s12 + $0x30] sm:$0xff] %v556_v3  ;;  %580 = vst [vmem:[%s1100_s12 + $0x70] sm:$0xff] %v564_v4  ;;  %v557_v13 = vmax.f32 %v515_v5, 0.0  ;;  %v565_v14 = vmax.f32 %v547_v6, 0.0  ;;  %v651_v17 = vld [vmem:[%s1100_s12] sm:$0xff] (%p1023_p6)  ;;  %v671_v27 = vld [vmem:[%s1100_s12 + $0x50] sm:$0xff] (%p1023_p6) }
 0x128   : > { %570 = vst [vmem:[%s1100_s12 + $0x20] sm:$0xff] %v554_v9  ;;  %578 = vst [vmem:[%s1100_s12 + $0x60] sm:$0xff] %v562_v10  ;;  %v555_v15 = vmax.f32 %v507_v11, 0.0  ;;  %v563_v16 = vmax.f32 %v539_v12, 0.0  ;;  %v657_v20 = vld [vmem:[%s1100_s12 + $0x18] sm:$0xff] (%p1023_p6)  ;;  %v667_v25 = vld [vmem:[%s1100_s12 + $0x40] sm:$0xff] (%p1023_p6) }
 0x129   : > { %573 = vst [vmem:[%s1100_s12 + $0x38] sm:$0xff] %v557_v13  ;;  %581 = vst [vmem:[%s1100_s12 + $0x78] sm:$0xff] %v565_v14  ;;  %v653_v18 = vld [vmem:[%s1100_s12 + $0x8] sm:$0xff] (%p1023_p6)  ;;  %v673_v28 = vld [vmem:[%s1100_s12 + $0x58] sm:$0xff] (%p1023_p6) }
 0x12a   : > { %571 = vst [vmem:[%s1100_s12 + $0x28] sm:$0xff] %v555_v15  ;;  %579 = vst [vmem:[%s1100_s12 + $0x68] sm:$0xff] %v563_v16  ;;  %v669_v26 = vld [vmem:[%s1100_s12 + $0x48] sm:$0xff] (%p1023_p6) }
 0x12b   : > { %652 = vst [vmem:[%s593_s11] sm:$0xff] %v651_v17  ;;  %654 = vst [vmem:[%s593_s11 + $0x10] sm:$0xff] %v653_v18 }
 0x12c   : > { %656 = vst [vmem:[%s593_s11 + $0x20] sm:$0xff] %v655_v19  ;;  %658 = vst [vmem:[%s593_s11 + $0x30] sm:$0xff] %v657_v20 }
 0x12d   : > { %668 = vst [vmem:[%s593_s11 + $0x80] sm:$0xff] %v667_v25  ;;  %670 = vst [vmem:[%s593_s11 + $0x90] sm:$0xff] %v669_v26 }
 0x12e   : > { %v663_v23 = vld [vmem:[%s1100_s12 + $0x30] sm:$0xff]  ;;  %672 = vst [vmem:[%s593_s11 + $0xa0] sm:$0xff] %v671_v27  ;;  %674 = vst [vmem:[%s593_s11 + $0xb0] sm:$0xff] %v673_v28 }
 0x12f   : > { %v659_v21 = vld [vmem:[%s1100_s12 + $0x20] sm:$0xff]  ;;  %664 = vst [vmem:[%s593_s11 + $0x60] sm:$0xff] %v663_v23  ;;  %v679_v31 = vld [vmem:[%s1100_s12 + $0x70] sm:$0xff] }
 0x130   : > { %660 = vst [vmem:[%s593_s11 + $0x40] sm:$0xff] %v659_v21  ;;  %v665_v24 = vld [vmem:[%s1100_s12 + $0x38] sm:$0xff]  ;;  %v675_v29 = vld [vmem:[%s1100_s12 + $0x60] sm:$0xff]  ;;  %680 = vst [vmem:[%s593_s11 + $0xe0] sm:$0xff] %v679_v31 }
 0x131   : > { %v661_v22 = vld [vmem:[%s1100_s12 + $0x28] sm:$0xff]  ;;  %666 = vst [vmem:[%s593_s11 + $0x70] sm:$0xff] %v665_v24  ;;  %676 = vst [vmem:[%s593_s11 + $0xc0] sm:$0xff] %v675_v29  ;;  %v681_v32 = vld [vmem:[%s1100_s12 + $0x78] sm:$0xff] }
 0x132   : > { %662 = vst [vmem:[%s593_s11 + $0x50] sm:$0xff] %v661_v22  ;;  %v677_v30 = vld [vmem:[%s1100_s12 + $0x68] sm:$0xff]  ;;  %682 = vst [vmem:[%s593_s11 + $0xf0] sm:$0xff] %v681_v32 }
 0x133   : > { %678 = vst [vmem:[%s593_s11 + $0xd0] sm:$0xff] %v677_v30 }
 0x134 PF: > { %s13_s16 = sadd.s32 1, %s966_s16   ;;  %s1160_s12 = smov %s954_s13 }
 0x135   : > { %p10_p12 = scmp.ge.s32.totalorder %s13_s16, 4   ;;  %s1161_s13 = smov %s1028_s22 }
 0x136   : > { %s1162_s14 = smov %s962_s15  ;;  %s1163_s15 = smov %s1165_s17 }
 0x137   :  { %12 = sbr.rel (!%p10_p12) target bundleno = 3 (0x3), region = 152 }

</bundles_post_ra>
